<compile_context>
chip_gen: v7x
topology: tpu7x:2x2x1
jax: 0.10.0
libtpu: 0.0.40
codegen_flags: <defaults>
</compile_context>

<pallas_src>
import functools
import math

import jax
import jax.numpy as jnp
from jax.experimental import pallas as pl
from jax.experimental.pallas import tpu as pltpu

_EPS = 1e-5
# Conservative scoped-VMEM request that is valid on v5e/v6e/v7x.  At realistic
# d_model/d_ff sizes re-derive the row tile against v7x's 64 MiB physical VMEM
# (2 buffers per streamed input + resident weights must fit).
_VMEM_LIMIT = 32 * 1024 * 1024


def _row_tile(n, max_tile=128):
    """Largest row tile <= max_tile that divides n (multiple of 8), else n."""
    if n <= max_tile:
        return n
    for t in range(max_tile, 7, -8):
        if n % t == 0:
            return t
    return n


# ----------------------------- Pallas kernels ------------------------------

def _linear_kernel(x_ref, w_ref, b_ref, o_ref, *, activation):
    y = jnp.dot(x_ref[...], w_ref[...], preferred_element_type=jnp.float32)
    y = y + b_ref[...]
    if activation == "relu":
        y = jnp.maximum(y, 0.0)
    o_ref[...] = y.astype(o_ref.dtype)


def linear(x2d, w, b, activation=None, out_dtype=None, block_rows=128):
    """x2d: [N, Din] (bf16), w: [Din, Dout] (bf16), b: [Dout] (f32)."""
    N, Din = x2d.shape
    Dout = w.shape[1]
    out_dtype = out_dtype or x2d.dtype
    tm = _row_tile(N, block_rows)
    return pl.pallas_call(
        functools.partial(_linear_kernel, activation=activation),
        grid=(N // tm,),
        in_specs=[
            pl.BlockSpec((tm, Din), lambda i: (i, 0)),      # streamed rows
            pl.BlockSpec((Din, Dout), lambda i: (0, 0)),    # resident weight
            pl.BlockSpec((1, Dout), lambda i: (0, 0)),
        ],
        out_specs=pl.BlockSpec((tm, Dout), lambda i: (i, 0)),
        out_shape=jax.ShapeDtypeStruct((N, Dout), out_dtype),
        compiler_params=pltpu.CompilerParams(
            dimension_semantics=("parallel",),
            vmem_limit_bytes=_VMEM_LIMIT),
    )(x2d, w, b.reshape(1, Dout))


def _linear_res_ln_kernel(x_ref, w_ref, b_ref, r_ref, g_ref, be_ref, o_ref, *, eps):
    # matmul + bias + residual add + LayerNorm fused epilogue (f32 statistics).
    y = jnp.dot(x_ref[...], w_ref[...], preferred_element_type=jnp.float32)
    z = r_ref[...].astype(jnp.float32) + y + b_ref[...]
    mu = jnp.mean(z, axis=-1, keepdims=True)
    var = jnp.mean(jnp.square(z - mu), axis=-1, keepdims=True)
    o_ref[...] = ((z - mu) * jax.lax.rsqrt(var + eps) * g_ref[...]
                  + be_ref[...]).astype(o_ref.dtype)


def linear_residual_layernorm(x2d, w, b, res2d, gamma, beta, block_rows=128):
    """LayerNorm(res2d + (x2d @ w + b)) — used for attention out-projection."""
    N, Din = x2d.shape
    Dout = w.shape[1]
    tm = _row_tile(N, block_rows)
    return pl.pallas_call(
        functools.partial(_linear_res_ln_kernel, eps=_EPS),
        grid=(N // tm,),
        in_specs=[
            pl.BlockSpec((tm, Din), lambda i: (i, 0)),
            pl.BlockSpec((Din, Dout), lambda i: (0, 0)),
            pl.BlockSpec((1, Dout), lambda i: (0, 0)),
            pl.BlockSpec((tm, Dout), lambda i: (i, 0)),     # residual rows
            pl.BlockSpec((1, Dout), lambda i: (0, 0)),
            pl.BlockSpec((1, Dout), lambda i: (0, 0)),
        ],
        out_specs=pl.BlockSpec((tm, Dout), lambda i: (i, 0)),
        out_shape=jax.ShapeDtypeStruct((N, Dout), res2d.dtype),
        compiler_params=pltpu.CompilerParams(
            dimension_semantics=("parallel",),
            vmem_limit_bytes=_VMEM_LIMIT),
    )(x2d, w, b.reshape(1, Dout), res2d, gamma.reshape(1, Dout),
      beta.reshape(1, Dout))


def _ffn_res_ln_kernel(x_ref, w1_ref, b1_ref, w2_ref, b2_ref, g_ref, be_ref,
                       o_ref, *, eps):
    # Fused FFN: relu(x@w1+b1) @ w2 + b2, then +residual(x) and LayerNorm.
    x = x_ref[...]
    h = jnp.dot(x, w1_ref[...], preferred_element_type=jnp.float32) + b1_ref[...]
    h = jnp.maximum(h, 0.0).astype(w2_ref.dtype)
    y = jnp.dot(h, w2_ref[...], preferred_element_type=jnp.float32) + b2_ref[...]
    z = x.astype(jnp.float32) + y
    mu = jnp.mean(z, axis=-1, keepdims=True)
    var = jnp.mean(jnp.square(z - mu), axis=-1, keepdims=True)
    o_ref[...] = ((z - mu) * jax.lax.rsqrt(var + eps) * g_ref[...]
                  + be_ref[...]).astype(o_ref.dtype)


def ffn_residual_layernorm(x2d, w1, b1, w2, b2, gamma, beta, block_rows=128):
    N, D = x2d.shape
    Dff = w1.shape[1]
    tm = _row_tile(N, block_rows)
    return pl.pallas_call(
        functools.partial(_ffn_res_ln_kernel, eps=_EPS),
        grid=(N // tm,),
        in_specs=[
            pl.BlockSpec((tm, D), lambda i: (i, 0)),
            pl.BlockSpec((D, Dff), lambda i: (0, 0)),
            pl.BlockSpec((1, Dff), lambda i: (0, 0)),
            pl.BlockSpec((Dff, D), lambda i: (0, 0)),
            pl.BlockSpec((1, D), lambda i: (0, 0)),
            pl.BlockSpec((1, D), lambda i: (0, 0)),
            pl.BlockSpec((1, D), lambda i: (0, 0)),
        ],
        out_specs=pl.BlockSpec((tm, D), lambda i: (i, 0)),
        out_shape=jax.ShapeDtypeStruct((N, D), x2d.dtype),
        compiler_params=pltpu.CompilerParams(
            dimension_semantics=("parallel",),
            vmem_limit_bytes=_VMEM_LIMIT),
    )(x2d, w1, b1.reshape(1, Dff), w2, b2.reshape(1, D),
      gamma.reshape(1, D), beta.reshape(1, D))


def _ln_kernel(x_ref, g_ref, b_ref, o_ref, *, eps):
    z = x_ref[...].astype(jnp.float32)
    mu = jnp.mean(z, axis=-1, keepdims=True)
    var = jnp.mean(jnp.square(z - mu), axis=-1, keepdims=True)
    o_ref[...] = ((z - mu) * jax.lax.rsqrt(var + eps) * g_ref[...]
                  + b_ref[...]).astype(o_ref.dtype)


def layernorm(x2d, gamma, beta, block_rows=128):
    N, D = x2d.shape
    tm = _row_tile(N, block_rows)
    return pl.pallas_call(
        functools.partial(_ln_kernel, eps=_EPS),
        grid=(N // tm,),
        in_specs=[pl.BlockSpec((tm, D), lambda i: (i, 0)),
                  pl.BlockSpec((1, D), lambda i: (0, 0)),
                  pl.BlockSpec((1, D), lambda i: (0, 0))],
        out_specs=pl.BlockSpec((tm, D), lambda i: (i, 0)),
        out_shape=jax.ShapeDtypeStruct((N, D), x2d.dtype),
        compiler_params=pltpu.CompilerParams(
            dimension_semantics=("parallel",),
            vmem_limit_bytes=_VMEM_LIMIT),
    )(x2d, gamma.reshape(1, D), beta.reshape(1, D))


def _mha_kernel(q_ref, k_ref, v_ref, o_ref, *, scale):
    # Blocks: q [1, H, L, dk], k/v [1, H, S, dk]; all heads batched in one
    # einsum so the MXU sees [H,L,dk] x [H,S,dk] instead of dk-wide slivers.
    q = q_ref[0]
    k = k_ref[0]
    v = v_ref[0]
    s = jnp.einsum("hqd,hkd->hqk", q, k,
                   preferred_element_type=jnp.float32) * scale
    m = jnp.max(s, axis=-1, keepdims=True)
    e = jnp.exp(s - m)                                    # f32 softmax math
    p = e * pl.reciprocal(jnp.sum(e, axis=-1, keepdims=True), approx=True)
    o = jnp.einsum("hqk,hkd->hqd", p.astype(v.dtype), v,
                   preferred_element_type=jnp.float32)
    o_ref[0] = o.astype(o_ref.dtype)


def multihead_attention(q, k, v, n_heads):
    """q: [B, L, D], k/v: [B, S, D] (bf16) -> softmax(QK^T/sqrt(dk)) V."""
    B, L, D = q.shape
    S = k.shape[1]
    dk = D // n_heads
    scale = 1.0 / math.sqrt(dk)
    qh = q.reshape(B, L, n_heads, dk).transpose(0, 2, 1, 3)   # [B, H, L, dk]
    kh = k.reshape(B, S, n_heads, dk).transpose(0, 2, 1, 3)
    vh = v.reshape(B, S, n_heads, dk).transpose(0, 2, 1, 3)
    out = pl.pallas_call(
        functools.partial(_mha_kernel, scale=scale),
        grid=(B,),
        in_specs=[pl.BlockSpec((1, n_heads, L, dk), lambda b: (b, 0, 0, 0)),
                  pl.BlockSpec((1, n_heads, S, dk), lambda b: (b, 0, 0, 0)),
                  pl.BlockSpec((1, n_heads, S, dk), lambda b: (b, 0, 0, 0))],
        out_specs=pl.BlockSpec((1, n_heads, L, dk), lambda b: (b, 0, 0, 0)),
        out_shape=jax.ShapeDtypeStruct((B, n_heads, L, dk), q.dtype),
        compiler_params=pltpu.CompilerParams(
            dimension_semantics=("parallel",),
            vmem_limit_bytes=_VMEM_LIMIT),
    )(qh, kh, vh)
    return out.transpose(0, 2, 1, 3).reshape(B, L, D)


# --------------------------- model-level wrappers ---------------------------

def self_attention_block(p, x, n_heads):
    """norm1(x + SelfAttn(x,x,x)): fused QKV proj -> MHA -> fused out+res+LN."""
    B, L, D = x.shape
    x2d = x.reshape(B * L, D)
    qkv = linear(x2d, p["wqkv"], p["bqkv"])                   # [N, 3D]
    q, k, v = jnp.split(qkv.reshape(B, L, 3 * D), 3, axis=-1)
    attn = multihead_attention(q, k, v, n_heads)              # [B, L, D]
    out = linear_residual_layernorm(attn.reshape(B * L, D), p["wo"], p["bo"],
                                    x2d, p["ln_g"], p["ln_b"])
    return out.reshape(B, L, D)


def cross_attention_block(p, x, cross, n_heads):
    """norm2(x + CrossAttn(x, cross, cross)): fused KV proj on cross."""
    B, L, D = x.shape
    S = cross.shape[1]
    x2d = x.reshape(B * L, D)
    q = linear(x2d, p["wq"], p["bq"]).reshape(B, L, D)
    kv = linear(cross.reshape(B * S, D), p["wkv"], p["bkv"]).reshape(B, S, 2 * D)
    k, v = jnp.split(kv, 2, axis=-1)
    attn = multihead_attention(q, k, v, n_heads)
    out = linear_residual_layernorm(attn.reshape(B * L, D), p["wo"], p["bo"],
                                    x2d, p["ln_g"], p["ln_b"])
    return out.reshape(B, L, D)


def decoder_layer(p, x, cross, n_heads):
    x = self_attention_block(p["self_attn"], x, n_heads)            # norm1
    x = cross_attention_block(p["cross_attn"], x, cross, n_heads)   # norm2
    B, L, D = x.shape
    y = ffn_residual_layernorm(x.reshape(B * L, D), p["w1"], p["b1"],
                               p["w2"], p["b2"], p["norm3_g"], p["norm3_b"])
    return y.reshape(B, L, D)                                       # norm3


def decoder_forward(params, x, cross, n_heads):
    x = x.astype(jnp.bfloat16)          # bf16 activations for the MXU
    cross = cross.astype(jnp.bfloat16)
    for layer_p in params["layers"]:
        x = decoder_layer(layer_p, x, cross, n_heads)
    B, L, D = x.shape
    x2d = layernorm(x.reshape(B * L, D), params["norm_g"], params["norm_b"])
    out = linear(x2d, params["proj_w"], params["proj_b"],
                 out_dtype=jnp.float32)
    return out.reshape(B, L, -1)


# ------------------------------ param init ----------------------------------

def _init_self_attn(key, d_model):
    ks = jax.random.split(key, 4)
    s = 0.05
    wq = s * jax.random.normal(ks[0], (d_model, d_model), jnp.float32)
    wk = s * jax.random.normal(ks[1], (d_model, d_model), jnp.float32)
    wv = s * jax.random.normal(ks[2], (d_model, d_model), jnp.float32)
    return {
        "wqkv": jnp.concatenate([wq, wk, wv], axis=1).astype(jnp.bfloat16),
        "bqkv": jnp.zeros((3 * d_model,), jnp.float32),
        "wo": (s * jax.random.normal(ks[3], (d_model, d_model),
                                     jnp.float32)).astype(jnp.bfloat16),
        "bo": jnp.zeros((d_model,), jnp.float32),
        "ln_g": jnp.ones((d_model,), jnp.float32),   # norm1
        "ln_b": jnp.zeros((d_model,), jnp.float32),
    }


def _init_cross_attn(key, d_model):
    ks = jax.random.split(key, 4)
    s = 0.05
    wk = s * jax.random.normal(ks[0], (d_model, d_model), jnp.float32)
    wv = s * jax.random.normal(ks[1], (d_model, d_model), jnp.float32)
    return {
        "wq": (s * jax.random.normal(ks[2], (d_model, d_model),
                                     jnp.float32)).astype(jnp.bfloat16),
        "bq": jnp.zeros((d_model,), jnp.float32),
        "wkv": jnp.concatenate([wk, wv], axis=1).astype(jnp.bfloat16),
        "bkv": jnp.zeros((2 * d_model,), jnp.float32),
        "wo": (s * jax.random.normal(ks[3], (d_model, d_model),
                                     jnp.float32)).astype(jnp.bfloat16),
        "bo": jnp.zeros((d_model,), jnp.float32),
        "ln_g": jnp.ones((d_model,), jnp.float32),   # norm2
        "ln_b": jnp.zeros((d_model,), jnp.float32),
    }


def _init_layer(key, d_model, d_ff):
    ks = jax.random.split(key, 4)
    s = 0.05
    return {
        "self_attn": _init_self_attn(ks[0], d_model),
        "cross_attn": _init_cross_attn(ks[1], d_model),
        "w1": (s * jax.random.normal(ks[2], (d_model, d_ff),
                                     jnp.float32)).astype(jnp.bfloat16),
        "b1": jnp.zeros((d_ff,), jnp.float32),
        "w2": (s * jax.random.normal(ks[3], (d_ff, d_model),
                                     jnp.float32)).astype(jnp.bfloat16),
        "b2": jnp.zeros((d_model,), jnp.float32),
        "norm3_g": jnp.ones((d_model,), jnp.float32),
        "norm3_b": jnp.zeros((d_model,), jnp.float32),
    }


def init_decoder_params(key, n_layers, d_model, d_ff, c_out):
    ks = jax.random.split(key, n_layers + 1)
    layers = [_init_layer(ks[i], d_model, d_ff) for i in range(n_layers)]
    s = 0.05
    return {
        "layers": layers,
        "norm_g": jnp.ones((d_model,), jnp.float32),
        "norm_b": jnp.zeros((d_model,), jnp.float32),
        "proj_w": (s * jax.random.normal(ks[-1], (d_model, c_out),
                                         jnp.float32)).astype(jnp.bfloat16),
        "proj_b": jnp.zeros((c_out,), jnp.float32),
    }


# --------------------------------- main --------------------------------------

if __name__ == "__main__":
    B, L, S = 2, 96, 128       # batch, decoder seq, encoder (cross) seq
    D, H, DFF, C_OUT = 128, 4, 256, 7
    N_LAYERS = 2

    key = jax.random.PRNGKey(0)
    kx, kc, kp = jax.random.split(key, 3)
    x = jax.random.normal(kx, (B, L, D), jnp.float32)
    cross = jax.random.normal(kc, (B, S, D), jnp.float32)
    params = init_decoder_params(kp, N_LAYERS, D, DFF, C_OUT)

    fwd = jax.jit(functools.partial(decoder_forward, n_heads=H))
    out = fwd(params, x, cross)
    out = jax.block_until_ready(out)
    assert out.shape == (B, L, C_OUT), out.shape
    assert bool(jnp.all(jnp.isfinite(out)))
    print("KERNEL_OK")
</pallas_src>

<mosaic_0001>
module attributes {stable_mosaic.version = 11 : i64} {
  func.func @_linear_kernel(%arg0: i32, %arg1: memref<96x128xbf16, #tpu.memory_space<vmem>>, %arg2: memref<128x384xbf16, #tpu.memory_space<vmem>>, %arg3: memref<1x384xf32, #tpu.memory_space<vmem>>, %arg4: memref<96x384xbf16, #tpu.memory_space<vmem>>) attributes {dimension_semantics = [#tpu.dimension_semantics<parallel>], iteration_bounds = array<i64: 2>, scalar_prefetch = 0 : i64, scratch_operands = 0 : i64, tpu.core_type = #tpu.core_type<tc>, window_params = [{transform_indices = @transform_0, window_bounds = array<i64: 96, 128>}, {pipeline_mode = #tpu.pipeline_mode<synchronous>, transform_indices = @transform_1, window_bounds = array<i64: 128, 384>}, {pipeline_mode = #tpu.pipeline_mode<synchronous>, transform_indices = @transform_2, window_bounds = array<i64: 1, 384>}, {transform_indices = @transform_3, window_bounds = array<i64: 96, 384>}]} {
    %c0 = arith.constant 0 : index
    %c0_0 = arith.constant 0 : index
    %0 = vector.load %arg1[%c0, %c0_0] : memref<96x128xbf16, #tpu.memory_space<vmem>>, vector<96x128xbf16>
    %c0_1 = arith.constant 0 : index
    %c0_2 = arith.constant 0 : index
    %1 = vector.load %arg2[%c0_1, %c0_2] : memref<128x384xbf16, #tpu.memory_space<vmem>>, vector<128x384xbf16>
    %cst = arith.constant dense<0.000000e+00> : vector<96x384xf32>
    %2 = tpu.matmul %0, %1, %cst {dimension_numbers = #tpu.dot_dimension_numbers<[1], [0], [0], [1], [0, 0, 1, 1], [], []>} : vector<96x128xbf16>, vector<128x384xbf16>, vector<96x384xf32> -> vector<96x384xf32>
    %c0_3 = arith.constant 0 : index
    %c0_4 = arith.constant 0 : index
    %3 = vector.load %arg3[%c0_3, %c0_4] : memref<1x384xf32, #tpu.memory_space<vmem>>, vector<1x384xf32>
    %4 = vector.broadcast %3 : vector<1x384xf32> to vector<96x384xf32>
    %5 = arith.addf %2, %4 : vector<96x384xf32>
    %6 = arith.truncf %5 : vector<96x384xf32> to vector<96x384xbf16>
    %c0_5 = arith.constant 0 : index
    %c0_6 = arith.constant 0 : index
    %7 = vector.load %arg4[%c0_5, %c0_6] : memref<96x384xbf16, #tpu.memory_space<vmem>>, vector<96x384xbf16>
    tpu.vector_store %arg4[%c0_5, %c0_6], %6 {strides = array<i32>} : memref<96x384xbf16, #tpu.memory_space<vmem>>, vector<96x384xbf16>,
    return
  }
  func.func @transform_0(%arg0: i32) -> (i32, i32) {
    %c0_i32 = arith.constant 0 : i32
    %c0_i32_0 = arith.constant 0 : i32
    return %arg0, %c0_i32 : i32, i32
  }
  func.func @transform_1(%arg0: i32) -> (i32, i32) {
    %c0_i32 = arith.constant 0 : i32
    %c0_i32_0 = arith.constant 0 : i32
    %c0_i32_1 = arith.constant 0 : i32
    return %c0_i32, %c0_i32_0 : i32, i32
  }
  func.func @transform_2(%arg0: i32) -> (i32, i32) {
    %c0_i32 = arith.constant 0 : i32
    %c0_i32_0 = arith.constant 0 : i32
    %c0_i32_1 = arith.constant 0 : i32
    return %c0_i32, %c0_i32_0 : i32, i32
  }
  func.func @transform_3(%arg0: i32) -> (i32, i32) {
    %c0_i32 = arith.constant 0 : i32
    %c0_i32_0 = arith.constant 0 : i32
    return %arg0, %c0_i32 : i32, i32
  }
}

module attributes {stable_mosaic.version = 11 : i64} {
  func.func @_mha_kernel(%arg0: i32, %arg1: memref<1x4x96x32xbf16, #tpu.memory_space<vmem>>, %arg2: memref<1x4x96x32xbf16, #tpu.memory_space<vmem>>, %arg3: memref<1x4x96x32xbf16, #tpu.memory_space<vmem>>, %arg4: memref<1x4x96x32xbf16, #tpu.memory_space<vmem>>) attributes {dimension_semantics = [#tpu.dimension_semantics<parallel>], iteration_bounds = array<i64: 2>, scalar_prefetch = 0 : i64, scratch_operands = 0 : i64, tpu.core_type = #tpu.core_type<tc>, window_params = [{transform_indices = @transform_0, window_bounds = array<i64: 1, 4, 96, 32>}, {transform_indices = @transform_1, window_bounds = array<i64: 1, 4, 96, 32>}, {transform_indices = @transform_2, window_bounds = array<i64: 1, 4, 96, 32>}, {transform_indices = @transform_3, window_bounds = array<i64: 1, 4, 96, 32>}]} {
    %c0 = arith.constant 0 : index
    %c0_0 = arith.constant 0 : index
    %c0_1 = arith.constant 0 : index
    %c0_2 = arith.constant 0 : index
    %0 = vector.load %arg1[%c0, %c0_0, %c0_1, %c0_2] : memref<1x4x96x32xbf16, #tpu.memory_space<vmem>>, vector<1x4x96x32xbf16>
    %1 = vector.shape_cast %0 : vector<1x4x96x32xbf16> to vector<4x96x32xbf16>
    %c0_3 = arith.constant 0 : index
    %c0_4 = arith.constant 0 : index
    %c0_5 = arith.constant 0 : index
    %c0_6 = arith.constant 0 : index
    %2 = vector.load %arg2[%c0_3, %c0_4, %c0_5, %c0_6] : memref<1x4x96x32xbf16, #tpu.memory_space<vmem>>, vector<1x4x96x32xbf16>
    %3 = vector.shape_cast %2 : vector<1x4x96x32xbf16> to vector<4x96x32xbf16>
    %c0_7 = arith.constant 0 : index
    %c0_8 = arith.constant 0 : index
    %c0_9 = arith.constant 0 : index
    %c0_10 = arith.constant 0 : index
    %4 = vector.load %arg3[%c0_7, %c0_8, %c0_9, %c0_10] : memref<1x4x96x32xbf16, #tpu.memory_space<vmem>>, vector<1x4x96x32xbf16>
    %5 = vector.shape_cast %4 : vector<1x4x96x32xbf16> to vector<4x96x32xbf16>
    "tpu.trace_start"() <{level = 10 : i32, message = "hqd,hkd->hqk"}> : () -> ()
    %cst = arith.constant dense<0.000000e+00> : vector<4x96x96xf32>
    %6 = tpu.matmul %1, %3, %cst {dimension_numbers = #tpu.dot_dimension_numbers<[2], [2], [1], [1], [0, 0, 0, 1, 1, 1], [0], [0]>} : vector<4x96x32xbf16>, vector<4x96x32xbf16>, vector<4x96x96xf32> -> vector<4x96x96xf32>
    "tpu.trace_stop"() : () -> ()
    %cst_11 = arith.constant 0.176776692 : f32
    %7 = vector.broadcast %cst_11 : f32 to vector<4x96x96xf32>
    %8 = arith.mulf %6, %7 : vector<4x96x96xf32>
    %cst_12 = arith.constant dense<0xFF800000> : vector<4x96xf32>
    %9 = vector.multi_reduction <maximumf>, %8, %cst_12 [2] : vector<4x96x96xf32> to vector<4x96xf32>
    %10 = vector.shape_cast %9 : vector<4x96xf32> to vector<4x96x1xf32>
    %11 = vector.broadcast %10 : vector<4x96x1xf32> to vector<4x96x96xf32>
    %12 = arith.subf %8, %11 : vector<4x96x96xf32>
    %13 = math.exp %12 : vector<4x96x96xf32>
    %cst_13 = arith.constant dense<0.000000e+00> : vector<4x96xf32>
    %14 = vector.multi_reduction <add>, %13, %cst_13 [2] : vector<4x96x96xf32> to vector<4x96xf32>
    %15 = vector.shape_cast %14 : vector<4x96xf32> to vector<4x96x1xf32>
    %16 = tpu.reciprocal %15 {approx = true} : vector<4x96x1xf32> -> vector<4x96x1xf32>
    %17 = vector.broadcast %16 : vector<4x96x1xf32> to vector<4x96x96xf32>
    %18 = arith.mulf %13, %17 : vector<4x96x96xf32>
    %19 = arith.truncf %18 : vector<4x96x96xf32> to vector<4x96x96xbf16>
    "tpu.trace_start"() <{level = 10 : i32, message = "hqk,hkd->hqd"}> : () -> ()
    %cst_14 = arith.constant dense<0.000000e+00> : vector<4x96x32xf32>
    %20 = tpu.matmul %19, %5, %cst_14 {dimension_numbers = #tpu.dot_dimension_numbers<[2], [1], [1], [2], [0, 0, 0, 1, 1, 2], [0], [0]>} : vector<4x96x96xbf16>, vector<4x96x32xbf16>, vector<4x96x32xf32> -> vector<4x96x32xf32>
    "tpu.trace_stop"() : () -> ()
    %21 = arith.truncf %20 : vector<4x96x32xf32> to vector<4x96x32xbf16>
    %c0_15 = arith.constant 0 : index
    %c0_16 = arith.constant 0 : index
    %c0_17 = arith.constant 0 : index
    %c0_18 = arith.constant 0 : index
    %22 = vector.load %arg4[%c0_15, %c0_16, %c0_17, %c0_18] : memref<1x4x96x32xbf16, #tpu.memory_space<vmem>>, vector<1x4x96x32xbf16>
    %23 = vector.shape_cast %22 : vector<1x4x96x32xbf16> to vector<4x96x32xbf16>
    %24 = vector.shape_cast %21 : vector<4x96x32xbf16> to vector<1x4x96x32xbf16>
    tpu.vector_store %arg4[%c0_15, %c0_16, %c0_17, %c0_18], %24 {strides = array<i32>} : memref<1x4x96x32xbf16, #tpu.memory_space<vmem>>, vector<1x4x96x32xbf16>,
    return
  }
  func.func @transform_0(%arg0: i32) -> (i32, i32, i32, i32) {
    %c0_i32 = arith.constant 0 : i32
    %c0_i32_0 = arith.constant 0 : i32
    %c0_i32_1 = arith.constant 0 : i32
    %c0_i32_2 = arith.constant 0 : i32
    return %arg0, %c0_i32, %c0_i32_0, %c0_i32_1 : i32, i32, i32, i32
  }
  func.func @transform_1(%arg0: i32) -> (i32, i32, i32, i32) {
    %c0_i32 = arith.constant 0 : i32
    %c0_i32_0 = arith.constant 0 : i32
    %c0_i32_1 = arith.constant 0 : i32
    %c0_i32_2 = arith.constant 0 : i32
    return %arg0, %c0_i32, %c0_i32_0, %c0_i32_1 : i32, i32, i32, i32
  }
  func.func @transform_2(%arg0: i32) -> (i32, i32, i32, i32) {
    %c0_i32 = arith.constant 0 : i32
    %c0_i32_0 = arith.constant 0 : i32
    %c0_i32_1 = arith.constant 0 : i32
    %c0_i32_2 = arith.constant 0 : i32
    return %arg0, %c0_i32, %c0_i32_0, %c0_i32_1 : i32, i32, i32, i32
  }
  func.func @transform_3(%arg0: i32) -> (i32, i32, i32, i32) {
    %c0_i32 = arith.constant 0 : i32
    %c0_i32_0 = arith.constant 0 : i32
    %c0_i32_1 = arith.constant 0 : i32
    %c0_i32_2 = arith.constant 0 : i32
    return %arg0, %c0_i32, %c0_i32_0, %c0_i32_1 : i32, i32, i32, i32
  }
}

module attributes {stable_mosaic.version = 11 : i64} {
  func.func @_linear_res_ln_kernel(%arg0: i32, %arg1: memref<96x128xbf16, #tpu.memory_space<vmem>>, %arg2: memref<128x128xbf16, #tpu.memory_space<vmem>>, %arg3: memref<1x128xf32, #tpu.memory_space<vmem>>, %arg4: memref<96x128xbf16, #tpu.memory_space<vmem>>, %arg5: memref<1x128xf32, #tpu.memory_space<vmem>>, %arg6: memref<1x128xf32, #tpu.memory_space<vmem>>, %arg7: memref<96x128xbf16, #tpu.memory_space<vmem>>) attributes {dimension_semantics = [#tpu.dimension_semantics<parallel>], iteration_bounds = array<i64: 2>, scalar_prefetch = 0 : i64, scratch_operands = 0 : i64, tpu.core_type = #tpu.core_type<tc>, window_params = [{transform_indices = @transform_0, window_bounds = array<i64: 96, 128>}, {pipeline_mode = #tpu.pipeline_mode<synchronous>, transform_indices = @transform_1, window_bounds = array<i64: 128, 128>}, {pipeline_mode = #tpu.pipeline_mode<synchronous>, transform_indices = @transform_2, window_bounds = array<i64: 1, 128>}, {transform_indices = @transform_3, window_bounds = array<i64: 96, 128>}, {pipeline_mode = #tpu.pipeline_mode<synchronous>, transform_indices = @transform_4, window_bounds = array<i64: 1, 128>}, {pipeline_mode = #tpu.pipeline_mode<synchronous>, transform_indices = @transform_5, window_bounds = array<i64: 1, 128>}, {transform_indices = @transform_6, window_bounds = array<i64: 96, 128>}]} {
    %c0 = arith.constant 0 : index
    %c0_0 = arith.constant 0 : index
    %0 = vector.load %arg1[%c0, %c0_0] : memref<96x128xbf16, #tpu.memory_space<vmem>>, vector<96x128xbf16>
    %c0_1 = arith.constant 0 : index
    %c0_2 = arith.constant 0 : index
    %1 = vector.load %arg2[%c0_1, %c0_2] : memref<128x128xbf16, #tpu.memory_space<vmem>>, vector<128x128xbf16>
    %cst = arith.constant dense<0.000000e+00> : vector<96x128xf32>
    %2 = tpu.matmul %0, %1, %cst {dimension_numbers = #tpu.dot_dimension_numbers<[1], [0], [0], [1], [0, 0, 1, 1], [], []>} : vector<96x128xbf16>, vector<128x128xbf16>, vector<96x128xf32> -> vector<96x128xf32>
    %c0_3 = arith.constant 0 : index
    %c0_4 = arith.constant 0 : index
    %3 = vector.load %arg4[%c0_3, %c0_4] : memref<96x128xbf16, #tpu.memory_space<vmem>>, vector<96x128xbf16>
    %4 = arith.extf %3 : vector<96x128xbf16> to vector<96x128xf32>
    %5 = arith.addf %4, %2 : vector<96x128xf32>
    %c0_5 = arith.constant 0 : index
    %c0_6 = arith.constant 0 : index
    %6 = vector.load %arg3[%c0_5, %c0_6] : memref<1x128xf32, #tpu.memory_space<vmem>>, vector<1x128xf32>
    %7 = vector.broadcast %6 : vector<1x128xf32> to vector<96x128xf32>
    %8 = arith.addf %5, %7 : vector<96x128xf32>
    %cst_7 = arith.constant dense<0.000000e+00> : vector<96xf32>
    %9 = vector.multi_reduction <add>, %8, %cst_7 [1] : vector<96x128xf32> to vector<96xf32>
    %10 = vector.shape_cast %9 : vector<96xf32> to vector<96x1xf32>
    %cst_8 = arith.constant 1.280000e+02 : f32
    %11 = vector.broadcast %cst_8 : f32 to vector<96x1xf32>
    %12 = arith.divf %10, %11 : vector<96x1xf32>
    %13 = vector.broadcast %12 : vector<96x1xf32> to vector<96x128xf32>
    %14 = arith.subf %8, %13 : vector<96x128xf32>
    %15 = arith.mulf %14, %14 : vector<96x128xf32>
    %cst_9 = arith.constant dense<0.000000e+00> : vector<96xf32>
    %16 = vector.multi_reduction <add>, %15, %cst_9 [1] : vector<96x128xf32> to vector<96xf32>
    %17 = vector.shape_cast %16 : vector<96xf32> to vector<96x1xf32>
    %cst_10 = arith.constant 1.280000e+02 : f32
    %18 = vector.broadcast %cst_10 : f32 to vector<96x1xf32>
    %19 = arith.divf %17, %18 : vector<96x1xf32>
    %20 = vector.broadcast %12 : vector<96x1xf32> to vector<96x128xf32>
    %21 = arith.subf %8, %20 : vector<96x128xf32>
    %cst_11 = arith.constant 9.99999974E-6 : f32
    %22 = vector.broadcast %cst_11 : f32 to vector<96x1xf32>
    %23 = arith.addf %19, %22 : vector<96x1xf32>
    %24 = math.rsqrt %23 : vector<96x1xf32>
    %25 = vector.broadcast %24 : vector<96x1xf32> to vector<96x128xf32>
    %26 = arith.mulf %21, %25 : vector<96x128xf32>
    %c0_12 = arith.constant 0 : index
    %c0_13 = arith.constant 0 : index
    %27 = vector.load %arg5[%c0_12, %c0_13] : memref<1x128xf32, #tpu.memory_space<vmem>>, vector<1x128xf32>
    %28 = vector.broadcast %27 : vector<1x128xf32> to vector<96x128xf32>
    %29 = arith.mulf %26, %28 : vector<96x128xf32>
    %c0_14 = arith.constant 0 : index
    %c0_15 = arith.constant 0 : index
    %30 = vector.load %arg6[%c0_14, %c0_15] : memref<1x128xf32, #tpu.memory_space<vmem>>, vector<1x128xf32>
    %31 = vector.broadcast %30 : vector<1x128xf32> to vector<96x128xf32>
    %32 = arith.addf %29, %31 : vector<96x128xf32>
    %33 = arith.truncf %32 : vector<96x128xf32> to vector<96x128xbf16>
    %c0_16 = arith.constant 0 : index
    %c0_17 = arith.constant 0 : index
    %34 = vector.load %arg7[%c0_16, %c0_17] : memref<96x128xbf16, #tpu.memory_space<vmem>>, vector<96x128xbf16>
    tpu.vector_store %arg7[%c0_16, %c0_17], %33 {strides = array<i32>} : memref<96x128xbf16, #tpu.memory_space<vmem>>, vector<96x128xbf16>,
    return
  }
  func.func @transform_0(%arg0: i32) -> (i32, i32) {
    %c0_i32 = arith.constant 0 : i32
    %c0_i32_0 = arith.constant 0 : i32
    return %arg0, %c0_i32 : i32, i32
  }
  func.func @transform_1(%arg0: i32) -> (i32, i32) {
    %c0_i32 = arith.constant 0 : i32
    %c0_i32_0 = arith.constant 0 : i32
    %c0_i32_1 = arith.constant 0 : i32
    return %c0_i32, %c0_i32_0 : i32, i32
  }
  func.func @transform_2(%arg0: i32) -> (i32, i32) {
    %c0_i32 = arith.constant 0 : i32
    %c0_i32_0 = arith.constant 0 : i32
    %c0_i32_1 = arith.constant 0 : i32
    return %c0_i32, %c0_i32_0 : i32, i32
  }
  func.func @transform_3(%arg0: i32) -> (i32, i32) {
    %c0_i32 = arith.constant 0 : i32
    %c0_i32_0 = arith.constant 0 : i32
    return %arg0, %c0_i32 : i32, i32
  }
  func.func @transform_4(%arg0: i32) -> (i32, i32) {
    %c0_i32 = arith.constant 0 : i32
    %c0_i32_0 = arith.constant 0 : i32
    %c0_i32_1 = arith.constant 0 : i32
    return %c0_i32, %c0_i32_0 : i32, i32
  }
  func.func @transform_5(%arg0: i32) -> (i32, i32) {
    %c0_i32 = arith.constant 0 : i32
    %c0_i32_0 = arith.constant 0 : i32
    %c0_i32_1 = arith.constant 0 : i32
    return %c0_i32, %c0_i32_0 : i32, i32
  }
  func.func @transform_6(%arg0: i32) -> (i32, i32) {
    %c0_i32 = arith.constant 0 : i32
    %c0_i32_0 = arith.constant 0 : i32
    return %arg0, %c0_i32 : i32, i32
  }
}

module attributes {stable_mosaic.version = 11 : i64} {
  func.func @_linear_kernel(%arg0: i32, %arg1: memref<96x128xbf16, #tpu.memory_space<vmem>>, %arg2: memref<128x128xbf16, #tpu.memory_space<vmem>>, %arg3: memref<1x128xf32, #tpu.memory_space<vmem>>, %arg4: memref<96x128xbf16, #tpu.memory_space<vmem>>) attributes {dimension_semantics = [#tpu.dimension_semantics<parallel>], iteration_bounds = array<i64: 2>, scalar_prefetch = 0 : i64, scratch_operands = 0 : i64, tpu.core_type = #tpu.core_type<tc>, window_params = [{transform_indices = @transform_0, window_bounds = array<i64: 96, 128>}, {pipeline_mode = #tpu.pipeline_mode<synchronous>, transform_indices = @transform_1, window_bounds = array<i64: 128, 128>}, {pipeline_mode = #tpu.pipeline_mode<synchronous>, transform_indices = @transform_2, window_bounds = array<i64: 1, 128>}, {transform_indices = @transform_3, window_bounds = array<i64: 96, 128>}]} {
    %c0 = arith.constant 0 : index
    %c0_0 = arith.constant 0 : index
    %0 = vector.load %arg1[%c0, %c0_0] : memref<96x128xbf16, #tpu.memory_space<vmem>>, vector<96x128xbf16>
    %c0_1 = arith.constant 0 : index
    %c0_2 = arith.constant 0 : index
    %1 = vector.load %arg2[%c0_1, %c0_2] : memref<128x128xbf16, #tpu.memory_space<vmem>>, vector<128x128xbf16>
    %cst = arith.constant dense<0.000000e+00> : vector<96x128xf32>
    %2 = tpu.matmul %0, %1, %cst {dimension_numbers = #tpu.dot_dimension_numbers<[1], [0], [0], [1], [0, 0, 1, 1], [], []>} : vector<96x128xbf16>, vector<128x128xbf16>, vector<96x128xf32> -> vector<96x128xf32>
    %c0_3 = arith.constant 0 : index
    %c0_4 = arith.constant 0 : index
    %3 = vector.load %arg3[%c0_3, %c0_4] : memref<1x128xf32, #tpu.memory_space<vmem>>, vector<1x128xf32>
    %4 = vector.broadcast %3 : vector<1x128xf32> to vector<96x128xf32>
    %5 = arith.addf %2, %4 : vector<96x128xf32>
    %6 = arith.truncf %5 : vector<96x128xf32> to vector<96x128xbf16>
    %c0_5 = arith.constant 0 : index
    %c0_6 = arith.constant 0 : index
    %7 = vector.load %arg4[%c0_5, %c0_6] : memref<96x128xbf16, #tpu.memory_space<vmem>>, vector<96x128xbf16>
    tpu.vector_store %arg4[%c0_5, %c0_6], %6 {strides = array<i32>} : memref<96x128xbf16, #tpu.memory_space<vmem>>, vector<96x128xbf16>,
    return
  }
  func.func @transform_0(%arg0: i32) -> (i32, i32) {
    %c0_i32 = arith.constant 0 : i32
    %c0_i32_0 = arith.constant 0 : i32
    return %arg0, %c0_i32 : i32, i32
  }
  func.func @transform_1(%arg0: i32) -> (i32, i32) {
    %c0_i32 = arith.constant 0 : i32
    %c0_i32_0 = arith.constant 0 : i32
    %c0_i32_1 = arith.constant 0 : i32
    return %c0_i32, %c0_i32_0 : i32, i32
  }
  func.func @transform_2(%arg0: i32) -> (i32, i32) {
    %c0_i32 = arith.constant 0 : i32
    %c0_i32_0 = arith.constant 0 : i32
    %c0_i32_1 = arith.constant 0 : i32
    return %c0_i32, %c0_i32_0 : i32, i32
  }
  func.func @transform_3(%arg0: i32) -> (i32, i32) {
    %c0_i32 = arith.constant 0 : i32
    %c0_i32_0 = arith.constant 0 : i32
    return %arg0, %c0_i32 : i32, i32
  }
}

module attributes {stable_mosaic.version = 11 : i64} {
  func.func @_linear_kernel(%arg0: i32, %arg1: memref<128x128xbf16, #tpu.memory_space<vmem>>, %arg2: memref<128x256xbf16, #tpu.memory_space<vmem>>, %arg3: memref<1x256xf32, #tpu.memory_space<vmem>>, %arg4: memref<128x256xbf16, #tpu.memory_space<vmem>>) attributes {dimension_semantics = [#tpu.dimension_semantics<parallel>], iteration_bounds = array<i64: 2>, scalar_prefetch = 0 : i64, scratch_operands = 0 : i64, tpu.core_type = #tpu.core_type<tc>, window_params = [{transform_indices = @transform_0, window_bounds = array<i64: 128, 128>}, {pipeline_mode = #tpu.pipeline_mode<synchronous>, transform_indices = @transform_1, window_bounds = array<i64: 128, 256>}, {pipeline_mode = #tpu.pipeline_mode<synchronous>, transform_indices = @transform_2, window_bounds = array<i64: 1, 256>}, {transform_indices = @transform_3, window_bounds = array<i64: 128, 256>}]} {
    %c0 = arith.constant 0 : index
    %c0_0 = arith.constant 0 : index
    %0 = vector.load %arg1[%c0, %c0_0] : memref<128x128xbf16, #tpu.memory_space<vmem>>, vector<128x128xbf16>
    %c0_1 = arith.constant 0 : index
    %c0_2 = arith.constant 0 : index
    %1 = vector.load %arg2[%c0_1, %c0_2] : memref<128x256xbf16, #tpu.memory_space<vmem>>, vector<128x256xbf16>
    %cst = arith.constant dense<0.000000e+00> : vector<128x256xf32>
    %2 = tpu.matmul %0, %1, %cst {dimension_numbers = #tpu.dot_dimension_numbers<[1], [0], [0], [1], [0, 0, 1, 1], [], []>} : vector<128x128xbf16>, vector<128x256xbf16>, vector<128x256xf32> -> vector<128x256xf32>
    %c0_3 = arith.constant 0 : index
    %c0_4 = arith.constant 0 : index
    %3 = vector.load %arg3[%c0_3, %c0_4] : memref<1x256xf32, #tpu.memory_space<vmem>>, vector<1x256xf32>
    %4 = vector.broadcast %3 : vector<1x256xf32> to vector<128x256xf32>
    %5 = arith.addf %2, %4 : vector<128x256xf32>
    %6 = arith.truncf %5 : vector<128x256xf32> to vector<128x256xbf16>
    %c0_5 = arith.constant 0 : index
    %c0_6 = arith.constant 0 : index
    %7 = vector.load %arg4[%c0_5, %c0_6] : memref<128x256xbf16, #tpu.memory_space<vmem>>, vector<128x256xbf16>
    tpu.vector_store %arg4[%c0_5, %c0_6], %6 {strides = array<i32>} : memref<128x256xbf16, #tpu.memory_space<vmem>>, vector<128x256xbf16>,
    return
  }
  func.func @transform_0(%arg0: i32) -> (i32, i32) {
    %c0_i32 = arith.constant 0 : i32
    %c0_i32_0 = arith.constant 0 : i32
    return %arg0, %c0_i32 : i32, i32
  }
  func.func @transform_1(%arg0: i32) -> (i32, i32) {
    %c0_i32 = arith.constant 0 : i32
    %c0_i32_0 = arith.constant 0 : i32
    %c0_i32_1 = arith.constant 0 : i32
    return %c0_i32, %c0_i32_0 : i32, i32
  }
  func.func @transform_2(%arg0: i32) -> (i32, i32) {
    %c0_i32 = arith.constant 0 : i32
    %c0_i32_0 = arith.constant 0 : i32
    %c0_i32_1 = arith.constant 0 : i32
    return %c0_i32, %c0_i32_0 : i32, i32
  }
  func.func @transform_3(%arg0: i32) -> (i32, i32) {
    %c0_i32 = arith.constant 0 : i32
    %c0_i32_0 = arith.constant 0 : i32
    return %arg0, %c0_i32 : i32, i32
  }
}

module attributes {stable_mosaic.version = 11 : i64} {
  func.func @_mha_kernel(%arg0: i32, %arg1: memref<1x4x96x32xbf16, #tpu.memory_space<vmem>>, %arg2: memref<1x4x128x32xbf16, #tpu.memory_space<vmem>>, %arg3: memref<1x4x128x32xbf16, #tpu.memory_space<vmem>>, %arg4: memref<1x4x96x32xbf16, #tpu.memory_space<vmem>>) attributes {dimension_semantics = [#tpu.dimension_semantics<parallel>], iteration_bounds = array<i64: 2>, scalar_prefetch = 0 : i64, scratch_operands = 0 : i64, tpu.core_type = #tpu.core_type<tc>, window_params = [{transform_indices = @transform_0, window_bounds = array<i64: 1, 4, 96, 32>}, {transform_indices = @transform_1, window_bounds = array<i64: 1, 4, 128, 32>}, {transform_indices = @transform_2, window_bounds = array<i64: 1, 4, 128, 32>}, {transform_indices = @transform_3, window_bounds = array<i64: 1, 4, 96, 32>}]} {
    %c0 = arith.constant 0 : index
    %c0_0 = arith.constant 0 : index
    %c0_1 = arith.constant 0 : index
    %c0_2 = arith.constant 0 : index
    %0 = vector.load %arg1[%c0, %c0_0, %c0_1, %c0_2] : memref<1x4x96x32xbf16, #tpu.memory_space<vmem>>, vector<1x4x96x32xbf16>
    %1 = vector.shape_cast %0 : vector<1x4x96x32xbf16> to vector<4x96x32xbf16>
    %c0_3 = arith.constant 0 : index
    %c0_4 = arith.constant 0 : index
    %c0_5 = arith.constant 0 : index
    %c0_6 = arith.constant 0 : index
    %2 = vector.load %arg2[%c0_3, %c0_4, %c0_5, %c0_6] : memref<1x4x128x32xbf16, #tpu.memory_space<vmem>>, vector<1x4x128x32xbf16>
    %3 = vector.shape_cast %2 : vector<1x4x128x32xbf16> to vector<4x128x32xbf16>
    %c0_7 = arith.constant 0 : index
    %c0_8 = arith.constant 0 : index
    %c0_9 = arith.constant 0 : index
    %c0_10 = arith.constant 0 : index
    %4 = vector.load %arg3[%c0_7, %c0_8, %c0_9, %c0_10] : memref<1x4x128x32xbf16, #tpu.memory_space<vmem>>, vector<1x4x128x32xbf16>
    %5 = vector.shape_cast %4 : vector<1x4x128x32xbf16> to vector<4x128x32xbf16>
    "tpu.trace_start"() <{level = 10 : i32, message = "hqd,hkd->hqk"}> : () -> ()
    %cst = arith.constant dense<0.000000e+00> : vector<4x96x128xf32>
    %6 = tpu.matmul %1, %3, %cst {dimension_numbers = #tpu.dot_dimension_numbers<[2], [2], [1], [1], [0, 0, 0, 1, 1, 1], [0], [0]>} : vector<4x96x32xbf16>, vector<4x128x32xbf16>, vector<4x96x128xf32> -> vector<4x96x128xf32>
    "tpu.trace_stop"() : () -> ()
    %cst_11 = arith.constant 0.176776692 : f32
    %7 = vector.broadcast %cst_11 : f32 to vector<4x96x128xf32>
    %8 = arith.mulf %6, %7 : vector<4x96x128xf32>
    %cst_12 = arith.constant dense<0xFF800000> : vector<4x96xf32>
    %9 = vector.multi_reduction <maximumf>, %8, %cst_12 [2] : vector<4x96x128xf32> to vector<4x96xf32>
    %10 = vector.shape_cast %9 : vector<4x96xf32> to vector<4x96x1xf32>
    %11 = vector.broadcast %10 : vector<4x96x1xf32> to vector<4x96x128xf32>
    %12 = arith.subf %8, %11 : vector<4x96x128xf32>
    %13 = math.exp %12 : vector<4x96x128xf32>
    %cst_13 = arith.constant dense<0.000000e+00> : vector<4x96xf32>
    %14 = vector.multi_reduction <add>, %13, %cst_13 [2] : vector<4x96x128xf32> to vector<4x96xf32>
    %15 = vector.shape_cast %14 : vector<4x96xf32> to vector<4x96x1xf32>
    %16 = tpu.reciprocal %15 {approx = true} : vector<4x96x1xf32> -> vector<4x96x1xf32>
    %17 = vector.broadcast %16 : vector<4x96x1xf32> to vector<4x96x128xf32>
    %18 = arith.mulf %13, %17 : vector<4x96x128xf32>
    %19 = arith.truncf %18 : vector<4x96x128xf32> to vector<4x96x128xbf16>
    "tpu.trace_start"() <{level = 10 : i32, message = "hqk,hkd->hqd"}> : () -> ()
    %cst_14 = arith.constant dense<0.000000e+00> : vector<4x96x32xf32>
    %20 = tpu.matmul %19, %5, %cst_14 {dimension_numbers = #tpu.dot_dimension_numbers<[2], [1], [1], [2], [0, 0, 0, 1, 1, 2], [0], [0]>} : vector<4x96x128xbf16>, vector<4x128x32xbf16>, vector<4x96x32xf32> -> vector<4x96x32xf32>
    "tpu.trace_stop"() : () -> ()
    %21 = arith.truncf %20 : vector<4x96x32xf32> to vector<4x96x32xbf16>
    %c0_15 = arith.constant 0 : index
    %c0_16 = arith.constant 0 : index
    %c0_17 = arith.constant 0 : index
    %c0_18 = arith.constant 0 : index
    %22 = vector.load %arg4[%c0_15, %c0_16, %c0_17, %c0_18] : memref<1x4x96x32xbf16, #tpu.memory_space<vmem>>, vector<1x4x96x32xbf16>
    %23 = vector.shape_cast %22 : vector<1x4x96x32xbf16> to vector<4x96x32xbf16>
    %24 = vector.shape_cast %21 : vector<4x96x32xbf16> to vector<1x4x96x32xbf16>
    tpu.vector_store %arg4[%c0_15, %c0_16, %c0_17, %c0_18], %24 {strides = array<i32>} : memref<1x4x96x32xbf16, #tpu.memory_space<vmem>>, vector<1x4x96x32xbf16>,
    return
  }
  func.func @transform_0(%arg0: i32) -> (i32, i32, i32, i32) {
    %c0_i32 = arith.constant 0 : i32
    %c0_i32_0 = arith.constant 0 : i32
    %c0_i32_1 = arith.constant 0 : i32
    %c0_i32_2 = arith.constant 0 : i32
    return %arg0, %c0_i32, %c0_i32_0, %c0_i32_1 : i32, i32, i32, i32
  }
  func.func @transform_1(%arg0: i32) -> (i32, i32, i32, i32) {
    %c0_i32 = arith.constant 0 : i32
    %c0_i32_0 = arith.constant 0 : i32
    %c0_i32_1 = arith.constant 0 : i32
    %c0_i32_2 = arith.constant 0 : i32
    return %arg0, %c0_i32, %c0_i32_0, %c0_i32_1 : i32, i32, i32, i32
  }
  func.func @transform_2(%arg0: i32) -> (i32, i32, i32, i32) {
    %c0_i32 = arith.constant 0 : i32
    %c0_i32_0 = arith.constant 0 : i32
    %c0_i32_1 = arith.constant 0 : i32
    %c0_i32_2 = arith.constant 0 : i32
    return %arg0, %c0_i32, %c0_i32_0, %c0_i32_1 : i32, i32, i32, i32
  }
  func.func @transform_3(%arg0: i32) -> (i32, i32, i32, i32) {
    %c0_i32 = arith.constant 0 : i32
    %c0_i32_0 = arith.constant 0 : i32
    %c0_i32_1 = arith.constant 0 : i32
    %c0_i32_2 = arith.constant 0 : i32
    return %arg0, %c0_i32, %c0_i32_0, %c0_i32_1 : i32, i32, i32, i32
  }
}

module attributes {stable_mosaic.version = 11 : i64} {
  func.func @_ffn_res_ln_kernel(%arg0: i32, %arg1: memref<96x128xbf16, #tpu.memory_space<vmem>>, %arg2: memref<128x256xbf16, #tpu.memory_space<vmem>>, %arg3: memref<1x256xf32, #tpu.memory_space<vmem>>, %arg4: memref<256x128xbf16, #tpu.memory_space<vmem>>, %arg5: memref<1x128xf32, #tpu.memory_space<vmem>>, %arg6: memref<1x128xf32, #tpu.memory_space<vmem>>, %arg7: memref<1x128xf32, #tpu.memory_space<vmem>>, %arg8: memref<96x128xbf16, #tpu.memory_space<vmem>>) attributes {dimension_semantics = [#tpu.dimension_semantics<parallel>], iteration_bounds = array<i64: 2>, scalar_prefetch = 0 : i64, scratch_operands = 0 : i64, tpu.core_type = #tpu.core_type<tc>, window_params = [{transform_indices = @transform_0, window_bounds = array<i64: 96, 128>}, {pipeline_mode = #tpu.pipeline_mode<synchronous>, transform_indices = @transform_1, window_bounds = array<i64: 128, 256>}, {pipeline_mode = #tpu.pipeline_mode<synchronous>, transform_indices = @transform_2, window_bounds = array<i64: 1, 256>}, {pipeline_mode = #tpu.pipeline_mode<synchronous>, transform_indices = @transform_3, window_bounds = array<i64: 256, 128>}, {pipeline_mode = #tpu.pipeline_mode<synchronous>, transform_indices = @transform_4, window_bounds = array<i64: 1, 128>}, {pipeline_mode = #tpu.pipeline_mode<synchronous>, transform_indices = @transform_5, window_bounds = array<i64: 1, 128>}, {pipeline_mode = #tpu.pipeline_mode<synchronous>, transform_indices = @transform_6, window_bounds = array<i64: 1, 128>}, {transform_indices = @transform_7, window_bounds = array<i64: 96, 128>}]} {
    %c0 = arith.constant 0 : index
    %c0_0 = arith.constant 0 : index
    %0 = vector.load %arg1[%c0, %c0_0] : memref<96x128xbf16, #tpu.memory_space<vmem>>, vector<96x128xbf16>
    %c0_1 = arith.constant 0 : index
    %c0_2 = arith.constant 0 : index
    %1 = vector.load %arg2[%c0_1, %c0_2] : memref<128x256xbf16, #tpu.memory_space<vmem>>, vector<128x256xbf16>
    %cst = arith.constant dense<0.000000e+00> : vector<96x256xf32>
    %2 = tpu.matmul %0, %1, %cst {dimension_numbers = #tpu.dot_dimension_numbers<[1], [0], [0], [1], [0, 0, 1, 1], [], []>} : vector<96x128xbf16>, vector<128x256xbf16>, vector<96x256xf32> -> vector<96x256xf32>
    %c0_3 = arith.constant 0 : index
    %c0_4 = arith.constant 0 : index
    %3 = vector.load %arg3[%c0_3, %c0_4] : memref<1x256xf32, #tpu.memory_space<vmem>>, vector<1x256xf32>
    %4 = vector.broadcast %3 : vector<1x256xf32> to vector<96x256xf32>
    %5 = arith.addf %2, %4 : vector<96x256xf32>
    %cst_5 = arith.constant 0.000000e+00 : f32
    %6 = vector.broadcast %cst_5 : f32 to vector<96x256xf32>
    %7 = arith.maximumf %5, %6 : vector<96x256xf32>
    %8 = arith.truncf %7 : vector<96x256xf32> to vector<96x256xbf16>
    %c0_6 = arith.constant 0 : index
    %c0_7 = arith.constant 0 : index
    %9 = vector.load %arg4[%c0_6, %c0_7] : memref<256x128xbf16, #tpu.memory_space<vmem>>, vector<256x128xbf16>
    %cst_8 = arith.constant dense<0.000000e+00> : vector<96x128xf32>
    %10 = tpu.matmul %8, %9, %cst_8 {dimension_numbers = #tpu.dot_dimension_numbers<[1], [0], [0], [1], [0, 0, 1, 1], [], []>} : vector<96x256xbf16>, vector<256x128xbf16>, vector<96x128xf32> -> vector<96x128xf32>
    %c0_9 = arith.constant 0 : index
    %c0_10 = arith.constant 0 : index
    %11 = vector.load %arg5[%c0_9, %c0_10] : memref<1x128xf32, #tpu.memory_space<vmem>>, vector<1x128xf32>
    %12 = vector.broadcast %11 : vector<1x128xf32> to vector<96x128xf32>
    %13 = arith.addf %10, %12 : vector<96x128xf32>
    %14 = arith.extf %0 : vector<96x128xbf16> to vector<96x128xf32>
    %15 = arith.addf %14, %13 : vector<96x128xf32>
    %cst_11 = arith.constant dense<0.000000e+00> : vector<96xf32>
    %16 = vector.multi_reduction <add>, %15, %cst_11 [1] : vector<96x128xf32> to vector<96xf32>
    %17 = vector.shape_cast %16 : vector<96xf32> to vector<96x1xf32>
    %cst_12 = arith.constant 1.280000e+02 : f32
    %18 = vector.broadcast %cst_12 : f32 to vector<96x1xf32>
    %19 = arith.divf %17, %18 : vector<96x1xf32>
    %20 = vector.broadcast %19 : vector<96x1xf32> to vector<96x128xf32>
    %21 = arith.subf %15, %20 : vector<96x128xf32>
    %22 = arith.mulf %21, %21 : vector<96x128xf32>
    %cst_13 = arith.constant dense<0.000000e+00> : vector<96xf32>
    %23 = vector.multi_reduction <add>, %22, %cst_13 [1] : vector<96x128xf32> to vector<96xf32>
    %24 = vector.shape_cast %23 : vector<96xf32> to vector<96x1xf32>
    %cst_14 = arith.constant 1.280000e+02 : f32
    %25 = vector.broadcast %cst_14 : f32 to vector<96x1xf32>
    %26 = arith.divf %24, %25 : vector<96x1xf32>
    %27 = vector.broadcast %19 : vector<96x1xf32> to vector<96x128xf32>
    %28 = arith.subf %15, %27 : vector<96x128xf32>
    %cst_15 = arith.constant 9.99999974E-6 : f32
    %29 = vector.broadcast %cst_15 : f32 to vector<96x1xf32>
    %30 = arith.addf %26, %29 : vector<96x1xf32>
    %31 = math.rsqrt %30 : vector<96x1xf32>
    %32 = vector.broadcast %31 : vector<96x1xf32> to vector<96x128xf32>
    %33 = arith.mulf %28, %32 : vector<96x128xf32>
    %c0_16 = arith.constant 0 : index
    %c0_17 = arith.constant 0 : index
    %34 = vector.load %arg6[%c0_16, %c0_17] : memref<1x128xf32, #tpu.memory_space<vmem>>, vector<1x128xf32>
    %35 = vector.broadcast %34 : vector<1x128xf32> to vector<96x128xf32>
    %36 = arith.mulf %33, %35 : vector<96x128xf32>
    %c0_18 = arith.constant 0 : index
    %c0_19 = arith.constant 0 : index
    %37 = vector.load %arg7[%c0_18, %c0_19] : memref<1x128xf32, #tpu.memory_space<vmem>>, vector<1x128xf32>
    %38 = vector.broadcast %37 : vector<1x128xf32> to vector<96x128xf32>
    %39 = arith.addf %36, %38 : vector<96x128xf32>
    %40 = arith.truncf %39 : vector<96x128xf32> to vector<96x128xbf16>
    %c0_20 = arith.constant 0 : index
    %c0_21 = arith.constant 0 : index
    %41 = vector.load %arg8[%c0_20, %c0_21] : memref<96x128xbf16, #tpu.memory_space<vmem>>, vector<96x128xbf16>
    tpu.vector_store %arg8[%c0_20, %c0_21], %40 {strides = array<i32>} : memref<96x128xbf16, #tpu.memory_space<vmem>>, vector<96x128xbf16>,
    return
  }
  func.func @transform_0(%arg0: i32) -> (i32, i32) {
    %c0_i32 = arith.constant 0 : i32
    %c0_i32_0 = arith.constant 0 : i32
    return %arg0, %c0_i32 : i32, i32
  }
  func.func @transform_1(%arg0: i32) -> (i32, i32) {
    %c0_i32 = arith.constant 0 : i32
    %c0_i32_0 = arith.constant 0 : i32
    %c0_i32_1 = arith.constant 0 : i32
    return %c0_i32, %c0_i32_0 : i32, i32
  }
  func.func @transform_2(%arg0: i32) -> (i32, i32) {
    %c0_i32 = arith.constant 0 : i32
    %c0_i32_0 = arith.constant 0 : i32
    %c0_i32_1 = arith.constant 0 : i32
    return %c0_i32, %c0_i32_0 : i32, i32
  }
  func.func @transform_3(%arg0: i32) -> (i32, i32) {
    %c0_i32 = arith.constant 0 : i32
    %c0_i32_0 = arith.constant 0 : i32
    %c0_i32_1 = arith.constant 0 : i32
    return %c0_i32, %c0_i32_0 : i32, i32
  }
  func.func @transform_4(%arg0: i32) -> (i32, i32) {
    %c0_i32 = arith.constant 0 : i32
    %c0_i32_0 = arith.constant 0 : i32
    %c0_i32_1 = arith.constant 0 : i32
    return %c0_i32, %c0_i32_0 : i32, i32
  }
  func.func @transform_5(%arg0: i32) -> (i32, i32) {
    %c0_i32 = arith.constant 0 : i32
    %c0_i32_0 = arith.constant 0 : i32
    %c0_i32_1 = arith.constant 0 : i32
    return %c0_i32, %c0_i32_0 : i32, i32
  }
  func.func @transform_6(%arg0: i32) -> (i32, i32) {
    %c0_i32 = arith.constant 0 : i32
    %c0_i32_0 = arith.constant 0 : i32
    %c0_i32_1 = arith.constant 0 : i32
    return %c0_i32, %c0_i32_0 : i32, i32
  }
  func.func @transform_7(%arg0: i32) -> (i32, i32) {
    %c0_i32 = arith.constant 0 : i32
    %c0_i32_0 = arith.constant 0 : i32
    return %arg0, %c0_i32 : i32, i32
  }
}

module attributes {stable_mosaic.version = 11 : i64} {
  func.func @_ln_kernel(%arg0: i32, %arg1: memref<96x128xbf16, #tpu.memory_space<vmem>>, %arg2: memref<1x128xf32, #tpu.memory_space<vmem>>, %arg3: memref<1x128xf32, #tpu.memory_space<vmem>>, %arg4: memref<96x128xbf16, #tpu.memory_space<vmem>>) attributes {dimension_semantics = [#tpu.dimension_semantics<parallel>], iteration_bounds = array<i64: 2>, scalar_prefetch = 0 : i64, scratch_operands = 0 : i64, tpu.core_type = #tpu.core_type<tc>, window_params = [{transform_indices = @transform_0, window_bounds = array<i64: 96, 128>}, {pipeline_mode = #tpu.pipeline_mode<synchronous>, transform_indices = @transform_1, window_bounds = array<i64: 1, 128>}, {pipeline_mode = #tpu.pipeline_mode<synchronous>, transform_indices = @transform_2, window_bounds = array<i64: 1, 128>}, {transform_indices = @transform_3, window_bounds = array<i64: 96, 128>}]} {
    %c0 = arith.constant 0 : index
    %c0_0 = arith.constant 0 : index
    %0 = vector.load %arg1[%c0, %c0_0] : memref<96x128xbf16, #tpu.memory_space<vmem>>, vector<96x128xbf16>
    %1 = arith.extf %0 : vector<96x128xbf16> to vector<96x128xf32>
    %cst = arith.constant dense<0.000000e+00> : vector<96xf32>
    %2 = vector.multi_reduction <add>, %1, %cst [1] : vector<96x128xf32> to vector<96xf32>
    %3 = vector.shape_cast %2 : vector<96xf32> to vector<96x1xf32>
    %cst_1 = arith.constant 1.280000e+02 : f32
    %4 = vector.broadcast %cst_1 : f32 to vector<96x1xf32>
    %5 = arith.divf %3, %4 : vector<96x1xf32>
    %6 = vector.broadcast %5 : vector<96x1xf32> to vector<96x128xf32>
    %7 = arith.subf %1, %6 : vector<96x128xf32>
    %8 = arith.mulf %7, %7 : vector<96x128xf32>
    %cst_2 = arith.constant dense<0.000000e+00> : vector<96xf32>
    %9 = vector.multi_reduction <add>, %8, %cst_2 [1] : vector<96x128xf32> to vector<96xf32>
    %10 = vector.shape_cast %9 : vector<96xf32> to vector<96x1xf32>
    %cst_3 = arith.constant 1.280000e+02 : f32
    %11 = vector.broadcast %cst_3 : f32 to vector<96x1xf32>
    %12 = arith.divf %10, %11 : vector<96x1xf32>
    %13 = vector.broadcast %5 : vector<96x1xf32> to vector<96x128xf32>
    %14 = arith.subf %1, %13 : vector<96x128xf32>
    %cst_4 = arith.constant 9.99999974E-6 : f32
    %15 = vector.broadcast %cst_4 : f32 to vector<96x1xf32>
    %16 = arith.addf %12, %15 : vector<96x1xf32>
    %17 = math.rsqrt %16 : vector<96x1xf32>
    %18 = vector.broadcast %17 : vector<96x1xf32> to vector<96x128xf32>
    %19 = arith.mulf %14, %18 : vector<96x128xf32>
    %c0_5 = arith.constant 0 : index
    %c0_6 = arith.constant 0 : index
    %20 = vector.load %arg2[%c0_5, %c0_6] : memref<1x128xf32, #tpu.memory_space<vmem>>, vector<1x128xf32>
    %21 = vector.broadcast %20 : vector<1x128xf32> to vector<96x128xf32>
    %22 = arith.mulf %19, %21 : vector<96x128xf32>
    %c0_7 = arith.constant 0 : index
    %c0_8 = arith.constant 0 : index
    %23 = vector.load %arg3[%c0_7, %c0_8] : memref<1x128xf32, #tpu.memory_space<vmem>>, vector<1x128xf32>
    %24 = vector.broadcast %23 : vector<1x128xf32> to vector<96x128xf32>
    %25 = arith.addf %22, %24 : vector<96x128xf32>
    %26 = arith.truncf %25 : vector<96x128xf32> to vector<96x128xbf16>
    %c0_9 = arith.constant 0 : index
    %c0_10 = arith.constant 0 : index
    %27 = vector.load %arg4[%c0_9, %c0_10] : memref<96x128xbf16, #tpu.memory_space<vmem>>, vector<96x128xbf16>
    tpu.vector_store %arg4[%c0_9, %c0_10], %26 {strides = array<i32>} : memref<96x128xbf16, #tpu.memory_space<vmem>>, vector<96x128xbf16>,
    return
  }
  func.func @transform_0(%arg0: i32) -> (i32, i32) {
    %c0_i32 = arith.constant 0 : i32
    %c0_i32_0 = arith.constant 0 : i32
    return %arg0, %c0_i32 : i32, i32
  }
  func.func @transform_1(%arg0: i32) -> (i32, i32) {
    %c0_i32 = arith.constant 0 : i32
    %c0_i32_0 = arith.constant 0 : i32
    %c0_i32_1 = arith.constant 0 : i32
    return %c0_i32, %c0_i32_0 : i32, i32
  }
  func.func @transform_2(%arg0: i32) -> (i32, i32) {
    %c0_i32 = arith.constant 0 : i32
    %c0_i32_0 = arith.constant 0 : i32
    %c0_i32_1 = arith.constant 0 : i32
    return %c0_i32, %c0_i32_0 : i32, i32
  }
  func.func @transform_3(%arg0: i32) -> (i32, i32) {
    %c0_i32 = arith.constant 0 : i32
    %c0_i32_0 = arith.constant 0 : i32
    return %arg0, %c0_i32 : i32, i32
  }
}

module attributes {stable_mosaic.version = 11 : i64} {
  func.func @_linear_kernel(%arg0: i32, %arg1: memref<96x128xbf16, #tpu.memory_space<vmem>>, %arg2: memref<128x7xbf16, #tpu.memory_space<vmem>>, %arg3: memref<1x7xf32, #tpu.memory_space<vmem>>, %arg4: memref<96x7xf32, #tpu.memory_space<vmem>>) attributes {dimension_semantics = [#tpu.dimension_semantics<parallel>], iteration_bounds = array<i64: 2>, scalar_prefetch = 0 : i64, scratch_operands = 0 : i64, tpu.core_type = #tpu.core_type<tc>, window_params = [{transform_indices = @transform_0, window_bounds = array<i64: 96, 128>}, {pipeline_mode = #tpu.pipeline_mode<synchronous>, transform_indices = @transform_1, window_bounds = array<i64: 128, 7>}, {pipeline_mode = #tpu.pipeline_mode<synchronous>, transform_indices = @transform_2, window_bounds = array<i64: 1, 7>}, {transform_indices = @transform_3, window_bounds = array<i64: 96, 7>}]} {
    %c0 = arith.constant 0 : index
    %c0_0 = arith.constant 0 : index
    %0 = vector.load %arg1[%c0, %c0_0] : memref<96x128xbf16, #tpu.memory_space<vmem>>, vector<96x128xbf16>
    %c0_1 = arith.constant 0 : index
    %c0_2 = arith.constant 0 : index
    %1 = vector.load %arg2[%c0_1, %c0_2] : memref<128x7xbf16, #tpu.memory_space<vmem>>, vector<128x7xbf16>
    %cst = arith.constant dense<0.000000e+00> : vector<96x7xf32>
    %2 = tpu.matmul %0, %1, %cst {dimension_numbers = #tpu.dot_dimension_numbers<[1], [0], [0], [1], [0, 0, 1, 1], [], []>} : vector<96x128xbf16>, vector<128x7xbf16>, vector<96x7xf32> -> vector<96x7xf32>
    %c0_3 = arith.constant 0 : index
    %c0_4 = arith.constant 0 : index
    %3 = vector.load %arg3[%c0_3, %c0_4] : memref<1x7xf32, #tpu.memory_space<vmem>>, vector<1x7xf32>
    %4 = vector.broadcast %3 : vector<1x7xf32> to vector<96x7xf32>
    %5 = arith.addf %2, %4 : vector<96x7xf32>
    %c0_5 = arith.constant 0 : index
    %c0_6 = arith.constant 0 : index
    %6 = vector.load %arg4[%c0_5, %c0_6] : memref<96x7xf32, #tpu.memory_space<vmem>>, vector<96x7xf32>
    tpu.vector_store %arg4[%c0_5, %c0_6], %5 {strides = array<i32>} : memref<96x7xf32, #tpu.memory_space<vmem>>, vector<96x7xf32>,
    return
  }
  func.func @transform_0(%arg0: i32) -> (i32, i32) {
    %c0_i32 = arith.constant 0 : i32
    %c0_i32_0 = arith.constant 0 : i32
    return %arg0, %c0_i32 : i32, i32
  }
  func.func @transform_1(%arg0: i32) -> (i32, i32) {
    %c0_i32 = arith.constant 0 : i32
    %c0_i32_0 = arith.constant 0 : i32
    %c0_i32_1 = arith.constant 0 : i32
    return %c0_i32, %c0_i32_0 : i32, i32
  }
  func.func @transform_2(%arg0: i32) -> (i32, i32) {
    %c0_i32 = arith.constant 0 : i32
    %c0_i32_0 = arith.constant 0 : i32
    %c0_i32_1 = arith.constant 0 : i32
    return %c0_i32, %c0_i32_0 : i32, i32
  }
  func.func @transform_3(%arg0: i32) -> (i32, i32) {
    %c0_i32 = arith.constant 0 : i32
    %c0_i32_0 = arith.constant 0 : i32
    return %arg0, %c0_i32 : i32, i32
  }
}

</mosaic_0001>

<bundles_post_ra>
// kernel: decoder_forward.18
= control target key start
LH: loop header
LB: loop body
LE: loop exit
PB: predicated region body
PF: predicated region fallthrough
CT: control target
= control target key end

     0   :  { %s984_s12 = smov 0   ;;  %s1162_s0 = inlined_call_operand.vmem [shape: bf16[192,128], index: 0, kind: input, shape index: {}]   ;;  %s1163_s1 = inlined_call_operand.vmem [shape: bf16[128,384], index: 1, kind: input, shape index: {}]   ;;  %s1164_s2 = inlined_call_operand.vmem [shape: f32[1,384], index: 2, kind: input, shape index: {}]   ;;  %s1165_s3 = inlined_call_operand.vmem [shape: bf16[192,384], index: 3, kind: output, shape index: {}]  }
   0x1 LB: > { %s778_s13 = sadd.s32 4294967295, %s961_s12   ;;  %p782_p0 = scmp.ge.s32.totalorder %s961_s12, 1  ;;  %s961_s12 = sphi %s984_s12, %s13_s12  }
   0x2   : > { %p138_p1 = scmp.lt.s32.totalorder %s961_s12, 3 }
   0x4   : > { %p139_p2 = pnand %p782_p0, %p138_p1 }
   0x5   : > { %v917_v0 = vld [vmem:[%s1163_s1 + $0x4] ss:$12 sps:$4 sm:$0xff] (!%p139_p2)   ;;  %s163_s16 = smul.u32 (!%p139_p2), 12, %s778_s13  ;;  %v919_v1 = vld [vmem:[%s1163_s1] ss:$12 sps:$4 sm:$0xff] (!%p139_p2)   ;;  %v963_v2 = vmov (!%p139_p2), 0   ;;  %v223_v31 = vlaneseq (!%p139_p2) }
   0x6   : > { %142 = sbr.rel (%p139_p2) target bundleno = 298 (0x12a), region = 32  ;;  %434 = vmatprep.mubr.bf16.mxu0 (!%p139_p2), %v963_v2  ;;  %402 = vmatprep.subr.bf16.mxu0 (!%p139_p2), %v917_v0  ;;  %v920_v3 = vld [vmem:[%s1163_s1 + $0x1c] ss:$12 sps:$4 sm:$0xff] (!%p139_p2)   ;;  %v922_v4 = vld [vmem:[%s1163_s1 + $0x18] ss:$12 sps:$4 sm:$0xff] (!%p139_p2)  }
   0x7   : > { %p164_p3 = scmp.lt.s32.totalorder (!%p139_p2), %s163_s16, 23  ;;  %403 = vmatpush1.bf16.msra.mxu0 (!%p139_p2), %v919_v1  ;;  %v923_v5 = vld [vmem:[%s1163_s1 + $0x34] ss:$12 sps:$4 sm:$0xff] (!%p139_p2)   ;;  %v925_v6 = vld [vmem:[%s1163_s1 + $0x30] ss:$12 sps:$4 sm:$0xff] (!%p139_p2)   ;;  %v224_v32 = vshrl.u32 (!%p139_p2), %v223_v31, 7 }
   0x8   : > { %404 = vmatprep.subr.bf16.mxu0 (!%p139_p2), %v920_v3  ;;  %v926_v7 = vld [vmem:[%s1163_s1 + $0x4c] ss:$12 sps:$4 sm:$0xff] (!%p139_p2)   ;;  %v935_v8 = vld [vmem:[%s1163_s1 + $0x8] ss:$12 sps:$4 sm:$0xff] (!%p139_p2)   ;;  %v929_v11 = vld [vmem:[%s1163_s1 + $0x64] ss:$12 sps:$4 sm:$0xff] (!%p139_p2)  }
   0x9   : > { %v928_v9 = vld [vmem:[%s1163_s1 + $0x48] ss:$12 sps:$4 sm:$0xff] (!%p139_p2)   ;;  %879 = vmatprep.subr.bf16.mxu1 (!%p139_p2), %v935_v8  ;;  %v939_v10 = vld [vmem:[%s1163_s1 + $0x20] ss:$12 sps:$4 sm:$0xff] (!%p139_p2)   ;;  %v943_v13 = vld [vmem:[%s1163_s1 + $0x38] ss:$12 sps:$4 sm:$0xff] (!%p139_p2)  }
   0xa   : > { %880 = vmatpush3.bf16.msra.mxu1 (!%p139_p2), %v935_v8  ;;  %v931_v12 = vld [vmem:[%s1163_s1 + $0x60] ss:$12 sps:$4 sm:$0xff] (!%p139_p2)   ;;  %v932_v14 = vld [vmem:[%s1163_s1 + $0x7c] ss:$12 sps:$4 sm:$0xff] (!%p139_p2)   ;;  %v934_v17 = vld [vmem:[%s1163_s1 + $0x78] ss:$12 sps:$4 sm:$0xff] (!%p139_p2)  }
   0xb   : > { %405 = vmatpush1.bf16.msra.mxu0 (!%p139_p2), %v922_v4  ;;  %881 = vmatprep.subr.bf16.mxu1 (!%p139_p2), %v939_v10  ;;  %v945_v16 = vld [vmem:[%s1163_s1 + $0x50] ss:$12 sps:$4 sm:$0xff] (!%p139_p2)   ;;  %v936_v18 = vld [vmem:[%s1163_s1 + $0x94] ss:$12 sps:$4 sm:$0xff] (!%p139_p2)   ;;  %v940_v21 = vld [vmem:[%s1163_s1 + $0xac] ss:$12 sps:$4 sm:$0xff] (!%p139_p2)  }
   0xc   : > { %406 = vmatprep.subr.bf16.mxu0 (!%p139_p2), %v923_v5  ;;  %v946_v19 = vld [vmem:[%s1163_s1 + $0x68] ss:$12 sps:$4 sm:$0xff] (!%p139_p2)   ;;  %v938_v20 = vld [vmem:[%s1163_s1 + $0x90] ss:$12 sps:$4 sm:$0xff] (!%p139_p2)   ;;  %v948_v22 = vld [vmem:[%s1163_s1 + $0x80] ss:$12 sps:$4 sm:$0xff] (!%p139_p2)  }
   0xd   : > { %s1167_s16 = smov (!%p164_p3, %s163_s16), 23  ;;  %v942_v23 = vld [vmem:[%s1163_s1 + $0xa8] ss:$12 sps:$4 sm:$0xff]   ;;  %v949_v24 = vld [vmem:[%s1163_s1 + $0x98] ss:$12 sps:$4 sm:$0xff]   ;;  %v225_v33 = vsub.s32 0, %v224_v32 }
   0xe   : > { %s783_s4 = sshll.u32 %s1167_s16, 2  ;;  %882 = vmatpush3.bf16.msra.mxu1 %v939_v10  ;;  %v951_v25 = vld [vmem:[%s1163_s1 + $0xb0] ss:$12 sps:$4 sm:$0xff]   ;;  %v221_v34 = vld [vmem:[%s1164_s2] sm:$0x7]  ;;  %v229_v35 = vsub.s32 1, %v224_v32 }
   0xf   : > { %407 = vmatpush1.bf16.msra.mxu0 %v925_v6  ;;  %s1032_s14 = scalar_lea.vmem %s1162_s0, %s783_s4  ;;  %883 = vmatprep.subr.bf16.mxu1 %v943_v13  ;;  %v1087_v36 = vrot.slane %v221_v34, %v225_v33  ;;  %v233_v41 = vsub.s32 2, %v224_v32 }
  0x10   : > { %408 = vmatprep.subr.bf16.mxu0 %v926_v7  ;;  %v944_v15 = vld [vmem:[%s1032_s14] sm:$0xff]   ;;  %v947_v26 = vld [vmem:[%s1032_s14 + $0x8] sm:$0xff]   ;;  %v950_v27 = vld [vmem:[%s1032_s14 + $0x10] sm:$0xff]   ;;  %v1089_v37 = vrot.slane %v221_v34, %v229_v35 }
  0x11   : > { %895 = vmatprep.mubr.bf16.mxu1 %v944_v15  ;;  %v952_v28 = vld [vmem:[%s1032_s14 + $0x18] sm:$0xff]   ;;  %v953_v29 = vld [vmem:[%s1032_s14 + $0x20] sm:$0xff]   ;;  %v954_v30 = vld [vmem:[%s1032_s14 + $0x28] sm:$0xff]   ;;  %s907_s14 = smul.u32 12, %s1167_s16  ;;  %v1101_v48 = vrot.slane %v221_v34, %v233_v41 }
  0x12   : > { %884 = vmatpush3.bf16.msra.mxu1 %v943_v13 }
  0x13   : > { %409 = vmatpush1.bf16.msra.mxu0 %v928_v9  ;;  %885 = vmatprep.subr.bf16.mxu1 %v945_v16  ;;  %s1097_s22 = scalar_lea.vmem %s1165_s3, %s907_s14 }
  0x14   : > { %410 = vmatprep.subr.bf16.mxu0 %v929_v11 }
  0x16   : > { %886 = vmatpush3.bf16.msra.mxu1 %v945_v16 }
  0x17   : > { %411 = vmatpush1.bf16.msra.mxu0 %v931_v12  ;;  %887 = vmatprep.subr.bf16.mxu1 %v946_v19 }
  0x18   : > { %412 = vmatprep.subr.bf16.mxu0 %v932_v14 }
  0x1a   : > { %888 = vmatpush3.bf16.msra.mxu1 %v946_v19 }
  0x1b   : > { %413 = vmatpush1.bf16.msra.mxu0 %v934_v17  ;;  %889 = vmatprep.subr.bf16.mxu1 %v948_v22 }
  0x1c   : > { %414 = vmatprep.subr.bf16.mxu0 %v936_v18 }
  0x1e   : > { %890 = vmatpush3.bf16.msra.mxu1 %v948_v22 }
  0x1f   : > { %415 = vmatpush1.bf16.msra.mxu0 %v938_v20  ;;  %891 = vmatprep.subr.bf16.mxu1 %v949_v24 }
  0x20   : > { %416 = vmatprep.subr.bf16.mxu0 %v940_v21 }
  0x22   : > { %892 = vmatpush3.bf16.msra.mxu1 %v949_v24 }
  0x23   : > { %417 = vmatpush1.bf16.msra.mxu0 %v942_v23  ;;  %893 = vmatprep.subr.bf16.mxu1 %v951_v25 }
  0x26   : > { %435 = vmatmul.mubr.bf16.vlgmr.msra.gmra.mrb[0].mxu0 %v944_v15  ;;  %894 = vmatpush3.bf16.msra.mxu1 %v951_v25 }
  0x27   : > { %444 = vmatprep.mubr.bf16.mxu0 %v963_v2 }
  0x29   : > { %896 = vmatmul.mubr.bf16.vlgmr.msra.gmra.mrb[0].mxu1 %v947_v26 }
  0x2a   : > { %899 = vmatprep.mubr.bf16.mxu1 %v950_v27 }
  0x2e   : > { %445 = vmatmul.mubr.bf16.gmra.mrb[4].mxu0 %v947_v26 }
  0x2f   : > { %454 = vmatprep.mubr.bf16.mxu0 %v963_v2 }
  0x31   : > { %900 = vmatmul.mubr.bf16.gmra.mrb[4].mxu1 %v952_v28 }
  0x32   : > { %903 = vmatprep.mubr.bf16.mxu1 %v953_v29 }
  0x36   : > { %455 = vmatmul.mubr.bf16.gmra.mrb[8].mxu0 %v950_v27 }
  0x37   : > { %464 = vmatprep.mubr.bf16.mxu0 %v963_v2 }
  0x39   : > { %904 = vmatmul.mubr.bf16.gmra.mrb[8].mxu1 %v954_v30 }
  0x3e   : > { %465 = vmatmul.mubr.bf16.gmra.mrb[12].mxu0 %v952_v28 }
  0x3f   : > { %474 = vmatprep.mubr.bf16.mxu0 %v963_v2 }
  0x46   : > { %475 = vmatmul.mubr.bf16.gmra.mrb[16].mxu0 %v953_v29 }
  0x47   : > { %484 = vmatprep.mubr.bf16.mxu0 %v963_v2 }
  0x4e   : > { %485 = vmatmul.mubr.bf16.gmra.mrb[20].mxu0 %v954_v30 }
  0xf9   : > { %v436_v38 = vpop.f32.mrb[0].mxu0 }
  0xfa   : > { %v437_v39 = vadd.f32 %v436_v38, %v1087_v36  ;;  %v438_v40 = vpop.f32.mrb[1].mxu0 }
  0xfb   : > { %v439_v42 = vadd.f32 %v438_v40, %v1089_v37  ;;  %v440_v43 = vpop.f32.mrb[2].mxu0 }
  0xfc   : > { %v441_v44 = vadd.f32 %v440_v43, %v1087_v36  ;;  %v442_v45 = vpop.f32.mrb[3].mxu0  ;;  %v897_v51 = vpop.f32.mrb[0].mxu1 }
  0xfd   : > { %v841_v46 = vpack.c.bf16 %v439_v42, %v437_v39  ;;  %v443_v47 = vadd.f32 %v442_v45, %v1089_v37  ;;  %v538_v54 = vadd.f32 %v897_v51, %v1101_v48  ;;  %v529_v55 = vpop.f32.mrb[1].mxu1 }
  0xfe   : > { %v530_v58 = vadd.f32 %v529_v55, %v1101_v48  ;;  %v898_v59 = vpop.f32.mrb[2].mxu1 }
  0xff   : > { %696 = vst [vmem:[%s1097_s22] sm:$0xff] %v841_v46  ;;  %v843_v49 = vpack.c.bf16 %v443_v47, %v441_v44  ;;  %v846_v62 = vpack.c.bf16 %v538_v54, %v538_v54  ;;  %v541_v63 = vadd.f32 %v898_v59, %v1101_v48  ;;  %v532_v0 = vpop.f32.mrb[3].mxu1 }
 0x100   : > { %v842_v3 = vpack.c.bf16 %v530_v58, %v530_v58  ;;  %v533_v4 = vadd.f32 %v532_v0, %v1101_v48 }
 0x101   : > { %698 = vst [vmem:[%s1097_s22 + $0xc] sm:$0xff] %v843_v49  ;;  %v446_v50 = vpop.f32.mrb[4].mxu0  ;;  %701 = vst [vmem:[%s1097_s22 + $0x20] sm:$0xf] %v846_v62  ;;  %v848_v5 = vpack.c.bf16 %v541_v63, %v541_v63 }
 0x102   : > { %v447_v52 = vadd.f32 %v446_v50, %v1087_v36  ;;  %v448_v53 = vpop.f32.mrb[5].mxu0  ;;  %697 = vst [vmem:[%s1097_s22 + $0x8] sm:$0xf] %v842_v3  ;;  %v844_v7 = vpack.c.bf16 %v533_v4, %v533_v4 }
 0x103   : > { %v449_v56 = vadd.f32 %v448_v53, %v1089_v37  ;;  %v450_v57 = vpop.f32.mrb[6].mxu0  ;;  %703 = vst [vmem:[%s1097_s22 + $0x2c] sm:$0xf] %v848_v5 }
 0x104   : > { %v451_v60 = vadd.f32 %v450_v57, %v1087_v36  ;;  %v452_v61 = vpop.f32.mrb[7].mxu0  ;;  %699 = vst [vmem:[%s1097_s22 + $0x14] sm:$0xf] %v844_v7  ;;  %v901_v9 = vpop.f32.mrb[4].mxu1 }
 0x105   : > { %v845_v1 = vpack.c.bf16 %v449_v56, %v447_v52  ;;  %v453_v2 = vadd.f32 %v452_v61, %v1089_v37  ;;  %v554_v12 = vadd.f32 %v901_v9, %v1101_v48  ;;  %v545_v13 = vpop.f32.mrb[5].mxu1 }
 0x106   : > { %v546_v16 = vadd.f32 %v545_v13, %v1101_v48  ;;  %v902_v17 = vpop.f32.mrb[6].mxu1 }
 0x107   : > { %700 = vst [vmem:[%s1097_s22 + $0x18] sm:$0xff] %v845_v1  ;;  %v847_v6 = vpack.c.bf16 %v453_v2, %v451_v60  ;;  %v854_v20 = vpack.c.bf16 %v554_v12, %v554_v12  ;;  %v557_v21 = vadd.f32 %v902_v17, %v1101_v48  ;;  %v548_v22 = vpop.f32.mrb[7].mxu1 }
 0x108   : > { %v850_v25 = vpack.c.bf16 %v546_v16, %v546_v16  ;;  %v549_v26 = vadd.f32 %v548_v22, %v1101_v48 }
 0x109   : > { %702 = vst [vmem:[%s1097_s22 + $0x24] sm:$0xff] %v847_v6  ;;  %v456_v8 = vpop.f32.mrb[8].mxu0  ;;  %709 = vst [vmem:[%s1097_s22 + $0x50] sm:$0xf] %v854_v20  ;;  %v856_v27 = vpack.c.bf16 %v557_v21, %v557_v21 }
 0x10a   : > { %v457_v10 = vadd.f32 %v456_v8, %v1087_v36  ;;  %v458_v11 = vpop.f32.mrb[9].mxu0  ;;  %705 = vst [vmem:[%s1097_s22 + $0x38] sm:$0xf] %v850_v25  ;;  %v852_v29 = vpack.c.bf16 %v549_v26, %v549_v26 }
 0x10b   : > { %v459_v14 = vadd.f32 %v458_v11, %v1089_v37  ;;  %v460_v15 = vpop.f32.mrb[10].mxu0  ;;  %711 = vst [vmem:[%s1097_s22 + $0x5c] sm:$0xf] %v856_v27 }
 0x10c   : > { %v461_v18 = vadd.f32 %v460_v15, %v1087_v36  ;;  %v462_v19 = vpop.f32.mrb[11].mxu0  ;;  %707 = vst [vmem:[%s1097_s22 + $0x44] sm:$0xf] %v852_v29  ;;  %v905_v31 = vpop.f32.mrb[8].mxu1 }
 0x10d   : > { %v849_v23 = vpack.c.bf16 %v459_v14, %v457_v10  ;;  %v463_v24 = vadd.f32 %v462_v19, %v1089_v37  ;;  %v570_v34 = vadd.f32 %v905_v31, %v1101_v48  ;;  %v561_v35 = vpop.f32.mrb[9].mxu1 }
 0x10e   : > { %v562_v40 = vadd.f32 %v561_v35, %v1101_v48  ;;  %v906_v41 = vpop.f32.mrb[10].mxu1 }
 0x10f   : > { %704 = vst [vmem:[%s1097_s22 + $0x30] sm:$0xff] %v849_v23  ;;  %v851_v28 = vpack.c.bf16 %v463_v24, %v461_v18  ;;  %v862_v44 = vpack.c.bf16 %v570_v34, %v570_v34  ;;  %v573_v45 = vadd.f32 %v906_v41, %v1101_v48  ;;  %v564_v46 = vpop.f32.mrb[11].mxu1 }
 0x110   : > { %v858_v50 = vpack.c.bf16 %v562_v40, %v562_v40  ;;  %v565_v51 = vadd.f32 %v564_v46, %v1101_v48 }
 0x111   : > { %706 = vst [vmem:[%s1097_s22 + $0x3c] sm:$0xff] %v851_v28  ;;  %v466_v30 = vpop.f32.mrb[12].mxu0  ;;  %717 = vst [vmem:[%s1097_s22 + $0x80] sm:$0xf] %v862_v44  ;;  %v864_v52 = vpack.c.bf16 %v573_v45, %v573_v45 }
 0x112   : > { %v467_v32 = vadd.f32 %v466_v30, %v1087_v36  ;;  %v468_v33 = vpop.f32.mrb[13].mxu0  ;;  %713 = vst [vmem:[%s1097_s22 + $0x68] sm:$0xf] %v858_v50  ;;  %v860_v54 = vpack.c.bf16 %v565_v51, %v565_v51 }
 0x113   : > { %v469_v38 = vadd.f32 %v468_v33, %v1089_v37  ;;  %v470_v39 = vpop.f32.mrb[14].mxu0  ;;  %719 = vst [vmem:[%s1097_s22 + $0x8c] sm:$0xf] %v864_v52 }
 0x114   : > { %v471_v42 = vadd.f32 %v470_v39, %v1087_v36  ;;  %v472_v43 = vpop.f32.mrb[15].mxu0  ;;  %715 = vst [vmem:[%s1097_s22 + $0x74] sm:$0xf] %v860_v54 }
 0x115   : > { %v853_v47 = vpack.c.bf16 %v469_v38, %v467_v32  ;;  %v473_v49 = vadd.f32 %v472_v43, %v1089_v37 }
 0x117   : > { %708 = vst [vmem:[%s1097_s22 + $0x48] sm:$0xff] %v853_v47  ;;  %v855_v53 = vpack.c.bf16 %v473_v49, %v471_v42 }
 0x119   : > { %710 = vst [vmem:[%s1097_s22 + $0x54] sm:$0xff] %v855_v53  ;;  %v476_v55 = vpop.f32.mrb[16].mxu0 }
 0x11a   : > { %v477_v56 = vadd.f32 %v476_v55, %v1087_v36  ;;  %v478_v57 = vpop.f32.mrb[17].mxu0 }
 0x11b   : > { %v479_v58 = vadd.f32 %v478_v57, %v1089_v37  ;;  %v480_v59 = vpop.f32.mrb[18].mxu0 }
 0x11c   : > { %v481_v48 = vadd.f32 %v480_v59, %v1087_v36  ;;  %v482_v60 = vpop.f32.mrb[19].mxu0 }
 0x11d   : > { %v857_v61 = vpack.c.bf16 %v479_v58, %v477_v56  ;;  %v483_v62 = vadd.f32 %v482_v60, %v1089_v37 }
 0x11f   : > { %712 = vst [vmem:[%s1097_s22 + $0x60] sm:$0xff] %v857_v61  ;;  %v859_v63 = vpack.c.bf16 %v483_v62, %v481_v48 }
 0x121   : > { %714 = vst [vmem:[%s1097_s22 + $0x6c] sm:$0xff] %v859_v63  ;;  %v486_v0 = vpop.f32.mrb[20].mxu0 }
 0x122   : > { %v487_v1 = vadd.f32 %v486_v0, %v1087_v36  ;;  %v488_v2 = vpop.f32.mrb[21].mxu0 }
 0x123   : > { %v489_v3 = vadd.f32 %v488_v2, %v1089_v37  ;;  %v490_v4 = vpop.f32.mrb[22].mxu0 }
 0x124   : > { %v491_v5 = vadd.f32 %v490_v4, %v1087_v36  ;;  %v492_v6 = vpop.f32.mrb[23].mxu0 }
 0x125   : > { %v861_v7 = vpack.c.bf16 %v489_v3, %v487_v1  ;;  %v493_v8 = vadd.f32 %v492_v6, %v1089_v37 }
 0x127   : > { %716 = vst [vmem:[%s1097_s22 + $0x78] sm:$0xff] %v861_v7  ;;  %v863_v9 = vpack.c.bf16 %v493_v8, %v491_v5 }
 0x129   : > { %718 = vst [vmem:[%s1097_s22 + $0x84] sm:$0xff] %v863_v9 }
 0x12a PF: > { %s13_s12 = sadd.s32 1, %s961_s12  }
 0x12b   : > { %p10_p4 = scmp.ge.s32.totalorder %s13_s12, 4  }
 0x12d   :  { %12 = sbr.rel (!%p10_p4) target bundleno = 1 (0x1), region = 62 }

// kernel: decoder_forward.20
= control target key start
LH: loop header
LB: loop body
LE: loop exit
PB: predicated region body
PF: predicated region fallthrough
CT: control target
= control target key end

     0   :  { %s1087_s21 = smov 0   ;;  %s1257_s0 = inlined_call_operand.vmem [shape: bf16[192,128], index: 0, kind: input, shape index: {}]   ;;  %s1258_s1 = inlined_call_operand.vmem [shape: bf16[128,128], index: 1, kind: input, shape index: {}]   ;;  %s1259_s2 = inlined_call_operand.vmem [shape: f32[1,128], index: 2, kind: input, shape index: {}]   ;;  %s1260_s3 = inlined_call_operand.vmem [shape: bf16[192,128], index: 3, kind: input, shape index: {}]   ;;  %s1261_s4 = inlined_call_operand.vmem [shape: f32[1,128], index: 4, kind: input, shape index: {}]   ;;  %s1262_s5 = inlined_call_operand.vmem [shape: f32[1,128], index: 5, kind: input, shape index: {}]   ;;  %s1263_s6 = inlined_call_operand.vmem [shape: bf16[192,128], index: 6, kind: output, shape index: {}]  }
   0x1 LB: > { %s825_s22 = sadd.s32 4294967295, %s1050_s21   ;;  %p829_p0 = scmp.ge.s32.totalorder %s1050_s21, 1  ;;  %s1050_s21 = sphi %s1087_s21, %s16_s21  }
   0x2   : > { %p224_p1 = scmp.lt.s32.totalorder %s1050_s21, 3 }
   0x4   : > { %p225_p2 = pnand %p829_p0, %p224_p1 }
   0x5   : > { %v1006_v0 = vld [vmem:[%s1258_s1] sm:$0xff] (!%p225_p2)   ;;  %s259_s25 = smul.u32 (!%p225_p2), 12, %s825_s22  ;;  %v1007_v1 = vld [vmem:[%s1258_s1 + $0x8] sm:$0xff] (!%p225_p2)   ;;  %v1008_v2 = vld [vmem:[%s1258_s1 + $0x10] sm:$0xff] (!%p225_p2)  }
   0x6   : > { %228 = sbr.rel (%p225_p2) target bundleno = 592 (0x250), region = 44  ;;  %954 = vmatprep.subr.bf16.mxu0 (!%p225_p2), %v1006_v0  ;;  %982 = vmatprep.subr.bf16.mxu1 (!%p225_p2), %v1006_v0  ;;  %v1009_v3 = vld [vmem:[%s1258_s1 + $0x18] sm:$0xff] (!%p225_p2)   ;;  %v1010_v6 = vld [vmem:[%s1258_s1 + $0x20] sm:$0xff] (!%p225_p2)   ;;  %v1011_v7 = vld [vmem:[%s1258_s1 + $0x28] sm:$0xff] (!%p225_p2)  }
   0x7   : > { %p260_p3 = scmp.lt.s32.totalorder (!%p225_p2), %s259_s25, 23  ;;  %955 = vmatpush3.bf16.msra.mxu0 (!%p225_p2), %v1006_v0  ;;  %990 = vmatpush3.bf16.msra.mxu1 (!%p225_p2), %v1006_v0  ;;  %v1012_v8 = vld [vmem:[%s1258_s1 + $0x30] sm:$0xff] (!%p225_p2)   ;;  %v1013_v9 = vld [vmem:[%s1258_s1 + $0x38] sm:$0xff] (!%p225_p2)   ;;  %v847_v24 = vld [vmem:[%s1259_s2] ss:$0 sm:$0xff] (!%p225_p2) }
   0x8   : > { %956 = vmatprep.subr.bf16.mxu0 (!%p225_p2), %v1007_v1  ;;  %983 = vmatprep.subr.bf16.mxu1 (!%p225_p2), %v1007_v1 }
   0xb   : > { %957 = vmatpush3.bf16.msra.mxu0 (!%p225_p2), %v1007_v1  ;;  %991 = vmatpush3.bf16.msra.mxu1 (!%p225_p2), %v1007_v1 }
   0xc   : > { %958 = vmatprep.subr.bf16.mxu0 (!%p225_p2), %v1008_v2  ;;  %984 = vmatprep.subr.bf16.mxu1 (!%p225_p2), %v1008_v2 }
   0xd   : > { %s1265_s25 = smov (!%p260_p3, %s259_s25), 23 }
   0xe   : > { %s1104_s30 = sshll.u32 %s1265_s25, 2 }
   0xf   : > { %s1113_s11 = scalar_lea.vmem %s1257_s0, %s1104_s30  ;;  %959 = vmatpush3.bf16.msra.mxu0 %v1008_v2  ;;  %992 = vmatpush3.bf16.msra.mxu1 %v1008_v2  ;;  %s1137_s23 = scalar_lea.vmem %s1260_s3, %s1104_s30 }
  0x10   : > { %v1014_v4 = vld [vmem:[%s1113_s11] sm:$0xff]   ;;  %v1015_v5 = vld [vmem:[%s1113_s11 + $0x10] sm:$0xff]   ;;  %960 = vmatprep.subr.bf16.mxu0 %v1009_v3  ;;  %985 = vmatprep.subr.bf16.mxu1 %v1009_v3  ;;  %v1016_v10 = vld [vmem:[%s1113_s11 + $0x8] sm:$0xff]   ;;  %s1219_s9 = scalar_lea.vmem %s1263_s6, %s1104_s30 }
  0x11   : > { %970 = vmatprep.mubr.bf16.mxu0 %v1014_v4  ;;  %974 = vmatprep.mubr.bf16.mxu1 %v1015_v5  ;;  %v1017_v11 = vld [vmem:[%s1113_s11 + $0x18] sm:$0xff]   ;;  %v1018_v12 = vld [vmem:[%s1113_s11 + $0x20] sm:$0xff]   ;;  %v1019_v13 = vld [vmem:[%s1113_s11 + $0x28] sm:$0xff]  }
  0x12   : > { %v930_v14 = vld [vmem:[%s1137_s23 + $0x8] sm:$0xff]   ;;  %v932_v15 = vld [vmem:[%s1137_s23 + $0x18] sm:$0xff]   ;;  %v877_v16 = vld [vmem:[%s1137_s23] sm:$0xff]  }
  0x13   : > { %961 = vmatpush3.bf16.msra.mxu0 %v1009_v3  ;;  %993 = vmatpush3.bf16.msra.mxu1 %v1009_v3  ;;  %v882_v17 = vunpack.c.l.bf16 %v930_v14  ;;  %v890_v18 = vunpack.c.l.bf16 %v932_v15  ;;  %v878_v19 = vunpack.c.l.bf16 %v877_v16  ;;  %v931_v20 = vld [vmem:[%s1137_s23 + $0x10] sm:$0xff]   ;;  %v883_v21 = vunpack.c.h.bf16 %v930_v14  ;;  %v933_v41 = vld [vmem:[%s1137_s23 + $0x20] sm:$0xff]   ;;  %v934_v56 = vld [vmem:[%s1137_s23 + $0x28] sm:$0xff]  }
  0x14   : > { %962 = vmatprep.subr.bf16.mxu0 %v1010_v6  ;;  %986 = vmatprep.subr.bf16.mxu1 %v1010_v6  ;;  %v886_v29 = vunpack.c.l.bf16 %v931_v20  ;;  %v891_v32 = vunpack.c.h.bf16 %v932_v15  ;;  %v879_v39 = vunpack.c.h.bf16 %v877_v16  ;;  %v887_v40 = vunpack.c.h.bf16 %v931_v20 }
  0x15   : > { %v894_v48 = vunpack.c.l.bf16 %v933_v41  ;;  %v895_v49 = vunpack.c.h.bf16 %v933_v41  ;;  %v898_v59 = vunpack.c.l.bf16 %v934_v56  ;;  %v899_v60 = vunpack.c.h.bf16 %v934_v56 }
  0x17   : > { %963 = vmatpush3.bf16.msra.mxu0 %v1010_v6  ;;  %994 = vmatpush3.bf16.msra.mxu1 %v1010_v6 }
  0x18   : > { %964 = vmatprep.subr.bf16.mxu0 %v1011_v7  ;;  %987 = vmatprep.subr.bf16.mxu1 %v1011_v7 }
  0x1b   : > { %965 = vmatpush3.bf16.msra.mxu0 %v1011_v7  ;;  %995 = vmatpush3.bf16.msra.mxu1 %v1011_v7 }
  0x1c   : > { %966 = vmatprep.subr.bf16.mxu0 %v1012_v8  ;;  %988 = vmatprep.subr.bf16.mxu1 %v1012_v8 }
  0x1f   : > { %967 = vmatpush3.bf16.msra.mxu0 %v1012_v8  ;;  %996 = vmatpush3.bf16.msra.mxu1 %v1012_v8 }
  0x20   : > { %968 = vmatprep.subr.bf16.mxu0 %v1013_v9  ;;  %989 = vmatprep.subr.bf16.mxu1 %v1013_v9 }
  0x23   : > { %969 = vmatpush3.bf16.msra.mxu0 %v1013_v9  ;;  %997 = vmatpush3.bf16.msra.mxu1 %v1013_v9 }
  0x26   : > { %971 = vmatmul.mubr.bf16.vlgmr.msra.gmra.mrb[0].mxu0 %v1016_v10  ;;  %975 = vmatmul.mubr.bf16.vlgmr.msra.gmra.mrb[0].mxu1 %v1017_v11 }
  0x27   : > { %978 = vmatprep.mubr.bf16.mxu1 %v1018_v12 }
  0x2e   : > { %979 = vmatmul.mubr.bf16.gmra.mrb[4].mxu1 %v1019_v13 }
  0xf9   : > { %v972_v22 = vpop.f32.mrb[0].mxu0  ;;  %v976_v23 = vpop.f32.mrb[0].mxu1 }
  0xfa   : > { %v497_v25 = vadd.f32 %v972_v22, %v882_v17  ;;  %v501_v26 = vadd.f32 %v976_v23, %v890_v18  ;;  %v424_v27 = vpop.f32.mrb[1].mxu0  ;;  %v440_v28 = vpop.f32.mrb[1].mxu1 }
  0xfb   : > { %v973_v30 = vpop.f32.mrb[2].mxu0  ;;  %v977_v31 = vpop.f32.mrb[2].mxu1  ;;  %v495_v33 = vadd.f32 %v878_v19, %v424_v27  ;;  %v499_v42 = vadd.f32 %v886_v29, %v440_v28 }
  0xfc   : > { %v498_v34 = vadd.f32 %v973_v30, %v883_v21  ;;  %v427_v35 = vpop.f32.mrb[3].mxu0  ;;  %v443_v36 = vpop.f32.mrb[3].mxu1  ;;  %v520_v37 = vadd.f32 %v847_v24, %v501_v26  ;;  %v516_v38 = vadd.f32 %v847_v24, %v497_v25  ;;  %v502_v43 = vadd.f32 %v977_v31, %v891_v32 }
  0xfd   : > { %v514_v44 = vadd.f32 %v847_v24, %v495_v33  ;;  %v496_v51 = vadd.f32 %v879_v39, %v427_v35  ;;  %v500_v52 = vadd.f32 %v887_v40, %v443_v36  ;;  %v518_v53 = vadd.f32 %v847_v24, %v499_v42 }
  0xfe   : > { %538 = vadd.xlane.f32.xlu0 %v520_v37  ;;  %530 = vadd.xlane.f32.xlu1 %v516_v38  ;;  %v517_v45 = vadd.f32 %v847_v24, %v498_v34  ;;  %v521_v54 = vadd.f32 %v847_v24, %v502_v43 }
  0xff   : > { %v519_v61 = vadd.f32 %v847_v24, %v500_v52  ;;  %v515_v62 = vadd.f32 %v847_v24, %v496_v51 }
 0x101   : > { %v980_v46 = vpop.f32.mrb[4].mxu1 }
 0x102   : > { %526 = vadd.xlane.f32.xlu0 %v514_v44  ;;  %532 = vadd.xlane.f32.xlu1 %v517_v45  ;;  %v456_v47 = vpop.f32.mrb[5].mxu1  ;;  %v505_v1 = vadd.f32 %v980_v46, %v898_v59 }
 0x103   : > { %v981_v50 = vpop.f32.mrb[6].mxu1  ;;  %v503_v57 = vadd.f32 %v894_v48, %v456_v47 }
 0x104   : > { %v459_v55 = vpop.f32.mrb[7].mxu1  ;;  %v506_v2 = vadd.f32 %v981_v50, %v899_v60  ;;  %v524_v4 = vadd.f32 %v847_v24, %v505_v1 }
 0x105   : > { %v504_v58 = vadd.f32 %v895_v49, %v459_v55  ;;  %v522_v0 = vadd.f32 %v847_v24, %v503_v57 }
 0x106   : > { %534 = vadd.xlane.f32.xlu0 %v518_v53  ;;  %540 = vadd.xlane.f32.xlu1 %v521_v54  ;;  %v525_v3 = vadd.f32 %v847_v24, %v506_v2 }
 0x107   : > { %v523_v63 = vadd.f32 %v847_v24, %v504_v58 }
 0x10a   : > { %536 = vadd.xlane.f32.xlu1 %v519_v61  ;;  %528 = vadd.xlane.f32.xlu0 %v515_v62 }
 0x10e   : > { %544 = vadd.xlane.f32.xlu1 %v523_v63  ;;  %542 = vadd.xlane.f32.xlu0 %v522_v0 }
 0x112   : > { %548 = vadd.xlane.f32.xlu1 %v525_v3  ;;  %546 = vadd.xlane.f32.xlu0 %v524_v4 }
 0x18b   : > { %v539_v5 = vpop.xlane.xlu0 %538  ;;  %v531_v6 = vpop.xlane.xlu1 %530 }
 0x18c   : > { %v557_v7 = vmul.f32 0.0078125, %v539_v5  ;;  %v553_v8 = vmul.f32 0.0078125, %v531_v6 }
 0x18e   : > { %v1148_v9 = vsub.f32 %v516_v38, %v553_v8  ;;  %v1150_v12 = vsub.f32 %v520_v37, %v557_v7 }
 0x18f   : > { %v527_v10 = vpop.xlane.xlu0 %526  ;;  %v533_v11 = vpop.xlane.xlu1 %532 }
 0x190   : > { %v551_v13 = vmul.f32 0.0078125, %v527_v10  ;;  %v554_v14 = vmul.f32 0.0078125, %v533_v11  ;;  %v577_v15 = vmul.f32 %v1148_v9, %v1148_v9  ;;  %v581_v23 = vmul.f32 %v1150_v12, %v1150_v12 }
 0x192   : > { %v1154_v16 = vsub.f32 %v517_v45, %v554_v14  ;;  %591 = vadd.xlane.f32.xlu0 %v577_v15  ;;  %v1156_v17 = vsub.f32 %v514_v44, %v551_v13 }
 0x193   : > { %v535_v18 = vpop.xlane.xlu0 %534  ;;  %v541_v19 = vpop.xlane.xlu1 %540 }
 0x194   : > { %v555_v20 = vmul.f32 0.0078125, %v535_v18  ;;  %v558_v21 = vmul.f32 0.0078125, %v541_v19  ;;  %v578_v22 = vmul.f32 %v1154_v16, %v1154_v16  ;;  %v575_v27 = vmul.f32 %v1156_v17, %v1156_v17  ;;  %v1200_v18 = vld [vmem:[%s1261_s4] ss:$0 sm:$0xff] }
 0x196   : > { %v1162_v24 = vsub.f32 %v521_v54, %v558_v21  ;;  %593 = vadd.xlane.f32.xlu1 %v578_v22  ;;  %599 = vadd.xlane.f32.xlu0 %v581_v23  ;;  %v1166_v28 = vsub.f32 %v518_v53, %v555_v20 }
 0x197   : > { %v537_v25 = vpop.xlane.xlu1 %536  ;;  %v529_v26 = vpop.xlane.xlu0 %528 }
 0x198   : > { %v556_v29 = vmul.f32 0.0078125, %v537_v25  ;;  %v552_v30 = vmul.f32 0.0078125, %v529_v26  ;;  %v582_v31 = vmul.f32 %v1162_v24, %v1162_v24  ;;  %v579_v38 = vmul.f32 %v1166_v28, %v1166_v28 }
 0x19a   : > { %v1170_v32 = vsub.f32 %v515_v62, %v552_v30  ;;  %601 = vadd.xlane.f32.xlu1 %v582_v31  ;;  %587 = vadd.xlane.f32.xlu0 %v575_v27  ;;  %v1172_v33 = vsub.f32 %v519_v61, %v556_v29  ;;  %v1207_v30 = vld [vmem:[%s1262_s5] ss:$0 sm:$0xff] }
 0x19b   : > { %v545_v34 = vpop.xlane.xlu1 %544  ;;  %v543_v35 = vpop.xlane.xlu0 %542 }
 0x19c   : > { %v560_v36 = vmul.f32 0.0078125, %v545_v34  ;;  %v559_v37 = vmul.f32 0.0078125, %v543_v35  ;;  %v576_v39 = vmul.f32 %v1170_v32, %v1170_v32  ;;  %v580_v43 = vmul.f32 %v1172_v33, %v1172_v33 }
 0x19e   : > { %v1178_v40 = vsub.f32 %v522_v0, %v559_v37  ;;  %595 = vadd.xlane.f32.xlu0 %v579_v38  ;;  %589 = vadd.xlane.f32.xlu1 %v576_v39  ;;  %v1182_v44 = vsub.f32 %v523_v63, %v560_v36 }
 0x19f   : > { %v549_v41 = vpop.xlane.xlu1 %548  ;;  %v547_v42 = vpop.xlane.xlu0 %546 }
 0x1a0   : > { %v562_v45 = vmul.f32 0.0078125, %v549_v41  ;;  %v561_v46 = vmul.f32 0.0078125, %v547_v42  ;;  %v583_v47 = vmul.f32 %v1178_v40, %v1178_v40  ;;  %v584_v50 = vmul.f32 %v1182_v44, %v1182_v44 }
 0x1a2   : > { %v1186_v48 = vsub.f32 %v524_v4, %v561_v46  ;;  %597 = vadd.xlane.f32.xlu1 %v580_v43  ;;  %603 = vadd.xlane.f32.xlu0 %v583_v47  ;;  %v1188_v49 = vsub.f32 %v525_v3, %v562_v45 }
 0x1a4   : > { %v585_v51 = vmul.f32 %v1186_v48, %v1186_v48  ;;  %v586_v52 = vmul.f32 %v1188_v49, %v1188_v49 }
 0x1a6   : > { %605 = vadd.xlane.f32.xlu1 %v584_v50  ;;  %607 = vadd.xlane.f32.xlu0 %v585_v51 }
 0x1aa   : > { %609 = vadd.xlane.f32.xlu1 %v586_v52 }
 0x21f   : > { %v592_v53 = vpop.xlane.xlu0 %591 }
 0x220   : > { %v613_v54 = vmul.f32 0.0078125, %v592_v53 }
 0x222   : > { %v625_v55 = vadd.f32 1e-05, %v613_v54 }
 0x223   : > { %v594_v56 = vpop.xlane.xlu1 %593  ;;  %v600_v57 = vpop.xlane.xlu0 %599 }
 0x224   : > { %1020 = vrsqrt.f32 %v625_v55  ;;  %v614_v58 = vmul.f32 0.0078125, %v594_v56  ;;  %v617_v59 = vmul.f32 0.0078125, %v600_v57 }
 0x226   : > { %v626_v60 = vadd.f32 1e-05, %v614_v58  ;;  %v629_v61 = vadd.f32 1e-05, %v617_v59 }
 0x227   : > { %v602_v62 = vpop.xlane.xlu1 %601  ;;  %v588_v63 = vpop.xlane.xlu0 %587 }
 0x228   : > { %1022 = vrsqrt.f32 %v626_v60  ;;  %v618_v0 = vmul.f32 0.0078125, %v602_v62  ;;  %v611_v1 = vmul.f32 0.0078125, %v588_v63 }
 0x229   : > { %1024 = vrsqrt.f32 %v629_v61 }
 0x22a   : > { %v630_v2 = vadd.f32 1e-05, %v618_v0  ;;  %v623_v3 = vadd.f32 1e-05, %v611_v1 }
 0x22b   : > { %v590_v4 = vpop.xlane.xlu1 %589  ;;  %v596_v5 = vpop.xlane.xlu0 %595 }
 0x22c   : > { %1026 = vrsqrt.f32 %v630_v2  ;;  %v612_v6 = vmul.f32 0.0078125, %v590_v4  ;;  %v615_v7 = vmul.f32 0.0078125, %v596_v5 }
 0x22d   : > { %1028 = vrsqrt.f32 %v623_v3 }
 0x22e   : > { %v1021_v8 = vpop.eup %1020  ;;  %v624_v10 = vadd.f32 1e-05, %v612_v6  ;;  %v627_v11 = vadd.f32 1e-05, %v615_v7 }
 0x22f   : > { %v649_v13 = vmul.f32 %v1021_v8, %v1148_v9  ;;  %v598_v14 = vpop.xlane.xlu1 %597  ;;  %v604_v15 = vpop.xlane.xlu0 %603 }
 0x230   : > { %1030 = vrsqrt.f32 %v624_v10  ;;  %v616_v19 = vmul.f32 0.0078125, %v598_v14  ;;  %v619_v20 = vmul.f32 0.0078125, %v604_v15 }
 0x231   : > { %1032 = vrsqrt.f32 %v627_v11  ;;  %v668_v26 = vmul.f32 %v1200_v18, %v649_v13 }
 0x232   : > { %v1023_v21 = vpop.eup %1022  ;;  %v628_v22 = vadd.f32 1e-05, %v616_v19  ;;  %v631_v23 = vadd.f32 1e-05, %v619_v20 }
 0x233   : > { %v1025_v25 = vpop.eup %1024  ;;  %v650_v27 = vmul.f32 %v1023_v21, %v1154_v16  ;;  %v606_v9 = vpop.xlane.xlu1 %605  ;;  %v687_v41 = vadd.f32 %v1207_v30, %v668_v26 }
 0x234   : > { %v608_v29 = vpop.xlane.xlu0 %607  ;;  %v653_v31 = vmul.f32 %v1025_v25, %v1150_v12  ;;  %1034 = vrsqrt.f32 %v628_v22  ;;  %v620_v34 = vmul.f32 0.0078125, %v606_v9 }
 0x235   : > { %v621_v35 = vmul.f32 0.0078125, %v608_v29  ;;  %v669_v36 = vmul.f32 %v1200_v18, %v650_v27  ;;  %1036 = vrsqrt.f32 %v631_v23 }
 0x236   : > { %v1027_v37 = vpop.eup %1026  ;;  %v632_v38 = vadd.f32 1e-05, %v620_v34  ;;  %v672_v43 = vmul.f32 %v1200_v18, %v653_v31 }
 0x237   : > { %v633_v39 = vadd.f32 1e-05, %v621_v35  ;;  %v1029_v16 = vpop.eup %1028  ;;  %v688_v42 = vadd.f32 %v1207_v30, %v669_v36  ;;  %v654_v45 = vmul.f32 %v1027_v37, %v1162_v24  ;;  %v610_v46 = vpop.xlane.xlu1 %609 }
 0x238   : > { %v647_v12 = vmul.f32 %v1029_v16, %v1156_v17  ;;  %1038 = vrsqrt.f32 %v632_v38  ;;  %v622_v47 = vmul.f32 0.0078125, %v610_v46  ;;  %v691_v24 = vadd.f32 %v1207_v30, %v672_v43 }
 0x239   : > { %v908_v50 = vpack.c.bf16 %v688_v42, %v687_v41  ;;  %v673_v51 = vmul.f32 %v1200_v18, %v654_v45  ;;  %1040 = vrsqrt.f32 %v633_v39 }
 0x23a   : > { %v1031_v52 = vpop.eup %1030  ;;  %v634_v53 = vadd.f32 1e-05, %v622_v47  ;;  %v666_v56 = vmul.f32 %v1200_v18, %v647_v12 }
 0x23b   : > { %v1033_v54 = vpop.eup %1032  ;;  %935 = vst [vmem:[%s1219_s9 + $0x8] sm:$0xff] %v908_v50   ;;  %v692_v55 = vadd.f32 %v1207_v30, %v673_v51  ;;  %v648_v57 = vmul.f32 %v1031_v52, %v1170_v32 }
 0x23c   : > { %v651_v17 = vmul.f32 %v1033_v54, %v1166_v28  ;;  %1042 = vrsqrt.f32 %v634_v53  ;;  %v685_v62 = vadd.f32 %v1207_v30, %v666_v56 }
 0x23d   : > { %v918_v58 = vpack.c.bf16 %v692_v55, %v691_v24  ;;  %v667_v59 = vmul.f32 %v1200_v18, %v648_v57 }
 0x23e   : > { %v1035_v60 = vpop.eup %1034  ;;  %v670_v0 = vmul.f32 %v1200_v18, %v651_v17 }
 0x23f   : > { %v1037_v61 = vpop.eup %1036  ;;  %937 = vst [vmem:[%s1219_s9 + $0x18] sm:$0xff] %v918_v58   ;;  %v686_v63 = vadd.f32 %v1207_v30, %v667_v59  ;;  %v652_v1 = vmul.f32 %v1035_v60, %v1172_v33 }
 0x240   : > { %v655_v32 = vmul.f32 %v1037_v61, %v1178_v40  ;;  %v689_v5 = vadd.f32 %v1207_v30, %v670_v0 }
 0x241   : > { %v903_v28 = vpack.c.bf16 %v686_v63, %v685_v62  ;;  %v671_v2 = vmul.f32 %v1200_v18, %v652_v1 }
 0x242   : > { %v1039_v3 = vpop.eup %1038  ;;  %v674_v7 = vmul.f32 %v1200_v18, %v655_v32 }
 0x243   : > { %v1041_v4 = vpop.eup %1040  ;;  %904 = vst [vmem:[%s1219_s9] sm:$0xff] %v903_v28   ;;  %v690_v6 = vadd.f32 %v1207_v30, %v671_v2  ;;  %v656_v8 = vmul.f32 %v1039_v3, %v1182_v44 }
 0x244   : > { %v657_v33 = vmul.f32 %v1041_v4, %v1186_v48  ;;  %v693_v13 = vadd.f32 %v1207_v30, %v674_v7 }
 0x245   : > { %v913_v10 = vpack.c.bf16 %v690_v6, %v689_v5  ;;  %v675_v40 = vmul.f32 %v1200_v18, %v656_v8 }
 0x246   : > { %v1043_v11 = vpop.eup %1042  ;;  %v676_v15 = vmul.f32 %v1200_v18, %v657_v33 }
 0x247   : > { %936 = vst [vmem:[%s1219_s9 + $0x10] sm:$0xff] %v913_v10   ;;  %v694_v14 = vadd.f32 %v1207_v30, %v675_v40  ;;  %v658_v19 = vmul.f32 %v1043_v11, %v1188_v49 }
 0x248   : > { %v695_v44 = vadd.f32 %v1207_v30, %v676_v15 }
 0x249   : > { %v923_v20 = vpack.c.bf16 %v694_v14, %v693_v13  ;;  %v677_v21 = vmul.f32 %v1200_v18, %v658_v19 }
 0x24b   : > { %938 = vst [vmem:[%s1219_s9 + $0x20] sm:$0xff] %v923_v20   ;;  %v696_v48 = vadd.f32 %v1207_v30, %v677_v21 }
 0x24d   : > { %v928_v22 = vpack.c.bf16 %v696_v48, %v695_v44 }
 0x24f   : > { %939 = vst [vmem:[%s1219_s9 + $0x28] sm:$0xff] %v928_v22  }
 0x250 PF: > { %s16_s21 = sadd.s32 1, %s1050_s21  }
 0x251   : > { %p13_p4 = scmp.ge.s32.totalorder %s16_s21, 4  }
 0x253   :  { %15 = sbr.rel (!%p13_p4) target bundleno = 1 (0x1), region = 77 }

// kernel: decoder_forward.19
= control target key start
LH: loop header
LB: loop body
LE: loop exit
PB: predicated region body
PF: predicated region fallthrough
CT: control target
= control target key end

     0   :  { %s3366_s12 = smov 0   ;;  %s4155_s0 = inlined_call_operand.vmem [shape: bf16[2,4,96,32], index: 0, kind: input, shape index: {}]   ;;  %s4156_s1 = inlined_call_operand.vmem [shape: bf16[2,4,96,32], index: 1, kind: input, shape index: {}]   ;;  %s4157_s2 = inlined_call_operand.vmem [shape: bf16[2,4,96,32], index: 2, kind: input, shape index: {}]   ;;  %s4158_s3 = inlined_call_operand.vmem [shape: bf16[2,4,96,32], index: 3, kind: output, shape index: {}]  }
   0x1 LB: > { %s2526_s13 = sadd.s32 4294967295, %s3344_s12   ;;  %p2530_p0 = scmp.ge.s32.totalorder %s3344_s12, 1  ;;  %s3344_s12 = sphi %s3366_s12, %s13_s12  }
   0x2   : > { %p157_p1 = scmp.lt.s32.totalorder %s3344_s12, 3 }
   0x4   : > { %p158_p2 = pnand %p2530_p0, %p157_p1 }
   0x6   : > { %161 = sbr.rel (%p158_p2) target bundleno = 914 (0x392), region = 32 }
   0xd   : > { %p191_p3 = scmp.lt.s32.totalorder %s2526_s13, 1  ;;  %vm416_vm0 = vcmask 261120   ;;  %vm1113_vm1 = vcmask 785408   ;;  %vm2398_vm2 = vcmask 257024  }
   0xf   : > { %s4178_s13 = smov (!%p191_p3, %s2526_s13), 1 }
  0x10   : > { %s3374_s14 = smul.u32 192, %s4178_s13 }
  0x12   : > { %s3380_s17 = scalar_lea.vmem %s4156_s1, %s3374_s14  ;;  %s3400_s20 = scalar_lea.vmem %s4155_s0, %s3374_s14 }
  0x13   : > { %v3074_v0 = vld [vmem:[%s3380_s17] sm:$0xff]   ;;  %v3075_v1 = vld [vmem:[%s3380_s17 + $0x30] sm:$0xff]   ;;  %v3076_v3 = vld [vmem:[%s3380_s17 + $0x8] sm:$0xff]   ;;  %s3760_s23 = scalar_lea.vmem %s4157_s2, %s3374_s14  ;;  %s4054_s26 = scalar_lea.vmem %s4158_s3, %s3374_s14 }
  0x14   : > { %3041 = vmatprep.subr.msk.bf16.mxu0 %vm416_vm0, %v3074_v0  ;;  %v436_v2 = vsel %vm416_vm0, %v3074_v0, 0  ;;  %3047 = vmatprep.subr.msk.bf16.mxu1 %vm416_vm0, %v3075_v1  ;;  %v613_v4 = vsel %vm416_vm0, %v3075_v1, 0  ;;  %v3077_v5 = vld [vmem:[%s3380_s17 + $0x38] sm:$0xff]   ;;  %v439_v6 = vsel %vm416_vm0, %v3076_v3, 0  ;;  %v3078_v7 = vld [vmem:[%s3380_s17 + $0x10] sm:$0xff]   ;;  %v3079_v9 = vld [vmem:[%s3380_s17 + $0x40] sm:$0xff]  }
  0x15   : > { %2850 = vmatpush3.bf16.xpose.msra.mxu0 %v436_v2  ;;  %2874 = vmatpush3.bf16.xpose.msra.mxu1 %v613_v4  ;;  %v616_v8 = vsel %vm416_vm0, %v3077_v5, 0  ;;  %v3086_v10 = vld [vmem:[%s3400_s20] sm:$0xff]   ;;  %v3087_v11 = vld [vmem:[%s3400_s20 + $0x30] sm:$0xff]   ;;  %v442_v12 = vsel %vm416_vm0, %v3078_v7, 0  ;;  %v3080_v13 = vld [vmem:[%s3380_s17 + $0x18] sm:$0xff]   ;;  %v619_v14 = vsel %vm416_vm0, %v3079_v9, 0 }
  0x16   : > { %3042 = vmatprep.subr.msk.bf16.mxu0 %vm416_vm0, %v3076_v3  ;;  %3048 = vmatprep.subr.msk.bf16.mxu1 %vm416_vm0, %v3077_v5  ;;  %v3081_v15 = vld [vmem:[%s3380_s17 + $0x48] sm:$0xff]   ;;  %v445_v16 = vsel %vm416_vm0, %v3080_v13, 0  ;;  %v3082_v17 = vld [vmem:[%s3380_s17 + $0x20] sm:$0xff]   ;;  %v3083_v19 = vld [vmem:[%s3380_s17 + $0x50] sm:$0xff]  }
  0x17   : > { %2861 = vmatprep.mubr.msk.bf16.mxu0 %vm416_vm0, %v3086_v10  ;;  %2885 = vmatprep.mubr.msk.bf16.mxu1 %vm416_vm0, %v3087_v11  ;;  %v622_v18 = vsel %vm416_vm0, %v3081_v15, 0  ;;  %v448_v20 = vsel %vm416_vm0, %v3082_v17, 0  ;;  %v3084_v21 = vld [vmem:[%s3380_s17 + $0x28] sm:$0xff]   ;;  %v625_v22 = vsel %vm416_vm0, %v3083_v19, 0  ;;  %v3085_v23 = vld [vmem:[%s3380_s17 + $0x58] sm:$0xff]   ;;  %v3090_v25 = vld [vmem:[%s3380_s17 + $0x60] sm:$0xff]  }
  0x18   : > { %v451_v24 = vsel %vm416_vm0, %v3084_v21, 0  ;;  %v628_v26 = vsel %vm416_vm0, %v3085_v23, 0  ;;  %v3091_v27 = vld [vmem:[%s3380_s17 + $0x90] sm:$0xff]   ;;  %v3088_v28 = vld [vmem:[%s3400_s20 + $0x8] sm:$0xff]   ;;  %v3089_v29 = vld [vmem:[%s3400_s20 + $0x38] sm:$0xff]   ;;  %v790_v30 = vsel %vm416_vm0, %v3090_v25, 0 }
  0x19   : > { %v3092_v31 = vld [vmem:[%s3380_s17 + $0x68] sm:$0xff]   ;;  %v967_v32 = vsel %vm416_vm0, %v3091_v27, 0  ;;  %v3093_v33 = vld [vmem:[%s3380_s17 + $0x98] sm:$0xff]   ;;  %v3094_v34 = vld [vmem:[%s3400_s20 + $0x10] sm:$0xff]  }
  0x1a   : > { %v3096_v35 = vld [vmem:[%s3400_s20 + $0x40] sm:$0xff]   ;;  %v3095_v36 = vld [vmem:[%s3400_s20 + $0x18] sm:$0xff]   ;;  %v3098_v37 = vld [vmem:[%s3400_s20 + $0x48] sm:$0xff]   ;;  %v793_v38 = vsel %vm416_vm0, %v3092_v31, 0  ;;  %v970_v40 = vsel %vm416_vm0, %v3093_v33, 0 }
  0x1b   : > { %v3097_v39 = vld [vmem:[%s3380_s17 + $0x70] sm:$0xff]   ;;  %v3099_v41 = vld [vmem:[%s3380_s17 + $0xa0] sm:$0xff]   ;;  %v3103_v44 = vld [vmem:[%s3400_s20 + $0x28] sm:$0xff]  }
  0x1c   : > { %v3102_v42 = vld [vmem:[%s3400_s20 + $0x20] sm:$0xff]   ;;  %v3104_v43 = vld [vmem:[%s3400_s20 + $0x50] sm:$0xff]   ;;  %v3106_v45 = vld [vmem:[%s3400_s20 + $0x58] sm:$0xff]   ;;  %v796_v46 = vsel %vm416_vm0, %v3097_v39, 0  ;;  %v973_v48 = vsel %vm416_vm0, %v3099_v41, 0 }
  0x1d   : > { %2852 = vmatpush3.bf16.xpose.msra.mxu0 %v439_v6  ;;  %2876 = vmatpush3.bf16.xpose.msra.mxu1 %v616_v8  ;;  %v3100_v47 = vld [vmem:[%s3380_s17 + $0x78] sm:$0xff]   ;;  %v3101_v49 = vld [vmem:[%s3380_s17 + $0xa8] sm:$0xff]   ;;  %v3110_v50 = vld [vmem:[%s3400_s20 + $0x60] sm:$0xff]  }
  0x1e   : > { %3043 = vmatprep.subr.msk.bf16.mxu0 %vm416_vm0, %v3078_v7  ;;  %3049 = vmatprep.subr.msk.bf16.mxu1 %vm416_vm0, %v3079_v9  ;;  %v3112_v51 = vld [vmem:[%s3400_s20 + $0x90] sm:$0xff]   ;;  %v799_v52 = vsel %vm416_vm0, %v3100_v47, 0  ;;  %v3105_v53 = vld [vmem:[%s3380_s17 + $0x80] sm:$0xff]   ;;  %v976_v54 = vsel %vm416_vm0, %v3101_v49, 0  ;;  %v3108_v57 = vld [vmem:[%s3380_s17 + $0x88] sm:$0xff]  }
  0x1f   : > { %v3107_v55 = vld [vmem:[%s3380_s17 + $0xb0] sm:$0xff]   ;;  %v802_v56 = vsel %vm416_vm0, %v3105_v53, 0  ;;  %v3109_v59 = vld [vmem:[%s3380_s17 + $0xb8] sm:$0xff]   ;;  %v805_v60 = vsel %vm416_vm0, %v3108_v57, 0  ;;  %v3111_v62 = vld [vmem:[%s3400_s20 + $0x68] sm:$0xff]  }
  0x20   : > { %v979_v58 = vsel %vm416_vm0, %v3107_v55, 0  ;;  %v982_v61 = vsel %vm416_vm0, %v3109_v59, 0  ;;  %v3113_v63 = vld [vmem:[%s3400_s20 + $0x98] sm:$0xff]   ;;  %v3114_v0 = vld [vmem:[%s3400_s20 + $0x70] sm:$0xff]   ;;  %v3116_v1 = vld [vmem:[%s3400_s20 + $0xa0] sm:$0xff]  }
  0x21   : > { %v3115_v2 = vld [vmem:[%s3400_s20 + $0x78] sm:$0xff]   ;;  %v3117_v3 = vld [vmem:[%s3400_s20 + $0xa8] sm:$0xff]   ;;  %v3118_v4 = vld [vmem:[%s3400_s20 + $0x80] sm:$0xff]  }
  0x22   : > { %v3120_v5 = vld [vmem:[%s3400_s20 + $0xb0] sm:$0xff]   ;;  %v3119_v6 = vld [vmem:[%s3400_s20 + $0x88] sm:$0xff]   ;;  %v3121_v7 = vld [vmem:[%s3400_s20 + $0xb8] sm:$0xff]  }
  0x25   : > { %2854 = vmatpush3.bf16.xpose.msra.mxu0 %v442_v12  ;;  %2878 = vmatpush3.bf16.xpose.msra.mxu1 %v619_v14 }
  0x26   : > { %3044 = vmatprep.subr.msk.bf16.mxu0 %vm416_vm0, %v3080_v13  ;;  %3050 = vmatprep.subr.msk.bf16.mxu1 %vm416_vm0, %v3081_v15 }
  0x2d   : > { %2856 = vmatpush3.bf16.xpose.msra.mxu0 %v445_v16  ;;  %2880 = vmatpush3.bf16.xpose.msra.mxu1 %v622_v18 }
  0x2e   : > { %3045 = vmatprep.subr.msk.bf16.mxu0 %vm416_vm0, %v3082_v17  ;;  %3051 = vmatprep.subr.msk.bf16.mxu1 %vm416_vm0, %v3083_v19 }
  0x35   : > { %2858 = vmatpush3.bf16.xpose.msra.mxu0 %v448_v20  ;;  %2882 = vmatpush3.bf16.xpose.msra.mxu1 %v625_v22 }
  0x36   : > { %3046 = vmatprep.subr.msk.bf16.mxu0 %vm416_vm0, %v3084_v21  ;;  %3052 = vmatprep.subr.msk.bf16.mxu1 %vm416_vm0, %v3085_v23 }
  0x3d   : > { %2860 = vmatpush3.bf16.xpose.msra.mxu0 %v451_v24  ;;  %2884 = vmatpush3.bf16.xpose.msra.mxu1 %v628_v26 }
  0x3e   : > { %3053 = vmatprep.subr.msk.bf16.mxu0 %vm416_vm0, %v3090_v25  ;;  %3059 = vmatprep.subr.msk.bf16.mxu1 %vm416_vm0, %v3091_v27 }
  0x44   : > { %2862 = vmatmul.mubr.msk.bf16.vlgmr.msra.gmra.mrb[0].mxu0 %vm416_vm0, %v3088_v28  ;;  %2886 = vmatmul.mubr.msk.bf16.vlgmr.msra.gmra.mrb[0].mxu1 %vm416_vm0, %v3089_v29 }
  0x45   : > { %2898 = vmatpush3.bf16.xpose.msra.mxu0 %v790_v30  ;;  %2922 = vmatpush3.bf16.xpose.msra.mxu1 %v967_v32 }
  0x46   : > { %3054 = vmatprep.subr.msk.bf16.mxu0 %vm416_vm0, %v3092_v31  ;;  %3060 = vmatprep.subr.msk.bf16.mxu1 %vm416_vm0, %v3093_v33 }
  0x47   : > { %2865 = vmatprep.mubr.msk.bf16.mxu0 %vm416_vm0, %v3094_v34  ;;  %2889 = vmatprep.mubr.msk.bf16.mxu1 %vm416_vm0, %v3096_v35 }
  0x4c   : > { %2866 = vmatmul.mubr.msk.bf16.gmra.mrb[4].mxu0 %vm416_vm0, %v3095_v36  ;;  %2890 = vmatmul.mubr.msk.bf16.gmra.mrb[4].mxu1 %vm416_vm0, %v3098_v37 }
  0x4d   : > { %2900 = vmatpush3.bf16.xpose.msra.mxu0 %v793_v38  ;;  %2924 = vmatpush3.bf16.xpose.msra.mxu1 %v970_v40 }
  0x4e   : > { %3055 = vmatprep.subr.msk.bf16.mxu0 %vm416_vm0, %v3097_v39  ;;  %3061 = vmatprep.subr.msk.bf16.mxu1 %vm416_vm0, %v3099_v41 }
  0x4f   : > { %2869 = vmatprep.mubr.msk.bf16.mxu0 %vm416_vm0, %v3102_v42  ;;  %2893 = vmatprep.mubr.msk.bf16.mxu1 %vm416_vm0, %v3104_v43 }
  0x54   : > { %2870 = vmatmul.mubr.msk.bf16.gmra.mrb[8].mxu0 %vm416_vm0, %v3103_v44  ;;  %2894 = vmatmul.mubr.msk.bf16.gmra.mrb[8].mxu1 %vm416_vm0, %v3106_v45 }
  0x55   : > { %2902 = vmatpush3.bf16.xpose.msra.mxu0 %v796_v46  ;;  %2926 = vmatpush3.bf16.xpose.msra.mxu1 %v973_v48 }
  0x56   : > { %3056 = vmatprep.subr.msk.bf16.mxu0 %vm416_vm0, %v3100_v47  ;;  %3062 = vmatprep.subr.msk.bf16.mxu1 %vm416_vm0, %v3101_v49 }
  0x57   : > { %2909 = vmatprep.mubr.msk.bf16.mxu0 %vm416_vm0, %v3110_v50  ;;  %2933 = vmatprep.mubr.msk.bf16.mxu1 %vm416_vm0, %v3112_v51 }
  0x5d   : > { %2904 = vmatpush3.bf16.xpose.msra.mxu0 %v799_v52  ;;  %2928 = vmatpush3.bf16.xpose.msra.mxu1 %v976_v54 }
  0x5e   : > { %3057 = vmatprep.subr.msk.bf16.mxu0 %vm416_vm0, %v3105_v53  ;;  %3063 = vmatprep.subr.msk.bf16.mxu1 %vm416_vm0, %v3107_v55 }
  0x65   : > { %2906 = vmatpush3.bf16.xpose.msra.mxu0 %v802_v56  ;;  %2930 = vmatpush3.bf16.xpose.msra.mxu1 %v979_v58 }
  0x66   : > { %3058 = vmatprep.subr.msk.bf16.mxu0 %vm416_vm0, %v3108_v57  ;;  %3064 = vmatprep.subr.msk.bf16.mxu1 %vm416_vm0, %v3109_v59 }
  0x6d   : > { %2908 = vmatpush3.bf16.xpose.msra.mxu0 %v805_v60  ;;  %2932 = vmatpush3.bf16.xpose.msra.mxu1 %v982_v61 }
  0x74   : > { %2910 = vmatmul.mubr.msk.bf16.vlgmr.msra.gmra.mrb[12].mxu0 %vm416_vm0, %v3111_v62  ;;  %2934 = vmatmul.mubr.msk.bf16.vlgmr.msra.gmra.mrb[12].mxu1 %vm416_vm0, %v3113_v63 }
  0x75   : > { %2913 = vmatprep.mubr.msk.bf16.mxu0 %vm416_vm0, %v3114_v0  ;;  %2937 = vmatprep.mubr.msk.bf16.mxu1 %vm416_vm0, %v3116_v1 }
  0x7c   : > { %2914 = vmatmul.mubr.msk.bf16.gmra.mrb[16].mxu0 %vm416_vm0, %v3115_v2  ;;  %2938 = vmatmul.mubr.msk.bf16.gmra.mrb[16].mxu1 %vm416_vm0, %v3117_v3 }
  0x7d   : > { %2917 = vmatprep.mubr.msk.bf16.mxu0 %vm416_vm0, %v3118_v4  ;;  %2941 = vmatprep.mubr.msk.bf16.mxu1 %vm416_vm0, %v3120_v5 }
  0x84   : > { %2918 = vmatmul.mubr.msk.bf16.gmra.mrb[20].mxu0 %vm416_vm0, %v3119_v6  ;;  %2942 = vmatmul.mubr.msk.bf16.gmra.mrb[20].mxu1 %vm416_vm0, %v3121_v7 }
 0x117   : > { %v2863_v8 = vpop.f32.mrb[0].mxu0  ;;  %v2887_v10 = vpop.f32.mrb[0].mxu1 }
 0x118   : > { %v3508_v9 = vmul.f32 0.17677669, %v2863_v8  ;;  %v487_v11 = vpop.f32.mrb[1].mxu0  ;;  %v664_v12 = vpop.f32.mrb[1].mxu1  ;;  %v3512_v17 = vmul.f32 0.17677669, %v2887_v10 }
 0x119   : > { %v2864_v13 = vpop.f32.mrb[2].mxu0  ;;  %v3510_v14 = vmul.f32 0.17677669, %v664_v12  ;;  %v2888_v15 = vpop.f32.mrb[2].mxu1  ;;  %v3520_v22 = vmul.f32 0.17677669, %v487_v11 }
 0x11a   : > { %v490_v16 = vpop.f32.mrb[3].mxu0  ;;  %v667_v18 = vpop.f32.mrb[3].mxu1  ;;  %v1120_v19 = vsel %vm1113_vm1, %v3508_v9, -inf  ;;  %v3516_v20 = vmul.f32 0.17677669, %v2864_v13  ;;  %v1156_v23 = vsel %vm1113_vm1, %v3512_v17, -inf }
 0x11b   : > { %1121 = vmax.xlane.f32.xlu0 %v1120_v19  ;;  %v1150_v21 = vsel %vm1113_vm1, %v3510_v14, -inf  ;;  %v3524_v25 = vmul.f32 0.17677669, %v2888_v15  ;;  %v3528_v33 = vmul.f32 0.17677669, %v490_v16  ;;  %v1114_v34 = vsel %vm1113_vm1, %v3520_v22, -inf }
 0x11c   : > { %1151 = vmax.xlane.f32.xlu1 %v1150_v21  ;;  %v1123_v26 = vsel %vm1113_vm1, %v3516_v20, -inf  ;;  %v3532_v36 = vmul.f32 0.17677669, %v667_v18 }
 0x11d   : > { %v1159_v37 = vsel %vm1113_vm1, %v3524_v25, -inf  ;;  %v1117_v40 = vsel %vm1113_vm1, %v3528_v33, -inf }
 0x11e   : > { %v1153_v42 = vsel %vm1113_vm1, %v3532_v36, -inf }
 0x11f   : > { %v2867_v24 = vpop.f32.mrb[4].mxu0  ;;  %1157 = vmax.xlane.f32.xlu0 %v1156_v23  ;;  %v2891_v28 = vpop.f32.mrb[4].mxu1 }
 0x120   : > { %v503_v27 = vpop.f32.mrb[5].mxu0  ;;  %1124 = vmax.xlane.f32.xlu1 %v1123_v26  ;;  %v680_v30 = vpop.f32.mrb[5].mxu1  ;;  %v3536_v38 = vmul.f32 0.17677669, %v2867_v24  ;;  %v3544_v45 = vmul.f32 0.17677669, %v2891_v28 }
 0x121   : > { %v2868_v29 = vpop.f32.mrb[6].mxu0  ;;  %v2892_v32 = vpop.f32.mrb[6].mxu1  ;;  %v3556_v56 = vmul.f32 0.17677669, %v503_v27  ;;  %v3560_v58 = vmul.f32 0.17677669, %v680_v30 }
 0x122   : > { %v506_v31 = vpop.f32.mrb[7].mxu0  ;;  %v683_v35 = vpop.f32.mrb[7].mxu1  ;;  %v3538_v39 = vmul.f32 0.17677669, %v2868_v29  ;;  %v1132_v46 = vsel %vm1113_vm1, %v3536_v38, -inf  ;;  %v1168_v54 = vsel %vm1113_vm1, %v3544_v45, -inf }
 0x123   : > { %1115 = vmax.xlane.f32.xlu0 %v1114_v34  ;;  %v3548_v49 = vmul.f32 0.17677669, %v2892_v32  ;;  %v3558_v57 = vmul.f32 0.17677669, %v506_v31  ;;  %v1126_v59 = vsel %vm1113_vm1, %v3556_v56, -inf  ;;  %v1162_v0 = vsel %vm1113_vm1, %v3560_v58, -inf }
 0x124   : > { %1160 = vmax.xlane.f32.xlu1 %v1159_v37  ;;  %v1135_v50 = vsel %vm1113_vm1, %v3538_v39, -inf  ;;  %v3564_v60 = vmul.f32 0.17677669, %v683_v35 }
 0x125   : > { %v1171_v55 = vsel %vm1113_vm1, %v3548_v49, -inf  ;;  %v1129_v61 = vsel %vm1113_vm1, %v3558_v57, -inf }
 0x126   : > { %v1165_v1 = vsel %vm1113_vm1, %v3564_v60, -inf }
 0x127   : > { %v2871_v41 = vpop.f32.mrb[8].mxu0  ;;  %1118 = vmax.xlane.f32.xlu0 %v1117_v40  ;;  %v2895_v44 = vpop.f32.mrb[8].mxu1 }
 0x128   : > { %v519_v43 = vpop.f32.mrb[9].mxu0  ;;  %1154 = vmax.xlane.f32.xlu1 %v1153_v42  ;;  %v696_v48 = vpop.f32.mrb[9].mxu1  ;;  %v3568_v62 = vmul.f32 0.17677669, %v2871_v41  ;;  %v3576_v2 = vmul.f32 0.17677669, %v2895_v44 }
 0x129   : > { %v2872_v47 = vpop.f32.mrb[10].mxu0  ;;  %v2896_v52 = vpop.f32.mrb[10].mxu1  ;;  %v3588_v8 = vmul.f32 0.17677669, %v519_v43  ;;  %v3592_v11 = vmul.f32 0.17677669, %v696_v48 }
 0x12a   : > { %v522_v51 = vpop.f32.mrb[11].mxu0  ;;  %v699_v53 = vpop.f32.mrb[11].mxu1  ;;  %v3570_v63 = vmul.f32 0.17677669, %v2872_v47  ;;  %v1144_v3 = vsel %vm1113_vm1, %v3568_v62, -inf  ;;  %v1180_v6 = vsel %vm1113_vm1, %v3576_v2, -inf }
 0x12b   : > { %1133 = vmax.xlane.f32.xlu0 %v1132_v46  ;;  %v3580_v4 = vmul.f32 0.17677669, %v2896_v52  ;;  %v3590_v10 = vmul.f32 0.17677669, %v522_v51  ;;  %v1138_v12 = vsel %vm1113_vm1, %v3588_v8, -inf  ;;  %v1174_v16 = vsel %vm1113_vm1, %v3592_v11, -inf }
 0x12c   : > { %1136 = vmax.xlane.f32.xlu1 %v1135_v50  ;;  %v1147_v5 = vsel %vm1113_vm1, %v3570_v63, -inf  ;;  %v3596_v13 = vmul.f32 0.17677669, %v699_v53 }
 0x12d   : > { %v1183_v7 = vsel %vm1113_vm1, %v3580_v4, -inf  ;;  %v1141_v15 = vsel %vm1113_vm1, %v3590_v10, -inf }
 0x12e   : > { %v1177_v23 = vsel %vm1113_vm1, %v3596_v13, -inf }
 0x12f   : > { %1169 = vmax.xlane.f32.xlu0 %v1168_v54 }
 0x130   : > { %1172 = vmax.xlane.f32.xlu1 %v1171_v55 }
 0x133   : > { %1127 = vmax.xlane.f32.xlu0 %v1126_v59 }
 0x134   : > { %1130 = vmax.xlane.f32.xlu1 %v1129_v61 }
 0x137   : > { %1163 = vmax.xlane.f32.xlu0 %v1162_v0 }
 0x138   : > { %1166 = vmax.xlane.f32.xlu1 %v1165_v1 }
 0x13b   : > { %1145 = vmax.xlane.f32.xlu0 %v1144_v3 }
 0x13c   : > { %1148 = vmax.xlane.f32.xlu1 %v1147_v5 }
 0x13f   : > { %1181 = vmax.xlane.f32.xlu0 %v1180_v6 }
 0x140   : > { %1184 = vmax.xlane.f32.xlu1 %v1183_v7 }
 0x143   : > { %1139 = vmax.xlane.f32.xlu0 %v1138_v12 }
 0x144   : > { %1142 = vmax.xlane.f32.xlu1 %v1141_v15 }
 0x147   : > { %v2911_v18 = vpop.f32.mrb[12].mxu0  ;;  %1175 = vmax.xlane.f32.xlu0 %v1174_v16  ;;  %v2935_v21 = vpop.f32.mrb[12].mxu1 }
 0x148   : > { %v3602_v19 = vmul.f32 0.17677669, %v2911_v18  ;;  %v841_v24 = vpop.f32.mrb[13].mxu0  ;;  %v3606_v26 = vmul.f32 0.17677669, %v2935_v21  ;;  %1178 = vmax.xlane.f32.xlu1 %v1177_v23  ;;  %v1018_v28 = vpop.f32.mrb[13].mxu1 }
 0x149   : > { %v2912_v27 = vpop.f32.mrb[14].mxu0  ;;  %v2936_v31 = vpop.f32.mrb[14].mxu1  ;;  %v3618_v41 = vmul.f32 0.17677669, %v841_v24  ;;  %v3624_v53 = vmul.f32 0.17677669, %v1018_v28 }
 0x14a   : > { %v3608_v29 = vmul.f32 0.17677669, %v2912_v27  ;;  %v844_v30 = vpop.f32.mrb[15].mxu0  ;;  %v1021_v32 = vpop.f32.mrb[15].mxu1  ;;  %v1192_v34 = vsel %vm1113_vm1, %v3602_v19, -inf  ;;  %v1228_v40 = vsel %vm1113_vm1, %v3606_v26, -inf }
 0x14b   : > { %v3612_v35 = vmul.f32 0.17677669, %v2936_v31  ;;  %1193 = vmax.xlane.f32.xlu0 %v1192_v34  ;;  %v3620_v43 = vmul.f32 0.17677669, %v844_v30  ;;  %v1186_v54 = vsel %vm1113_vm1, %v3618_v41, -inf  ;;  %v1222_v1 = vsel %vm1113_vm1, %v3624_v53, -inf }
 0x14c   : > { %v1195_v37 = vsel %vm1113_vm1, %v3608_v29, -inf  ;;  %v3628_v59 = vmul.f32 0.17677669, %v1021_v32 }
 0x14d   : > { %1196 = vmax.xlane.f32.xlu1 %v1195_v37  ;;  %v1231_v44 = vsel %vm1113_vm1, %v3612_v35, -inf  ;;  %v1189_v61 = vsel %vm1113_vm1, %v3620_v43, -inf }
 0x14e   : > { %v1225_v6 = vsel %vm1113_vm1, %v3628_v59, -inf }
 0x14f   : > { %v2915_v42 = vpop.f32.mrb[16].mxu0  ;;  %1229 = vmax.xlane.f32.xlu0 %v1228_v40  ;;  %v2939_v47 = vpop.f32.mrb[16].mxu1 }
 0x150   : > { %v857_v46 = vpop.f32.mrb[17].mxu0  ;;  %v1034_v50 = vpop.f32.mrb[17].mxu1  ;;  %v3632_v0 = vmul.f32 0.17677669, %v2915_v42  ;;  %v3640_v15 = vmul.f32 0.17677669, %v2939_v47 }
 0x151   : > { %1232 = vmax.xlane.f32.xlu1 %v1231_v44  ;;  %v2916_v48 = vpop.f32.mrb[18].mxu0  ;;  %v2940_v52 = vpop.f32.mrb[18].mxu1  ;;  %v3650_v32 = vmul.f32 0.17677669, %v857_v46  ;;  %v3656_v40 = vmul.f32 0.17677669, %v1034_v50 }
 0x152   : > { %v860_v51 = vpop.f32.mrb[19].mxu0  ;;  %v1037_v55 = vpop.f32.mrb[19].mxu1  ;;  %v3636_v5 = vmul.f32 0.17677669, %v2916_v48  ;;  %v1204_v16 = vsel %vm1113_vm1, %v3632_v0, -inf  ;;  %v1240_v31 = vsel %vm1113_vm1, %v3640_v15, -inf }
 0x153   : > { %1187 = vmax.xlane.f32.xlu0 %v1186_v54  ;;  %v3644_v28 = vmul.f32 0.17677669, %v2940_v52  ;;  %v3652_v34 = vmul.f32 0.17677669, %v860_v51  ;;  %v1198_v42 = vsel %vm1113_vm1, %v3650_v32, -inf  ;;  %v1234_v48 = vsel %vm1113_vm1, %v3656_v40, -inf }
 0x154   : > { %v1207_v30 = vsel %vm1113_vm1, %v3636_v5, -inf  ;;  %v3660_v44 = vmul.f32 0.17677669, %v1037_v55 }
 0x155   : > { %1190 = vmax.xlane.f32.xlu1 %v1189_v61  ;;  %v1243_v37 = vsel %vm1113_vm1, %v3644_v28, -inf  ;;  %v1201_v47 = vsel %vm1113_vm1, %v3652_v34, -inf }
 0x156   : > { %v1237_v50 = vsel %vm1113_vm1, %v3660_v44, -inf }
 0x157   : > { %v2919_v3 = vpop.f32.mrb[20].mxu0  ;;  %1223 = vmax.xlane.f32.xlu0 %v1222_v1  ;;  %v2943_v12 = vpop.f32.mrb[20].mxu1 }
 0x158   : > { %v873_v7 = vpop.f32.mrb[21].mxu0  ;;  %v1050_v21 = vpop.f32.mrb[21].mxu1  ;;  %v3664_v46 = vmul.f32 0.17677669, %v2919_v3  ;;  %v3672_v52 = vmul.f32 0.17677669, %v2943_v12 }
 0x159   : > { %1226 = vmax.xlane.f32.xlu1 %v1225_v6  ;;  %v2920_v18 = vpop.f32.mrb[22].mxu0  ;;  %v2944_v24 = vpop.f32.mrb[22].mxu1  ;;  %v3682_v3 = vmul.f32 0.17677669, %v873_v7 }
 0x15a   : > { %v876_v23 = vpop.f32.mrb[23].mxu0  ;;  %v1053_v27 = vpop.f32.mrb[23].mxu1  ;;  %v3668_v51 = vmul.f32 0.17677669, %v2920_v18  ;;  %v1216_v54 = vsel %vm1113_vm1, %v3664_v46, -inf  ;;  %v1252_v1 = vsel %vm1113_vm1, %v3672_v52, -inf }
 0x15b   : > { %1205 = vmax.xlane.f32.xlu0 %v1204_v16  ;;  %v3676_v55 = vmul.f32 0.17677669, %v2944_v24  ;;  %v3684_v6 = vmul.f32 0.17677669, %v876_v23  ;;  %v3688_v16 = vmul.f32 0.17677669, %v1050_v21 }
 0x15c   : > { %v1219_v61 = vsel %vm1113_vm1, %v3668_v51, -inf  ;;  %v1210_v18 = vsel %vm1113_vm1, %v3682_v3, -inf  ;;  %v3692_v24 = vmul.f32 0.17677669, %v1053_v27 }
 0x15d   : > { %1208 = vmax.xlane.f32.xlu1 %v1207_v30  ;;  %v1255_v12 = vsel %vm1113_vm1, %v3676_v55, -inf  ;;  %v1213_v30 = vsel %vm1113_vm1, %v3684_v6, -inf  ;;  %v1246_v7 = vsel %vm1113_vm1, %v3688_v16, -inf }
 0x15e   : > { %v1249_v23 = vsel %vm1113_vm1, %v3692_v24, -inf }
 0x15f   : > { %1241 = vmax.xlane.f32.xlu0 %v1240_v31 }
 0x161   : > { %1244 = vmax.xlane.f32.xlu1 %v1243_v37 }
 0x163   : > { %1199 = vmax.xlane.f32.xlu0 %v1198_v42 }
 0x165   : > { %1202 = vmax.xlane.f32.xlu1 %v1201_v47 }
 0x167   : > { %1235 = vmax.xlane.f32.xlu0 %v1234_v48 }
 0x169   : > { %1238 = vmax.xlane.f32.xlu1 %v1237_v50 }
 0x16b   : > { %1217 = vmax.xlane.f32.xlu0 %v1216_v54 }
 0x16d   : > { %1220 = vmax.xlane.f32.xlu1 %v1219_v61 }
 0x16f   : > { %1253 = vmax.xlane.f32.xlu0 %v1252_v1 }
 0x171   : > { %1256 = vmax.xlane.f32.xlu1 %v1255_v12 }
 0x173   : > { %1211 = vmax.xlane.f32.xlu0 %v1210_v18 }
 0x175   : > { %1214 = vmax.xlane.f32.xlu1 %v1213_v30 }
 0x177   : > { %1247 = vmax.xlane.f32.xlu0 %v1246_v7 }
 0x179   : > { %1250 = vmax.xlane.f32.xlu1 %v1249_v23 }
 0x1a8   : > { %v1122_v21 = vpop.xlane.xlu0 %1121 }
 0x1a9   : > { %v1260_v31 = vsub.f32 %v3508_v9, %v1122_v21  ;;  %v1152_v37 = vpop.xlane.xlu1 %1151 }
 0x1aa   : > { %v1270_v54 = vsub.f32 %v3510_v14, %v1152_v37 }
 0x1ab   : > { %v1310_v42 = vmul.f32 1.442695, %v1260_v31 }
 0x1ac   : > { %v1158_v27 = vpop.xlane.xlu0 %1157  ;;  %v1330_v7 = vmul.f32 1.442695, %v1270_v54 }
 0x1ad   : > { %3146 = vpow2.f32 %v1310_v42  ;;  %v1272_v47 = vsub.f32 %v3512_v17, %v1158_v27  ;;  %v1125_v48 = vpop.xlane.xlu1 %1124 }
 0x1ae   : > { %v1261_v50 = vsub.f32 %v3516_v20, %v1125_v48 }
 0x1af   : > { %v1334_v61 = vmul.f32 1.442695, %v1272_v47 }
 0x1b0   : > { %v1312_v1 = vmul.f32 1.442695, %v1261_v50  ;;  %v1116_v12 = vpop.xlane.xlu0 %1115 }
 0x1b1   : > { %3148 = vpow2.f32 %v1334_v61  ;;  %v1258_v18 = vsub.f32 %v3520_v22, %v1116_v12  ;;  %v1161_v30 = vpop.xlane.xlu1 %1160 }
 0x1b2   : > { %3150 = vpow2.f32 %v1312_v1  ;;  %v1273_v9 = vsub.f32 %v3524_v25, %v1161_v30 }
 0x1b3   : > { %v1306_v23 = vmul.f32 1.442695, %v1258_v18 }
 0x1b4   : > { %v1336_v21 = vmul.f32 1.442695, %v1273_v9  ;;  %v1119_v31 = vpop.xlane.xlu0 %1118 }
 0x1b5   : > { %3152 = vpow2.f32 %v1306_v23  ;;  %v1259_v17 = vsub.f32 %v3528_v33, %v1119_v31  ;;  %v1155_v20 = vpop.xlane.xlu1 %1154 }
 0x1b6   : > { %3154 = vpow2.f32 %v1336_v21  ;;  %v1271_v14 = vsub.f32 %v3532_v36, %v1155_v20 }
 0x1b7   : > { %v3708_v37 = vpop.eup %3146  ;;  %3156 = vpow2.f32 %v1330_v7  ;;  %v1308_v42 = vmul.f32 1.442695, %v1259_v17 }
 0x1b8   : > { %v1332_v22 = vmul.f32 1.442695, %v1271_v14  ;;  %v1134_v27 = vpop.xlane.xlu0 %1133  ;;  %v1408_v25 = vsel %vm1113_vm1, %v3708_v37, 0.0 }
 0x1b9   : > { %3158 = vpow2.f32 %v1308_v42  ;;  %v1264_v47 = vsub.f32 %v3536_v38, %v1134_v27  ;;  %v1137_v48 = vpop.xlane.xlu1 %1136  ;;  %1409 = vadd.xlane.f32.xlu0 %v1408_v25 }
 0x1ba   : > { %v1265_v33 = vsub.f32 %v3538_v39, %v1137_v48  ;;  %3160 = vpow2.f32 %v1332_v22 }
 0x1bb   : > { %v3714_v50 = vpop.eup %3148  ;;  %v1318_v54 = vmul.f32 1.442695, %v1264_v47 }
 0x1bc   : > { %v3716_v36 = vpop.eup %3150  ;;  %v1320_v61 = vmul.f32 1.442695, %v1265_v33  ;;  %v1170_v1 = vpop.xlane.xlu0 %1169  ;;  %v1444_v12 = vsel %vm1113_vm1, %v3714_v50, 0.0 }
 0x1bd   : > { %3162 = vpow2.f32 %v1318_v54  ;;  %v1276_v18 = vsub.f32 %v3544_v45, %v1170_v1  ;;  %v1173_v30 = vpop.xlane.xlu1 %1172  ;;  %1445 = vadd.xlane.f32.xlu0 %v1444_v12  ;;  %v1411_v38 = vsel %vm1113_vm1, %v3716_v36, 0.0 }
 0x1be   : > { %v1277_v39 = vsub.f32 %v3548_v49, %v1173_v30  ;;  %1412 = vadd.xlane.f32.xlu1 %v1411_v38  ;;  %3164 = vpow2.f32 %v1320_v61 }
 0x1bf   : > { %v3724_v9 = vpop.eup %3152  ;;  %v1342_v7 = vmul.f32 1.442695, %v1276_v18 }
 0x1c0   : > { %v3726_v23 = vpop.eup %3154  ;;  %v1344_v21 = vmul.f32 1.442695, %v1277_v39  ;;  %v1128_v31 = vpop.xlane.xlu0 %1127  ;;  %v1402_v17 = vsel %vm1113_vm1, %v3724_v9, 0.0 }
 0x1c1   : > { %v3730_v45 = vpop.eup %3156  ;;  %3166 = vpow2.f32 %v1342_v7  ;;  %v1262_v20 = vsub.f32 %v3556_v56, %v1128_v31  ;;  %v1131_v14 = vpop.xlane.xlu1 %1130  ;;  %1403 = vadd.xlane.f32.xlu0 %v1402_v17  ;;  %v1447_v49 = vsel %vm1113_vm1, %v3726_v23, 0.0 }
 0x1c2   : > { %v1263_v42 = vsub.f32 %v3558_v57, %v1131_v14  ;;  %1448 = vadd.xlane.f32.xlu1 %v1447_v49  ;;  %3168 = vpow2.f32 %v1344_v21  ;;  %v1438_v48 = vsel %vm1113_vm1, %v3730_v45, 0.0  ;;  %v3122_v49 = vld [vmem:[%s3760_s23] sm:$0xff]  }
 0x1c3   : > { %v3736_v22 = vpop.eup %3158  ;;  %v1314_v27 = vmul.f32 1.442695, %v1262_v20  ;;  %2945 = vmatprep.subr.bf16.mxu0 %v3122_v49 }
 0x1c4   : > { %v1316_v25 = vmul.f32 1.442695, %v1263_v42  ;;  %v1164_v47 = vpop.xlane.xlu0 %1163  ;;  %v1405_v56 = vsel %vm1113_vm1, %v3736_v22, 0.0  ;;  %v3743_v61 = vpop.eup %3160  ;;  %2946 = vmatpush3.bf16.msra.mxu0 %v3122_v49 }
 0x1c5   : > { %3170 = vpow2.f32 %v1314_v27  ;;  %v1274_v33 = vsub.f32 %v3560_v58, %v1164_v47  ;;  %v1167_v54 = vpop.xlane.xlu1 %1166  ;;  %1439 = vadd.xlane.f32.xlu0 %v1438_v48  ;;  %v1441_v7 = vsel %vm1113_vm1, %v3743_v61, 0.0 }
 0x1c6   : > { %v1275_v57 = vsub.f32 %v3564_v60, %v1167_v54  ;;  %1406 = vadd.xlane.f32.xlu1 %v1405_v56  ;;  %3172 = vpow2.f32 %v1316_v25  ;;  %v3124_v54 = vld [vmem:[%s3760_s23 + $0x30] sm:$0xff]  }
 0x1c7   : > { %v3746_v1 = vpop.eup %3162  ;;  %v1338_v12 = vmul.f32 1.442695, %v1274_v33  ;;  %v3123_v33 = vld [vmem:[%s3760_s23 + $0x8] sm:$0xff]   ;;  %2969 = vmatprep.subr.bf16.mxu1 %v3124_v54 }
 0x1c8   : > { %v1340_v18 = vmul.f32 1.442695, %v1275_v57  ;;  %v1146_v30 = vpop.xlane.xlu0 %1145  ;;  %v1420_v38 = vsel %vm1113_vm1, %v3746_v1, 0.0  ;;  %v3753_v60 = vpop.eup %3164  ;;  %2947 = vmatprep.subr.bf16.mxu0 %v3123_v33  ;;  %2970 = vmatpush3.bf16.msra.mxu1 %v3124_v54 }
 0x1c9   : > { %3174 = vpow2.f32 %v1338_v12  ;;  %v1268_v58 = vsub.f32 %v3568_v62, %v1146_v30  ;;  %v1149_v39 = vpop.xlane.xlu1 %1148  ;;  %1421 = vadd.xlane.f32.xlu0 %v1420_v38  ;;  %v1423_v27 = vsel %vm1113_vm1, %v3753_v60, 0.0  ;;  %2948 = vmatpush3.bf16.msra.mxu0 %v3123_v33  ;;  %v3128_v33 = vld [vmem:[%s3760_s23 + $0x40] sm:$0xff]  }
 0x1ca   : > { %v1269_v21 = vsub.f32 %v3570_v63, %v1149_v39  ;;  %1442 = vadd.xlane.f32.xlu1 %v1441_v7  ;;  %3176 = vpow2.f32 %v1340_v18 }
 0x1cb   : > { %v3762_v31 = vpop.eup %3166  ;;  %v1326_v17 = vmul.f32 1.442695, %v1268_v58 }
 0x1cc   : > { %v1328_v62 = vmul.f32 1.442695, %v1269_v21  ;;  %v1182_v20 = vpop.xlane.xlu0 %1181  ;;  %v1456_v14 = vsel %vm1113_vm1, %v3762_v31, 0.0  ;;  %v3770_v25 = vpop.eup %3168  ;;  %v3125_v21 = vld [vmem:[%s3760_s23 + $0x10] sm:$0xff]  }
 0x1cd   : > { %3178 = vpow2.f32 %v1326_v17  ;;  %v1280_v63 = vsub.f32 %v3576_v2, %v1182_v20  ;;  %v1185_v42 = vpop.xlane.xlu1 %1184  ;;  %1457 = vadd.xlane.f32.xlu0 %v1456_v14  ;;  %v1459_v30 = vsel %vm1113_vm1, %v3770_v25, 0.0  ;;  %v3126_v17 = vld [vmem:[%s3760_s23 + $0x38] sm:$0xff]   ;;  %2949 = vmatprep.subr.bf16.mxu0 %v3125_v21 }
 0x1ce   : > { %v1281_v47 = vsub.f32 %v3580_v4, %v1185_v42  ;;  %1424 = vadd.xlane.f32.xlu1 %v1423_v27  ;;  %3180 = vpow2.f32 %v1328_v62  ;;  %2971 = vmatprep.subr.bf16.mxu1 %v3126_v17 }
 0x1cf   : > { %v3773_v48 = vpop.eup %3170  ;;  %v1350_v56 = vmul.f32 1.442695, %v1280_v63  ;;  %2950 = vmatpush3.bf16.msra.mxu0 %v3125_v21  ;;  %2972 = vmatpush3.bf16.msra.mxu1 %v3126_v17  ;;  %v3130_v21 = vld [vmem:[%s3760_s23 + $0x48] sm:$0xff]  }
 0x1d0   : > { %v1352_v57 = vmul.f32 1.442695, %v1281_v47  ;;  %v1140_v2 = vpop.xlane.xlu0 %1139  ;;  %v1414_v12 = vsel %vm1113_vm1, %v3773_v48, 0.0  ;;  %v3782_v38 = vpop.eup %3172  ;;  %2973 = vmatprep.subr.bf16.mxu1 %v3128_v33 }
 0x1d1   : > { %3182 = vpow2.f32 %v1350_v56  ;;  %v1266_v18 = vsub.f32 %v3588_v8, %v1140_v2  ;;  %v1143_v4 = vpop.xlane.xlu1 %1142  ;;  %1415 = vadd.xlane.f32.xlu0 %v1414_v12  ;;  %v1417_v49 = vsel %vm1113_vm1, %v3782_v38, 0.0  ;;  %v3127_v56 = vld [vmem:[%s3760_s23 + $0x18] sm:$0xff]  }
 0x1d2   : > { %v1267_v58 = vsub.f32 %v3590_v10, %v1143_v4  ;;  %1460 = vadd.xlane.f32.xlu1 %v1459_v30  ;;  %3184 = vpow2.f32 %v1352_v57  ;;  %2951 = vmatprep.subr.bf16.mxu0 %v3127_v56 }
 0x1d3   : > { %v3785_v39 = vpop.eup %3174  ;;  %v1322_v7 = vmul.f32 1.442695, %v1266_v18  ;;  %2952 = vmatpush3.bf16.msra.mxu0 %v3127_v56  ;;  %2974 = vmatpush3.bf16.msra.mxu1 %v3128_v33  ;;  %v3132_v56 = vld [vmem:[%s3760_s23 + $0x50] sm:$0xff]  }
 0x1d4   : > { %v1324_v8 = vmul.f32 1.442695, %v1267_v58  ;;  %v1176_v62 = vpop.xlane.xlu0 %1175  ;;  %v1450_v20 = vsel %vm1113_vm1, %v3785_v39, 0.0  ;;  %v3794_v63 = vpop.eup %3176  ;;  %2975 = vmatprep.subr.bf16.mxu1 %v3130_v21 }
 0x1d5   : > { %3186 = vpow2.f32 %v1322_v7  ;;  %v1278_v10 = vsub.f32 %v3592_v11, %v1176_v62  ;;  %v1179_v14 = vpop.xlane.xlu1 %1178  ;;  %1451 = vadd.xlane.f32.xlu0 %v1450_v20  ;;  %v1453_v12 = vsel %vm1113_vm1, %v3794_v63, 0.0  ;;  %v3129_v7 = vld [vmem:[%s3760_s23 + $0x20] sm:$0xff]  }
 0x1d6   : > { %v1279_v42 = vsub.f32 %v3596_v13, %v1179_v14  ;;  %1418 = vadd.xlane.f32.xlu1 %v1417_v49  ;;  %3188 = vpow2.f32 %v1324_v8  ;;  %2953 = vmatprep.subr.bf16.mxu0 %v3129_v7 }
 0x1d7   : > { %v3797_v27 = vpop.eup %3178  ;;  %v1346_v47 = vmul.f32 1.442695, %v1278_v10  ;;  %2954 = vmatpush3.bf16.msra.mxu0 %v3129_v7  ;;  %2976 = vmatpush3.bf16.msra.mxu1 %v3130_v21 }
 0x1d8   : > { %v1348_v11 = vmul.f32 1.442695, %v1279_v42  ;;  %v1194_v54 = vpop.xlane.xlu0 %1193  ;;  %v1432_v57 = vsel %vm1113_vm1, %v3797_v27, 0.0  ;;  %v3806_v18 = vpop.eup %3180  ;;  %2977 = vmatprep.subr.bf16.mxu1 %v3132_v56 }
 0x1d9   : > { %3190 = vpow2.f32 %v1346_v47  ;;  %v1284_v13 = vsub.f32 %v3602_v19, %v1194_v54  ;;  %1433 = vadd.xlane.f32.xlu0 %v1432_v57  ;;  %v1435_v20 = vsel %vm1113_vm1, %v3806_v18, 0.0  ;;  %v3131_v47 = vld [vmem:[%s3760_s23 + $0x28] sm:$0xff]  }
 0x1da   : > { %v1197_v2 = vpop.xlane.xlu1 %1196  ;;  %1454 = vadd.xlane.f32.xlu1 %v1453_v12  ;;  %3192 = vpow2.f32 %v1348_v11  ;;  %2955 = vmatprep.subr.bf16.mxu0 %v3131_v47 }
 0x1db   : > { %v1285_v4 = vsub.f32 %v3608_v29, %v1197_v2  ;;  %v3809_v30 = vpop.eup %3182  ;;  %v1358_v58 = vmul.f32 1.442695, %v1284_v13  ;;  %2956 = vmatpush3.bf16.msra.mxu0 %v3131_v47  ;;  %2978 = vmatpush3.bf16.msra.mxu1 %v3132_v56 }
 0x1dc   : > { %v1230_v17 = vpop.xlane.xlu0 %1229  ;;  %v1468_v8 = vsel %vm1113_vm1, %v3809_v30, 0.0  ;;  %v3818_v10 = vpop.eup %3184 }
 0x1dd   : > { %v1360_v19 = vmul.f32 1.442695, %v1285_v4  ;;  %3194 = vpow2.f32 %v1358_v58  ;;  %v1296_v29 = vsub.f32 %v3606_v26, %v1230_v17  ;;  %1469 = vadd.xlane.f32.xlu0 %v1468_v8  ;;  %v1471_v57 = vsel %vm1113_vm1, %v3818_v10, 0.0  ;;  %v3133_v58 = vld [vmem:[%s3760_s23 + $0x58] sm:$0xff]  }
 0x1de   : > { %v1233_v62 = vpop.xlane.xlu1 %1232  ;;  %1436 = vadd.xlane.f32.xlu1 %v1435_v20  ;;  %2979 = vmatprep.subr.bf16.mxu1 %v3133_v58 }
 0x1df   : > { %v1297_v14 = vsub.f32 %v3612_v35, %v1233_v62  ;;  %v3821_v49 = vpop.eup %3186  ;;  %v1382_v42 = vmul.f32 1.442695, %v1296_v29  ;;  %3196 = vpow2.f32 %v1360_v19  ;;  %2980 = vmatpush3.bf16.msra.mxu1 %v3133_v58 }
 0x1e0   : > { %v1188_v33 = vpop.xlane.xlu0 %1187  ;;  %v1426_v11 = vsel %vm1113_vm1, %v3821_v49, 0.0  ;;  %v3830_v13 = vpop.eup %3188 }
 0x1e1   : > { %v1384_v26 = vmul.f32 1.442695, %v1297_v14  ;;  %3198 = vpow2.f32 %v1382_v42  ;;  %v1282_v54 = vsub.f32 %v3618_v41, %v1188_v33  ;;  %1427 = vadd.xlane.f32.xlu0 %v1426_v11 }
 0x1e2   : > { %v1191_v35 = vpop.xlane.xlu1 %1190  ;;  %1472 = vadd.xlane.f32.xlu1 %v1471_v57 }
 0x1e3   : > { %v1283_v2 = vsub.f32 %v3620_v43, %v1191_v35  ;;  %v3833_v12 = vpop.eup %3190  ;;  %v1354_v4 = vmul.f32 1.442695, %v1282_v54  ;;  %3200 = vpow2.f32 %v1384_v26  ;;  %v1429_v43 = vsel %vm1113_vm1, %v3830_v13, 0.0 }
 0x1e4   : > { %v1224_v7 = vpop.xlane.xlu0 %1223  ;;  %v1462_v21 = vsel %vm1113_vm1, %v3833_v12, 0.0  ;;  %v3841_v8 = vpop.eup %3192 }
 0x1e5   : > { %v1356_v41 = vmul.f32 1.442695, %v1283_v2  ;;  %3202 = vpow2.f32 %v1354_v4  ;;  %v1294_v19 = vsub.f32 %v3624_v53, %v1224_v7  ;;  %1463 = vadd.xlane.f32.xlu0 %v1462_v21  ;;  %v1465_v26 = vsel %vm1113_vm1, %v3841_v8, 0.0 }
 0x1e6   : > { %v1227_v17 = vpop.xlane.xlu1 %1226  ;;  %1430 = vadd.xlane.f32.xlu1 %v1429_v43 }
 0x1e7   : > { %v1295_v29 = vsub.f32 %v3628_v59, %v1227_v17  ;;  %v3844_v62 = vpop.eup %3194  ;;  %v1378_v20 = vmul.f32 1.442695, %v1294_v19  ;;  %3204 = vpow2.f32 %v1356_v41 }
 0x1e8   : > { %v1206_v42 = vpop.xlane.xlu0 %1205  ;;  %v1480_v53 = vsel %vm1113_vm1, %v3844_v62, 0.0 }
 0x1e9   : > { %v1380_v14 = vmul.f32 1.442695, %v1295_v29  ;;  %3206 = vpow2.f32 %v1378_v20  ;;  %v1288_v47 = vsub.f32 %v3632_v0, %v1206_v42  ;;  %1481 = vadd.xlane.f32.xlu0 %v1480_v53  ;;  %v3851_v59 = vpop.eup %3196 }
 0x1ea   : > { %v1209_v56 = vpop.xlane.xlu1 %1208  ;;  %1466 = vadd.xlane.f32.xlu1 %v1465_v26  ;;  %v1483_v58 = vsel %vm1113_vm1, %v3851_v59, 0.0 }
 0x1eb   : > { %v1289_v33 = vsub.f32 %v3636_v5, %v1209_v56  ;;  %v3854_v11 = vpop.eup %3198  ;;  %v1366_v54 = vmul.f32 1.442695, %v1288_v47  ;;  %3208 = vpow2.f32 %v1380_v14 }
 0x1ec   : > { %v1242_v57 = vpop.xlane.xlu0 %1241  ;;  %v1516_v2 = vsel %vm1113_vm1, %v3854_v11, 0.0 }
 0x1ed   : > { %v1368_v35 = vmul.f32 1.442695, %v1289_v33  ;;  %3210 = vpow2.f32 %v1366_v54  ;;  %v1300_v0 = vsub.f32 %v3640_v15, %v1242_v57  ;;  %1517 = vadd.xlane.f32.xlu0 %v1516_v2  ;;  %v3861_v41 = vpop.eup %3200 }
 0x1ee   : > { %v1245_v4 = vpop.xlane.xlu1 %1244  ;;  %1484 = vadd.xlane.f32.xlu1 %v1483_v58  ;;  %v1519_v20 = vsel %vm1113_vm1, %v3861_v41, 0.0 }
 0x1ef   : > { %v1301_v5 = vsub.f32 %v3644_v28, %v1245_v4  ;;  %v3864_v7 = vpop.eup %3202  ;;  %v1390_v21 = vmul.f32 1.442695, %v1300_v0  ;;  %3212 = vpow2.f32 %v1368_v35 }
 0x1f0   : > { %v1200_v17 = vpop.xlane.xlu0 %1199  ;;  %v1474_v43 = vsel %vm1113_vm1, %v3864_v7, 0.0 }
 0x1f1   : > { %v1392_v19 = vmul.f32 1.442695, %v1301_v5  ;;  %3214 = vpow2.f32 %v1390_v21  ;;  %v1286_v15 = vsub.f32 %v3650_v32, %v1200_v17  ;;  %1475 = vadd.xlane.f32.xlu0 %v1474_v43  ;;  %v3871_v14 = vpop.eup %3204 }
 0x1f2   : > { %v1203_v29 = vpop.xlane.xlu1 %1202  ;;  %1520 = vadd.xlane.f32.xlu1 %v1519_v20  ;;  %v1477_v54 = vsel %vm1113_vm1, %v3871_v14, 0.0 }
 0x1f3   : > { %v1287_v28 = vsub.f32 %v3652_v34, %v1203_v29  ;;  %v3874_v42 = vpop.eup %3206  ;;  %v1362_v53 = vmul.f32 1.442695, %v1286_v15  ;;  %3216 = vpow2.f32 %v1392_v19  ;;  %v3897_v15 = vld [vmem:[%s3760_s23 + $0x60] sm:$0xff]  }
 0x1f4   : > { %v1236_v56 = vpop.xlane.xlu0 %1235  ;;  %v1510_v26 = vsel %vm1113_vm1, %v3874_v42, 0.0  ;;  %2993 = vmatprep.subr.bf16.mxu0 %v3897_v15 }
 0x1f5   : > { %v1364_v47 = vmul.f32 1.442695, %v1287_v28  ;;  %3218 = vpow2.f32 %v1362_v53  ;;  %v1298_v32 = vsub.f32 %v3656_v40, %v1236_v56  ;;  %1511 = vadd.xlane.f32.xlu0 %v1510_v26  ;;  %v3881_v35 = vpop.eup %3208  ;;  %v3909_v56 = vld [vmem:[%s3760_s23 + $0x90] sm:$0xff]  }
 0x1f6   : > { %v1239_v33 = vpop.xlane.xlu1 %1238  ;;  %1478 = vadd.xlane.f32.xlu1 %v1477_v54  ;;  %v1513_v21 = vsel %vm1113_vm1, %v3881_v35, 0.0  ;;  %3017 = vmatprep.subr.bf16.mxu1 %v3909_v56 }
 0x1f7   : > { %v1299_v34 = vsub.f32 %v3660_v44, %v1239_v33  ;;  %v3884_v57 = vpop.eup %3210  ;;  %v1386_v2 = vmul.f32 1.442695, %v1298_v32  ;;  %3220 = vpow2.f32 %v1364_v47 }
 0x1f8   : > { %v1218_v4 = vpop.xlane.xlu0 %1217  ;;  %v1492_v40 = vsel %vm1113_vm1, %v3884_v57, 0.0 }
 0x1f9   : > { %v1388_v0 = vmul.f32 1.442695, %v1299_v34  ;;  %3222 = vpow2.f32 %v1386_v2  ;;  %v1292_v58 = vsub.f32 %v3664_v46, %v1218_v4  ;;  %1493 = vadd.xlane.f32.xlu0 %v1492_v40  ;;  %v3891_v44 = vpop.eup %3212 }
 0x1fa   : > { %v1221_v5 = vpop.xlane.xlu1 %1220  ;;  %1514 = vadd.xlane.f32.xlu1 %v1513_v21  ;;  %v1495_v53 = vsel %vm1113_vm1, %v3891_v44, 0.0 }
 0x1fb   : > { %v1293_v19 = vsub.f32 %v3668_v51, %v1221_v5  ;;  %v3894_v17 = vpop.eup %3214  ;;  %v1374_v43 = vmul.f32 1.442695, %v1292_v58  ;;  %3224 = vpow2.f32 %v1388_v0 }
 0x1fc   : > { %v1254_v20 = vpop.xlane.xlu0 %1253  ;;  %v1528_v46 = vsel %vm1113_vm1, %v3894_v17, 0.0 }
 0x1fd   : > { %v1376_v29 = vmul.f32 1.442695, %v1293_v19  ;;  %3226 = vpow2.f32 %v1374_v43  ;;  %1529 = vadd.xlane.f32.xlu0 %v1528_v46  ;;  %v3904_v51 = vpop.eup %3216  ;;  %v1304_v40 = vsub.f32 %v3672_v52, %v1254_v20 }
 0x1fe   : > { %v1257_v28 = vpop.xlane.xlu1 %1256  ;;  %1496 = vadd.xlane.f32.xlu1 %v1495_v53  ;;  %v1531_v54 = vsel %vm1113_vm1, %v3904_v51, 0.0 }
 0x1ff   : > { %v3906_v47 = vpop.eup %3218  ;;  %3228 = vpow2.f32 %v1376_v29  ;;  %v1305_v5 = vsub.f32 %v3676_v55, %v1257_v28  ;;  %v1398_v20 = vmul.f32 1.442695, %v1304_v40 }
 0x200   : > { %v1212_v26 = vpop.xlane.xlu0 %1211  ;;  %v1486_v32 = vsel %vm1113_vm1, %v3906_v47, 0.0 }
 0x201   : > { %v1290_v33 = vsub.f32 %v3682_v3, %v1212_v26  ;;  %1487 = vadd.xlane.f32.xlu0 %v1486_v32  ;;  %v3917_v2 = vpop.eup %3220  ;;  %v1400_v53 = vmul.f32 1.442695, %v1305_v5 }
 0x202   : > { %v1215_v34 = vpop.xlane.xlu1 %1214  ;;  %1532 = vadd.xlane.f32.xlu1 %v1531_v54  ;;  %v1489_v29 = vsel %vm1113_vm1, %v3917_v2, 0.0 }
 0x203   : > { %v1291_v0 = vsub.f32 %v3684_v6, %v1215_v34  ;;  %v3920_v4 = vpop.eup %3222  ;;  %v1370_v58 = vmul.f32 1.442695, %v1290_v33 }
 0x204   : > { %v1248_v21 = vpop.xlane.xlu0 %1247  ;;  %v1522_v19 = vsel %vm1113_vm1, %v3920_v4, 0.0 }
 0x205   : > { %v1372_v3 = vmul.f32 1.442695, %v1291_v0  ;;  %3230 = vpow2.f32 %v1370_v58  ;;  %v1302_v43 = vsub.f32 %v3688_v16, %v1248_v21  ;;  %1523 = vadd.xlane.f32.xlu0 %v1522_v19  ;;  %v3929_v46 = vpop.eup %3224 }
 0x206   : > { %v1251_v6 = vpop.xlane.xlu1 %1250  ;;  %1490 = vadd.xlane.f32.xlu1 %v1489_v29  ;;  %v1525_v32 = vsel %vm1113_vm1, %v3929_v46, 0.0 }
 0x207   : > { %3232 = vpow2.f32 %v1372_v3  ;;  %v1303_v52 = vsub.f32 %v3692_v24, %v1251_v6  ;;  %v3932_v55 = vpop.eup %3226  ;;  %v1394_v28 = vmul.f32 1.442695, %v1302_v43 }
 0x208   : > { %4165 = vst [vmem:[#allocation2_spill] sm:$0xff] %v3932_v55  ;;  %v1504_v16 = vsel %vm1113_vm1, %v3932_v55, 0.0 }
 0x209   : > { %v1396_v26 = vmul.f32 1.442695, %v1303_v52  ;;  %3234 = vpow2.f32 %v1394_v28  ;;  %1505 = vadd.xlane.f32.xlu0 %v1504_v16  ;;  %v3938_v33 = vpop.eup %3228 }
 0x20a   : > { %1526 = vadd.xlane.f32.xlu1 %v1525_v32  ;;  %v1507_v24 = vsel %vm1113_vm1, %v3938_v33, 0.0 }
 0x20b   : > { %3236 = vpow2.f32 %v1396_v26 }
 0x20c   : > { %3238 = vpow2.f32 %v1398_v20 }
 0x20d   : > { %3240 = vpow2.f32 %v1400_v53 }
 0x20e   : > { %1508 = vadd.xlane.f32.xlu1 %v1507_v24 }
 0x20f   : > { %v3942_v54 = vpop.eup %3230 }
 0x210   : > { %v1498_v0 = vsel %vm1113_vm1, %v3942_v54, 0.0 }
 0x211   : > { %v3944_v34 = vpop.eup %3232  ;;  %1499 = vadd.xlane.f32.xlu0 %v1498_v0 }
 0x212   : > { %4166 = vst [vmem:[#allocation3_spill] sm:$0xff] %v3944_v34  ;;  %v1501_v40 = vsel %vm1113_vm1, %v3944_v34, 0.0 }
 0x213   : > { %1502 = vadd.xlane.f32.xlu1 %v1501_v40  ;;  %v3950_v58 = vpop.eup %3234 }
 0x214   : > { %4167 = vst [vmem:[#allocation4_spill] sm:$0xff] %v3950_v58  ;;  %v1534_v3 = vsel %vm1113_vm1, %v3950_v58, 0.0 }
 0x215   : > { %v3952_v5 = vpop.eup %3236  ;;  %1535 = vadd.xlane.f32.xlu0 %v1534_v3 }
 0x216   : > { %4168 = vst [vmem:[#allocation5_spill] sm:$0xff] %v3952_v5  ;;  %v3956_v21 = vpop.eup %3238  ;;  %v1537_v19 = vsel %vm1113_vm1, %v3952_v5, 0.0 }
 0x217   : > { %4169 = vst [vmem:[#allocation6_spill] sm:$0xff] %v3956_v21  ;;  %v3960_v43 = vpop.eup %3240  ;;  %1538 = vadd.xlane.f32.xlu1 %v1537_v19  ;;  %v1540_v29 = vsel %vm1113_vm1, %v3956_v21, 0.0 }
 0x218   : > { %4170 = vst [vmem:[#allocation7_spill] sm:$0xff] %v3960_v43  ;;  %v1543_v6 = vsel %vm1113_vm1, %v3960_v43, 0.0 }
 0x219   : > { %1541 = vadd.xlane.f32.xlu0 %v1540_v29 }
 0x21b   : > { %1544 = vadd.xlane.f32.xlu1 %v1543_v6 }
 0x246   : > { %v1410_v52 = vpop.xlane.xlu0 %1409 }
 0x24a   : > { %v1446_v20 = vpop.xlane.xlu0 %1445 }
 0x24b   : > { %v1413_v28 = vpop.xlane.xlu1 %1412 }
 0x24c   : > { %3242 = vrcp.f32 %v1413_v28 }
 0x24e   : > { %v1404_v53 = vpop.xlane.xlu0 %1403 }
 0x24f   : > { %v1449_v26 = vpop.xlane.xlu1 %1448  ;;  %3244 = vrcp.f32 %v1404_v53 }
 0x250   : > { %3246 = vrcp.f32 %v1410_v52 }
 0x252   : > { %v1440_v16 = vpop.xlane.xlu0 %1439 }
 0x253   : > { %v1407_v32 = vpop.xlane.xlu1 %1406 }
 0x254   : > { %3248 = vrcp.f32 %v1407_v32 }
 0x255   : > { %3250 = vrcp.f32 %v1449_v26 }
 0x256   : > { %3252 = vrcp.f32 %v1440_v16  ;;  %v1422_v24 = vpop.xlane.xlu0 %1421  ;;  %v3243_v3 = vpop.eup %3242 }
 0x257   : > { %3254 = vrcp.f32 %v1446_v20  ;;  %v1443_v0 = vpop.xlane.xlu1 %1442  ;;  %v1597_v21 = vmul.f32 %v3243_v3, %v3716_v36  ;;  %v3135_v3 = vld [vmem:[%s3760_s23 + $0x68] sm:$0xff]  }
 0x258   : > { %3256 = vrcp.f32 %v1443_v0 }
 0x259   : > { %v3245_v29 = vpop.eup %3244 }
 0x25a   : > { %v1458_v40 = vpop.xlane.xlu0 %1457  ;;  %v3247_v6 = vpop.eup %3246  ;;  %v1594_v32 = vmul.f32 %v3245_v29, %v3724_v9 }
 0x25b   : > { %v1425_v19 = vpop.xlane.xlu1 %1424  ;;  %v1596_v20 = vmul.f32 %v3247_v6, %v3708_v37 }
 0x25c   : > { %3258 = vrcp.f32 %v1425_v19  ;;  %v3138_v19 = vld [vmem:[%s3760_s23 + $0x98] sm:$0xff]  }
 0x25d   : > { %v1643_v55 = vpack.c.bf16 %v1597_v21, %v1596_v20 }
 0x25e   : > { %v3249_v43 = vpop.eup %3248  ;;  %v1416_v28 = vpop.xlane.xlu0 %1415 }
 0x25f   : > { %v3251_v53 = vpop.eup %3250  ;;  %v1461_v52 = vpop.xlane.xlu1 %1460  ;;  %v1595_v26 = vmul.f32 %v3249_v43, %v3736_v22  ;;  %3260 = vrcp.f32 %v1416_v28 }
 0x260   : > { %v3253_v16 = vpop.eup %3252  ;;  %v1609_v34 = vmul.f32 %v3251_v53, %v3726_v23  ;;  %3262 = vrcp.f32 %v1422_v24  ;;  %v3142_v53 = vld [vmem:[%s3760_s23 + $0xa8] sm:$0xff]  }
 0x261   : > { %v3255_v0 = vpop.eup %3254  ;;  %v1642_v5 = vpack.c.bf16 %v1595_v26, %v1594_v32  ;;  %v1606_v22 = vmul.f32 %v3253_v16, %v3730_v45 }
 0x262   : > { %v3257_v58 = vpop.eup %3256  ;;  %v1452_v36 = vpop.xlane.xlu0 %1451  ;;  %v1608_v43 = vmul.f32 %v3255_v0, %v3714_v50 }
 0x263   : > { %2957 = vmatprep.mubr.msk.bf16.mxu0 %vm1113_vm1, %v1642_v5  ;;  %v1419_v9 = vpop.xlane.xlu1 %1418  ;;  %v1607_v37 = vmul.f32 %v3257_v58, %v3743_v61  ;;  %v3137_v5 = vld [vmem:[%s3760_s23 + $0x70] sm:$0xff]   ;;  %v3139_v61 = vld [vmem:[%s3760_s23 + $0x78] sm:$0xff]  }
 0x264   : > { %3264 = vrcp.f32 %v1419_v9  ;;  %2958 = vmatmul.mubr.msk.bf16.vlgmr.msra.gmra.mrb[24].mxu0 %vm1113_vm1, %v1643_v55  ;;  %v1649_v21 = vpack.c.bf16 %v1609_v34, %v1608_v43  ;;  %v3144_v43 = vld [vmem:[%s3760_s23 + $0xb0] sm:$0xff]  }
 0x265   : > { %3266 = vrcp.f32 %v1461_v52  ;;  %v1648_v23 = vpack.c.bf16 %v1607_v37, %v1606_v22  ;;  %2994 = vmatpush3.bf16.msra.mxu0 %v3897_v15  ;;  %v3140_v15 = vld [vmem:[%s3760_s23 + $0xa0] sm:$0xff]  }
 0x266   : > { %3268 = vrcp.f32 %v1452_v36  ;;  %v1434_v24 = vpop.xlane.xlu0 %1433  ;;  %2995 = vmatprep.subr.bf16.mxu0 %v3135_v3  ;;  %v3259_v55 = vpop.eup %3258 }
 0x267   : > { %3270 = vrcp.f32 %v1458_v40  ;;  %2981 = vmatprep.mubr.msk.bf16.mxu1 %vm1113_vm1, %v1648_v23  ;;  %v1455_v45 = vpop.xlane.xlu1 %1454  ;;  %v1601_v28 = vmul.f32 %v3259_v55, %v3753_v60 }
 0x268   : > { %3272 = vrcp.f32 %v1455_v45  ;;  %2982 = vmatmul.mubr.msk.bf16.vlgmr.msra.gmra.mrb[24].mxu1 %vm1113_vm1, %v1649_v21 }
 0x269   : > { %2996 = vmatpush3.bf16.msra.mxu0 %v3135_v3  ;;  %3018 = vmatpush3.bf16.msra.mxu1 %v3909_v56  ;;  %v3261_v58 = vpop.eup %3260  ;;  %v3141_v56 = vld [vmem:[%s3760_s23 + $0x80] sm:$0xff]  }
 0x26a   : > { %v1470_v50 = vpop.xlane.xlu0 %1469  ;;  %2997 = vmatprep.subr.bf16.mxu0 %v3137_v5  ;;  %3019 = vmatprep.subr.bf16.mxu1 %v3138_v19  ;;  %v3263_v40 = vpop.eup %3262  ;;  %v1598_v26 = vmul.f32 %v3261_v58, %v3773_v48  ;;  %v3143_v48 = vld [vmem:[%s3760_s23 + $0x88] sm:$0xff]  }
 0x26b   : > { %v1437_v34 = vpop.xlane.xlu1 %1436  ;;  %v1600_v0 = vmul.f32 %v3263_v40, %v3746_v1 }
 0x26c   : > { %3274 = vrcp.f32 %v1437_v34 }
 0x26d   : > { %2998 = vmatpush3.bf16.msra.mxu0 %v3137_v5  ;;  %3020 = vmatpush3.bf16.msra.mxu1 %v3138_v19  ;;  %v1645_v22 = vpack.c.bf16 %v1601_v28, %v1600_v0  ;;  %v3145_v19 = vld [vmem:[%s3760_s23 + $0xb8] sm:$0xff]  }
 0x26e   : > { %v3265_v29 = vpop.eup %3264  ;;  %v1428_v6 = vpop.xlane.xlu0 %1427  ;;  %2999 = vmatprep.subr.bf16.mxu0 %v3139_v61  ;;  %3021 = vmatprep.subr.bf16.mxu1 %v3140_v15 }
 0x26f   : > { %v3267_v52 = vpop.eup %3266  ;;  %v1473_v32 = vpop.xlane.xlu1 %1472  ;;  %v1599_v16 = vmul.f32 %v3265_v29, %v3782_v38  ;;  %3276 = vrcp.f32 %v1428_v6 }
 0x270   : > { %v3269_v20 = vpop.eup %3268  ;;  %v1613_v37 = vmul.f32 %v3267_v52, %v3770_v25  ;;  %3278 = vrcp.f32 %v1434_v24 }
 0x271   : > { %v3271_v36 = vpop.eup %3270  ;;  %v1644_v3 = vpack.c.bf16 %v1599_v16, %v1598_v26  ;;  %3000 = vmatpush3.bf16.msra.mxu0 %v3139_v61  ;;  %3022 = vmatpush3.bf16.msra.mxu1 %v3140_v15  ;;  %v1610_v38 = vmul.f32 %v3269_v20, %v3785_v39 }
 0x272   : > { %v3273_v60 = vpop.eup %3272  ;;  %v1464_v9 = vpop.xlane.xlu0 %1463  ;;  %3001 = vmatprep.subr.bf16.mxu0 %v3141_v56  ;;  %3023 = vmatprep.subr.bf16.mxu1 %v3142_v53  ;;  %v1612_v21 = vmul.f32 %v3271_v36, %v3762_v31 }
 0x273   : > { %2961 = vmatprep.mubr.msk.bf16.mxu0 %vm1113_vm1, %v1644_v3  ;;  %v1431_v1 = vpop.xlane.xlu1 %1430  ;;  %v1611_v23 = vmul.f32 %v3273_v60, %v3794_v63 }
 0x274   : > { %3280 = vrcp.f32 %v1431_v1  ;;  %2962 = vmatmul.mubr.msk.bf16.gmra.mrb[28].mxu0 %vm1113_vm1, %v1645_v22  ;;  %v1651_v24 = vpack.c.bf16 %v1613_v37, %v1612_v21 }
 0x275   : > { %3282 = vrcp.f32 %v1473_v32  ;;  %v1650_v25 = vpack.c.bf16 %v1611_v23, %v1610_v38  ;;  %3002 = vmatpush3.bf16.msra.mxu0 %v3141_v56  ;;  %3024 = vmatpush3.bf16.msra.mxu1 %v3142_v53 }
 0x276   : > { %3284 = vrcp.f32 %v1464_v9  ;;  %v1482_v5 = vpop.xlane.xlu0 %1481  ;;  %3003 = vmatprep.subr.bf16.mxu0 %v3143_v48  ;;  %3025 = vmatprep.subr.bf16.mxu1 %v3144_v43  ;;  %v3275_v63 = vpop.eup %3274 }
 0x277   : > { %3286 = vrcp.f32 %v1470_v50  ;;  %2985 = vmatprep.mubr.msk.bf16.mxu1 %vm1113_vm1, %v1650_v25  ;;  %v1467_v39 = vpop.xlane.xlu1 %1466  ;;  %v1605_v58 = vmul.f32 %v3275_v63, %v3806_v18 }
 0x278   : > { %3288 = vrcp.f32 %v1467_v39  ;;  %2986 = vmatmul.mubr.msk.bf16.gmra.mrb[28].mxu1 %vm1113_vm1, %v1651_v24 }
 0x279   : > { %3004 = vmatpush3.bf16.msra.mxu0 %v3143_v48  ;;  %3026 = vmatpush3.bf16.msra.mxu1 %v3144_v43  ;;  %v3277_v61 = vpop.eup %3276 }
 0x27a   : > { %v1518_v31 = vpop.xlane.xlu0 %1517  ;;  %3027 = vmatprep.subr.bf16.mxu1 %v3145_v19  ;;  %v3279_v15 = vpop.eup %3278  ;;  %v1602_v29 = vmul.f32 %v3277_v61, %v3821_v49 }
 0x27b   : > { %v1485_v45 = vpop.xlane.xlu1 %1484  ;;  %v1604_v56 = vmul.f32 %v3279_v15, %v3797_v27 }
 0x27c   : > { %3290 = vrcp.f32 %v1485_v45 }
 0x27d   : > { %3028 = vmatpush3.bf16.msra.mxu1 %v3145_v19  ;;  %v1647_v16 = vpack.c.bf16 %v1605_v58, %v1604_v56 }
 0x27e   : > { %v3281_v55 = vpop.eup %3280  ;;  %v1476_v34 = vpop.xlane.xlu0 %1475 }
 0x27f   : > { %v3283_v50 = vpop.eup %3282  ;;  %v1521_v40 = vpop.xlane.xlu1 %1520  ;;  %v1603_v6 = vmul.f32 %v3281_v55, %v3830_v13  ;;  %3292 = vrcp.f32 %v1476_v34 }
 0x280   : > { %v3285_v28 = vpop.eup %3284  ;;  %v1617_v20 = vmul.f32 %v3283_v50, %v3818_v10  ;;  %3294 = vrcp.f32 %v1482_v5 }
 0x281   : > { %v3287_v53 = vpop.eup %3286  ;;  %v1646_v52 = vpack.c.bf16 %v1603_v6, %v1602_v29  ;;  %v1614_v49 = vmul.f32 %v3285_v28, %v3833_v12 }
 0x282   : > { %v3289_v32 = vpop.eup %3288  ;;  %v1512_v26 = vpop.xlane.xlu0 %1511  ;;  %v1616_v27 = vmul.f32 %v3287_v53, %v3809_v30 }
 0x283   : > { %2965 = vmatprep.mubr.msk.bf16.mxu0 %vm1113_vm1, %v1646_v52  ;;  %v1479_v18 = vpop.xlane.xlu1 %1478  ;;  %v1615_v13 = vmul.f32 %v3289_v32, %v3841_v8 }
 0x284   : > { %3296 = vrcp.f32 %v1479_v18  ;;  %2966 = vmatmul.mubr.msk.bf16.gmra.mrb[32].mxu0 %vm1113_vm1, %v1647_v16  ;;  %v1653_v3 = vpack.c.bf16 %v1617_v20, %v1616_v27 }
 0x285   : > { %3298 = vrcp.f32 %v1521_v40  ;;  %v1652_v0 = vpack.c.bf16 %v1615_v13, %v1614_v49 }
 0x286   : > { %3300 = vrcp.f32 %v1512_v26  ;;  %v1494_v36 = vpop.xlane.xlu0 %1493  ;;  %v3291_v60 = vpop.eup %3290 }
 0x287   : > { %3302 = vrcp.f32 %v1518_v31  ;;  %2989 = vmatprep.mubr.msk.bf16.mxu1 %vm1113_vm1, %v1652_v0  ;;  %v1515_v10 = vpop.xlane.xlu1 %1514  ;;  %v1621_v30 = vmul.f32 %v3291_v60, %v3851_v59  ;;  %v4172_v60 = vld [vmem:[#allocation2_spill] sm:$0xff] }
 0x288   : > { %3304 = vrcp.f32 %v1515_v10  ;;  %2990 = vmatmul.mubr.msk.bf16.gmra.mrb[32].mxu1 %vm1113_vm1, %v1653_v3 }
 0x289   : > { %v3293_v9 = vpop.eup %3292 }
 0x28a   : > { %v1530_v12 = vpop.xlane.xlu0 %1529  ;;  %v3295_v22 = vpop.eup %3294  ;;  %v1618_v38 = vmul.f32 %v3293_v9, %v3864_v7 }
 0x28b   : > { %v1497_v8 = vpop.xlane.xlu1 %1496  ;;  %v1620_v25 = vmul.f32 %v3295_v22, %v3844_v62 }
 0x28c   : > { %3306 = vrcp.f32 %v1497_v8 }
 0x28d   : > { %v1655_v39 = vpack.c.bf16 %v1621_v30, %v1620_v25 }
 0x28e   : > { %v3297_v37 = vpop.eup %3296  ;;  %v1488_v48 = vpop.xlane.xlu0 %1487 }
 0x28f   : > { %v3299_v43 = vpop.eup %3298  ;;  %v1533_v1 = vpop.xlane.xlu1 %1532  ;;  %v1619_v23 = vmul.f32 %v3297_v37, %v3871_v14  ;;  %3308 = vrcp.f32 %v1488_v48  ;;  %v4173_v48 = vld [vmem:[#allocation4_spill] sm:$0xff] }
 0x290   : > { %v3301_v21 = vpop.eup %3300  ;;  %v1633_v31 = vmul.f32 %v3299_v43, %v3861_v41  ;;  %3310 = vrcp.f32 %v1494_v36 }
 0x291   : > { %v3303_v5 = vpop.eup %3302  ;;  %v1654_v24 = vpack.c.bf16 %v1619_v23, %v1618_v38  ;;  %v1630_v7 = vmul.f32 %v3301_v21, %v3874_v42  ;;  %v4175_v21 = vld [vmem:[#allocation6_spill] sm:$0xff] }
 0x292   : > { %v3305_v19 = vpop.eup %3304  ;;  %v1524_v59 = vpop.xlane.xlu0 %1523  ;;  %v1632_v45 = vmul.f32 %v3303_v5, %v3854_v11  ;;  %v4176_v5 = vld [vmem:[#allocation7_spill] sm:$0xff] }
 0x293   : > { %3005 = vmatprep.mubr.msk.bf16.mxu0 %vm1113_vm1, %v1654_v24  ;;  %v1491_v63 = vpop.xlane.xlu1 %1490  ;;  %v1631_v14 = vmul.f32 %v3305_v19, %v3881_v35 }
 0x294   : > { %3312 = vrcp.f32 %v1491_v63  ;;  %3006 = vmatmul.mubr.msk.bf16.vlgmr.msra.gmra.mrb[36].mxu0 %vm1113_vm1, %v1655_v39  ;;  %v1661_v61 = vpack.c.bf16 %v1633_v31, %v1632_v45 }
 0x295   : > { %3314 = vrcp.f32 %v1533_v1  ;;  %v1660_v62 = vpack.c.bf16 %v1631_v14, %v1630_v7  ;;  %v4174_v1 = vld [vmem:[#allocation5_spill] sm:$0xff] }
 0x296   : > { %3316 = vrcp.f32 %v1524_v59  ;;  %v1506_v15 = vpop.xlane.xlu0 %1505  ;;  %v3307_v42 = vpop.eup %3306 }
 0x297   : > { %3318 = vrcp.f32 %v1530_v12  ;;  %3029 = vmatprep.mubr.msk.bf16.mxu1 %vm1113_vm1, %v1660_v62  ;;  %v1527_v41 = vpop.xlane.xlu1 %1526  ;;  %v1625_v50 = vmul.f32 %v3307_v42, %v3891_v44  ;;  %v4171_v12 = vld [vmem:[#allocation3_spill] sm:$0xff] }
 0x298   : > { %3320 = vrcp.f32 %v1527_v41  ;;  %3030 = vmatmul.mubr.msk.bf16.vlgmr.msra.gmra.mrb[36].mxu1 %vm1113_vm1, %v1661_v61 }
 0x299   : > { %v3309_v35 = vpop.eup %3308 }
 0x29a   : > { %v3311_v34 = vpop.eup %3310  ;;  %v1622_v6 = vmul.f32 %v3309_v35, %v3906_v47 }
 0x29b   : > { %v1509_v55 = vpop.xlane.xlu1 %1508  ;;  %v1624_v53 = vmul.f32 %v3311_v34, %v3884_v57 }
 0x29c   : > { %3322 = vrcp.f32 %v1509_v55 }
 0x29d   : > { %3324 = vrcp.f32 %v1506_v15  ;;  %v1657_v20 = vpack.c.bf16 %v1625_v50, %v1624_v53 }
 0x29e   : > { %v3313_v11 = vpop.eup %3312  ;;  %v1500_v58 = vpop.xlane.xlu0 %1499 }
 0x29f   : > { %v3315_v40 = vpop.eup %3314  ;;  %3326 = vrcp.f32 %v1500_v58  ;;  %v1623_v28 = vmul.f32 %v3313_v11, %v3917_v2 }
 0x2a0   : > { %v1503_v29 = vpop.xlane.xlu1 %1502  ;;  %v3317_v56 = vpop.eup %3316  ;;  %v1637_v18 = vmul.f32 %v3315_v40, %v3904_v51 }
 0x2a1   : > { %3328 = vrcp.f32 %v1503_v29  ;;  %v3319_v52 = vpop.eup %3318  ;;  %v1656_v32 = vpack.c.bf16 %v1623_v28, %v1622_v6  ;;  %v1634_v49 = vmul.f32 %v3317_v56, %v3920_v4 }
 0x2a2   : > { %v3321_v26 = vpop.eup %3320  ;;  %v1536_v16 = vpop.xlane.xlu0 %1535  ;;  %v1636_v57 = vmul.f32 %v3319_v52, %v3894_v17 }
 0x2a3   : > { %3330 = vrcp.f32 %v1536_v16  ;;  %3009 = vmatprep.mubr.msk.bf16.mxu0 %vm1113_vm1, %v1656_v32  ;;  %v1635_v47 = vmul.f32 %v3321_v26, %v3929_v46 }
 0x2a4   : > { %v1539_v44 = vpop.xlane.xlu1 %1538  ;;  %3010 = vmatmul.mubr.msk.bf16.gmra.mrb[40].mxu0 %vm1113_vm1, %v1657_v20  ;;  %v1663_v27 = vpack.c.bf16 %v1637_v18, %v1636_v57 }
 0x2a5   : > { %3332 = vrcp.f32 %v1539_v44  ;;  %v1662_v2 = vpack.c.bf16 %v1635_v47, %v1634_v49 }
 0x2a6   : > { %v1542_v13 = vpop.xlane.xlu0 %1541  ;;  %v3323_v0 = vpop.eup %3322 }
 0x2a7   : > { %3334 = vrcp.f32 %v1542_v13  ;;  %3033 = vmatprep.mubr.msk.bf16.mxu1 %vm1113_vm1, %v1662_v2  ;;  %v3325_v36 = vpop.eup %3324  ;;  %v1629_v46 = vmul.f32 %v3323_v0, %v3938_v33 }
 0x2a8   : > { %v1545_v51 = vpop.xlane.xlu1 %1544  ;;  %3034 = vmatmul.mubr.msk.bf16.gmra.mrb[40].mxu1 %vm1113_vm1, %v1663_v27  ;;  %v1628_v8 = vmul.f32 %v3325_v36, %v4172_v60 }
 0x2a9   : > { %3336 = vrcp.f32 %v1545_v51  ;;  %v3327_v4 = vpop.eup %3326 }
 0x2aa   : > { %v1626_v10 = vmul.f32 %v3327_v4, %v3942_v54  ;;  %v1659_v30 = vpack.c.bf16 %v1629_v46, %v1628_v8 }
 0x2ab   : > { %v3329_v3 = vpop.eup %3328 }
 0x2ac   : > { %v1627_v17 = vmul.f32 %v3329_v3, %v4171_v12 }
 0x2ad   : > { %v3331_v9 = vpop.eup %3330 }
 0x2ae   : > { %v1658_v22 = vpack.c.bf16 %v1627_v17, %v1626_v10  ;;  %v1638_v43 = vmul.f32 %v3331_v9, %v4173_v48 }
 0x2af   : > { %v3333_v37 = vpop.eup %3332 }
 0x2b0   : > { %3013 = vmatprep.mubr.msk.bf16.mxu0 %vm1113_vm1, %v1658_v22  ;;  %v1639_v38 = vmul.f32 %v3333_v37, %v4174_v1 }
 0x2b1   : > { %3014 = vmatmul.mubr.msk.bf16.gmra.mrb[44].mxu0 %vm1113_vm1, %v1659_v30  ;;  %v3335_v33 = vpop.eup %3334 }
 0x2b2   : > { %v1664_v23 = vpack.c.bf16 %v1639_v38, %v1638_v43  ;;  %v1640_v25 = vmul.f32 %v3335_v33, %v4175_v21 }
 0x2b3   : > { %v3337_v54 = vpop.eup %3336 }
 0x2b4   : > { %3037 = vmatprep.mubr.msk.bf16.mxu1 %vm1113_vm1, %v1664_v23  ;;  %v1641_v24 = vmul.f32 %v3337_v54, %v4176_v5 }
 0x2b6   : > { %v1665_v19 = vpack.c.bf16 %v1641_v24, %v1640_v25 }
 0x2b8   : > { %3038 = vmatmul.mubr.msk.bf16.gmra.mrb[44].mxu1 %vm1113_vm1, %v1665_v19 }
 0x337   : > { %v2959_v39 = vpop.f32.mrb[24].mxu0 }
 0x338   : > { %v2707_v31 = vpack.c.bf16 %v2959_v39, %v2959_v39  ;;  %v1754_v59 = vpop.f32.mrb[25].mxu0 }
 0x339   : > { %v2705_v63 = vpack.c.bf16 %v1754_v59, %v1754_v59  ;;  %v2960_v7 = vpop.f32.mrb[26].mxu0 }
 0x33a   : > { %2401 = vst.msk [vmem:[%s4054_s26 + $0x8] sm:$0xf] %vm2398_vm2, %v2707_v31  ;;  %v2708_v14 = vpack.c.bf16 %v2960_v7, %v2960_v7  ;;  %v1757_v45 = vpop.f32.mrb[27].mxu0 }
 0x33b   : > { %2399 = vst.msk [vmem:[%s4054_s26] sm:$0xf] %vm2398_vm2, %v2705_v63  ;;  %v2706_v62 = vpack.c.bf16 %v1757_v45, %v1757_v45  ;;  %v2983_v61 = vpop.f32.mrb[24].mxu1 }
 0x33c   : > { %2402 = vst.msk [vmem:[%s4054_s26 + $0xc] sm:$0xf] %vm2398_vm2, %v2708_v14  ;;  %v2719_v41 = vpack.c.bf16 %v2983_v61, %v2983_v61  ;;  %v1889_v15 = vpop.f32.mrb[25].mxu1 }
 0x33d   : > { %2400 = vst.msk [vmem:[%s4054_s26 + $0x4] sm:$0xf] %vm2398_vm2, %v2706_v62  ;;  %v2717_v42 = vpack.c.bf16 %v1889_v15, %v1889_v15  ;;  %v2984_v55 = vpop.f32.mrb[26].mxu1 }
 0x33e   : > { %2413 = vst.msk [vmem:[%s4054_s26 + $0x38] sm:$0xf] %vm2398_vm2, %v2719_v41  ;;  %v2720_v35 = vpack.c.bf16 %v2984_v55, %v2984_v55  ;;  %v1892_v34 = vpop.f32.mrb[27].mxu1 }
 0x33f   : > { %2411 = vst.msk [vmem:[%s4054_s26 + $0x30] sm:$0xf] %vm2398_vm2, %v2717_v42  ;;  %v2718_v11 = vpack.c.bf16 %v1892_v34, %v1892_v34 }
 0x340   : > { %2414 = vst.msk [vmem:[%s4054_s26 + $0x3c] sm:$0xf] %vm2398_vm2, %v2720_v35 }
 0x341   : > { %2412 = vst.msk [vmem:[%s4054_s26 + $0x34] sm:$0xf] %vm2398_vm2, %v2718_v11 }
 0x347   : > { %v2963_v58 = vpop.f32.mrb[28].mxu0 }
 0x348   : > { %v2711_v50 = vpack.c.bf16 %v2963_v58, %v2963_v58  ;;  %v1770_v40 = vpop.f32.mrb[29].mxu0 }
 0x349   : > { %v2709_v29 = vpack.c.bf16 %v1770_v40, %v1770_v40  ;;  %v2964_v6 = vpop.f32.mrb[30].mxu0 }
 0x34a   : > { %2405 = vst.msk [vmem:[%s4054_s26 + $0x18] sm:$0xf] %vm2398_vm2, %v2711_v50  ;;  %v2712_v28 = vpack.c.bf16 %v2964_v6, %v2964_v6  ;;  %v1773_v56 = vpop.f32.mrb[31].mxu0 }
 0x34b   : > { %2403 = vst.msk [vmem:[%s4054_s26 + $0x10] sm:$0xf] %vm2398_vm2, %v2709_v29  ;;  %v2710_v53 = vpack.c.bf16 %v1773_v56, %v1773_v56  ;;  %v2987_v52 = vpop.f32.mrb[28].mxu1 }
 0x34c   : > { %2406 = vst.msk [vmem:[%s4054_s26 + $0x1c] sm:$0xf] %vm2398_vm2, %v2712_v28  ;;  %v2723_v32 = vpack.c.bf16 %v2987_v52, %v2987_v52  ;;  %v1905_v26 = vpop.f32.mrb[29].mxu1 }
 0x34d   : > { %2404 = vst.msk [vmem:[%s4054_s26 + $0x14] sm:$0xf] %vm2398_vm2, %v2710_v53  ;;  %v2721_v16 = vpack.c.bf16 %v1905_v26, %v1905_v26  ;;  %v2988_v20 = vpop.f32.mrb[30].mxu1 }
 0x34e   : > { %2417 = vst.msk [vmem:[%s4054_s26 + $0x48] sm:$0xf] %vm2398_vm2, %v2723_v32  ;;  %v2724_v18 = vpack.c.bf16 %v2988_v20, %v2988_v20  ;;  %v1908_v44 = vpop.f32.mrb[31].mxu1 }
 0x34f   : > { %2415 = vst.msk [vmem:[%s4054_s26 + $0x40] sm:$0xf] %vm2398_vm2, %v2721_v16  ;;  %v2722_v49 = vpack.c.bf16 %v1908_v44, %v1908_v44 }
 0x350   : > { %2418 = vst.msk [vmem:[%s4054_s26 + $0x4c] sm:$0xf] %vm2398_vm2, %v2724_v18 }
 0x351   : > { %2416 = vst.msk [vmem:[%s4054_s26 + $0x44] sm:$0xf] %vm2398_vm2, %v2722_v49 }
 0x357   : > { %v2967_v47 = vpop.f32.mrb[32].mxu0 }
 0x358   : > { %v2715_v57 = vpack.c.bf16 %v2967_v47, %v2967_v47  ;;  %v1786_v2 = vpop.f32.mrb[33].mxu0 }
 0x359   : > { %v2713_v13 = vpack.c.bf16 %v1786_v2, %v1786_v2  ;;  %v2968_v27 = vpop.f32.mrb[34].mxu0 }
 0x35a   : > { %2409 = vst.msk [vmem:[%s4054_s26 + $0x28] sm:$0xf] %vm2398_vm2, %v2715_v57  ;;  %v2716_v0 = vpack.c.bf16 %v2968_v27, %v2968_v27  ;;  %v1789_v51 = vpop.f32.mrb[35].mxu0 }
 0x35b   : > { %2407 = vst.msk [vmem:[%s4054_s26 + $0x20] sm:$0xf] %vm2398_vm2, %v2713_v13  ;;  %v2714_v36 = vpack.c.bf16 %v1789_v51, %v1789_v51  ;;  %v2991_v4 = vpop.f32.mrb[32].mxu1 }
 0x35c   : > { %2410 = vst.msk [vmem:[%s4054_s26 + $0x2c] sm:$0xf] %vm2398_vm2, %v2716_v0  ;;  %v2727_v3 = vpack.c.bf16 %v2991_v4, %v2991_v4  ;;  %v1921_v46 = vpop.f32.mrb[33].mxu1 }
 0x35d   : > { %2408 = vst.msk [vmem:[%s4054_s26 + $0x24] sm:$0xf] %vm2398_vm2, %v2714_v36  ;;  %v2725_v10 = vpack.c.bf16 %v1921_v46, %v1921_v46  ;;  %v2992_v12 = vpop.f32.mrb[34].mxu1 }
 0x35e   : > { %2421 = vst.msk [vmem:[%s4054_s26 + $0x58] sm:$0xf] %vm2398_vm2, %v2727_v3  ;;  %v2728_v17 = vpack.c.bf16 %v2992_v12, %v2992_v12  ;;  %v1924_v60 = vpop.f32.mrb[35].mxu1 }
 0x35f   : > { %2419 = vst.msk [vmem:[%s4054_s26 + $0x50] sm:$0xf] %vm2398_vm2, %v2725_v10  ;;  %v2726_v8 = vpack.c.bf16 %v1924_v60, %v1924_v60 }
 0x360   : > { %2422 = vst.msk [vmem:[%s4054_s26 + $0x5c] sm:$0xf] %vm2398_vm2, %v2728_v17 }
 0x361   : > { %2420 = vst.msk [vmem:[%s4054_s26 + $0x54] sm:$0xf] %vm2398_vm2, %v2726_v8 }
 0x367   : > { %v3007_v9 = vpop.f32.mrb[36].mxu0 }
 0x368   : > { %v2731_v22 = vpack.c.bf16 %v3007_v9, %v3007_v9  ;;  %v2024_v37 = vpop.f32.mrb[37].mxu0 }
 0x369   : > { %v2729_v30 = vpack.c.bf16 %v2024_v37, %v2024_v37  ;;  %v3008_v48 = vpop.f32.mrb[38].mxu0 }
 0x36a   : > { %2425 = vst.msk [vmem:[%s4054_s26 + $0x68] sm:$0xf] %vm2398_vm2, %v2731_v22  ;;  %v2732_v43 = vpack.c.bf16 %v3008_v48, %v3008_v48  ;;  %v2027_v1 = vpop.f32.mrb[39].mxu0 }
 0x36b   : > { %2423 = vst.msk [vmem:[%s4054_s26 + $0x60] sm:$0xf] %vm2398_vm2, %v2729_v30  ;;  %v2730_v38 = vpack.c.bf16 %v2027_v1, %v2027_v1  ;;  %v3031_v33 = vpop.f32.mrb[36].mxu1 }
 0x36c   : > { %2426 = vst.msk [vmem:[%s4054_s26 + $0x6c] sm:$0xf] %vm2398_vm2, %v2732_v43  ;;  %v2743_v23 = vpack.c.bf16 %v3031_v33, %v3031_v33  ;;  %v2159_v54 = vpop.f32.mrb[37].mxu1 }
 0x36d   : > { %2424 = vst.msk [vmem:[%s4054_s26 + $0x64] sm:$0xf] %vm2398_vm2, %v2730_v38  ;;  %v2741_v21 = vpack.c.bf16 %v2159_v54, %v2159_v54  ;;  %v3032_v25 = vpop.f32.mrb[38].mxu1 }
 0x36e   : > { %2437 = vst.msk [vmem:[%s4054_s26 + $0x98] sm:$0xf] %vm2398_vm2, %v2743_v23  ;;  %v2744_v5 = vpack.c.bf16 %v3032_v25, %v3032_v25  ;;  %v2162_v24 = vpop.f32.mrb[39].mxu1 }
 0x36f   : > { %2435 = vst.msk [vmem:[%s4054_s26 + $0x90] sm:$0xf] %vm2398_vm2, %v2741_v21  ;;  %v2742_v19 = vpack.c.bf16 %v2162_v24, %v2162_v24 }
 0x370   : > { %2438 = vst.msk [vmem:[%s4054_s26 + $0x9c] sm:$0xf] %vm2398_vm2, %v2744_v5 }
 0x371   : > { %2436 = vst.msk [vmem:[%s4054_s26 + $0x94] sm:$0xf] %vm2398_vm2, %v2742_v19 }
 0x377   : > { %v3011_v39 = vpop.f32.mrb[40].mxu0 }
 0x378   : > { %v2735_v31 = vpack.c.bf16 %v3011_v39, %v3011_v39  ;;  %v2040_v59 = vpop.f32.mrb[41].mxu0 }
 0x379   : > { %v2733_v63 = vpack.c.bf16 %v2040_v59, %v2040_v59  ;;  %v3012_v7 = vpop.f32.mrb[42].mxu0 }
 0x37a   : > { %2429 = vst.msk [vmem:[%s4054_s26 + $0x78] sm:$0xf] %vm2398_vm2, %v2735_v31  ;;  %v2736_v14 = vpack.c.bf16 %v3012_v7, %v3012_v7  ;;  %v2043_v45 = vpop.f32.mrb[43].mxu0 }
 0x37b   : > { %2427 = vst.msk [vmem:[%s4054_s26 + $0x70] sm:$0xf] %vm2398_vm2, %v2733_v63  ;;  %v2734_v62 = vpack.c.bf16 %v2043_v45, %v2043_v45  ;;  %v3035_v61 = vpop.f32.mrb[40].mxu1 }
 0x37c   : > { %2430 = vst.msk [vmem:[%s4054_s26 + $0x7c] sm:$0xf] %vm2398_vm2, %v2736_v14  ;;  %v2747_v41 = vpack.c.bf16 %v3035_v61, %v3035_v61  ;;  %v2175_v15 = vpop.f32.mrb[41].mxu1 }
 0x37d   : > { %2428 = vst.msk [vmem:[%s4054_s26 + $0x74] sm:$0xf] %vm2398_vm2, %v2734_v62  ;;  %v2745_v42 = vpack.c.bf16 %v2175_v15, %v2175_v15  ;;  %v3036_v55 = vpop.f32.mrb[42].mxu1 }
 0x37e   : > { %2441 = vst.msk [vmem:[%s4054_s26 + $0xa8] sm:$0xf] %vm2398_vm2, %v2747_v41  ;;  %v2748_v35 = vpack.c.bf16 %v3036_v55, %v3036_v55  ;;  %v2178_v34 = vpop.f32.mrb[43].mxu1 }
 0x37f   : > { %2439 = vst.msk [vmem:[%s4054_s26 + $0xa0] sm:$0xf] %vm2398_vm2, %v2745_v42  ;;  %v2746_v11 = vpack.c.bf16 %v2178_v34, %v2178_v34 }
 0x380   : > { %2442 = vst.msk [vmem:[%s4054_s26 + $0xac] sm:$0xf] %vm2398_vm2, %v2748_v35 }
 0x381   : > { %2440 = vst.msk [vmem:[%s4054_s26 + $0xa4] sm:$0xf] %vm2398_vm2, %v2746_v11 }
 0x384   : > { %v3015_v58 = vpop.f32.mrb[44].mxu0 }
 0x385   : > { %v2739_v50 = vpack.c.bf16 %v3015_v58, %v3015_v58  ;;  %v2056_v40 = vpop.f32.mrb[45].mxu0 }
 0x386   : > { %v2737_v29 = vpack.c.bf16 %v2056_v40, %v2056_v40  ;;  %v3016_v6 = vpop.f32.mrb[46].mxu0 }
 0x387   : > { %2433 = vst.msk [vmem:[%s4054_s26 + $0x88] sm:$0xf] %vm2398_vm2, %v2739_v50  ;;  %v2740_v28 = vpack.c.bf16 %v3016_v6, %v3016_v6  ;;  %v2059_v56 = vpop.f32.mrb[47].mxu0 }
 0x388   : > { %2431 = vst.msk [vmem:[%s4054_s26 + $0x80] sm:$0xf] %vm2398_vm2, %v2737_v29  ;;  %v2738_v53 = vpack.c.bf16 %v2059_v56, %v2059_v56 }
 0x389   : > { %2434 = vst.msk [vmem:[%s4054_s26 + $0x8c] sm:$0xf] %vm2398_vm2, %v2740_v28 }
 0x38a   : > { %2432 = vst.msk [vmem:[%s4054_s26 + $0x84] sm:$0xf] %vm2398_vm2, %v2738_v53 }
 0x38b   : > { %v3039_v52 = vpop.f32.mrb[44].mxu1 }
 0x38c   : > { %v2751_v32 = vpack.c.bf16 %v3039_v52, %v3039_v52  ;;  %v2191_v26 = vpop.f32.mrb[45].mxu1 }
 0x38d   : > { %v2749_v16 = vpack.c.bf16 %v2191_v26, %v2191_v26  ;;  %v3040_v20 = vpop.f32.mrb[46].mxu1 }
 0x38e   : > { %2445 = vst.msk [vmem:[%s4054_s26 + $0xb8] sm:$0xf] %vm2398_vm2, %v2751_v32  ;;  %v2752_v18 = vpack.c.bf16 %v3040_v20, %v3040_v20  ;;  %v2194_v44 = vpop.f32.mrb[47].mxu1 }
 0x38f   : > { %2443 = vst.msk [vmem:[%s4054_s26 + $0xb0] sm:$0xf] %vm2398_vm2, %v2749_v16  ;;  %v2750_v49 = vpack.c.bf16 %v2194_v44, %v2194_v44 }
 0x390   : > { %2446 = vst.msk [vmem:[%s4054_s26 + $0xbc] sm:$0xf] %vm2398_vm2, %v2752_v18 }
 0x391   : > { %2444 = vst.msk [vmem:[%s4054_s26 + $0xb4] sm:$0xf] %vm2398_vm2, %v2750_v49 }
 0x392 PF: > { %s13_s12 = sadd.s32 1, %s3344_s12  }
 0x393   : > { %p10_p4 = scmp.ge.s32.totalorder %s13_s12, 4  }
 0x395   :  { %12 = sbr.rel (!%p10_p4) target bundleno = 1 (0x1), region = 68 }

// kernel: decoder_forward.21
= control target key start
LH: loop header
LB: loop body
LE: loop exit
PB: predicated region body
PF: predicated region fallthrough
CT: control target
= control target key end

     0   :  { %s682_s12 = smov 0   ;;  %s741_s0 = inlined_call_operand.vmem [shape: bf16[192,128], index: 0, kind: input, shape index: {}]   ;;  %s742_s1 = inlined_call_operand.vmem [shape: bf16[128,128], index: 1, kind: input, shape index: {}]   ;;  %s743_s2 = inlined_call_operand.vmem [shape: f32[1,128], index: 2, kind: input, shape index: {}]   ;;  %s744_s3 = inlined_call_operand.vmem [shape: bf16[192,128], index: 3, kind: output, shape index: {}]  }
   0x1 LB: > { %s491_s13 = sadd.s32 4294967295, %s660_s12   ;;  %p495_p0 = scmp.ge.s32.totalorder %s660_s12, 1  ;;  %s660_s12 = sphi %s682_s12, %s13_s12  }
   0x2   : > { %p138_p1 = scmp.lt.s32.totalorder %s660_s12, 3 }
   0x4   : > { %p139_p2 = pnand %p495_p0, %p138_p1 }
   0x5   : > { %v640_v0 = vld [vmem:[%s742_s1] sm:$0xff] (!%p139_p2)   ;;  %s162_s16 = smul.u32 (!%p139_p2), 12, %s491_s13  ;;  %v641_v1 = vld [vmem:[%s742_s1 + $0x8] sm:$0xff] (!%p139_p2)   ;;  %v642_v2 = vld [vmem:[%s742_s1 + $0x10] sm:$0xff] (!%p139_p2)  }
   0x6   : > { %142 = sbr.rel (%p139_p2) target bundleno = 266 (0x10a), region = 32  ;;  %616 = vmatprep.subr.bf16.mxu1 (!%p139_p2), %v640_v0  ;;  %588 = vmatprep.subr.bf16.mxu0 (!%p139_p2), %v640_v0  ;;  %v643_v3 = vld [vmem:[%s742_s1 + $0x18] sm:$0xff] (!%p139_p2)   ;;  %v644_v6 = vld [vmem:[%s742_s1 + $0x20] sm:$0xff] (!%p139_p2)   ;;  %v645_v7 = vld [vmem:[%s742_s1 + $0x28] sm:$0xff] (!%p139_p2)  }
   0x7   : > { %p163_p3 = scmp.lt.s32.totalorder (!%p139_p2), %s162_s16, 23  ;;  %624 = vmatpush3.bf16.msra.mxu1 (!%p139_p2), %v640_v0  ;;  %589 = vmatpush3.bf16.msra.mxu0 (!%p139_p2), %v640_v0  ;;  %v646_v8 = vld [vmem:[%s742_s1 + $0x30] sm:$0xff] (!%p139_p2)   ;;  %v647_v9 = vld [vmem:[%s742_s1 + $0x38] sm:$0xff] (!%p139_p2)   ;;  %v498_v14 = vld [vmem:[%s743_s2] ss:$0 sm:$0xff] (!%p139_p2) }
   0x8   : > { %617 = vmatprep.subr.bf16.mxu1 (!%p139_p2), %v641_v1  ;;  %590 = vmatprep.subr.bf16.mxu0 (!%p139_p2), %v641_v1 }
   0xb   : > { %625 = vmatpush3.bf16.msra.mxu1 (!%p139_p2), %v641_v1  ;;  %591 = vmatpush3.bf16.msra.mxu0 (!%p139_p2), %v641_v1 }
   0xc   : > { %618 = vmatprep.subr.bf16.mxu1 (!%p139_p2), %v642_v2  ;;  %592 = vmatprep.subr.bf16.mxu0 (!%p139_p2), %v642_v2 }
   0xd   : > { %s746_s16 = smov (!%p163_p3, %s162_s16), 23 }
   0xe   : > { %s496_s21 = sshll.u32 %s746_s16, 2 }
   0xf   : > { %s710_s26 = scalar_lea.vmem %s741_s0, %s496_s21  ;;  %626 = vmatpush3.bf16.msra.mxu1 %v642_v2  ;;  %593 = vmatpush3.bf16.msra.mxu0 %v642_v2  ;;  %s172_s13 = scalar_lea.vmem %s744_s3, %s496_s21 }
  0x10   : > { %v648_v4 = vld [vmem:[%s710_s26 + $0x10] sm:$0xff]   ;;  %v650_v5 = vld [vmem:[%s710_s26] sm:$0xff]   ;;  %619 = vmatprep.subr.bf16.mxu1 %v643_v3  ;;  %594 = vmatprep.subr.bf16.mxu0 %v643_v3  ;;  %v649_v10 = vld [vmem:[%s710_s26 + $0x18] sm:$0xff]  }
  0x11   : > { %608 = vmatprep.mubr.bf16.mxu1 %v648_v4  ;;  %604 = vmatprep.mubr.bf16.mxu0 %v650_v5  ;;  %v651_v11 = vld [vmem:[%s710_s26 + $0x8] sm:$0xff]   ;;  %v652_v12 = vld [vmem:[%s710_s26 + $0x20] sm:$0xff]  }
  0x12   : > { %v653_v13 = vld [vmem:[%s710_s26 + $0x28] sm:$0xff]  }
  0x13   : > { %627 = vmatpush3.bf16.msra.mxu1 %v643_v3  ;;  %595 = vmatpush3.bf16.msra.mxu0 %v643_v3 }
  0x14   : > { %620 = vmatprep.subr.bf16.mxu1 %v644_v6  ;;  %596 = vmatprep.subr.bf16.mxu0 %v644_v6 }
  0x17   : > { %628 = vmatpush3.bf16.msra.mxu1 %v644_v6  ;;  %597 = vmatpush3.bf16.msra.mxu0 %v644_v6 }
  0x18   : > { %621 = vmatprep.subr.bf16.mxu1 %v645_v7  ;;  %598 = vmatprep.subr.bf16.mxu0 %v645_v7 }
  0x1b   : > { %629 = vmatpush3.bf16.msra.mxu1 %v645_v7  ;;  %599 = vmatpush3.bf16.msra.mxu0 %v645_v7 }
  0x1c   : > { %622 = vmatprep.subr.bf16.mxu1 %v646_v8  ;;  %600 = vmatprep.subr.bf16.mxu0 %v646_v8 }
  0x1f   : > { %630 = vmatpush3.bf16.msra.mxu1 %v646_v8  ;;  %601 = vmatpush3.bf16.msra.mxu0 %v646_v8 }
  0x20   : > { %623 = vmatprep.subr.bf16.mxu1 %v647_v9  ;;  %602 = vmatprep.subr.bf16.mxu0 %v647_v9 }
  0x23   : > { %631 = vmatpush3.bf16.msra.mxu1 %v647_v9  ;;  %603 = vmatpush3.bf16.msra.mxu0 %v647_v9 }
  0x26   : > { %609 = vmatmul.mubr.bf16.vlgmr.msra.gmra.mrb[0].mxu1 %v649_v10  ;;  %605 = vmatmul.mubr.bf16.vlgmr.msra.gmra.mrb[0].mxu0 %v651_v11 }
  0x27   : > { %612 = vmatprep.mubr.bf16.mxu1 %v652_v12 }
  0x2e   : > { %613 = vmatmul.mubr.bf16.gmra.mrb[4].mxu1 %v653_v13 }
  0xf9   : > { %v610_v15 = vpop.f32.mrb[0].mxu1  ;;  %v606_v16 = vpop.f32.mrb[0].mxu0 }
  0xfa   : > { %v344_v17 = vpop.f32.mrb[1].mxu1  ;;  %v337_v18 = vadd.f32 %v606_v16, %v498_v14  ;;  %v328_v19 = vpop.f32.mrb[1].mxu0  ;;  %v353_v23 = vadd.f32 %v610_v15, %v498_v14 }
  0xfb   : > { %v611_v20 = vpop.f32.mrb[2].mxu1  ;;  %v329_v21 = vadd.f32 %v498_v14, %v328_v19  ;;  %v607_v22 = vpop.f32.mrb[2].mxu0  ;;  %v345_v28 = vadd.f32 %v498_v14, %v344_v17 }
  0xfc   : > { %v356_v24 = vadd.f32 %v611_v20, %v498_v14  ;;  %v347_v25 = vpop.f32.mrb[3].mxu1  ;;  %v340_v26 = vadd.f32 %v607_v22, %v498_v14  ;;  %v331_v27 = vpop.f32.mrb[3].mxu0 }
  0xfd   : > { %v348_v29 = vadd.f32 %v498_v14, %v347_v25  ;;  %v332_v30 = vadd.f32 %v498_v14, %v331_v27 }
  0xfe   : > { %v557_v31 = vpack.c.bf16 %v356_v24, %v353_v23  ;;  %v547_v32 = vpack.c.bf16 %v340_v26, %v337_v18 }
  0xff   : > { %v552_v33 = vpack.c.bf16 %v348_v29, %v345_v28  ;;  %v542_v34 = vpack.c.bf16 %v332_v30, %v329_v21 }
 0x100   : > { %571 = vst [vmem:[%s172_s13 + $0x18] sm:$0xff] %v557_v31   ;;  %569 = vst [vmem:[%s172_s13 + $0x8] sm:$0xff] %v547_v32  }
 0x101   : > { %570 = vst [vmem:[%s172_s13 + $0x10] sm:$0xff] %v552_v33   ;;  %543 = vst [vmem:[%s172_s13] sm:$0xff] %v542_v34   ;;  %v614_v35 = vpop.f32.mrb[4].mxu1 }
 0x102   : > { %v360_v36 = vpop.f32.mrb[5].mxu1  ;;  %v369_v38 = vadd.f32 %v614_v35, %v498_v14 }
 0x103   : > { %v615_v37 = vpop.f32.mrb[6].mxu1  ;;  %v361_v41 = vadd.f32 %v498_v14, %v360_v36 }
 0x104   : > { %v372_v39 = vadd.f32 %v615_v37, %v498_v14  ;;  %v363_v40 = vpop.f32.mrb[7].mxu1 }
 0x105   : > { %v364_v42 = vadd.f32 %v498_v14, %v363_v40 }
 0x106   : > { %v567_v43 = vpack.c.bf16 %v372_v39, %v369_v38 }
 0x107   : > { %v562_v44 = vpack.c.bf16 %v364_v42, %v361_v41 }
 0x108   : > { %573 = vst [vmem:[%s172_s13 + $0x28] sm:$0xff] %v567_v43  }
 0x109   : > { %572 = vst [vmem:[%s172_s13 + $0x20] sm:$0xff] %v562_v44  }
 0x10a PF: > { %s13_s12 = sadd.s32 1, %s660_s12  }
 0x10b   : > { %p10_p4 = scmp.ge.s32.totalorder %s13_s12, 4  }
 0x10d   :  { %12 = sbr.rel (!%p10_p4) target bundleno = 1 (0x1), region = 62 }

// kernel: decoder_forward.22
= control target key start
LH: loop header
LB: loop body
LE: loop exit
PB: predicated region body
PF: predicated region fallthrough
CT: control target
= control target key end

     0   :  { %s787_s12 = smov 0   ;;  %s931_s0 = inlined_call_operand.vmem [shape: bf16[256,128], index: 0, kind: input, shape index: {}]   ;;  %s932_s1 = inlined_call_operand.vmem [shape: bf16[128,256], index: 1, kind: input, shape index: {}]   ;;  %s933_s2 = inlined_call_operand.vmem [shape: f32[1,256], index: 2, kind: input, shape index: {}]   ;;  %s934_s3 = inlined_call_operand.vmem [shape: bf16[256,256], index: 3, kind: output, shape index: {}]  }
   0x1 LB: > { %s632_s13 = sadd.s32 4294967295, %s764_s12   ;;  %p636_p0 = scmp.ge.s32.totalorder %s764_s12, 1  ;;  %s764_s12 = sphi %s787_s12, %s13_s12  }
   0x2   : > { %p138_p1 = scmp.lt.s32.totalorder %s764_s12, 3 }
   0x4   : > { %p139_p2 = pnand %p636_p0, %p138_p1 }
   0x5   : > { %v726_v0 = vld [vmem:[%s932_s1 + $0x4] ss:$8 sps:$4 sm:$0xff] (!%p139_p2)   ;;  %s637_s16 = sshll.u32 (!%p139_p2), %s632_s13, 4  ;;  %v728_v1 = vld [vmem:[%s932_s1] ss:$8 sps:$4 sm:$0xff] (!%p139_p2)   ;;  %v766_v2 = vmov (!%p139_p2), 0   ;;  %v211_v25 = vlaneseq (!%p139_p2) }
   0x6   : > { %142 = sbr.rel (%p139_p2) target bundleno = 283 (0x11b), region = 32  ;;  %381 = vmatprep.mubr.bf16.mxu0 (!%p139_p2), %v766_v2  ;;  %421 = vmatprep.mubr.bf16.mxu1 (!%p139_p2), %v766_v2  ;;  %p164_p3 = scmp.lt.s32.totalorder (!%p139_p2), %s637_s16, 31  ;;  %v729_v3 = vld [vmem:[%s932_s1 + $0x14] ss:$8 sps:$4 sm:$0xff] (!%p139_p2)   ;;  %v731_v4 = vld [vmem:[%s932_s1 + $0x10] ss:$8 sps:$4 sm:$0xff] (!%p139_p2)  }
   0x7   : > { %349 = vmatprep.subr.bf16.mxu0 (!%p139_p2), %v726_v0  ;;  %701 = vmatprep.subr.bf16.mxu1 (!%p139_p2), %v726_v0  ;;  %v732_v5 = vld [vmem:[%s932_s1 + $0x24] ss:$8 sps:$4 sm:$0xff] (!%p139_p2)   ;;  %v734_v6 = vld [vmem:[%s932_s1 + $0x20] ss:$8 sps:$4 sm:$0xff] (!%p139_p2)   ;;  %v735_v7 = vld [vmem:[%s932_s1 + $0x34] ss:$8 sps:$4 sm:$0xff] (!%p139_p2)  }
   0x8   : > { %350 = vmatpush1.bf16.msra.mxu0 (!%p139_p2), %v728_v1  ;;  %709 = vmatpush1.bf16.msra.mxu1 (!%p139_p2), %v728_v1  ;;  %v737_v8 = vld [vmem:[%s932_s1 + $0x30] ss:$8 sps:$4 sm:$0xff] (!%p139_p2)   ;;  %v738_v9 = vld [vmem:[%s932_s1 + $0x44] ss:$8 sps:$4 sm:$0xff] (!%p139_p2)   ;;  %v740_v10 = vld [vmem:[%s932_s1 + $0x40] ss:$8 sps:$4 sm:$0xff] (!%p139_p2)  }
   0x9   : > { %351 = vmatprep.subr.bf16.mxu0 (!%p139_p2), %v729_v3  ;;  %702 = vmatprep.subr.bf16.mxu1 (!%p139_p2), %v729_v3  ;;  %v741_v11 = vld [vmem:[%s932_s1 + $0x54] ss:$8 sps:$4 sm:$0xff] (!%p139_p2)   ;;  %v743_v12 = vld [vmem:[%s932_s1 + $0x50] ss:$8 sps:$4 sm:$0xff] (!%p139_p2)   ;;  %v744_v13 = vld [vmem:[%s932_s1 + $0x64] ss:$8 sps:$4 sm:$0xff] (!%p139_p2)  }
   0xa   : > { %v746_v14 = vld [vmem:[%s932_s1 + $0x60] ss:$8 sps:$4 sm:$0xff] (!%p139_p2)   ;;  %v747_v15 = vld [vmem:[%s932_s1 + $0x74] ss:$8 sps:$4 sm:$0xff] (!%p139_p2)   ;;  %v749_v16 = vld [vmem:[%s932_s1 + $0x70] ss:$8 sps:$4 sm:$0xff] (!%p139_p2)  }
   0xb   : > { %v212_v26 = vshrl.u32 (!%p139_p2), %v211_v25, 7  ;;  %v209_v28 = vld [vmem:[%s933_s2] sm:$0x3] (!%p139_p2) }
   0xc   : > { %352 = vmatpush1.bf16.msra.mxu0 (!%p139_p2), %v731_v4  ;;  %710 = vmatpush1.bf16.msra.mxu1 (!%p139_p2), %v731_v4 }
   0xd   : > { %s936_s16 = smov (!%p164_p3, %s637_s16), 31  ;;  %353 = vmatprep.subr.bf16.mxu0 %v732_v5  ;;  %703 = vmatprep.subr.bf16.mxu1 %v732_v5  ;;  %v213_v27 = vsub.s32 0, %v212_v26  ;;  %v217_v29 = vsub.s32 1, %v212_v26 }
   0xe   : > { %s638_s25 = sshll.u32 %s936_s16, 2  ;;  %s684_s28 = sshll.u32 %s936_s16, 3 }
   0xf   : > { %s824_s5 = scalar_lea.vmem %s931_s0, %s638_s25  ;;  %v870_v30 = vrot.slane %v209_v28, %v213_v27  ;;  %v872_v31 = vrot.slane %v209_v28, %v217_v29  ;;  %s882_s4 = scalar_lea.vmem %s934_s3, %s684_s28 }
  0x10   : > { %354 = vmatpush1.bf16.msra.mxu0 %v734_v6  ;;  %711 = vmatpush1.bf16.msra.mxu1 %v734_v6  ;;  %v750_v17 = vld [vmem:[%s824_s5] sm:$0xff]   ;;  %v752_v19 = vld [vmem:[%s824_s5 + $0x8] sm:$0xff]   ;;  %v754_v21 = vld [vmem:[%s824_s5 + $0x10] sm:$0xff]  }
  0x11   : > { %355 = vmatprep.subr.bf16.mxu0 %v735_v7  ;;  %704 = vmatprep.subr.bf16.mxu1 %v735_v7  ;;  %v751_v18 = vld [vmem:[%s824_s5 + $0x20] sm:$0xff]   ;;  %v753_v20 = vld [vmem:[%s824_s5 + $0x28] sm:$0xff]   ;;  %v755_v22 = vld [vmem:[%s824_s5 + $0x30] sm:$0xff]  }
  0x12   : > { %v756_v23 = vld [vmem:[%s824_s5 + $0x18] sm:$0xff]  }
  0x13   : > { %v757_v24 = vld [vmem:[%s824_s5 + $0x38] sm:$0xff]  }
  0x14   : > { %356 = vmatpush1.bf16.msra.mxu0 %v737_v8  ;;  %712 = vmatpush1.bf16.msra.mxu1 %v737_v8 }
  0x15   : > { %357 = vmatprep.subr.bf16.mxu0 %v738_v9  ;;  %705 = vmatprep.subr.bf16.mxu1 %v738_v9 }
  0x18   : > { %358 = vmatpush1.bf16.msra.mxu0 %v740_v10  ;;  %713 = vmatpush1.bf16.msra.mxu1 %v740_v10 }
  0x19   : > { %359 = vmatprep.subr.bf16.mxu0 %v741_v11  ;;  %706 = vmatprep.subr.bf16.mxu1 %v741_v11 }
  0x1c   : > { %360 = vmatpush1.bf16.msra.mxu0 %v743_v12  ;;  %714 = vmatpush1.bf16.msra.mxu1 %v743_v12 }
  0x1d   : > { %361 = vmatprep.subr.bf16.mxu0 %v744_v13  ;;  %707 = vmatprep.subr.bf16.mxu1 %v744_v13 }
  0x20   : > { %362 = vmatpush1.bf16.msra.mxu0 %v746_v14  ;;  %715 = vmatpush1.bf16.msra.mxu1 %v746_v14 }
  0x21   : > { %363 = vmatprep.subr.bf16.mxu0 %v747_v15  ;;  %708 = vmatprep.subr.bf16.mxu1 %v747_v15 }
  0x24   : > { %364 = vmatpush1.bf16.msra.mxu0 %v749_v16  ;;  %716 = vmatpush1.bf16.msra.mxu1 %v749_v16 }
  0x27   : > { %382 = vmatmul.mubr.bf16.vlgmr.msra.gmra.mrb[0].mxu0 %v750_v17  ;;  %422 = vmatmul.mubr.bf16.vlgmr.msra.gmra.mrb[0].mxu1 %v751_v18 }
  0x28   : > { %391 = vmatprep.mubr.bf16.mxu0 %v766_v2  ;;  %431 = vmatprep.mubr.bf16.mxu1 %v766_v2 }
  0x2f   : > { %392 = vmatmul.mubr.bf16.gmra.mrb[4].mxu0 %v752_v19  ;;  %432 = vmatmul.mubr.bf16.gmra.mrb[4].mxu1 %v753_v20 }
  0x30   : > { %401 = vmatprep.mubr.bf16.mxu0 %v766_v2  ;;  %441 = vmatprep.mubr.bf16.mxu1 %v766_v2 }
  0x37   : > { %402 = vmatmul.mubr.bf16.gmra.mrb[8].mxu0 %v754_v21  ;;  %442 = vmatmul.mubr.bf16.gmra.mrb[8].mxu1 %v755_v22 }
  0x38   : > { %411 = vmatprep.mubr.bf16.mxu0 %v766_v2  ;;  %451 = vmatprep.mubr.bf16.mxu1 %v766_v2 }
  0x3f   : > { %412 = vmatmul.mubr.bf16.gmra.mrb[12].mxu0 %v756_v23  ;;  %452 = vmatmul.mubr.bf16.gmra.mrb[12].mxu1 %v757_v24 }
  0xfa   : > { %v383_v32 = vpop.f32.mrb[0].mxu0  ;;  %v423_v33 = vpop.f32.mrb[0].mxu1 }
  0xfb   : > { %v384_v34 = vadd.f32 %v383_v32, %v870_v30  ;;  %v424_v35 = vadd.f32 %v423_v33, %v870_v30  ;;  %v385_v36 = vpop.f32.mrb[1].mxu0  ;;  %v425_v37 = vpop.f32.mrb[1].mxu1 }
  0xfc   : > { %v386_v38 = vadd.f32 %v385_v36, %v872_v31  ;;  %v426_v39 = vadd.f32 %v425_v37, %v872_v31  ;;  %v387_v40 = vpop.f32.mrb[2].mxu0  ;;  %v427_v41 = vpop.f32.mrb[2].mxu1 }
  0xfd   : > { %v388_v42 = vadd.f32 %v387_v40, %v870_v30  ;;  %v428_v43 = vadd.f32 %v427_v41, %v870_v30  ;;  %v389_v44 = vpop.f32.mrb[3].mxu0  ;;  %v429_v45 = vpop.f32.mrb[3].mxu1 }
  0xfe   : > { %v685_v46 = vpack.c.bf16 %v386_v38, %v384_v34  ;;  %v693_v47 = vpack.c.bf16 %v426_v39, %v424_v35  ;;  %v390_v48 = vadd.f32 %v389_v44, %v872_v31  ;;  %v430_v49 = vadd.f32 %v429_v45, %v872_v31 }
 0x100   : > { %558 = vst [vmem:[%s882_s4] sm:$0xff] %v685_v46  ;;  %566 = vst [vmem:[%s882_s4 + $0x40] sm:$0xff] %v693_v47  ;;  %v686_v50 = vpack.c.bf16 %v390_v48, %v388_v42  ;;  %v694_v51 = vpack.c.bf16 %v430_v49, %v428_v43 }
 0x102   : > { %559 = vst [vmem:[%s882_s4 + $0x8] sm:$0xff] %v686_v50  ;;  %567 = vst [vmem:[%s882_s4 + $0x48] sm:$0xff] %v694_v51  ;;  %v393_v52 = vpop.f32.mrb[4].mxu0  ;;  %v433_v53 = vpop.f32.mrb[4].mxu1 }
 0x103   : > { %v394_v54 = vadd.f32 %v393_v52, %v870_v30  ;;  %v434_v55 = vadd.f32 %v433_v53, %v870_v30  ;;  %v395_v56 = vpop.f32.mrb[5].mxu0  ;;  %v435_v57 = vpop.f32.mrb[5].mxu1 }
 0x104   : > { %v396_v58 = vadd.f32 %v395_v56, %v872_v31  ;;  %v436_v59 = vadd.f32 %v435_v57, %v872_v31  ;;  %v397_v60 = vpop.f32.mrb[6].mxu0  ;;  %v437_v61 = vpop.f32.mrb[6].mxu1 }
 0x105   : > { %v398_v62 = vadd.f32 %v397_v60, %v870_v30  ;;  %v438_v63 = vadd.f32 %v437_v61, %v870_v30  ;;  %v399_v0 = vpop.f32.mrb[7].mxu0  ;;  %v439_v1 = vpop.f32.mrb[7].mxu1 }
 0x106   : > { %v687_v2 = vpack.c.bf16 %v396_v58, %v394_v54  ;;  %v695_v3 = vpack.c.bf16 %v436_v59, %v434_v55  ;;  %v400_v4 = vadd.f32 %v399_v0, %v872_v31  ;;  %v440_v5 = vadd.f32 %v439_v1, %v872_v31 }
 0x108   : > { %560 = vst [vmem:[%s882_s4 + $0x10] sm:$0xff] %v687_v2  ;;  %568 = vst [vmem:[%s882_s4 + $0x50] sm:$0xff] %v695_v3  ;;  %v688_v6 = vpack.c.bf16 %v400_v4, %v398_v62  ;;  %v696_v7 = vpack.c.bf16 %v440_v5, %v438_v63 }
 0x10a   : > { %561 = vst [vmem:[%s882_s4 + $0x18] sm:$0xff] %v688_v6  ;;  %569 = vst [vmem:[%s882_s4 + $0x58] sm:$0xff] %v696_v7  ;;  %v403_v8 = vpop.f32.mrb[8].mxu0  ;;  %v443_v9 = vpop.f32.mrb[8].mxu1 }
 0x10b   : > { %v404_v10 = vadd.f32 %v403_v8, %v870_v30  ;;  %v444_v11 = vadd.f32 %v443_v9, %v870_v30  ;;  %v405_v12 = vpop.f32.mrb[9].mxu0  ;;  %v445_v13 = vpop.f32.mrb[9].mxu1 }
 0x10c   : > { %v406_v14 = vadd.f32 %v405_v12, %v872_v31  ;;  %v446_v15 = vadd.f32 %v445_v13, %v872_v31  ;;  %v407_v16 = vpop.f32.mrb[10].mxu0  ;;  %v447_v17 = vpop.f32.mrb[10].mxu1 }
 0x10d   : > { %v408_v18 = vadd.f32 %v407_v16, %v870_v30  ;;  %v448_v19 = vadd.f32 %v447_v17, %v870_v30  ;;  %v409_v20 = vpop.f32.mrb[11].mxu0  ;;  %v449_v21 = vpop.f32.mrb[11].mxu1 }
 0x10e   : > { %v689_v22 = vpack.c.bf16 %v406_v14, %v404_v10  ;;  %v697_v23 = vpack.c.bf16 %v446_v15, %v444_v11  ;;  %v410_v24 = vadd.f32 %v409_v20, %v872_v31  ;;  %v450_v25 = vadd.f32 %v449_v21, %v872_v31 }
 0x110   : > { %562 = vst [vmem:[%s882_s4 + $0x20] sm:$0xff] %v689_v22  ;;  %570 = vst [vmem:[%s882_s4 + $0x60] sm:$0xff] %v697_v23  ;;  %v690_v26 = vpack.c.bf16 %v410_v24, %v408_v18  ;;  %v698_v27 = vpack.c.bf16 %v450_v25, %v448_v19 }
 0x112   : > { %563 = vst [vmem:[%s882_s4 + $0x28] sm:$0xff] %v690_v26  ;;  %571 = vst [vmem:[%s882_s4 + $0x68] sm:$0xff] %v698_v27  ;;  %v413_v28 = vpop.f32.mrb[12].mxu0  ;;  %v453_v29 = vpop.f32.mrb[12].mxu1 }
 0x113   : > { %v414_v32 = vadd.f32 %v413_v28, %v870_v30  ;;  %v454_v33 = vadd.f32 %v453_v29, %v870_v30  ;;  %v415_v34 = vpop.f32.mrb[13].mxu0  ;;  %v455_v35 = vpop.f32.mrb[13].mxu1 }
 0x114   : > { %v416_v36 = vadd.f32 %v415_v34, %v872_v31  ;;  %v456_v37 = vadd.f32 %v455_v35, %v872_v31  ;;  %v417_v38 = vpop.f32.mrb[14].mxu0  ;;  %v457_v39 = vpop.f32.mrb[14].mxu1 }
 0x115   : > { %v418_v40 = vadd.f32 %v417_v38, %v870_v30  ;;  %v458_v41 = vadd.f32 %v457_v39, %v870_v30  ;;  %v419_v42 = vpop.f32.mrb[15].mxu0  ;;  %v459_v43 = vpop.f32.mrb[15].mxu1 }
 0x116   : > { %v691_v44 = vpack.c.bf16 %v416_v36, %v414_v32  ;;  %v699_v45 = vpack.c.bf16 %v456_v37, %v454_v33  ;;  %v420_v46 = vadd.f32 %v419_v42, %v872_v31  ;;  %v460_v47 = vadd.f32 %v459_v43, %v872_v31 }
 0x118   : > { %564 = vst [vmem:[%s882_s4 + $0x30] sm:$0xff] %v691_v44  ;;  %572 = vst [vmem:[%s882_s4 + $0x70] sm:$0xff] %v699_v45  ;;  %v692_v48 = vpack.c.bf16 %v420_v46, %v418_v40  ;;  %v700_v49 = vpack.c.bf16 %v460_v47, %v458_v41 }
 0x11a   : > { %565 = vst [vmem:[%s882_s4 + $0x38] sm:$0xff] %v692_v48  ;;  %573 = vst [vmem:[%s882_s4 + $0x78] sm:$0xff] %v700_v49 }
 0x11b PF: > { %s13_s12 = sadd.s32 1, %s764_s12  }
 0x11c   : > { %p10_p4 = scmp.ge.s32.totalorder %s13_s12, 4  }
 0x11e   :  { %12 = sbr.rel (!%p10_p4) target bundleno = 1 (0x1), region = 62 }

// kernel: decoder_forward.25
= control target key start
LH: loop header
LB: loop body
LE: loop exit
PB: predicated region body
PF: predicated region fallthrough
CT: control target
= control target key end

     0   :  { %s1390_s24 = smov 0   ;;  %s1728_s0 = inlined_call_operand.vmem [shape: bf16[192,128], index: 0, kind: input, shape index: {}]   ;;  %s1729_s1 = inlined_call_operand.vmem [shape: bf16[128,256], index: 1, kind: input, shape index: {}]   ;;  %s1730_s2 = inlined_call_operand.vmem [shape: f32[1,256], index: 2, kind: input, shape index: {}]   ;;  %s1731_s3 = inlined_call_operand.vmem [shape: bf16[256,128], index: 3, kind: input, shape index: {}]   ;;  %s1732_s4 = inlined_call_operand.vmem [shape: f32[1,128], index: 4, kind: input, shape index: {}]   ;;  %s1733_s5 = inlined_call_operand.vmem [shape: f32[1,128], index: 5, kind: input, shape index: {}]   ;;  %s1734_s6 = inlined_call_operand.vmem [shape: f32[1,128], index: 6, kind: input, shape index: {}]   ;;  %s1735_s7 = inlined_call_operand.vmem [shape: bf16[192,128], index: 7, kind: output, shape index: {}]  }
   0x1 LB: > { %s1095_s25 = sadd.s32 4294967295, %s1347_s24   ;;  %p1099_p0 = scmp.ge.s32.totalorder %s1347_s24, 1  ;;  %s1347_s24 = sphi %s1390_s24, %s17_s24  }
   0x2   : > { %p238_p1 = scmp.lt.s32.totalorder %s1347_s24, 3 }
   0x4   : > { %p239_p2 = pnand %p1099_p0, %p238_p1 }
   0x5   : > { %v1265_v0 = vld [vmem:[%s1729_s1 + $0x4] ss:$8 sps:$4 sm:$0xff] (!%p239_p2)   ;;  %v1267_v1 = vld [vmem:[%s1729_s1] ss:$8 sps:$4 sm:$0xff] (!%p239_p2)   ;;  %v1349_v2 = vmov (!%p239_p2), 0   ;;  %s270_s17 = smul.u32 (!%p239_p2), 12, %s1095_s25  ;;  %v313_v39 = vlaneseq (!%p239_p2) }
   0x6   : > { %242 = sbr.rel (%p239_p2) target bundleno = 835 (0x343), region = 48  ;;  %471 = vmatprep.mubr.bf16.mxu0 (!%p239_p2), %v1349_v2  ;;  %439 = vmatprep.subr.bf16.mxu0 (!%p239_p2), %v1265_v0  ;;  %v1268_v3 = vld [vmem:[%s1729_s1 + $0x14] ss:$8 sps:$4 sm:$0xff] (!%p239_p2)   ;;  %v1270_v4 = vld [vmem:[%s1729_s1 + $0x10] ss:$8 sps:$4 sm:$0xff] (!%p239_p2)   ;;  %v1295_v11 = vld [vmem:[%s1731_s3 + $0x40] sm:$0xff] (!%p239_p2)  }
   0x7   : > { %440 = vmatpush1.bf16.msra.mxu0 (!%p239_p2), %v1267_v1  ;;  %v1271_v5 = vld [vmem:[%s1729_s1 + $0x24] ss:$8 sps:$4 sm:$0xff] (!%p239_p2)   ;;  %v1273_v6 = vld [vmem:[%s1729_s1 + $0x20] ss:$8 sps:$4 sm:$0xff] (!%p239_p2)   ;;  %v1274_v7 = vld [vmem:[%s1729_s1 + $0x34] ss:$8 sps:$4 sm:$0xff] (!%p239_p2)   ;;  %1204 = vmatprep.subr.bf16.mxu1 (!%p239_p2), %v1295_v11 }
   0x8   : > { %441 = vmatprep.subr.bf16.mxu0 (!%p239_p2), %v1268_v3  ;;  %v1276_v8 = vld [vmem:[%s1729_s1 + $0x30] ss:$8 sps:$4 sm:$0xff] (!%p239_p2)   ;;  %v1277_v9 = vld [vmem:[%s1729_s1 + $0x44] ss:$8 sps:$4 sm:$0xff] (!%p239_p2)   ;;  %v1279_v10 = vld [vmem:[%s1729_s1 + $0x40] ss:$8 sps:$4 sm:$0xff] (!%p239_p2)  }
   0x9   : > { %p271_p3 = scmp.lt.s32.totalorder (!%p239_p2), %s270_s17, 23  ;;  %v1280_v12 = vld [vmem:[%s1729_s1 + $0x54] ss:$8 sps:$4 sm:$0xff] (!%p239_p2)   ;;  %v1296_v13 = vld [vmem:[%s1731_s3] sm:$0xff] (!%p239_p2)   ;;  %v1297_v14 = vld [vmem:[%s1731_s3 + $0x48] sm:$0xff] (!%p239_p2)   ;;  %v314_v40 = vshrl.u32 (!%p239_p2), %v313_v39, 7 }
   0xa   : > { %1205 = vmatpush3.bf16.msra.mxu1 (!%p239_p2), %v1296_v13  ;;  %v1298_v15 = vld [vmem:[%s1731_s3 + $0x8] sm:$0xff] (!%p239_p2)   ;;  %v1299_v16 = vld [vmem:[%s1731_s3 + $0x50] sm:$0xff] (!%p239_p2)   ;;  %v1301_v21 = vld [vmem:[%s1731_s3 + $0x58] sm:$0xff] (!%p239_p2)  }
   0xb   : > { %442 = vmatpush1.bf16.msra.mxu0 (!%p239_p2), %v1270_v4  ;;  %1206 = vmatprep.subr.bf16.mxu1 (!%p239_p2), %v1297_v14  ;;  %v1282_v17 = vld [vmem:[%s1729_s1 + $0x50] ss:$8 sps:$4 sm:$0xff] (!%p239_p2)   ;;  %v1283_v18 = vld [vmem:[%s1729_s1 + $0x64] ss:$8 sps:$4 sm:$0xff] (!%p239_p2)   ;;  %v1285_v20 = vld [vmem:[%s1729_s1 + $0x60] ss:$8 sps:$4 sm:$0xff] (!%p239_p2)  }
   0xc   : > { %443 = vmatprep.subr.bf16.mxu0 (!%p239_p2), %v1271_v5  ;;  %v1300_v19 = vld [vmem:[%s1731_s3 + $0x10] sm:$0xff] (!%p239_p2)   ;;  %v1302_v23 = vld [vmem:[%s1731_s3 + $0x18] sm:$0xff] (!%p239_p2)   ;;  %v1303_v24 = vld [vmem:[%s1731_s3 + $0x60] sm:$0xff] (!%p239_p2)   ;;  %v315_v41 = vsub.s32 (!%p239_p2), 0, %v314_v40  ;;  %v319_v43 = vsub.s32 (!%p239_p2), 1, %v314_v40 }
   0xd   : > { %s1737_s17 = smov (!%p271_p3, %s270_s17), 23  ;;  %v1286_v22 = vld [vmem:[%s1729_s1 + $0x74] ss:$8 sps:$4 sm:$0xff]   ;;  %v1288_v25 = vld [vmem:[%s1729_s1 + $0x70] ss:$8 sps:$4 sm:$0xff]   ;;  %v1304_v27 = vld [vmem:[%s1731_s3 + $0x20] sm:$0xff]  }
   0xe   : > { %1207 = vmatpush3.bf16.msra.mxu1 %v1298_v15  ;;  %s1100_s23 = sshll.u32 %s1737_s17, 2  ;;  %v1305_v28 = vld [vmem:[%s1731_s3 + $0x68] sm:$0xff]   ;;  %v1307_v35 = vld [vmem:[%s1731_s3 + $0x70] sm:$0xff]   ;;  %v1309_v37 = vld [vmem:[%s1731_s3 + $0x78] sm:$0xff]  }
   0xf   : > { %444 = vmatpush1.bf16.msra.mxu0 %v1273_v6  ;;  %1208 = vmatprep.subr.bf16.mxu1 %v1299_v16  ;;  %s274_s12 = scalar_lea.vmem %s1728_s0, %s1100_s23  ;;  %v1306_v34 = vld [vmem:[%s1731_s3 + $0x28] sm:$0xff]   ;;  %v1308_v36 = vld [vmem:[%s1731_s3 + $0x30] sm:$0xff]   ;;  %v1310_v38 = vld [vmem:[%s1731_s3 + $0x38] sm:$0xff]   ;;  %s1688_s20 = scalar_lea.vmem %s1735_s7, %s1100_s23 }
  0x10   : > { %445 = vmatprep.subr.bf16.mxu0 %v1274_v7  ;;  %v1482_v26 = vld [vmem:[%s274_s12] sm:$0xff]   ;;  %v1492_v29 = vld [vmem:[%s274_s12 + $0x8] sm:$0xff]   ;;  %v1496_v30 = vld [vmem:[%s274_s12 + $0x10] sm:$0xff]  }
  0x11   : > { %v1500_v31 = vld [vmem:[%s274_s12 + $0x18] sm:$0xff]   ;;  %v1504_v32 = vld [vmem:[%s274_s12 + $0x20] sm:$0xff]   ;;  %v1508_v33 = vld [vmem:[%s274_s12 + $0x28] sm:$0xff]  }
  0x12   : > { %1209 = vmatpush3.bf16.msra.mxu1 %v1300_v19  ;;  %v311_v42 = vld [vmem:[%s1730_s2] sm:$0x3] }
  0x13   : > { %446 = vmatpush1.bf16.msra.mxu0 %v1276_v8  ;;  %1210 = vmatprep.subr.bf16.mxu1 %v1301_v21  ;;  %v1529_v44 = vrot.slane %v311_v42, %v315_v41  ;;  %v1531_v45 = vrot.slane %v311_v42, %v319_v43 }
  0x14   : > { %447 = vmatprep.subr.bf16.mxu0 %v1277_v9 }
  0x16   : > { %1211 = vmatpush3.bf16.msra.mxu1 %v1302_v23 }
  0x17   : > { %448 = vmatpush1.bf16.msra.mxu0 %v1279_v10  ;;  %1212 = vmatprep.subr.bf16.mxu1 %v1303_v24 }
  0x18   : > { %449 = vmatprep.subr.bf16.mxu0 %v1280_v12 }
  0x1a   : > { %1213 = vmatpush3.bf16.msra.mxu1 %v1304_v27 }
  0x1b   : > { %450 = vmatpush1.bf16.msra.mxu0 %v1282_v17  ;;  %1214 = vmatprep.subr.bf16.mxu1 %v1305_v28 }
  0x1c   : > { %451 = vmatprep.subr.bf16.mxu0 %v1283_v18 }
  0x1e   : > { %1215 = vmatpush3.bf16.msra.mxu1 %v1306_v34 }
  0x1f   : > { %452 = vmatpush1.bf16.msra.mxu0 %v1285_v20  ;;  %1216 = vmatprep.subr.bf16.mxu1 %v1307_v35 }
  0x20   : > { %453 = vmatprep.subr.bf16.mxu0 %v1286_v22 }
  0x22   : > { %1217 = vmatpush3.bf16.msra.mxu1 %v1308_v36 }
  0x23   : > { %454 = vmatpush1.bf16.msra.mxu0 %v1288_v25  ;;  %1218 = vmatprep.subr.bf16.mxu1 %v1309_v37 }
  0x26   : > { %472 = vmatmul.mubr.bf16.vlgmr.msra.gmra.mrb[0].mxu0 %v1482_v26  ;;  %1219 = vmatpush3.bf16.msra.mxu1 %v1310_v38 }
  0x27   : > { %481 = vmatprep.mubr.bf16.mxu0 %v1349_v2 }
  0x2e   : > { %482 = vmatmul.mubr.bf16.gmra.mrb[4].mxu0 %v1492_v29 }
  0x2f   : > { %491 = vmatprep.mubr.bf16.mxu0 %v1349_v2 }
  0x36   : > { %492 = vmatmul.mubr.bf16.gmra.mrb[8].mxu0 %v1496_v30 }
  0x37   : > { %501 = vmatprep.mubr.bf16.mxu0 %v1349_v2 }
  0x3e   : > { %502 = vmatmul.mubr.bf16.gmra.mrb[12].mxu0 %v1500_v31 }
  0x3f   : > { %511 = vmatprep.mubr.bf16.mxu0 %v1349_v2 }
  0x46   : > { %512 = vmatmul.mubr.bf16.gmra.mrb[16].mxu0 %v1504_v32 }
  0x47   : > { %521 = vmatprep.mubr.bf16.mxu0 %v1349_v2 }
  0x4e   : > { %522 = vmatmul.mubr.bf16.gmra.mrb[20].mxu0 %v1508_v33 }
  0xf9   : > { %v473_v46 = vpop.f32.mrb[0].mxu0 }
  0xfa   : > { %v474_v47 = vadd.f32 %v473_v46, %v1529_v44  ;;  %v475_v48 = vpop.f32.mrb[1].mxu0 }
  0xfb   : > { %v476_v49 = vadd.f32 %v475_v48, %v1531_v45  ;;  %v477_v50 = vpop.f32.mrb[2].mxu0 }
  0xfc   : > { %v478_v51 = vadd.f32 %v477_v50, %v1529_v44  ;;  %v479_v52 = vpop.f32.mrb[3].mxu0  ;;  %v532_v54 = vmax.f32 %v474_v47, 0.0 }
  0xfd   : > { %v480_v53 = vadd.f32 %v479_v52, %v1531_v45  ;;  %v533_v56 = vmax.f32 %v476_v49, 0.0 }
  0xfe   : > { %v534_v55 = vmax.f32 %v478_v51, 0.0 }
  0xff   : > { %v535_v57 = vmax.f32 %v480_v53, 0.0 }
 0x100   : > { %v556_v58 = vpack.c.bf16 %v534_v55, %v532_v54 }
 0x101   : > { %v483_v59 = vpop.f32.mrb[4].mxu0  ;;  %v557_v60 = vpack.c.bf16 %v535_v57, %v533_v56 }
 0x102   : > { %v484_v61 = vadd.f32 %v483_v59, %v1529_v44  ;;  %v485_v62 = vpop.f32.mrb[5].mxu0 }
 0x103   : > { %v486_v63 = vadd.f32 %v485_v62, %v1531_v45  ;;  %v487_v0 = vpop.f32.mrb[6].mxu0  ;;  %735 = vmatprep.mubr.bf16.mxu1 %v557_v60 }
 0x104   : > { %v488_v1 = vadd.f32 %v487_v0, %v1529_v44  ;;  %v489_v2 = vpop.f32.mrb[7].mxu0  ;;  %736 = vmatmul.mubr.bf16.vlgmr.msra.gmra.mrb[0].mxu1 %v556_v58  ;;  %v536_v4 = vmax.f32 %v484_v61, 0.0 }
 0x105   : > { %v490_v3 = vadd.f32 %v489_v2, %v1531_v45  ;;  %v537_v6 = vmax.f32 %v486_v63, 0.0 }
 0x106   : > { %v538_v5 = vmax.f32 %v488_v1, 0.0 }
 0x107   : > { %v539_v7 = vmax.f32 %v490_v3, 0.0 }
 0x108   : > { %v558_v8 = vpack.c.bf16 %v538_v5, %v536_v4 }
 0x109   : > { %v559_v9 = vpack.c.bf16 %v539_v7, %v537_v6  ;;  %v493_v10 = vpop.f32.mrb[8].mxu0 }
 0x10a   : > { %v494_v11 = vadd.f32 %v493_v10, %v1529_v44  ;;  %v495_v12 = vpop.f32.mrb[9].mxu0 }
 0x10b   : > { %v496_v13 = vadd.f32 %v495_v12, %v1531_v45  ;;  %v497_v14 = vpop.f32.mrb[10].mxu0  ;;  %743 = vmatprep.mubr.bf16.mxu1 %v559_v9 }
 0x10c   : > { %v498_v15 = vadd.f32 %v497_v14, %v1529_v44  ;;  %v499_v16 = vpop.f32.mrb[11].mxu0  ;;  %744 = vmatmul.mubr.bf16.gmra.mrb[4].mxu1 %v558_v8  ;;  %v540_v18 = vmax.f32 %v494_v11, 0.0  ;;  %v1560_v11 = vld [vmem:[%s1732_s4] ss:$0 sm:$0xff]  ;;  %v784_v14 = vunpack.c.l.bf16 %v1482_v26 }
 0x10d   : > { %v500_v17 = vadd.f32 %v499_v16, %v1531_v45  ;;  %v541_v20 = vmax.f32 %v496_v13, 0.0 }
 0x10e   : > { %v542_v19 = vmax.f32 %v498_v15, 0.0 }
 0x10f   : > { %v543_v21 = vmax.f32 %v500_v17, 0.0 }
 0x110   : > { %v560_v22 = vpack.c.bf16 %v542_v19, %v540_v18  ;;  %v785_v19 = vunpack.c.h.bf16 %v1482_v26  ;;  %v787_v26 = vunpack.c.h.bf16 %v1492_v29 }
 0x111   : > { %v561_v23 = vpack.c.bf16 %v543_v21, %v541_v20  ;;  %v503_v24 = vpop.f32.mrb[12].mxu0 }
 0x112   : > { %v504_v25 = vadd.f32 %v503_v24, %v1529_v44  ;;  %v505_v27 = vpop.f32.mrb[13].mxu0 }
 0x113   : > { %v506_v28 = vadd.f32 %v505_v27, %v1531_v45  ;;  %v507_v34 = vpop.f32.mrb[14].mxu0  ;;  %751 = vmatprep.mubr.bf16.mxu1 %v561_v23 }
 0x114   : > { %v508_v35 = vadd.f32 %v507_v34, %v1529_v44  ;;  %v509_v36 = vpop.f32.mrb[15].mxu0  ;;  %752 = vmatmul.mubr.bf16.gmra.mrb[8].mxu1 %v560_v22  ;;  %v544_v38 = vmax.f32 %v504_v25, 0.0  ;;  %v786_v25 = vunpack.c.l.bf16 %v1492_v29 }
 0x115   : > { %v510_v37 = vadd.f32 %v509_v36, %v1531_v45  ;;  %v545_v40 = vmax.f32 %v506_v28, 0.0 }
 0x116   : > { %v546_v39 = vmax.f32 %v508_v35, 0.0 }
 0x117   : > { %v547_v41 = vmax.f32 %v510_v37, 0.0 }
 0x118   : > { %v562_v42 = vpack.c.bf16 %v546_v39, %v544_v38 }
 0x119   : > { %v563_v43 = vpack.c.bf16 %v547_v41, %v545_v40  ;;  %v513_v46 = vpop.f32.mrb[16].mxu0 }
 0x11a   : > { %v514_v47 = vadd.f32 %v513_v46, %v1529_v44  ;;  %v515_v48 = vpop.f32.mrb[17].mxu0 }
 0x11b   : > { %v516_v49 = vadd.f32 %v515_v48, %v1531_v45  ;;  %v517_v50 = vpop.f32.mrb[18].mxu0  ;;  %759 = vmatprep.mubr.bf16.mxu1 %v563_v43  ;;  %v789_v48 = vunpack.c.h.bf16 %v1496_v30 }
 0x11c   : > { %v518_v51 = vadd.f32 %v517_v50, %v1529_v44  ;;  %v519_v52 = vpop.f32.mrb[19].mxu0  ;;  %760 = vmatmul.mubr.bf16.gmra.mrb[12].mxu1 %v562_v42  ;;  %v548_v54 = vmax.f32 %v514_v47, 0.0  ;;  %v788_v42 = vunpack.c.l.bf16 %v1496_v30 }
 0x11d   : > { %v520_v53 = vadd.f32 %v519_v52, %v1531_v45  ;;  %v549_v56 = vmax.f32 %v516_v49, 0.0 }
 0x11e   : > { %v550_v55 = vmax.f32 %v518_v51, 0.0 }
 0x11f   : > { %v551_v57 = vmax.f32 %v520_v53, 0.0 }
 0x120   : > { %v564_v58 = vpack.c.bf16 %v550_v55, %v548_v54  ;;  %v790_v55 = vunpack.c.l.bf16 %v1500_v31 }
 0x121   : > { %v565_v59 = vpack.c.bf16 %v551_v57, %v549_v56  ;;  %v523_v60 = vpop.f32.mrb[20].mxu0 }
 0x122   : > { %v524_v61 = vadd.f32 %v523_v60, %v1529_v44  ;;  %v525_v62 = vpop.f32.mrb[21].mxu0 }
 0x123   : > { %v526_v63 = vadd.f32 %v525_v62, %v1531_v45  ;;  %v527_v0 = vpop.f32.mrb[22].mxu0  ;;  %767 = vmatprep.mubr.bf16.mxu1 %v565_v59 }
 0x124   : > { %v528_v1 = vadd.f32 %v527_v0, %v1529_v44  ;;  %v529_v2 = vpop.f32.mrb[23].mxu0  ;;  %768 = vmatmul.mubr.bf16.gmra.mrb[16].mxu1 %v564_v58  ;;  %v552_v4 = vmax.f32 %v524_v61, 0.0  ;;  %v791_v58 = vunpack.c.h.bf16 %v1500_v31 }
 0x125   : > { %v530_v3 = vadd.f32 %v529_v2, %v1531_v45  ;;  %v553_v6 = vmax.f32 %v526_v63, 0.0  ;;  %v792_v2 = vunpack.c.l.bf16 %v1504_v32 }
 0x126   : > { %v554_v5 = vmax.f32 %v528_v1, 0.0 }
 0x127   : > { %v555_v7 = vmax.f32 %v530_v3, 0.0 }
 0x128   : > { %v566_v8 = vpack.c.bf16 %v554_v5, %v552_v4  ;;  %v793_v5 = vunpack.c.h.bf16 %v1504_v32 }
 0x129   : > { %v567_v9 = vpack.c.bf16 %v555_v7, %v553_v6 }
 0x12b   : > { %775 = vmatprep.mubr.bf16.mxu1 %v567_v9 }
 0x12c   : > { %776 = vmatmul.mubr.bf16.gmra.mrb[20].mxu1 %v566_v8 }
 0x1d7   : > { %v1220_v10 = vpop.f32.mrb[0].mxu1 }
 0x1d8   : > { %v1221_v12 = vpop.f32.mrb[1].mxu1 }
 0x1d9   : > { %v1222_v44 = vadd.f32 %v1221_v12, %v1220_v10  ;;  %v1223_v13 = vpop.f32.mrb[2].mxu1 }
 0x1da   : > { %v1224_v45 = vpop.f32.mrb[3].mxu1 }
 0x1db   : > { %v738_v15 = vadd.f32 %v1222_v44, %v1560_v11  ;;  %v1225_v16 = vadd.f32 %v1224_v45, %v1223_v13  ;;  %v794_v13 = vunpack.c.l.bf16 %v1508_v33 }
 0x1dd   : > { %v741_v17 = vadd.f32 %v1225_v16, %v1560_v11  ;;  %v1565_v18 = vadd.f32 %v784_v14, %v738_v15  ;;  %v795_v16 = vunpack.c.h.bf16 %v1508_v33 }
 0x1df   : > { %v1226_v20 = vpop.f32.mrb[4].mxu1  ;;  %808 = vadd.xlane.f32.xlu0 %v1565_v18  ;;  %v1569_v24 = vadd.f32 %v785_v19, %v741_v17 }
 0x1e0   : > { %v1227_v21 = vpop.f32.mrb[5].mxu1 }
 0x1e1   : > { %v1228_v22 = vadd.f32 %v1227_v21, %v1226_v20  ;;  %v1229_v23 = vpop.f32.mrb[6].mxu1 }
 0x1e2   : > { %v1230_v27 = vpop.f32.mrb[7].mxu1 }
 0x1e3   : > { %v746_v28 = vadd.f32 %v1228_v22, %v1560_v11  ;;  %v1231_v34 = vadd.f32 %v1230_v27, %v1229_v23  ;;  %810 = vadd.xlane.f32.xlu0 %v1569_v24 }
 0x1e5   : > { %v749_v35 = vadd.f32 %v1231_v34, %v1560_v11  ;;  %v1575_v36 = vadd.f32 %v786_v25, %v746_v28 }
 0x1e7   : > { %v1232_v37 = vpop.f32.mrb[8].mxu1  ;;  %812 = vadd.xlane.f32.xlu1 %v1575_v36  ;;  %v1579_v41 = vadd.f32 %v787_v26, %v749_v35 }
 0x1e8   : > { %v1233_v38 = vpop.f32.mrb[9].mxu1 }
 0x1e9   : > { %v1234_v39 = vadd.f32 %v1233_v38, %v1232_v37  ;;  %v1235_v40 = vpop.f32.mrb[10].mxu1 }
 0x1ea   : > { %v1236_v43 = vpop.f32.mrb[11].mxu1 }
 0x1eb   : > { %v754_v46 = vadd.f32 %v1234_v39, %v1560_v11  ;;  %v1237_v47 = vadd.f32 %v1236_v43, %v1235_v40  ;;  %814 = vadd.xlane.f32.xlu1 %v1579_v41 }
 0x1ed   : > { %v757_v29 = vadd.f32 %v1237_v47, %v1560_v11  ;;  %v1586_v49 = vadd.f32 %v788_v42, %v754_v46 }
 0x1ef   : > { %v1238_v50 = vpop.f32.mrb[12].mxu1  ;;  %816 = vadd.xlane.f32.xlu0 %v1586_v49  ;;  %v1589_v51 = vadd.f32 %v789_v48, %v757_v29 }
 0x1f0   : > { %v1239_v52 = vpop.f32.mrb[13].mxu1 }
 0x1f1   : > { %v1240_v53 = vadd.f32 %v1239_v52, %v1238_v50  ;;  %v1241_v54 = vpop.f32.mrb[14].mxu1  ;;  %818 = vadd.xlane.f32.xlu1 %v1589_v51 }
 0x1f2   : > { %v1242_v56 = vpop.f32.mrb[15].mxu1 }
 0x1f3   : > { %v762_v57 = vadd.f32 %v1240_v53, %v1560_v11  ;;  %v1243_v30 = vadd.f32 %v1242_v56, %v1241_v54 }
 0x1f5   : > { %v765_v59 = vadd.f32 %v1243_v30, %v1560_v11  ;;  %v1596_v60 = vadd.f32 %v790_v55, %v762_v57 }
 0x1f7   : > { %v1244_v61 = vpop.f32.mrb[16].mxu1  ;;  %820 = vadd.xlane.f32.xlu0 %v1596_v60  ;;  %v1599_v62 = vadd.f32 %v791_v58, %v765_v59 }
 0x1f8   : > { %v1245_v63 = vpop.f32.mrb[17].mxu1 }
 0x1f9   : > { %v1246_v0 = vadd.f32 %v1245_v63, %v1244_v61  ;;  %v1247_v1 = vpop.f32.mrb[18].mxu1  ;;  %822 = vadd.xlane.f32.xlu1 %v1599_v62 }
 0x1fa   : > { %v1248_v3 = vpop.f32.mrb[19].mxu1 }
 0x1fb   : > { %v770_v4 = vadd.f32 %v1246_v0, %v1560_v11  ;;  %v1249_v31 = vadd.f32 %v1248_v3, %v1247_v1 }
 0x1fd   : > { %v773_v6 = vadd.f32 %v1249_v31, %v1560_v11  ;;  %v804_v7 = vadd.f32 %v792_v2, %v770_v4 }
 0x1ff   : > { %v1250_v8 = vpop.f32.mrb[20].mxu1  ;;  %824 = vadd.xlane.f32.xlu0 %v804_v7  ;;  %v805_v9 = vadd.f32 %v793_v5, %v773_v6 }
 0x200   : > { %v1251_v10 = vpop.f32.mrb[21].mxu1 }
 0x201   : > { %v1252_v12 = vadd.f32 %v1251_v10, %v1250_v8  ;;  %v1253_v44 = vpop.f32.mrb[22].mxu1  ;;  %826 = vadd.xlane.f32.xlu1 %v805_v9 }
 0x202   : > { %v1254_v14 = vpop.f32.mrb[23].mxu1 }
 0x203   : > { %v778_v45 = vadd.f32 %v1252_v12, %v1560_v11  ;;  %v1255_v15 = vadd.f32 %v1254_v14, %v1253_v44 }
 0x205   : > { %v781_v32 = vadd.f32 %v1255_v15, %v1560_v11  ;;  %v806_v17 = vadd.f32 %v794_v13, %v778_v45 }
 0x207   : > { %828 = vadd.xlane.f32.xlu0 %v806_v17  ;;  %v807_v19 = vadd.f32 %v795_v16, %v781_v32 }
 0x209   : > { %830 = vadd.xlane.f32.xlu1 %v807_v19 }
 0x26c   : > { %v809_v20 = vpop.xlane.xlu0 %808 }
 0x26d   : > { %v833_v21 = vmul.f32 0.0078125, %v809_v20 }
 0x26f   : > { %v1611_v22 = vsub.f32 %v1565_v18, %v833_v21 }
 0x270   : > { %v811_v23 = vpop.xlane.xlu0 %810 }
 0x271   : > { %v834_v25 = vmul.f32 0.0078125, %v811_v23  ;;  %v857_v27 = vmul.f32 %v1611_v22, %v1611_v22 }
 0x273   : > { %v1616_v28 = vsub.f32 %v1569_v24, %v834_v25  ;;  %869 = vadd.xlane.f32.xlu0 %v857_v27 }
 0x274   : > { %v813_v33 = vpop.xlane.xlu1 %812 }
 0x275   : > { %v835_v11 = vmul.f32 0.0078125, %v813_v33  ;;  %v858_v34 = vmul.f32 %v1616_v28, %v1616_v28 }
 0x277   : > { %v1621_v35 = vsub.f32 %v1575_v36, %v835_v11  ;;  %871 = vadd.xlane.f32.xlu1 %v858_v34 }
 0x278   : > { %v815_v18 = vpop.xlane.xlu1 %814 }
 0x279   : > { %v836_v26 = vmul.f32 0.0078125, %v815_v18  ;;  %v859_v37 = vmul.f32 %v1621_v35, %v1621_v35 }
 0x27b   : > { %v1626_v38 = vsub.f32 %v1579_v41, %v836_v26  ;;  %873 = vadd.xlane.f32.xlu0 %v859_v37 }
 0x27c   : > { %v817_v24 = vpop.xlane.xlu0 %816 }
 0x27d   : > { %v837_v39 = vmul.f32 0.0078125, %v817_v24  ;;  %v860_v40 = vmul.f32 %v1626_v38, %v1626_v38 }
 0x27e   : > { %v819_v42 = vpop.xlane.xlu1 %818 }
 0x27f   : > { %v1631_v43 = vsub.f32 %v1586_v49, %v837_v39  ;;  %v838_v36 = vmul.f32 0.0078125, %v819_v42  ;;  %875 = vadd.xlane.f32.xlu1 %v860_v40 }
 0x281   : > { %v1634_v46 = vsub.f32 %v1589_v51, %v838_v36  ;;  %v861_v47 = vmul.f32 %v1631_v43, %v1631_v43 }
 0x283   : > { %877 = vadd.xlane.f32.xlu0 %v861_v47  ;;  %v862_v41 = vmul.f32 %v1634_v46, %v1634_v46 }
 0x284   : > { %v821_v48 = vpop.xlane.xlu0 %820 }
 0x285   : > { %v839_v29 = vmul.f32 0.0078125, %v821_v48  ;;  %879 = vadd.xlane.f32.xlu1 %v862_v41 }
 0x286   : > { %v823_v50 = vpop.xlane.xlu1 %822 }
 0x287   : > { %v1641_v52 = vsub.f32 %v1596_v60, %v839_v29  ;;  %v840_v49 = vmul.f32 0.0078125, %v823_v50 }
 0x289   : > { %v1644_v53 = vsub.f32 %v1599_v62, %v840_v49  ;;  %v863_v51 = vmul.f32 %v1641_v52, %v1641_v52 }
 0x28b   : > { %881 = vadd.xlane.f32.xlu0 %v863_v51  ;;  %v864_v54 = vmul.f32 %v1644_v53, %v1644_v53 }
 0x28c   : > { %v825_v55 = vpop.xlane.xlu0 %824 }
 0x28d   : > { %v841_v56 = vmul.f32 0.0078125, %v825_v55  ;;  %883 = vadd.xlane.f32.xlu1 %v864_v54 }
 0x28e   : > { %v827_v57 = vpop.xlane.xlu1 %826 }
 0x28f   : > { %v1650_v30 = vsub.f32 %v804_v7, %v841_v56  ;;  %v842_v58 = vmul.f32 0.0078125, %v827_v57 }
 0x291   : > { %v1652_v59 = vsub.f32 %v805_v9, %v842_v58  ;;  %v865_v60 = vmul.f32 %v1650_v30, %v1650_v30 }
 0x293   : > { %885 = vadd.xlane.f32.xlu0 %v865_v60  ;;  %v866_v61 = vmul.f32 %v1652_v59, %v1652_v59 }
 0x294   : > { %v829_v62 = vpop.xlane.xlu0 %828 }
 0x295   : > { %v843_v63 = vmul.f32 0.0078125, %v829_v62  ;;  %887 = vadd.xlane.f32.xlu1 %v866_v61 }
 0x296   : > { %v831_v0 = vpop.xlane.xlu1 %830 }
 0x297   : > { %v1658_v1 = vsub.f32 %v806_v17, %v843_v63  ;;  %v844_v2 = vmul.f32 0.0078125, %v831_v0 }
 0x299   : > { %v1660_v3 = vsub.f32 %v807_v19, %v844_v2  ;;  %v867_v4 = vmul.f32 %v1658_v1, %v1658_v1  ;;  %v1670_v19 = vld [vmem:[%s1733_s5] ss:$0 sm:$0xff] }
 0x29b   : > { %889 = vadd.xlane.f32.xlu0 %v867_v4  ;;  %v868_v31 = vmul.f32 %v1660_v3, %v1660_v3 }
 0x29d   : > { %891 = vadd.xlane.f32.xlu1 %v868_v31 }
 0x300   : > { %v870_v5 = vpop.xlane.xlu0 %869 }
 0x301   : > { %v893_v6 = vmul.f32 0.0078125, %v870_v5 }
 0x303   : > { %v905_v7 = vadd.f32 1e-05, %v893_v6 }
 0x304   : > { %v872_v8 = vpop.xlane.xlu1 %871 }
 0x305   : > { %1317 = vrsqrt.f32 %v905_v7  ;;  %v894_v9 = vmul.f32 0.0078125, %v872_v8 }
 0x307   : > { %v906_v10 = vadd.f32 1e-05, %v894_v9 }
 0x308   : > { %v874_v12 = vpop.xlane.xlu0 %873 }
 0x309   : > { %1319 = vrsqrt.f32 %v906_v10  ;;  %v895_v44 = vmul.f32 0.0078125, %v874_v12 }
 0x30b   : > { %v907_v13 = vadd.f32 1e-05, %v895_v44 }
 0x30c   : > { %v876_v14 = vpop.xlane.xlu1 %875 }
 0x30d   : > { %1321 = vrsqrt.f32 %v907_v13  ;;  %v896_v45 = vmul.f32 0.0078125, %v876_v14 }
 0x30f   : > { %v1318_v15 = vpop.eup %1317  ;;  %v908_v16 = vadd.f32 1e-05, %v896_v45 }
 0x310   : > { %v929_v32 = vmul.f32 %v1318_v15, %v1611_v22  ;;  %v878_v17 = vpop.xlane.xlu0 %877  ;;  %v1677_v22 = vld [vmem:[%s1734_s6] ss:$0 sm:$0xff] }
 0x311   : > { %1323 = vrsqrt.f32 %v908_v16  ;;  %v897_v20 = vmul.f32 0.0078125, %v878_v17 }
 0x312   : > { %v880_v21 = vpop.xlane.xlu1 %879  ;;  %v948_v33 = vmul.f32 %v1670_v19, %v929_v32 }
 0x313   : > { %v1320_v23 = vpop.eup %1319  ;;  %v909_v25 = vadd.f32 1e-05, %v897_v20  ;;  %v898_v27 = vmul.f32 0.0078125, %v880_v21 }
 0x314   : > { %v930_v11 = vmul.f32 %v1320_v23, %v1616_v28  ;;  %v967_v37 = vadd.f32 %v1677_v22, %v948_v33 }
 0x315   : > { %1325 = vrsqrt.f32 %v909_v25  ;;  %v910_v34 = vadd.f32 1e-05, %v898_v27 }
 0x316   : > { %v949_v18 = vmul.f32 %v1670_v19, %v930_v11 }
 0x317   : > { %v1322_v26 = vpop.eup %1321  ;;  %1327 = vrsqrt.f32 %v910_v34 }
 0x318   : > { %v968_v24 = vadd.f32 %v1677_v22, %v949_v18  ;;  %v931_v39 = vmul.f32 %v1322_v26, %v1621_v35  ;;  %v882_v40 = vpop.xlane.xlu0 %881 }
 0x319   : > { %v899_v28 = vmul.f32 0.0078125, %v882_v40 }
 0x31a   : > { %v1172_v42 = vpack.c.bf16 %v968_v24, %v967_v37  ;;  %v884_v36 = vpop.xlane.xlu1 %883  ;;  %v950_v29 = vmul.f32 %v1670_v19, %v931_v39 }
 0x31b   : > { %v1324_v47 = vpop.eup %1323  ;;  %v911_v41 = vadd.f32 1e-05, %v899_v28  ;;  %v900_v48 = vmul.f32 0.0078125, %v884_v36 }
 0x31c   : > { %1173 = vst [vmem:[%s1688_s20] sm:$0xff] %v1172_v42   ;;  %v932_v50 = vmul.f32 %v1324_v47, %v1626_v38  ;;  %v969_v54 = vadd.f32 %v1677_v22, %v950_v29 }
 0x31d   : > { %1329 = vrsqrt.f32 %v911_v41  ;;  %v912_v35 = vadd.f32 1e-05, %v900_v48 }
 0x31e   : > { %v951_v49 = vmul.f32 %v1670_v19, %v932_v50 }
 0x31f   : > { %v1326_v51 = vpop.eup %1325  ;;  %1331 = vrsqrt.f32 %v912_v35 }
 0x320   : > { %v970_v55 = vadd.f32 %v1677_v22, %v951_v49  ;;  %v933_v56 = vmul.f32 %v1326_v51, %v1631_v43  ;;  %v886_v57 = vpop.xlane.xlu0 %885 }
 0x321   : > { %v1328_v58 = vpop.eup %1327  ;;  %v901_v60 = vmul.f32 0.0078125, %v886_v57 }
 0x322   : > { %v1177_v61 = vpack.c.bf16 %v970_v55, %v969_v54  ;;  %v952_v62 = vmul.f32 %v1670_v19, %v933_v56  ;;  %v934_v38 = vmul.f32 %v1328_v58, %v1634_v46  ;;  %v888_v63 = vpop.xlane.xlu1 %887 }
 0x323   : > { %v913_v0 = vadd.f32 1e-05, %v901_v60  ;;  %v902_v2 = vmul.f32 0.0078125, %v888_v63 }
 0x324   : > { %1199 = vst [vmem:[%s1688_s20 + $0x8] sm:$0xff] %v1177_v61   ;;  %v953_v4 = vmul.f32 %v1670_v19, %v934_v38  ;;  %v971_v5 = vadd.f32 %v1677_v22, %v952_v62 }
 0x325   : > { %1333 = vrsqrt.f32 %v913_v0  ;;  %v914_v31 = vadd.f32 1e-05, %v902_v2 }
 0x326   : > { %v972_v43 = vadd.f32 %v1677_v22, %v953_v4 }
 0x327   : > { %v1330_v6 = vpop.eup %1329  ;;  %1335 = vrsqrt.f32 %v914_v31 }
 0x328   : > { %v1182_v7 = vpack.c.bf16 %v972_v43, %v971_v5  ;;  %v935_v8 = vmul.f32 %v1330_v6, %v1641_v52  ;;  %v890_v9 = vpop.xlane.xlu0 %889 }
 0x329   : > { %v1332_v46 = vpop.eup %1331  ;;  %v903_v10 = vmul.f32 0.0078125, %v890_v9 }
 0x32a   : > { %1200 = vst [vmem:[%s1688_s20 + $0x10] sm:$0xff] %v1182_v7   ;;  %v954_v12 = vmul.f32 %v1670_v19, %v935_v8  ;;  %v936_v44 = vmul.f32 %v1332_v46, %v1644_v53  ;;  %v892_v13 = vpop.xlane.xlu1 %891 }
 0x32b   : > { %v915_v14 = vadd.f32 1e-05, %v903_v10  ;;  %v904_v45 = vmul.f32 0.0078125, %v892_v13 }
 0x32c   : > { %v955_v15 = vmul.f32 %v1670_v19, %v936_v44  ;;  %v973_v32 = vadd.f32 %v1677_v22, %v954_v12 }
 0x32d   : > { %1337 = vrsqrt.f32 %v915_v14  ;;  %v916_v16 = vadd.f32 1e-05, %v904_v45 }
 0x32e   : > { %v974_v52 = vadd.f32 %v1677_v22, %v955_v15 }
 0x32f   : > { %v1334_v17 = vpop.eup %1333  ;;  %1339 = vrsqrt.f32 %v916_v16 }
 0x330   : > { %v1187_v20 = vpack.c.bf16 %v974_v52, %v973_v32  ;;  %v937_v21 = vmul.f32 %v1334_v17, %v1650_v30 }
 0x331   : > { %v1336_v23 = vpop.eup %1335 }
 0x332   : > { %1201 = vst [vmem:[%s1688_s20 + $0x18] sm:$0xff] %v1187_v20   ;;  %v956_v53 = vmul.f32 %v1670_v19, %v937_v21  ;;  %v938_v25 = vmul.f32 %v1336_v23, %v1652_v59 }
 0x334   : > { %v957_v27 = vmul.f32 %v1670_v19, %v938_v25  ;;  %v975_v33 = vadd.f32 %v1677_v22, %v956_v53 }
 0x336   : > { %v976_v11 = vadd.f32 %v1677_v22, %v957_v27 }
 0x337   : > { %v1338_v34 = vpop.eup %1337 }
 0x338   : > { %v1192_v18 = vpack.c.bf16 %v976_v11, %v975_v33  ;;  %v939_v26 = vmul.f32 %v1338_v34, %v1658_v1 }
 0x339   : > { %v1340_v37 = vpop.eup %1339 }
 0x33a   : > { %1202 = vst [vmem:[%s1688_s20 + $0x20] sm:$0xff] %v1192_v18   ;;  %v958_v30 = vmul.f32 %v1670_v19, %v939_v26  ;;  %v940_v24 = vmul.f32 %v1340_v37, %v1660_v3 }
 0x33c   : > { %v959_v39 = vmul.f32 %v1670_v19, %v940_v24  ;;  %v977_v59 = vadd.f32 %v1677_v22, %v958_v30 }
 0x33e   : > { %v978_v40 = vadd.f32 %v1677_v22, %v959_v39 }
 0x340   : > { %v1197_v28 = vpack.c.bf16 %v978_v40, %v977_v59 }
 0x342   : > { %1203 = vst [vmem:[%s1688_s20 + $0x28] sm:$0xff] %v1197_v28  }
 0x343 PF: > { %s17_s24 = sadd.s32 1, %s1347_s24  }
 0x344   : > { %p14_p4 = scmp.ge.s32.totalorder %s17_s24, 4  }
 0x346   :  { %16 = sbr.rel (!%p14_p4) target bundleno = 1 (0x1), region = 78 }

// kernel: decoder_forward.34
= control target key start
LH: loop header
LB: loop body
LE: loop exit
PB: predicated region body
PF: predicated region fallthrough
CT: control target
= control target key end

     0   :  { %s644_s12 = smov 0   ;;  %s770_s0 = inlined_call_operand.vmem [shape: bf16[192,128], index: 0, kind: input, shape index: {}]   ;;  %s771_s1 = inlined_call_operand.vmem [shape: f32[1,128], index: 1, kind: input, shape index: {}]   ;;  %s772_s2 = inlined_call_operand.vmem [shape: f32[1,128], index: 2, kind: input, shape index: {}]   ;;  %s773_s3 = inlined_call_operand.vmem [shape: bf16[192,128], index: 3, kind: output, shape index: {}]  }
   0x1 LB: > { %s485_s13 = sadd.s32 4294967295, %s622_s12   ;;  %p489_p0 = scmp.ge.s32.totalorder %s622_s12, 1  ;;  %s622_s12 = sphi %s644_s12, %s13_s12  }
   0x2   : > { %p138_p1 = scmp.lt.s32.totalorder %s622_s12, 3 }
   0x4   : > { %p139_p2 = pnand %p489_p0, %p138_p1 }
   0x5   : > { %s162_s14 = smul.u32 (!%p139_p2), 12, %s485_s13 }
   0x6   : > { %142 = sbr.rel (%p139_p2) target bundleno = 357 (0x165), region = 32 }
   0x7   : > { %p163_p3 = scmp.lt.s32.totalorder (!%p139_p2), %s162_s14, 23 }
   0xd   : > { %s775_s14 = smov (!%p163_p3, %s162_s14), 23 }
   0xe   : > { %s490_s15 = sshll.u32 %s775_s14, 2 }
   0xf   : > { %s166_s18 = scalar_lea.vmem %s770_s0, %s490_s15  ;;  %s732_s25 = scalar_lea.vmem %s773_s3, %s490_s15 }
  0x10   : > { %v521_v0 = vld [vmem:[%s166_s18] sm:$0xff]   ;;  %v574_v1 = vld [vmem:[%s166_s18 + $0x8] sm:$0xff]   ;;  %v575_v6 = vld [vmem:[%s166_s18 + $0x10] sm:$0xff]  }
  0x11   : > { %v522_v2 = vunpack.c.l.bf16 %v521_v0  ;;  %v526_v3 = vunpack.c.l.bf16 %v574_v1  ;;  %v523_v4 = vunpack.c.h.bf16 %v521_v0  ;;  %v527_v5 = vunpack.c.h.bf16 %v574_v1  ;;  %v576_v9 = vld [vmem:[%s166_s18 + $0x18] sm:$0xff]   ;;  %v577_v12 = vld [vmem:[%s166_s18 + $0x20] sm:$0xff]   ;;  %v578_v15 = vld [vmem:[%s166_s18 + $0x28] sm:$0xff]  }
  0x12   : > { %v530_v7 = vunpack.c.l.bf16 %v575_v6  ;;  %v531_v8 = vunpack.c.h.bf16 %v575_v6  ;;  %v534_v10 = vunpack.c.l.bf16 %v576_v9  ;;  %v535_v11 = vunpack.c.h.bf16 %v576_v9 }
  0x13   : > { %198 = vadd.xlane.f32.xlu0 %v522_v2  ;;  %202 = vadd.xlane.f32.xlu1 %v526_v3  ;;  %v538_v13 = vunpack.c.l.bf16 %v577_v12  ;;  %v539_v14 = vunpack.c.h.bf16 %v577_v12  ;;  %v542_v16 = vunpack.c.l.bf16 %v578_v15  ;;  %v543_v17 = vunpack.c.h.bf16 %v578_v15 }
  0x17   : > { %200 = vadd.xlane.f32.xlu0 %v523_v4  ;;  %204 = vadd.xlane.f32.xlu1 %v527_v5 }
  0x1b   : > { %206 = vadd.xlane.f32.xlu0 %v530_v7  ;;  %208 = vadd.xlane.f32.xlu1 %v531_v8 }
  0x1f   : > { %210 = vadd.xlane.f32.xlu0 %v534_v10  ;;  %212 = vadd.xlane.f32.xlu1 %v535_v11 }
  0x23   : > { %214 = vadd.xlane.f32.xlu0 %v538_v13  ;;  %216 = vadd.xlane.f32.xlu1 %v539_v14 }
  0x27   : > { %218 = vadd.xlane.f32.xlu0 %v542_v16  ;;  %220 = vadd.xlane.f32.xlu1 %v543_v17 }
  0xa0   : > { %v199_v18 = vpop.xlane.xlu0 %198  ;;  %v203_v19 = vpop.xlane.xlu1 %202 }
  0xa1   : > { %v223_v20 = vmul.f32 0.0078125, %v199_v18  ;;  %v225_v21 = vmul.f32 0.0078125, %v203_v19 }
  0xa3   : > { %v660_v22 = vsub.f32 %v522_v2, %v223_v20  ;;  %v662_v23 = vsub.f32 %v526_v3, %v225_v21 }
  0xa4   : > { %v201_v24 = vpop.xlane.xlu0 %200  ;;  %v205_v25 = vpop.xlane.xlu1 %204 }
  0xa5   : > { %v224_v26 = vmul.f32 0.0078125, %v201_v24  ;;  %v247_v27 = vmul.f32 %v660_v22, %v660_v22  ;;  %v226_v28 = vmul.f32 0.0078125, %v205_v25  ;;  %v249_v31 = vmul.f32 %v662_v23, %v662_v23 }
  0xa7   : > { %v666_v29 = vsub.f32 %v523_v4, %v224_v26  ;;  %259 = vadd.xlane.f32.xlu0 %v247_v27  ;;  %v668_v30 = vsub.f32 %v527_v5, %v226_v28 }
  0xa8   : > { %v207_v32 = vpop.xlane.xlu0 %206  ;;  %v209_v33 = vpop.xlane.xlu1 %208 }
  0xa9   : > { %v227_v34 = vmul.f32 0.0078125, %v207_v32  ;;  %v248_v35 = vmul.f32 %v666_v29, %v666_v29  ;;  %v228_v36 = vmul.f32 0.0078125, %v209_v33  ;;  %v250_v39 = vmul.f32 %v668_v30, %v668_v30 }
  0xab   : > { %v674_v37 = vsub.f32 %v530_v7, %v227_v34  ;;  %263 = vadd.xlane.f32.xlu0 %v249_v31  ;;  %261 = vadd.xlane.f32.xlu1 %v248_v35  ;;  %v676_v38 = vsub.f32 %v531_v8, %v228_v36  ;;  %v712_v31 = vld [vmem:[%s771_s1] ss:$0 sm:$0xff] }
  0xac   : > { %v211_v40 = vpop.xlane.xlu0 %210  ;;  %v213_v41 = vpop.xlane.xlu1 %212 }
  0xad   : > { %v229_v42 = vmul.f32 0.0078125, %v211_v40  ;;  %v251_v43 = vmul.f32 %v674_v37, %v674_v37  ;;  %v230_v44 = vmul.f32 0.0078125, %v213_v41  ;;  %v252_v47 = vmul.f32 %v676_v38, %v676_v38 }
  0xaf   : > { %v682_v45 = vsub.f32 %v534_v10, %v229_v42  ;;  %265 = vadd.xlane.f32.xlu1 %v250_v39  ;;  %267 = vadd.xlane.f32.xlu0 %v251_v43  ;;  %v684_v46 = vsub.f32 %v535_v11, %v230_v44  ;;  %v719_v43 = vld [vmem:[%s772_s2] ss:$0 sm:$0xff] }
  0xb0   : > { %v215_v48 = vpop.xlane.xlu0 %214  ;;  %v217_v49 = vpop.xlane.xlu1 %216 }
  0xb1   : > { %v231_v50 = vmul.f32 0.0078125, %v215_v48  ;;  %v253_v51 = vmul.f32 %v682_v45, %v682_v45  ;;  %v232_v52 = vmul.f32 0.0078125, %v217_v49  ;;  %v254_v55 = vmul.f32 %v684_v46, %v684_v46 }
  0xb3   : > { %v690_v53 = vsub.f32 %v538_v13, %v231_v50  ;;  %269 = vadd.xlane.f32.xlu1 %v252_v47  ;;  %271 = vadd.xlane.f32.xlu0 %v253_v51  ;;  %v692_v54 = vsub.f32 %v539_v14, %v232_v52 }
  0xb4   : > { %v219_v56 = vpop.xlane.xlu0 %218  ;;  %v221_v57 = vpop.xlane.xlu1 %220 }
  0xb5   : > { %v233_v58 = vmul.f32 0.0078125, %v219_v56  ;;  %v255_v59 = vmul.f32 %v690_v53, %v690_v53  ;;  %v234_v60 = vmul.f32 0.0078125, %v221_v57  ;;  %v256_v63 = vmul.f32 %v692_v54, %v692_v54 }
  0xb7   : > { %v698_v61 = vsub.f32 %v542_v16, %v233_v58  ;;  %273 = vadd.xlane.f32.xlu1 %v254_v55  ;;  %275 = vadd.xlane.f32.xlu0 %v255_v59  ;;  %v700_v62 = vsub.f32 %v543_v17, %v234_v60 }
  0xb9   : > { %v257_v0 = vmul.f32 %v698_v61, %v698_v61  ;;  %v258_v1 = vmul.f32 %v700_v62, %v700_v62 }
  0xbb   : > { %277 = vadd.xlane.f32.xlu1 %v256_v63  ;;  %279 = vadd.xlane.f32.xlu0 %v257_v0 }
  0xbf   : > { %281 = vadd.xlane.f32.xlu1 %v258_v1 }
 0x134   : > { %v260_v2 = vpop.xlane.xlu0 %259 }
 0x135   : > { %v283_v3 = vmul.f32 0.0078125, %v260_v2 }
 0x137   : > { %v295_v4 = vadd.f32 1e-05, %v283_v3 }
 0x138   : > { %v262_v5 = vpop.xlane.xlu1 %261  ;;  %v264_v6 = vpop.xlane.xlu0 %263 }
 0x139   : > { %592 = vrsqrt.f32 %v295_v4  ;;  %v284_v7 = vmul.f32 0.0078125, %v262_v5  ;;  %v285_v8 = vmul.f32 0.0078125, %v264_v6 }
 0x13b   : > { %v296_v9 = vadd.f32 1e-05, %v284_v7  ;;  %v297_v10 = vadd.f32 1e-05, %v285_v8 }
 0x13c   : > { %v266_v11 = vpop.xlane.xlu1 %265  ;;  %v268_v12 = vpop.xlane.xlu0 %267 }
 0x13d   : > { %594 = vrsqrt.f32 %v296_v9  ;;  %v286_v13 = vmul.f32 0.0078125, %v266_v11  ;;  %v287_v14 = vmul.f32 0.0078125, %v268_v12 }
 0x13e   : > { %596 = vrsqrt.f32 %v297_v10 }
 0x13f   : > { %v298_v15 = vadd.f32 1e-05, %v286_v13  ;;  %v299_v16 = vadd.f32 1e-05, %v287_v14 }
 0x140   : > { %v270_v17 = vpop.xlane.xlu1 %269  ;;  %v272_v18 = vpop.xlane.xlu0 %271 }
 0x141   : > { %598 = vrsqrt.f32 %v298_v15  ;;  %v288_v19 = vmul.f32 0.0078125, %v270_v17  ;;  %v289_v20 = vmul.f32 0.0078125, %v272_v18 }
 0x142   : > { %600 = vrsqrt.f32 %v299_v16 }
 0x143   : > { %v593_v21 = vpop.eup %592  ;;  %v300_v24 = vadd.f32 1e-05, %v288_v19  ;;  %v301_v25 = vadd.f32 1e-05, %v289_v20 }
 0x144   : > { %v319_v26 = vmul.f32 %v593_v21, %v660_v22  ;;  %v274_v27 = vpop.xlane.xlu1 %273  ;;  %v276_v28 = vpop.xlane.xlu0 %275 }
 0x145   : > { %602 = vrsqrt.f32 %v300_v24  ;;  %v290_v32 = vmul.f32 0.0078125, %v274_v27  ;;  %v291_v33 = vmul.f32 0.0078125, %v276_v28 }
 0x146   : > { %604 = vrsqrt.f32 %v301_v25  ;;  %v338_v40 = vmul.f32 %v712_v31, %v319_v26 }
 0x147   : > { %v595_v34 = vpop.eup %594  ;;  %v302_v35 = vadd.f32 1e-05, %v290_v32  ;;  %v303_v36 = vadd.f32 1e-05, %v291_v33 }
 0x148   : > { %v597_v39 = vpop.eup %596  ;;  %v320_v41 = vmul.f32 %v595_v34, %v666_v29  ;;  %v278_v22 = vpop.xlane.xlu1 %277  ;;  %v357_v55 = vadd.f32 %v719_v43, %v338_v40 }
 0x149   : > { %v280_v42 = vpop.xlane.xlu0 %279  ;;  %v321_v44 = vmul.f32 %v597_v39, %v662_v23  ;;  %606 = vrsqrt.f32 %v302_v35  ;;  %v292_v47 = vmul.f32 0.0078125, %v278_v22 }
 0x14a   : > { %v293_v48 = vmul.f32 0.0078125, %v280_v42  ;;  %v339_v49 = vmul.f32 %v712_v31, %v320_v41  ;;  %608 = vrsqrt.f32 %v303_v36 }
 0x14b   : > { %v599_v50 = vpop.eup %598  ;;  %v304_v51 = vadd.f32 1e-05, %v292_v47  ;;  %v340_v57 = vmul.f32 %v712_v31, %v321_v44 }
 0x14c   : > { %v305_v52 = vadd.f32 1e-05, %v293_v48  ;;  %v601_v29 = vpop.eup %600  ;;  %v358_v56 = vadd.f32 %v719_v43, %v339_v49  ;;  %v322_v58 = vmul.f32 %v599_v50, %v668_v30  ;;  %v282_v59 = vpop.xlane.xlu1 %281 }
 0x14d   : > { %v323_v23 = vmul.f32 %v601_v29, %v674_v37  ;;  %610 = vrsqrt.f32 %v304_v51  ;;  %v294_v60 = vmul.f32 0.0078125, %v282_v59  ;;  %v359_v3 = vadd.f32 %v719_v43, %v340_v57 }
 0x14e   : > { %v547_v63 = vpack.c.bf16 %v358_v56, %v357_v55  ;;  %v341_v0 = vmul.f32 %v712_v31, %v322_v58  ;;  %612 = vrsqrt.f32 %v305_v52 }
 0x14f   : > { %v603_v1 = vpop.eup %602  ;;  %v306_v2 = vadd.f32 1e-05, %v294_v60  ;;  %v342_v5 = vmul.f32 %v712_v31, %v323_v23 }
 0x150   : > { %v605_v30 = vpop.eup %604  ;;  %548 = vst [vmem:[%s732_s25] sm:$0xff] %v547_v63   ;;  %v360_v4 = vadd.f32 %v719_v43, %v341_v0  ;;  %v324_v6 = vmul.f32 %v603_v1, %v676_v38 }
 0x151   : > { %v325_v37 = vmul.f32 %v605_v30, %v682_v45  ;;  %614 = vrsqrt.f32 %v306_v2  ;;  %v361_v11 = vadd.f32 %v719_v43, %v342_v5 }
 0x152   : > { %v552_v7 = vpack.c.bf16 %v360_v4, %v359_v3  ;;  %v343_v8 = vmul.f32 %v712_v31, %v324_v6 }
 0x153   : > { %v607_v9 = vpop.eup %606  ;;  %v344_v13 = vmul.f32 %v712_v31, %v325_v37 }
 0x154   : > { %v609_v10 = vpop.eup %608  ;;  %579 = vst [vmem:[%s732_s25 + $0x8] sm:$0xff] %v552_v7   ;;  %v362_v12 = vadd.f32 %v719_v43, %v343_v8  ;;  %v326_v14 = vmul.f32 %v607_v9, %v684_v46 }
 0x155   : > { %v327_v38 = vmul.f32 %v609_v10, %v690_v53  ;;  %v363_v18 = vadd.f32 %v719_v43, %v344_v13 }
 0x156   : > { %v557_v45 = vpack.c.bf16 %v362_v12, %v361_v11  ;;  %v345_v15 = vmul.f32 %v712_v31, %v326_v14 }
 0x157   : > { %v611_v16 = vpop.eup %610  ;;  %v346_v20 = vmul.f32 %v712_v31, %v327_v38 }
 0x158   : > { %v613_v17 = vpop.eup %612  ;;  %580 = vst [vmem:[%s732_s25 + $0x10] sm:$0xff] %v557_v45   ;;  %v364_v19 = vadd.f32 %v719_v43, %v345_v15  ;;  %v328_v21 = vmul.f32 %v611_v16, %v692_v54 }
 0x159   : > { %v329_v46 = vmul.f32 %v613_v17, %v698_v61  ;;  %v365_v26 = vadd.f32 %v719_v43, %v346_v20 }
 0x15a   : > { %v562_v24 = vpack.c.bf16 %v364_v19, %v363_v18  ;;  %v347_v53 = vmul.f32 %v712_v31, %v328_v21 }
 0x15b   : > { %v615_v25 = vpop.eup %614  ;;  %v348_v28 = vmul.f32 %v712_v31, %v329_v46 }
 0x15c   : > { %581 = vst [vmem:[%s732_s25 + $0x18] sm:$0xff] %v562_v24   ;;  %v366_v27 = vadd.f32 %v719_v43, %v347_v53  ;;  %v330_v32 = vmul.f32 %v615_v25, %v700_v62 }
 0x15d   : > { %v367_v54 = vadd.f32 %v719_v43, %v348_v28 }
 0x15e   : > { %v567_v33 = vpack.c.bf16 %v366_v27, %v365_v26  ;;  %v349_v34 = vmul.f32 %v712_v31, %v330_v32 }
 0x160   : > { %582 = vst [vmem:[%s732_s25 + $0x20] sm:$0xff] %v567_v33   ;;  %v368_v61 = vadd.f32 %v719_v43, %v349_v34 }
 0x162   : > { %v572_v35 = vpack.c.bf16 %v368_v61, %v367_v54 }
 0x164   : > { %583 = vst [vmem:[%s732_s25 + $0x28] sm:$0xff] %v572_v35  }
 0x165 PF: > { %s13_s12 = sadd.s32 1, %s622_s12  }
 0x166   : > { %p10_p4 = scmp.ge.s32.totalorder %s13_s12, 4  }
 0x168   :  { %12 = sbr.rel (!%p10_p4) target bundleno = 1 (0x1), region = 62 }

// kernel: decoder_forward.35
= control target key start
LH: loop header
LB: loop body
LE: loop exit
PB: predicated region body
PF: predicated region fallthrough
CT: control target
= control target key end

     0   :  { %s576_s12 = smov 0   ;;  %s658_s0 = inlined_call_operand.vmem [shape: bf16[192,128], index: 0, kind: input, shape index: {}]   ;;  %s659_s1 = inlined_call_operand.vmem [shape: bf16[128,7], index: 1, kind: input, shape index: {}]   ;;  %s660_s2 = inlined_call_operand.vmem [shape: f32[1,7], index: 2, kind: input, shape index: {}]   ;;  %s661_s3 = inlined_call_operand.vmem [shape: f32[192,7], index: 3, kind: output, shape index: {}]  }
   0x1 LB: > { %s444_s13 = sadd.s32 4294967295, %s554_s12   ;;  %p448_p0 = scmp.ge.s32.totalorder %s554_s12, 1  ;;  %s554_s12 = sphi %s576_s12, %s13_s12  }
   0x2   : > { %p138_p1 = scmp.lt.s32.totalorder %s554_s12, 3 }
   0x4   : > { %p139_p2 = pnand %p448_p0, %p138_p1 }
   0x5   : > { %v534_v0 = vld [vmem:[%s659_s1] sm:$0xff] (!%p139_p2)   ;;  %s162_s16 = smul.u32 (!%p139_p2), 12, %s444_s13  ;;  %v535_v1 = vld [vmem:[%s659_s1 + $0x8] sm:$0xff] (!%p139_p2)   ;;  %v536_v2 = vld [vmem:[%s659_s1 + $0x10] sm:$0xff] (!%p139_p2)   ;;  %vm375_vm0 = vcmask (!%p139_p2), 56320  }
   0x6   : > { %142 = sbr.rel (%p139_p2) target bundleno = 264 (0x108), region = 32  ;;  %510 = vmatprep.subr.bf16.mxu1 (!%p139_p2), %v534_v0  ;;  %482 = vmatprep.subr.bf16.mxu0 (!%p139_p2), %v534_v0  ;;  %v537_v3 = vld [vmem:[%s659_s1 + $0x18] sm:$0xff] (!%p139_p2)   ;;  %v538_v6 = vld [vmem:[%s659_s1 + $0x20] sm:$0xff] (!%p139_p2)   ;;  %v539_v7 = vld [vmem:[%s659_s1 + $0x28] sm:$0xff] (!%p139_p2)  }
   0x7   : > { %p163_p3 = scmp.lt.s32.totalorder (!%p139_p2), %s162_s16, 23  ;;  %518 = vmatpush3.bf16.msra.mxu1 (!%p139_p2), %v534_v0  ;;  %483 = vmatpush3.bf16.msra.mxu0 (!%p139_p2), %v534_v0  ;;  %v540_v8 = vld [vmem:[%s659_s1 + $0x30] sm:$0xff] (!%p139_p2)   ;;  %v541_v9 = vld [vmem:[%s659_s1 + $0x38] sm:$0xff] (!%p139_p2)   ;;  %v451_v14 = vld [vmem:[%s660_s2] ss:$0 sm:$0xff] (!%p139_p2) }
   0x8   : > { %511 = vmatprep.subr.bf16.mxu1 (!%p139_p2), %v535_v1  ;;  %484 = vmatprep.subr.bf16.mxu0 (!%p139_p2), %v535_v1 }
   0xb   : > { %519 = vmatpush3.bf16.msra.mxu1 (!%p139_p2), %v535_v1  ;;  %485 = vmatpush3.bf16.msra.mxu0 (!%p139_p2), %v535_v1 }
   0xc   : > { %512 = vmatprep.subr.bf16.mxu1 (!%p139_p2), %v536_v2  ;;  %486 = vmatprep.subr.bf16.mxu0 (!%p139_p2), %v536_v2 }
   0xd   : > { %s663_s16 = smov (!%p163_p3, %s162_s16), 23 }
   0xe   : > { %s449_s21 = sshll.u32 %s663_s16, 2  ;;  %s450_s8 = sshll.u32 %s663_s16, 3 }
   0xf   : > { %s602_s26 = scalar_lea.vmem %s658_s0, %s449_s21  ;;  %520 = vmatpush3.bf16.msra.mxu1 %v536_v2  ;;  %487 = vmatpush3.bf16.msra.mxu0 %v536_v2  ;;  %s629_s14 = scalar_lea.vmem %s661_s3, %s450_s8 }
  0x10   : > { %v542_v4 = vld [vmem:[%s602_s26 + $0x10] sm:$0xff]   ;;  %v544_v5 = vld [vmem:[%s602_s26] sm:$0xff]   ;;  %513 = vmatprep.subr.bf16.mxu1 %v537_v3  ;;  %488 = vmatprep.subr.bf16.mxu0 %v537_v3  ;;  %v543_v10 = vld [vmem:[%s602_s26 + $0x18] sm:$0xff]  }
  0x11   : > { %502 = vmatprep.mubr.bf16.mxu1 %v542_v4  ;;  %498 = vmatprep.mubr.bf16.mxu0 %v544_v5  ;;  %v545_v11 = vld [vmem:[%s602_s26 + $0x8] sm:$0xff]   ;;  %v546_v12 = vld [vmem:[%s602_s26 + $0x20] sm:$0xff]  }
  0x12   : > { %v547_v13 = vld [vmem:[%s602_s26 + $0x28] sm:$0xff]  }
  0x13   : > { %521 = vmatpush3.bf16.msra.mxu1 %v537_v3  ;;  %489 = vmatpush3.bf16.msra.mxu0 %v537_v3 }
  0x14   : > { %514 = vmatprep.subr.bf16.mxu1 %v538_v6  ;;  %490 = vmatprep.subr.bf16.mxu0 %v538_v6 }
  0x17   : > { %522 = vmatpush3.bf16.msra.mxu1 %v538_v6  ;;  %491 = vmatpush3.bf16.msra.mxu0 %v538_v6 }
  0x18   : > { %515 = vmatprep.subr.bf16.mxu1 %v539_v7  ;;  %492 = vmatprep.subr.bf16.mxu0 %v539_v7 }
  0x1b   : > { %523 = vmatpush3.bf16.msra.mxu1 %v539_v7  ;;  %493 = vmatpush3.bf16.msra.mxu0 %v539_v7 }
  0x1c   : > { %516 = vmatprep.subr.bf16.mxu1 %v540_v8  ;;  %494 = vmatprep.subr.bf16.mxu0 %v540_v8 }
  0x1f   : > { %524 = vmatpush3.bf16.msra.mxu1 %v540_v8  ;;  %495 = vmatpush3.bf16.msra.mxu0 %v540_v8 }
  0x20   : > { %517 = vmatprep.subr.bf16.mxu1 %v541_v9  ;;  %496 = vmatprep.subr.bf16.mxu0 %v541_v9 }
  0x23   : > { %525 = vmatpush3.bf16.msra.mxu1 %v541_v9  ;;  %497 = vmatpush3.bf16.msra.mxu0 %v541_v9 }
  0x26   : > { %503 = vmatmul.mubr.bf16.vlgmr.msra.gmra.mrb[0].mxu1 %v543_v10  ;;  %499 = vmatmul.mubr.bf16.vlgmr.msra.gmra.mrb[0].mxu0 %v545_v11 }
  0x27   : > { %506 = vmatprep.mubr.bf16.mxu1 %v546_v12 }
  0x2e   : > { %507 = vmatmul.mubr.bf16.gmra.mrb[4].mxu1 %v547_v13 }
  0xf9   : > { %v504_v15 = vpop.f32.mrb[0].mxu1  ;;  %v500_v16 = vpop.f32.mrb[0].mxu0 }
  0xfa   : > { %v353_v17 = vadd.f32 %v504_v15, %v451_v14  ;;  %v344_v18 = vpop.f32.mrb[1].mxu1  ;;  %v337_v19 = vadd.f32 %v500_v16, %v451_v14  ;;  %v328_v20 = vpop.f32.mrb[1].mxu0 }
  0xfb   : > { %v345_v21 = vadd.f32 %v451_v14, %v344_v18  ;;  %v505_v22 = vpop.f32.mrb[2].mxu1  ;;  %v329_v23 = vadd.f32 %v451_v14, %v328_v20  ;;  %v501_v24 = vpop.f32.mrb[2].mxu0 }
  0xfc   : > { %382 = vst.msk [vmem:[%s629_s14 + $0x30] sm:$0xff] %vm375_vm0, %v353_v17  ;;  %v356_v25 = vadd.f32 %v505_v22, %v451_v14  ;;  %v347_v26 = vpop.f32.mrb[3].mxu1  ;;  %378 = vst.msk [vmem:[%s629_s14 + $0x10] sm:$0xff] %vm375_vm0, %v337_v19  ;;  %v340_v27 = vadd.f32 %v501_v24, %v451_v14  ;;  %v331_v28 = vpop.f32.mrb[3].mxu0 }
  0xfd   : > { %380 = vst.msk [vmem:[%s629_s14 + $0x20] sm:$0xff] %vm375_vm0, %v345_v21  ;;  %v348_v29 = vadd.f32 %v451_v14, %v347_v26  ;;  %376 = vst.msk [vmem:[%s629_s14] sm:$0xff] %vm375_vm0, %v329_v23  ;;  %v332_v30 = vadd.f32 %v451_v14, %v331_v28 }
  0xfe   : > { %383 = vst.msk [vmem:[%s629_s14 + $0x38] sm:$0xff] %vm375_vm0, %v356_v25  ;;  %379 = vst.msk [vmem:[%s629_s14 + $0x18] sm:$0xff] %vm375_vm0, %v340_v27 }
  0xff   : > { %381 = vst.msk [vmem:[%s629_s14 + $0x28] sm:$0xff] %vm375_vm0, %v348_v29  ;;  %377 = vst.msk [vmem:[%s629_s14 + $0x8] sm:$0xff] %vm375_vm0, %v332_v30 }
 0x101   : > { %v508_v31 = vpop.f32.mrb[4].mxu1 }
 0x102   : > { %v369_v32 = vadd.f32 %v508_v31, %v451_v14  ;;  %v360_v33 = vpop.f32.mrb[5].mxu1 }
 0x103   : > { %v361_v34 = vadd.f32 %v451_v14, %v360_v33  ;;  %v509_v35 = vpop.f32.mrb[6].mxu1 }
 0x104   : > { %386 = vst.msk [vmem:[%s629_s14 + $0x50] sm:$0xff] %vm375_vm0, %v369_v32  ;;  %v372_v36 = vadd.f32 %v509_v35, %v451_v14  ;;  %v363_v37 = vpop.f32.mrb[7].mxu1 }
 0x105   : > { %384 = vst.msk [vmem:[%s629_s14 + $0x40] sm:$0xff] %vm375_vm0, %v361_v34  ;;  %v364_v38 = vadd.f32 %v451_v14, %v363_v37 }
 0x106   : > { %387 = vst.msk [vmem:[%s629_s14 + $0x58] sm:$0xff] %vm375_vm0, %v372_v36 }
 0x107   : > { %385 = vst.msk [vmem:[%s629_s14 + $0x48] sm:$0xff] %vm375_vm0, %v364_v38 }
 0x108 PF: > { %s13_s12 = sadd.s32 1, %s554_s12  }
 0x109   : > { %p10_p4 = scmp.ge.s32.totalorder %s13_s12, 4  }
 0x10b   :  { %12 = sbr.rel (!%p10_p4) target bundleno = 1 (0x1), region = 62 }

// kernel: decoder_forward.23
= control target key start
LH: loop header
LB: loop body
LE: loop exit
PB: predicated region body
PF: predicated region fallthrough
CT: control target
= control target key end

     0   :  { %s3409_s12 = smov 0   ;;  %s4116_s0 = inlined_call_operand.vmem [shape: bf16[2,4,96,32], index: 0, kind: input, shape index: {}]   ;;  %s4117_s1 = inlined_call_operand.vmem [shape: bf16[2,4,128,32], index: 1, kind: input, shape index: {}]   ;;  %s4118_s2 = inlined_call_operand.vmem [shape: bf16[2,4,128,32], index: 2, kind: input, shape index: {}]   ;;  %s4119_s3 = inlined_call_operand.vmem [shape: bf16[2,4,96,32], index: 3, kind: output, shape index: {}]  }
   0x1 LB: > { %s2501_s13 = sadd.s32 4294967295, %s3387_s12   ;;  %p2505_p0 = scmp.ge.s32.totalorder %s3387_s12, 1  ;;  %s3387_s12 = sphi %s3409_s12, %s13_s12  }
   0x2   : > { %p157_p1 = scmp.lt.s32.totalorder %s3387_s12, 3 }
   0x4   : > { %p158_p2 = pnand %p2505_p0, %p157_p1 }
   0x6   : > { %161 = sbr.rel (%p158_p2) target bundleno = 943 (0x3af), region = 32 }
   0xd   : > { %p191_p3 = scmp.lt.s32.totalorder %s2501_s13, 1  ;;  %vm458_vm0 = vcmask 261120   ;;  %vm2373_vm1 = vcmask 257024  }
   0xf   : > { %s4145_s13 = smov (!%p191_p3, %s2501_s13), 1 }
  0x10   : > { %s2674_s14 = sshll.u32 %s4145_s13, 8  ;;  %s3092_s18 = smul.u32 192, %s4145_s13 }
  0x11   : > { %s3425_s17 = scalar_lea.vmem %s4117_s1, %s2674_s14  ;;  %s3498_s24 = scalar_lea.vmem %s4118_s2, %s2674_s14 }
  0x12   : > { %v3101_v0 = vld [vmem:[%s3425_s17] sm:$0xff]   ;;  %v3103_v3 = vld [vmem:[%s3425_s17 + $0x8] sm:$0xff]   ;;  %v3105_v7 = vld [vmem:[%s3425_s17 + $0x10] sm:$0xff]   ;;  %s3449_s21 = scalar_lea.vmem %s4116_s0, %s3092_s18  ;;  %s4015_s27 = scalar_lea.vmem %s4119_s3, %s3092_s18 }
  0x13   : > { %v3102_v1 = vld [vmem:[%s3425_s17 + $0x40] sm:$0xff]   ;;  %3060 = vmatprep.subr.msk.bf16.mxu0 %vm458_vm0, %v3101_v0  ;;  %v478_v2 = vsel %vm458_vm0, %v3101_v0, 0  ;;  %v3104_v5 = vld [vmem:[%s3425_s17 + $0x48] sm:$0xff]   ;;  %v481_v6 = vsel %vm458_vm0, %v3103_v3, 0  ;;  %v3106_v9 = vld [vmem:[%s3425_s17 + $0x50] sm:$0xff]   ;;  %v484_v12 = vsel %vm458_vm0, %v3105_v7, 0 }
  0x14   : > { %3068 = vmatprep.subr.msk.bf16.mxu1 %vm458_vm0, %v3102_v1  ;;  %2837 = vmatpush3.bf16.xpose.msra.mxu0 %v478_v2  ;;  %v671_v4 = vsel %vm458_vm0, %v3102_v1, 0  ;;  %v674_v8 = vsel %vm458_vm0, %v3104_v5, 0  ;;  %v3107_v10 = vld [vmem:[%s3425_s17 + $0x18] sm:$0xff]   ;;  %v3117_v13 = vld [vmem:[%s3449_s21] sm:$0xff]   ;;  %v677_v14 = vsel %vm458_vm0, %v3106_v9, 0  ;;  %v3118_v15 = vld [vmem:[%s3449_s21 + $0x30] sm:$0xff]  }
  0x15   : > { %2865 = vmatpush3.bf16.xpose.msra.mxu1 %v671_v4  ;;  %3061 = vmatprep.subr.msk.bf16.mxu0 %vm458_vm0, %v3103_v3  ;;  %v3108_v11 = vld [vmem:[%s3425_s17 + $0x58] sm:$0xff]   ;;  %v487_v16 = vsel %vm458_vm0, %v3107_v10, 0  ;;  %v3109_v17 = vld [vmem:[%s3425_s17 + $0x20] sm:$0xff]   ;;  %v3111_v21 = vld [vmem:[%s3425_s17 + $0x28] sm:$0xff]  }
  0x16   : > { %3069 = vmatprep.subr.msk.bf16.mxu1 %vm458_vm0, %v3104_v5  ;;  %2852 = vmatprep.mubr.msk.bf16.mxu0 %vm458_vm0, %v3117_v13  ;;  %v680_v18 = vsel %vm458_vm0, %v3108_v11, 0  ;;  %v3110_v19 = vld [vmem:[%s3425_s17 + $0x60] sm:$0xff]   ;;  %v490_v20 = vsel %vm458_vm0, %v3109_v17, 0  ;;  %v3112_v23 = vld [vmem:[%s3425_s17 + $0x68] sm:$0xff]   ;;  %v493_v24 = vsel %vm458_vm0, %v3111_v21, 0  ;;  %v3113_v25 = vld [vmem:[%s3425_s17 + $0x30] sm:$0xff]  }
  0x17   : > { %2880 = vmatprep.mubr.msk.bf16.mxu1 %vm458_vm0, %v3118_v15  ;;  %v683_v22 = vsel %vm458_vm0, %v3110_v19, 0  ;;  %v686_v26 = vsel %vm458_vm0, %v3112_v23, 0  ;;  %v3114_v27 = vld [vmem:[%s3425_s17 + $0x70] sm:$0xff]   ;;  %v3115_v28 = vld [vmem:[%s3425_s17 + $0x38] sm:$0xff]   ;;  %v496_v30 = vsel %vm458_vm0, %v3113_v25, 0  ;;  %v3121_v31 = vld [vmem:[%s3425_s17 + $0x80] sm:$0xff]  }
  0x18   : > { %v3116_v29 = vld [vmem:[%s3425_s17 + $0x78] sm:$0xff]   ;;  %v689_v32 = vsel %vm458_vm0, %v3114_v27, 0  ;;  %v3122_v33 = vld [vmem:[%s3425_s17 + $0xc0] sm:$0xff]   ;;  %v3123_v34 = vld [vmem:[%s3425_s17 + $0x88] sm:$0xff]   ;;  %v499_v36 = vsel %vm458_vm0, %v3115_v28, 0  ;;  %v864_v38 = vsel %vm458_vm0, %v3121_v31, 0 }
  0x19   : > { %v3124_v35 = vld [vmem:[%s3425_s17 + $0xc8] sm:$0xff]   ;;  %v692_v37 = vsel %vm458_vm0, %v3116_v29, 0  ;;  %v1057_v39 = vsel %vm458_vm0, %v3122_v33, 0  ;;  %v867_v40 = vsel %vm458_vm0, %v3123_v34, 0  ;;  %v3120_v43 = vld [vmem:[%s3449_s21 + $0x38] sm:$0xff]   ;;  %v3125_v44 = vld [vmem:[%s3449_s21 + $0x10] sm:$0xff]  }
  0x1a   : > { %v1060_v41 = vsel %vm458_vm0, %v3124_v35, 0  ;;  %v3119_v42 = vld [vmem:[%s3449_s21 + $0x8] sm:$0xff]   ;;  %v3129_v45 = vld [vmem:[%s3449_s21 + $0x40] sm:$0xff]   ;;  %v3126_v46 = vld [vmem:[%s3449_s21 + $0x18] sm:$0xff]  }
  0x1b   : > { %v3130_v47 = vld [vmem:[%s3449_s21 + $0x48] sm:$0xff]   ;;  %v3127_v48 = vld [vmem:[%s3425_s17 + $0x90] sm:$0xff]   ;;  %v3133_v50 = vld [vmem:[%s3449_s21 + $0x20] sm:$0xff]  }
  0x1c   : > { %2839 = vmatpush3.bf16.xpose.msra.mxu0 %v481_v6  ;;  %v3128_v49 = vld [vmem:[%s3425_s17 + $0xd0] sm:$0xff]   ;;  %v3134_v52 = vld [vmem:[%s3449_s21 + $0x28] sm:$0xff]   ;;  %v3138_v53 = vld [vmem:[%s3449_s21 + $0x58] sm:$0xff]   ;;  %v870_v54 = vsel %vm458_vm0, %v3127_v48, 0 }
  0x1d   : > { %2867 = vmatpush3.bf16.xpose.msra.mxu1 %v674_v8  ;;  %3062 = vmatprep.subr.msk.bf16.mxu0 %vm458_vm0, %v3105_v7  ;;  %v3137_v51 = vld [vmem:[%s3449_s21 + $0x50] sm:$0xff]   ;;  %v3131_v55 = vld [vmem:[%s3425_s17 + $0x98] sm:$0xff]   ;;  %v1063_v56 = vsel %vm458_vm0, %v3128_v49, 0  ;;  %v3145_v58 = vld [vmem:[%s3449_s21 + $0x60] sm:$0xff]  }
  0x1e   : > { %3070 = vmatprep.subr.msk.bf16.mxu1 %vm458_vm0, %v3106_v9  ;;  %v3132_v57 = vld [vmem:[%s3425_s17 + $0xd8] sm:$0xff]   ;;  %v3147_v59 = vld [vmem:[%s3449_s21 + $0x90] sm:$0xff]   ;;  %v873_v60 = vsel %vm458_vm0, %v3131_v55, 0  ;;  %v3135_v61 = vld [vmem:[%s3425_s17 + $0xa0] sm:$0xff]  }
  0x1f   : > { %v1066_v62 = vsel %vm458_vm0, %v3132_v57, 0  ;;  %v3136_v63 = vld [vmem:[%s3425_s17 + $0xe0] sm:$0xff]   ;;  %v876_v0 = vsel %vm458_vm0, %v3135_v61, 0  ;;  %v3139_v1 = vld [vmem:[%s3425_s17 + $0xa8] sm:$0xff]   ;;  %v3141_v5 = vld [vmem:[%s3425_s17 + $0xb0] sm:$0xff]  }
  0x20   : > { %v1069_v2 = vsel %vm458_vm0, %v3136_v63, 0  ;;  %v3140_v3 = vld [vmem:[%s3425_s17 + $0xe8] sm:$0xff]   ;;  %v879_v4 = vsel %vm458_vm0, %v3139_v1, 0  ;;  %v3142_v7 = vld [vmem:[%s3425_s17 + $0xf0] sm:$0xff]   ;;  %v882_v8 = vsel %vm458_vm0, %v3141_v5, 0  ;;  %v3143_v9 = vld [vmem:[%s3425_s17 + $0xb8] sm:$0xff]  }
  0x21   : > { %v1072_v6 = vsel %vm458_vm0, %v3140_v3, 0  ;;  %v3148_v15 = vld [vmem:[%s3449_s21 + $0x98] sm:$0xff]  }
  0x24   : > { %2841 = vmatpush3.bf16.xpose.msra.mxu0 %v484_v12  ;;  %v885_v12 = vsel %vm458_vm0, %v3143_v9, 0 }
  0x25   : > { %2869 = vmatpush3.bf16.xpose.msra.mxu1 %v677_v14  ;;  %3063 = vmatprep.subr.msk.bf16.mxu0 %vm458_vm0, %v3107_v10  ;;  %v1075_v10 = vsel %vm458_vm0, %v3142_v7, 0  ;;  %v3146_v14 = vld [vmem:[%s3449_s21 + $0x68] sm:$0xff]  }
  0x26   : > { %3071 = vmatprep.subr.msk.bf16.mxu1 %vm458_vm0, %v3108_v11  ;;  %v3144_v11 = vld [vmem:[%s3425_s17 + $0xf8] sm:$0xff]  }
  0x27   : > { %v1078_v13 = vsel %vm458_vm0, %v3144_v11, 0 }
  0x2c   : > { %2843 = vmatpush3.bf16.xpose.msra.mxu0 %v487_v16  ;;  %v3149_v16 = vld [vmem:[%s3449_s21 + $0x70] sm:$0xff]  }
  0x2d   : > { %2871 = vmatpush3.bf16.xpose.msra.mxu1 %v680_v18  ;;  %3064 = vmatprep.subr.msk.bf16.mxu0 %vm458_vm0, %v3109_v17  ;;  %v3151_v17 = vld [vmem:[%s3449_s21 + $0xa0] sm:$0xff]   ;;  %v3150_v18 = vld [vmem:[%s3449_s21 + $0x78] sm:$0xff]  }
  0x2e   : > { %3072 = vmatprep.subr.msk.bf16.mxu1 %vm458_vm0, %v3110_v19  ;;  %v3152_v19 = vld [vmem:[%s3449_s21 + $0xa8] sm:$0xff]  }
  0x34   : > { %2845 = vmatpush3.bf16.xpose.msra.mxu0 %v490_v20  ;;  %v3153_v20 = vld [vmem:[%s3449_s21 + $0x80] sm:$0xff]  }
  0x35   : > { %2873 = vmatpush3.bf16.xpose.msra.mxu1 %v683_v22  ;;  %3065 = vmatprep.subr.msk.bf16.mxu0 %vm458_vm0, %v3111_v21  ;;  %v3155_v21 = vld [vmem:[%s3449_s21 + $0xb0] sm:$0xff]   ;;  %v3154_v22 = vld [vmem:[%s3449_s21 + $0x88] sm:$0xff]  }
  0x36   : > { %3073 = vmatprep.subr.msk.bf16.mxu1 %vm458_vm0, %v3112_v23  ;;  %v3156_v23 = vld [vmem:[%s3449_s21 + $0xb8] sm:$0xff]  }
  0x3c   : > { %2847 = vmatpush3.bf16.xpose.msra.mxu0 %v493_v24 }
  0x3d   : > { %2875 = vmatpush3.bf16.xpose.msra.mxu1 %v686_v26  ;;  %3066 = vmatprep.subr.msk.bf16.mxu0 %vm458_vm0, %v3113_v25 }
  0x3e   : > { %3074 = vmatprep.subr.msk.bf16.mxu1 %vm458_vm0, %v3114_v27 }
  0x44   : > { %2849 = vmatpush3.bf16.xpose.msra.mxu0 %v496_v30 }
  0x45   : > { %2877 = vmatpush3.bf16.xpose.msra.mxu1 %v689_v32  ;;  %3067 = vmatprep.subr.msk.bf16.mxu0 %vm458_vm0, %v3115_v28 }
  0x46   : > { %3075 = vmatprep.subr.msk.bf16.mxu1 %vm458_vm0, %v3116_v29 }
  0x4c   : > { %2851 = vmatpush3.bf16.xpose.msra.mxu0 %v499_v36 }
  0x4d   : > { %2879 = vmatpush3.bf16.xpose.msra.mxu1 %v692_v37  ;;  %3076 = vmatprep.subr.msk.bf16.mxu0 %vm458_vm0, %v3121_v31 }
  0x4e   : > { %3084 = vmatprep.subr.msk.bf16.mxu1 %vm458_vm0, %v3122_v33 }
  0x53   : > { %2853 = vmatmul.mubr.msk.bf16.vlgmr.msra.gmra.mrb[0].mxu0 %vm458_vm0, %v3119_v42 }
  0x54   : > { %2881 = vmatmul.mubr.msk.bf16.vlgmr.msra.gmra.mrb[0].mxu1 %vm458_vm0, %v3120_v43  ;;  %2893 = vmatpush3.bf16.xpose.msra.mxu0 %v864_v38 }
  0x55   : > { %2921 = vmatpush3.bf16.xpose.msra.mxu1 %v1057_v39  ;;  %3077 = vmatprep.subr.msk.bf16.mxu0 %vm458_vm0, %v3123_v34 }
  0x56   : > { %3085 = vmatprep.subr.msk.bf16.mxu1 %vm458_vm0, %v3124_v35  ;;  %2856 = vmatprep.mubr.msk.bf16.mxu0 %vm458_vm0, %v3125_v44 }
  0x57   : > { %2884 = vmatprep.mubr.msk.bf16.mxu1 %vm458_vm0, %v3129_v45 }
  0x5b   : > { %2857 = vmatmul.mubr.msk.bf16.gmra.mrb[4].mxu0 %vm458_vm0, %v3126_v46 }
  0x5c   : > { %2895 = vmatpush3.bf16.xpose.msra.mxu0 %v867_v40  ;;  %2885 = vmatmul.mubr.msk.bf16.gmra.mrb[4].mxu1 %vm458_vm0, %v3130_v47 }
  0x5d   : > { %2923 = vmatpush3.bf16.xpose.msra.mxu1 %v1060_v41  ;;  %3078 = vmatprep.subr.msk.bf16.mxu0 %vm458_vm0, %v3127_v48 }
  0x5e   : > { %3086 = vmatprep.subr.msk.bf16.mxu1 %vm458_vm0, %v3128_v49  ;;  %2860 = vmatprep.mubr.msk.bf16.mxu0 %vm458_vm0, %v3133_v50 }
  0x5f   : > { %2888 = vmatprep.mubr.msk.bf16.mxu1 %vm458_vm0, %v3137_v51 }
  0x63   : > { %2861 = vmatmul.mubr.msk.bf16.gmra.mrb[8].mxu0 %vm458_vm0, %v3134_v52 }
  0x64   : > { %2897 = vmatpush3.bf16.xpose.msra.mxu0 %v870_v54  ;;  %2889 = vmatmul.mubr.msk.bf16.gmra.mrb[8].mxu1 %vm458_vm0, %v3138_v53 }
  0x65   : > { %2925 = vmatpush3.bf16.xpose.msra.mxu1 %v1063_v56  ;;  %3079 = vmatprep.subr.msk.bf16.mxu0 %vm458_vm0, %v3131_v55 }
  0x66   : > { %3087 = vmatprep.subr.msk.bf16.mxu1 %vm458_vm0, %v3132_v57  ;;  %2908 = vmatprep.mubr.msk.bf16.mxu0 %vm458_vm0, %v3145_v58 }
  0x67   : > { %2936 = vmatprep.mubr.msk.bf16.mxu1 %vm458_vm0, %v3147_v59 }
  0x6c   : > { %2899 = vmatpush3.bf16.xpose.msra.mxu0 %v873_v60 }
  0x6d   : > { %2927 = vmatpush3.bf16.xpose.msra.mxu1 %v1066_v62  ;;  %3080 = vmatprep.subr.msk.bf16.mxu0 %vm458_vm0, %v3135_v61 }
  0x6e   : > { %3088 = vmatprep.subr.msk.bf16.mxu1 %vm458_vm0, %v3136_v63 }
  0x74   : > { %2901 = vmatpush3.bf16.xpose.msra.mxu0 %v876_v0 }
  0x75   : > { %2929 = vmatpush3.bf16.xpose.msra.mxu1 %v1069_v2  ;;  %3081 = vmatprep.subr.msk.bf16.mxu0 %vm458_vm0, %v3139_v1 }
  0x76   : > { %3089 = vmatprep.subr.msk.bf16.mxu1 %vm458_vm0, %v3140_v3 }
  0x7c   : > { %2903 = vmatpush3.bf16.xpose.msra.mxu0 %v879_v4 }
  0x7d   : > { %2931 = vmatpush3.bf16.xpose.msra.mxu1 %v1072_v6  ;;  %3082 = vmatprep.subr.msk.bf16.mxu0 %vm458_vm0, %v3141_v5 }
  0x7e   : > { %3090 = vmatprep.subr.msk.bf16.mxu1 %vm458_vm0, %v3142_v7 }
  0x84   : > { %2905 = vmatpush3.bf16.xpose.msra.mxu0 %v882_v8 }
  0x85   : > { %2933 = vmatpush3.bf16.xpose.msra.mxu1 %v1075_v10  ;;  %3083 = vmatprep.subr.msk.bf16.mxu0 %vm458_vm0, %v3143_v9 }
  0x86   : > { %3091 = vmatprep.subr.msk.bf16.mxu1 %vm458_vm0, %v3144_v11 }
  0x8c   : > { %2907 = vmatpush3.bf16.xpose.msra.mxu0 %v885_v12 }
  0x8d   : > { %2935 = vmatpush3.bf16.xpose.msra.mxu1 %v1078_v13 }
  0x93   : > { %2909 = vmatmul.mubr.msk.bf16.vlgmr.msra.gmra.mrb[12].mxu0 %vm458_vm0, %v3146_v14 }
  0x94   : > { %2937 = vmatmul.mubr.msk.bf16.vlgmr.msra.gmra.mrb[12].mxu1 %vm458_vm0, %v3148_v15  ;;  %2912 = vmatprep.mubr.msk.bf16.mxu0 %vm458_vm0, %v3149_v16 }
  0x95   : > { %2940 = vmatprep.mubr.msk.bf16.mxu1 %vm458_vm0, %v3151_v17 }
  0x9b   : > { %2913 = vmatmul.mubr.msk.bf16.gmra.mrb[16].mxu0 %vm458_vm0, %v3150_v18 }
  0x9c   : > { %2941 = vmatmul.mubr.msk.bf16.gmra.mrb[16].mxu1 %vm458_vm0, %v3152_v19  ;;  %2916 = vmatprep.mubr.msk.bf16.mxu0 %vm458_vm0, %v3153_v20 }
  0x9d   : > { %2944 = vmatprep.mubr.msk.bf16.mxu1 %vm458_vm0, %v3155_v21 }
  0xa3   : > { %2917 = vmatmul.mubr.msk.bf16.gmra.mrb[20].mxu0 %vm458_vm0, %v3154_v22 }
  0xa4   : > { %2945 = vmatmul.mubr.msk.bf16.gmra.mrb[20].mxu1 %vm458_vm0, %v3156_v23 }
 0x126   : > { %v2854_v24 = vpop.f32.mrb[0].mxu0 }
 0x127   : > { %v3586_v25 = vmul.f32 0.17677669, %v2854_v24  ;;  %v2882_v26 = vpop.f32.mrb[0].mxu1  ;;  %v535_v27 = vpop.f32.mrb[1].mxu0 }
 0x128   : > { %v728_v28 = vpop.f32.mrb[1].mxu1  ;;  %v2855_v29 = vpop.f32.mrb[2].mxu0  ;;  %v3588_v30 = vmul.f32 0.17677669, %v2882_v26  ;;  %v3597_v37 = vmul.f32 0.17677669, %v535_v27 }
 0x129   : > { %v3590_v31 = vmul.f32 0.17677669, %v728_v28  ;;  %1213 = vmax.xlane.f32.xlu0 %v3586_v25  ;;  %v538_v32 = vpop.f32.mrb[3].mxu0  ;;  %v2883_v33 = vpop.f32.mrb[2].mxu1  ;;  %v3594_v35 = vmul.f32 0.17677669, %v2855_v29 }
 0x12a   : > { %v731_v34 = vpop.f32.mrb[3].mxu1  ;;  %v3600_v42 = vmul.f32 0.17677669, %v2883_v33  ;;  %v3603_v46 = vmul.f32 0.17677669, %v538_v32 }
 0x12b   : > { %1233 = vmax.xlane.f32.xlu1 %v3590_v31  ;;  %v3606_v47 = vmul.f32 0.17677669, %v731_v34 }
 0x12d   : > { %1237 = vmax.xlane.f32.xlu0 %v3588_v30 }
 0x12e   : > { %v2858_v36 = vpop.f32.mrb[4].mxu0 }
 0x12f   : > { %1215 = vmax.xlane.f32.xlu1 %v3594_v35  ;;  %v551_v38 = vpop.f32.mrb[5].mxu0  ;;  %v2886_v39 = vpop.f32.mrb[4].mxu1  ;;  %v3609_v48 = vmul.f32 0.17677669, %v2858_v36 }
 0x130   : > { %v2859_v40 = vpop.f32.mrb[6].mxu0  ;;  %v744_v41 = vpop.f32.mrb[5].mxu1  ;;  %v3614_v55 = vmul.f32 0.17677669, %v2886_v39  ;;  %v3620_v60 = vmul.f32 0.17677669, %v551_v38 }
 0x131   : > { %1209 = vmax.xlane.f32.xlu0 %v3597_v37  ;;  %v2887_v43 = vpop.f32.mrb[6].mxu1  ;;  %v554_v44 = vpop.f32.mrb[7].mxu0  ;;  %v3612_v50 = vmul.f32 0.17677669, %v2859_v40  ;;  %v3626_v62 = vmul.f32 0.17677669, %v744_v41 }
 0x132   : > { %v747_v45 = vpop.f32.mrb[7].mxu1  ;;  %v3618_v59 = vmul.f32 0.17677669, %v2887_v43  ;;  %v3624_v61 = vmul.f32 0.17677669, %v554_v44 }
 0x133   : > { %1239 = vmax.xlane.f32.xlu1 %v3600_v42  ;;  %v3630_v63 = vmul.f32 0.17677669, %v747_v45 }
 0x135   : > { %1211 = vmax.xlane.f32.xlu0 %v3603_v46 }
 0x136   : > { %v2862_v49 = vpop.f32.mrb[8].mxu0 }
 0x137   : > { %1235 = vmax.xlane.f32.xlu1 %v3606_v47  ;;  %v567_v51 = vpop.f32.mrb[9].mxu0  ;;  %v2890_v52 = vpop.f32.mrb[8].mxu1  ;;  %v3633_v0 = vmul.f32 0.17677669, %v2862_v49 }
 0x138   : > { %v2863_v53 = vpop.f32.mrb[10].mxu0  ;;  %v760_v54 = vpop.f32.mrb[9].mxu1  ;;  %v3638_v2 = vmul.f32 0.17677669, %v2890_v52  ;;  %v3644_v4 = vmul.f32 0.17677669, %v567_v51 }
 0x139   : > { %1221 = vmax.xlane.f32.xlu0 %v3609_v48  ;;  %v2891_v56 = vpop.f32.mrb[10].mxu1  ;;  %v570_v57 = vpop.f32.mrb[11].mxu0  ;;  %v3636_v1 = vmul.f32 0.17677669, %v2863_v53  ;;  %v3650_v6 = vmul.f32 0.17677669, %v760_v54 }
 0x13a   : > { %v763_v58 = vpop.f32.mrb[11].mxu1  ;;  %v3642_v3 = vmul.f32 0.17677669, %v2891_v56  ;;  %v3648_v5 = vmul.f32 0.17677669, %v570_v57 }
 0x13b   : > { %1223 = vmax.xlane.f32.xlu1 %v3612_v50  ;;  %v3654_v7 = vmul.f32 0.17677669, %v763_v58 }
 0x13d   : > { %1245 = vmax.xlane.f32.xlu0 %v3614_v55 }
 0x13f   : > { %1247 = vmax.xlane.f32.xlu1 %v3618_v59 }
 0x141   : > { %1217 = vmax.xlane.f32.xlu0 %v3620_v60 }
 0x143   : > { %1219 = vmax.xlane.f32.xlu1 %v3624_v61 }
 0x145   : > { %1241 = vmax.xlane.f32.xlu0 %v3626_v62 }
 0x147   : > { %1243 = vmax.xlane.f32.xlu1 %v3630_v63 }
 0x149   : > { %1229 = vmax.xlane.f32.xlu0 %v3633_v0 }
 0x14b   : > { %1231 = vmax.xlane.f32.xlu1 %v3636_v1 }
 0x14d   : > { %1253 = vmax.xlane.f32.xlu0 %v3638_v2 }
 0x14f   : > { %1255 = vmax.xlane.f32.xlu1 %v3642_v3 }
 0x151   : > { %1225 = vmax.xlane.f32.xlu0 %v3644_v4 }
 0x153   : > { %1227 = vmax.xlane.f32.xlu1 %v3648_v5 }
 0x155   : > { %1249 = vmax.xlane.f32.xlu0 %v3650_v6 }
 0x157   : > { %1251 = vmax.xlane.f32.xlu1 %v3654_v7 }
 0x166   : > { %v2910_v8 = vpop.f32.mrb[12].mxu0 }
 0x167   : > { %v3658_v9 = vmul.f32 0.17677669, %v2910_v8  ;;  %v921_v10 = vpop.f32.mrb[13].mxu0  ;;  %v2938_v11 = vpop.f32.mrb[12].mxu1 }
 0x168   : > { %v2911_v12 = vpop.f32.mrb[14].mxu0  ;;  %v1114_v13 = vpop.f32.mrb[13].mxu1  ;;  %v3660_v14 = vmul.f32 0.17677669, %v2938_v11  ;;  %v3669_v21 = vmul.f32 0.17677669, %v921_v10 }
 0x169   : > { %v3662_v15 = vmul.f32 0.17677669, %v2911_v12  ;;  %v2939_v16 = vpop.f32.mrb[14].mxu1  ;;  %1261 = vmax.xlane.f32.xlu0 %v3658_v9  ;;  %v924_v17 = vpop.f32.mrb[15].mxu0  ;;  %v3675_v33 = vmul.f32 0.17677669, %v1114_v13 }
 0x16a   : > { %v1117_v18 = vpop.f32.mrb[15].mxu1  ;;  %v3666_v19 = vmul.f32 0.17677669, %v2939_v16  ;;  %v3672_v27 = vmul.f32 0.17677669, %v924_v17 }
 0x16b   : > { %1263 = vmax.xlane.f32.xlu1 %v3662_v15  ;;  %v3678_v34 = vmul.f32 0.17677669, %v1117_v18 }
 0x16d   : > { %1285 = vmax.xlane.f32.xlu0 %v3660_v14 }
 0x16e   : > { %v2914_v20 = vpop.f32.mrb[16].mxu0 }
 0x16f   : > { %1287 = vmax.xlane.f32.xlu1 %v3666_v19  ;;  %v937_v22 = vpop.f32.mrb[17].mxu0  ;;  %v2942_v23 = vpop.f32.mrb[16].mxu1  ;;  %v3680_v36 = vmul.f32 0.17677669, %v2914_v20 }
 0x170   : > { %v2915_v24 = vpop.f32.mrb[18].mxu0  ;;  %v1130_v26 = vpop.f32.mrb[17].mxu1  ;;  %v3686_v45 = vmul.f32 0.17677669, %v2942_v23  ;;  %v3693_v54 = vmul.f32 0.17677669, %v937_v22 }
 0x171   : > { %1257 = vmax.xlane.f32.xlu0 %v3669_v21  ;;  %v940_v28 = vpop.f32.mrb[19].mxu0  ;;  %v2943_v29 = vpop.f32.mrb[18].mxu1  ;;  %v3684_v44 = vmul.f32 0.17677669, %v2915_v24  ;;  %v3699_v57 = vmul.f32 0.17677669, %v1130_v26 }
 0x172   : > { %v1133_v32 = vpop.f32.mrb[19].mxu1  ;;  %v3690_v53 = vmul.f32 0.17677669, %v2943_v29  ;;  %v3696_v56 = vmul.f32 0.17677669, %v940_v28  ;;  %v3157_v24 = vld [vmem:[%s3498_s24] sm:$0xff]  }
 0x173   : > { %1259 = vmax.xlane.f32.xlu1 %v3672_v27  ;;  %v3702_v58 = vmul.f32 0.17677669, %v1133_v32  ;;  %2948 = vmatprep.subr.bf16.mxu0 %v3157_v24 }
 0x174   : > { %2949 = vmatpush3.bf16.msra.mxu0 %v3157_v24 }
 0x175   : > { %1281 = vmax.xlane.f32.xlu0 %v3675_v33 }
 0x176   : > { %v2918_v38 = vpop.f32.mrb[20].mxu0 }
 0x177   : > { %1283 = vmax.xlane.f32.xlu1 %v3678_v34  ;;  %v953_v39 = vpop.f32.mrb[21].mxu0  ;;  %v2946_v40 = vpop.f32.mrb[20].mxu1  ;;  %v3704_v8 = vmul.f32 0.17677669, %v2918_v38 }
 0x178   : > { %v2919_v41 = vpop.f32.mrb[22].mxu0  ;;  %v1146_v43 = vpop.f32.mrb[21].mxu1  ;;  %v3710_v11 = vmul.f32 0.17677669, %v2946_v40  ;;  %v3717_v13 = vmul.f32 0.17677669, %v953_v39 }
 0x179   : > { %1269 = vmax.xlane.f32.xlu0 %v3680_v36  ;;  %v956_v49 = vpop.f32.mrb[23].mxu0  ;;  %v2947_v51 = vpop.f32.mrb[22].mxu1  ;;  %v3708_v10 = vmul.f32 0.17677669, %v2919_v41  ;;  %v3723_v17 = vmul.f32 0.17677669, %v1146_v43 }
 0x17a   : > { %v1149_v52 = vpop.f32.mrb[23].mxu1  ;;  %v3714_v12 = vmul.f32 0.17677669, %v2947_v51  ;;  %v3720_v16 = vmul.f32 0.17677669, %v956_v49 }
 0x17b   : > { %1271 = vmax.xlane.f32.xlu1 %v3684_v44  ;;  %v3726_v18 = vmul.f32 0.17677669, %v1149_v52 }
 0x17d   : > { %1293 = vmax.xlane.f32.xlu0 %v3686_v45 }
 0x17f   : > { %1295 = vmax.xlane.f32.xlu1 %v3690_v53 }
 0x181   : > { %1265 = vmax.xlane.f32.xlu0 %v3693_v54 }
 0x183   : > { %1267 = vmax.xlane.f32.xlu1 %v3696_v56 }
 0x185   : > { %1289 = vmax.xlane.f32.xlu0 %v3699_v57 }
 0x187   : > { %1291 = vmax.xlane.f32.xlu1 %v3702_v58 }
 0x189   : > { %1277 = vmax.xlane.f32.xlu0 %v3704_v8 }
 0x18b   : > { %1279 = vmax.xlane.f32.xlu1 %v3708_v10 }
 0x18d   : > { %1301 = vmax.xlane.f32.xlu0 %v3710_v11 }
 0x18f   : > { %1303 = vmax.xlane.f32.xlu1 %v3714_v12 }
 0x191   : > { %1273 = vmax.xlane.f32.xlu0 %v3717_v13 }
 0x193   : > { %1275 = vmax.xlane.f32.xlu1 %v3720_v16 }
 0x195   : > { %1297 = vmax.xlane.f32.xlu0 %v3723_v17 }
 0x197   : > { %1299 = vmax.xlane.f32.xlu1 %v3726_v18 }
 0x1b6   : > { %v1214_v20 = vpop.xlane.xlu0 %1213 }
 0x1b7   : > { %v1307_v22 = vsub.f32 %v3586_v25, %v1214_v20 }
 0x1b8   : > { %v1234_v23 = vpop.xlane.xlu1 %1233 }
 0x1b9   : > { %v1357_v26 = vmul.f32 1.442695, %v1307_v22  ;;  %v1317_v40 = vsub.f32 %v3590_v31, %v1234_v23 }
 0x1ba   : > { %v1238_v28 = vpop.xlane.xlu0 %1237 }
 0x1bb   : > { %3189 = vpow2.f32 %v1357_v26  ;;  %v1319_v29 = vsub.f32 %v3588_v30, %v1238_v28  ;;  %v1377_v20 = vmul.f32 1.442695, %v1317_v40 }
 0x1bc   : > { %v1216_v32 = vpop.xlane.xlu1 %1215 }
 0x1bd   : > { %v1381_v38 = vmul.f32 1.442695, %v1319_v29  ;;  %v1308_v39 = vsub.f32 %v3594_v35, %v1216_v32 }
 0x1be   : > { %v1210_v41 = vpop.xlane.xlu0 %1209 }
 0x1bf   : > { %3191 = vpow2.f32 %v1381_v38  ;;  %v1359_v43 = vmul.f32 1.442695, %v1308_v39  ;;  %v1305_v25 = vsub.f32 %v3597_v37, %v1210_v41 }
 0x1c0   : > { %v1240_v49 = vpop.xlane.xlu1 %1239 }
 0x1c1   : > { %3193 = vpow2.f32 %v1359_v43  ;;  %v1353_v51 = vmul.f32 1.442695, %v1305_v25  ;;  %v1320_v52 = vsub.f32 %v3600_v42, %v1240_v49 }
 0x1c2   : > { %v1212_v22 = vpop.xlane.xlu0 %1211 }
 0x1c3   : > { %3195 = vpow2.f32 %v1353_v51  ;;  %v1383_v30 = vmul.f32 1.442695, %v1320_v52  ;;  %v1306_v24 = vsub.f32 %v3603_v46, %v1212_v22 }
 0x1c4   : > { %v1236_v26 = vpop.xlane.xlu1 %1235 }
 0x1c5   : > { %v3738_v35 = vpop.eup %3189  ;;  %3197 = vpow2.f32 %v1383_v30  ;;  %v1355_v31 = vmul.f32 1.442695, %v1306_v24  ;;  %v1318_v23 = vsub.f32 %v3606_v47, %v1236_v26 }
 0x1c6   : > { %3199 = vpow2.f32 %v1377_v20  ;;  %v1222_v37 = vpop.xlane.xlu0 %1221  ;;  %1453 = vadd.xlane.f32.xlu0 %v3738_v35 }
 0x1c7   : > { %3201 = vpow2.f32 %v1355_v31  ;;  %v1311_v42 = vsub.f32 %v3609_v48, %v1222_v37  ;;  %v1379_v32 = vmul.f32 1.442695, %v1318_v23  ;;  %v3158_v23 = vld [vmem:[%s3498_s24 + $0x8] sm:$0xff]   ;;  %v3159_v37 = vld [vmem:[%s3498_s24 + $0x40] sm:$0xff]  }
 0x1c8   : > { %v1224_v28 = vpop.xlane.xlu1 %1223  ;;  %2950 = vmatprep.subr.bf16.mxu0 %v3158_v23  ;;  %2976 = vmatprep.subr.bf16.mxu1 %v3159_v37 }
 0x1c9   : > { %v3743_v29 = vpop.eup %3191  ;;  %v1365_v38 = vmul.f32 1.442695, %v1311_v42  ;;  %v1312_v46 = vsub.f32 %v3612_v50, %v1224_v28  ;;  %2951 = vmatpush3.bf16.msra.mxu0 %v3158_v23  ;;  %2977 = vmatpush3.bf16.msra.mxu1 %v3159_v37 }
 0x1ca   : > { %v1246_v39 = vpop.xlane.xlu0 %1245  ;;  %1477 = vadd.xlane.f32.xlu0 %v3743_v29 }
 0x1cb   : > { %v3747_v40 = vpop.eup %3193  ;;  %3203 = vpow2.f32 %v1365_v38  ;;  %v1323_v47 = vsub.f32 %v3614_v55, %v1246_v39  ;;  %v1367_v48 = vmul.f32 1.442695, %v1312_v46 }
 0x1cc   : > { %v1248_v41 = vpop.xlane.xlu1 %1247  ;;  %1455 = vadd.xlane.f32.xlu1 %v3747_v40  ;;  %3205 = vpow2.f32 %v1379_v32 }
 0x1cd   : > { %v3751_v43 = vpop.eup %3195  ;;  %v1389_v25 = vmul.f32 1.442695, %v1323_v47  ;;  %v1324_v49 = vsub.f32 %v3618_v59, %v1248_v41  ;;  %v3160_v47 = vld [vmem:[%s3498_s24 + $0x10] sm:$0xff]   ;;  %v3161_v41 = vld [vmem:[%s3498_s24 + $0x48] sm:$0xff]  }
 0x1ce   : > { %v1218_v51 = vpop.xlane.xlu0 %1217  ;;  %1449 = vadd.xlane.f32.xlu0 %v3751_v43  ;;  %2952 = vmatprep.subr.bf16.mxu0 %v3160_v47 }
 0x1cf   : > { %v3755_v50 = vpop.eup %3197  ;;  %3207 = vpow2.f32 %v1389_v25  ;;  %v1309_v52 = vsub.f32 %v3620_v60, %v1218_v51  ;;  %v1391_v30 = vmul.f32 1.442695, %v1324_v49  ;;  %2978 = vmatprep.subr.bf16.mxu1 %v3161_v41  ;;  %2953 = vmatpush3.bf16.msra.mxu0 %v3160_v47 }
 0x1d0   : > { %v3758_v55 = vpop.eup %3199  ;;  %v1220_v20 = vpop.xlane.xlu1 %1219  ;;  %1479 = vadd.xlane.f32.xlu1 %v3755_v50  ;;  %3209 = vpow2.f32 %v1367_v48  ;;  %2979 = vmatpush3.bf16.msra.mxu1 %v3161_v41 }
 0x1d1   : > { %v3761_v22 = vpop.eup %3201  ;;  %v1361_v59 = vmul.f32 1.442695, %v1309_v52  ;;  %v1310_v24 = vsub.f32 %v3624_v61, %v1220_v20 }
 0x1d2   : > { %v1242_v26 = vpop.xlane.xlu0 %1241  ;;  %1473 = vadd.xlane.f32.xlu0 %v3758_v55 }
 0x1d3   : > { %3211 = vpow2.f32 %v1361_v59  ;;  %v1321_v31 = vsub.f32 %v3626_v62, %v1242_v26  ;;  %v1363_v28 = vmul.f32 1.442695, %v1310_v24  ;;  %v3163_v59 = vld [vmem:[%s3498_s24 + $0x50] sm:$0xff]  }
 0x1d4   : > { %v1244_v60 = vpop.xlane.xlu1 %1243  ;;  %1451 = vadd.xlane.f32.xlu1 %v3761_v22  ;;  %3213 = vpow2.f32 %v1391_v30  ;;  %v3162_v30 = vld [vmem:[%s3498_s24 + $0x18] sm:$0xff]   ;;  %2980 = vmatprep.subr.bf16.mxu1 %v3163_v59 }
 0x1d5   : > { %v3769_v42 = vpop.eup %3203  ;;  %v1385_v32 = vmul.f32 1.442695, %v1321_v31  ;;  %v1322_v61 = vsub.f32 %v3630_v63, %v1244_v60  ;;  %2954 = vmatprep.subr.bf16.mxu0 %v3162_v30  ;;  %2981 = vmatpush3.bf16.msra.mxu1 %v3163_v59 }
 0x1d6   : > { %v1230_v38 = vpop.xlane.xlu0 %1229  ;;  %1461 = vadd.xlane.f32.xlu0 %v3769_v42  ;;  %v3773_v46 = vpop.eup %3205  ;;  %2955 = vmatpush3.bf16.msra.mxu0 %v3162_v30  ;;  %v3169_v30 = vld [vmem:[%s3498_s24 + $0x68] sm:$0xff]  }
 0x1d7   : > { %3215 = vpow2.f32 %v1385_v32  ;;  %v1315_v62 = vsub.f32 %v3633_v0, %v1230_v38  ;;  %v1387_v63 = vmul.f32 1.442695, %v1322_v61  ;;  %v3165_v32 = vld [vmem:[%s3498_s24 + $0x58] sm:$0xff]  }
 0x1d8   : > { %v1232_v39 = vpop.xlane.xlu1 %1231  ;;  %1475 = vadd.xlane.f32.xlu1 %v3773_v46  ;;  %3217 = vpow2.f32 %v1363_v28  ;;  %v3164_v28 = vld [vmem:[%s3498_s24 + $0x20] sm:$0xff]   ;;  %2982 = vmatprep.subr.bf16.mxu1 %v3165_v32 }
 0x1d9   : > { %v3779_v48 = vpop.eup %3207  ;;  %v1373_v25 = vmul.f32 1.442695, %v1315_v62  ;;  %v1316_v49 = vsub.f32 %v3636_v1, %v1232_v39  ;;  %2956 = vmatprep.subr.bf16.mxu0 %v3164_v28  ;;  %2983 = vmatpush3.bf16.msra.mxu1 %v3165_v32 }
 0x1da   : > { %v1254_v51 = vpop.xlane.xlu0 %1253  ;;  %1485 = vadd.xlane.f32.xlu0 %v3779_v48  ;;  %v3783_v0 = vpop.eup %3209  ;;  %2957 = vmatpush3.bf16.msra.mxu0 %v3164_v28 }
 0x1db   : > { %3219 = vpow2.f32 %v1373_v25  ;;  %v1327_v52 = vsub.f32 %v3638_v2, %v1254_v51  ;;  %v1375_v1 = vmul.f32 1.442695, %v1316_v49  ;;  %v3167_v25 = vld [vmem:[%s3498_s24 + $0x60] sm:$0xff]  }
 0x1dc   : > { %v1256_v20 = vpop.xlane.xlu1 %1255  ;;  %1463 = vadd.xlane.f32.xlu1 %v3783_v0  ;;  %3221 = vpow2.f32 %v1387_v63  ;;  %v3166_v63 = vld [vmem:[%s3498_s24 + $0x28] sm:$0xff]   ;;  %2984 = vmatprep.subr.bf16.mxu1 %v3167_v25 }
 0x1dd   : > { %v3789_v24 = vpop.eup %3211  ;;  %v1397_v26 = vmul.f32 1.442695, %v1327_v52  ;;  %v1328_v31 = vsub.f32 %v3642_v3, %v1256_v20  ;;  %2958 = vmatprep.subr.bf16.mxu0 %v3166_v63  ;;  %2985 = vmatpush3.bf16.msra.mxu1 %v3167_v25  ;;  %v3168_v20 = vld [vmem:[%s3498_s24 + $0x30] sm:$0xff]  }
 0x1de   : > { %v1226_v60 = vpop.xlane.xlu0 %1225  ;;  %1457 = vadd.xlane.f32.xlu0 %v3789_v24  ;;  %v3793_v2 = vpop.eup %3213  ;;  %2959 = vmatpush3.bf16.msra.mxu0 %v3166_v63 }
 0x1df   : > { %3223 = vpow2.f32 %v1397_v26  ;;  %v1313_v23 = vsub.f32 %v3644_v4, %v1226_v60  ;;  %v1399_v3 = vmul.f32 1.442695, %v1328_v31  ;;  %2960 = vmatprep.subr.bf16.mxu0 %v3168_v20  ;;  %2986 = vmatprep.subr.bf16.mxu1 %v3169_v30  ;;  %v3170_v26 = vld [vmem:[%s3498_s24 + $0x38] sm:$0xff]   ;;  %v3171_v31 = vld [vmem:[%s3498_s24 + $0x70] sm:$0xff]  }
 0x1e0   : > { %v1228_v37 = vpop.xlane.xlu1 %1227  ;;  %1487 = vadd.xlane.f32.xlu1 %v3793_v2  ;;  %3225 = vpow2.f32 %v1375_v1 }
 0x1e1   : > { %v3799_v61 = vpop.eup %3215  ;;  %v1369_v38 = vmul.f32 1.442695, %v1313_v23  ;;  %v1314_v62 = vsub.f32 %v3648_v5, %v1228_v37  ;;  %2987 = vmatpush3.bf16.msra.mxu1 %v3169_v30  ;;  %v3172_v37 = vld [vmem:[%s3498_s24 + $0x78] sm:$0xff]  }
 0x1e2   : > { %v1250_v39 = vpop.xlane.xlu0 %1249  ;;  %1481 = vadd.xlane.f32.xlu0 %v3799_v61  ;;  %v3803_v4 = vpop.eup %3217  ;;  %2961 = vmatpush3.bf16.msra.mxu0 %v3168_v20 }
 0x1e3   : > { %3227 = vpow2.f32 %v1369_v38  ;;  %v1325_v47 = vsub.f32 %v3650_v6, %v1250_v39  ;;  %v1371_v49 = vmul.f32 1.442695, %v1314_v62  ;;  %2962 = vmatprep.subr.bf16.mxu0 %v3170_v26  ;;  %2988 = vmatprep.subr.bf16.mxu1 %v3171_v31 }
 0x1e4   : > { %v1252_v41 = vpop.xlane.xlu1 %1251  ;;  %1459 = vadd.xlane.f32.xlu1 %v3803_v4  ;;  %3229 = vpow2.f32 %v1399_v3 }
 0x1e5   : > { %v3809_v5 = vpop.eup %3219  ;;  %v1393_v51 = vmul.f32 1.442695, %v1325_v47  ;;  %v1326_v52 = vsub.f32 %v3654_v7, %v1252_v41  ;;  %2989 = vmatpush3.bf16.msra.mxu1 %v3171_v31 }
 0x1e6   : > { %1469 = vadd.xlane.f32.xlu0 %v3809_v5  ;;  %v3813_v6 = vpop.eup %3221  ;;  %2963 = vmatpush3.bf16.msra.mxu0 %v3170_v26 }
 0x1e7   : > { %3231 = vpow2.f32 %v1393_v51  ;;  %v1395_v1 = vmul.f32 1.442695, %v1326_v52  ;;  %2990 = vmatprep.subr.bf16.mxu1 %v3172_v37 }
 0x1e8   : > { %1483 = vadd.xlane.f32.xlu1 %v3813_v6  ;;  %3233 = vpow2.f32 %v1371_v49 }
 0x1e9   : > { %v3818_v59 = vpop.eup %3223  ;;  %3235 = vpow2.f32 %v1395_v1  ;;  %2991 = vmatpush3.bf16.msra.mxu1 %v3172_v37 }
 0x1ea   : > { %1493 = vadd.xlane.f32.xlu0 %v3818_v59  ;;  %v3821_v7 = vpop.eup %3225 }
 0x1ec   : > { %1471 = vadd.xlane.f32.xlu1 %v3821_v7 }
 0x1ed   : > { %v3826_v60 = vpop.eup %3227 }
 0x1ee   : > { %1465 = vadd.xlane.f32.xlu0 %v3826_v60  ;;  %v3829_v23 = vpop.eup %3229 }
 0x1f0   : > { %1495 = vadd.xlane.f32.xlu1 %v3829_v23 }
 0x1f1   : > { %v3833_v28 = vpop.eup %3231 }
 0x1f2   : > { %1489 = vadd.xlane.f32.xlu0 %v3833_v28  ;;  %v3836_v32 = vpop.eup %3233 }
 0x1f3   : > { %v3839_v38 = vpop.eup %3235 }
 0x1f4   : > { %1467 = vadd.xlane.f32.xlu1 %v3836_v32 }
 0x1f6   : > { %v1262_v3 = vpop.xlane.xlu0 %1261 }
 0x1f7   : > { %v1331_v62 = vsub.f32 %v3658_v9, %v1262_v3 }
 0x1f8   : > { %1491 = vadd.xlane.f32.xlu1 %v3839_v38  ;;  %v1264_v39 = vpop.xlane.xlu1 %1263 }
 0x1f9   : > { %v1405_v47 = vmul.f32 1.442695, %v1331_v62  ;;  %v1332_v41 = vsub.f32 %v3662_v15, %v1264_v39 }
 0x1fa   : > { %v1286_v63 = vpop.xlane.xlu0 %1285 }
 0x1fb   : > { %3237 = vpow2.f32 %v1405_v47  ;;  %v1407_v25 = vmul.f32 1.442695, %v1332_v41  ;;  %v1343_v49 = vsub.f32 %v3660_v14, %v1286_v63 }
 0x1fc   : > { %v1288_v51 = vpop.xlane.xlu1 %1287 }
 0x1fd   : > { %3239 = vpow2.f32 %v1407_v25  ;;  %v1429_v52 = vmul.f32 1.442695, %v1343_v49  ;;  %v1344_v20 = vsub.f32 %v3666_v19, %v1288_v51 }
 0x1fe   : > { %v1258_v30 = vpop.xlane.xlu0 %1257 }
 0x1ff   : > { %3241 = vpow2.f32 %v1429_v52  ;;  %v1431_v1 = vmul.f32 1.442695, %v1344_v20  ;;  %v1329_v9 = vsub.f32 %v3669_v21, %v1258_v30  ;;  %v3854_v21 = vld [vmem:[%s3498_s24 + $0x80] sm:$0xff]  }
 0x200   : > { %v1260_v26 = vpop.xlane.xlu1 %1259  ;;  %3004 = vmatprep.subr.bf16.mxu0 %v3854_v21 }
 0x201   : > { %3243 = vpow2.f32 %v1431_v1  ;;  %v1401_v31 = vmul.f32 1.442695, %v1329_v9  ;;  %v1330_v15 = vsub.f32 %v3672_v27, %v1260_v26 }
 0x202   : > { %v1282_v37 = vpop.xlane.xlu0 %1281 }
 0x203   : > { %3245 = vpow2.f32 %v1401_v31  ;;  %v1403_v3 = vmul.f32 1.442695, %v1330_v15  ;;  %v1341_v14 = vsub.f32 %v3675_v33, %v1282_v37 }
 0x204   : > { %v1284_v62 = vpop.xlane.xlu1 %1283 }
 0x205   : > { %v3849_v39 = vpop.eup %3237  ;;  %3247 = vpow2.f32 %v1403_v3  ;;  %v1425_v19 = vmul.f32 1.442695, %v1341_v14  ;;  %v1342_v47 = vsub.f32 %v3678_v34, %v1284_v62 }
 0x206   : > { %v1270_v41 = vpop.xlane.xlu0 %1269  ;;  %1501 = vadd.xlane.f32.xlu0 %v3849_v39 }
 0x207   : > { %v3856_v63 = vpop.eup %3239  ;;  %3249 = vpow2.f32 %v1425_v19  ;;  %v1427_v27 = vmul.f32 1.442695, %v1342_v47  ;;  %v1335_v25 = vsub.f32 %v3680_v36, %v1270_v41  ;;  %v3881_v47 = vld [vmem:[%s3498_s24 + $0xc0] sm:$0xff]  }
 0x208   : > { %v1272_v49 = vpop.xlane.xlu1 %1271  ;;  %1503 = vadd.xlane.f32.xlu1 %v3856_v63  ;;  %3032 = vmatprep.subr.bf16.mxu1 %v3881_v47 }
 0x209   : > { %v3861_v33 = vpop.eup %3241  ;;  %3251 = vpow2.f32 %v1427_v27  ;;  %v1413_v34 = vmul.f32 1.442695, %v1335_v25  ;;  %v1336_v51 = vsub.f32 %v3684_v44, %v1272_v49 }
 0x20a   : > { %v1294_v52 = vpop.xlane.xlu0 %1293  ;;  %1525 = vadd.xlane.f32.xlu0 %v3861_v33 }
 0x20b   : > { %v3865_v20 = vpop.eup %3243  ;;  %3253 = vpow2.f32 %v1413_v34  ;;  %v1415_v30 = vmul.f32 1.442695, %v1336_v51  ;;  %v1347_v36 = vsub.f32 %v3686_v45, %v1294_v52 }
 0x20c   : > { %v1296_v1 = vpop.xlane.xlu1 %1295  ;;  %1527 = vadd.xlane.f32.xlu1 %v3865_v20 }
 0x20d   : > { %v3869_v9 = vpop.eup %3245  ;;  %3255 = vpow2.f32 %v1415_v30  ;;  %v1437_v26 = vmul.f32 1.442695, %v1347_v36  ;;  %v1348_v31 = vsub.f32 %v3690_v53, %v1296_v1 }
 0x20e   : > { %v1266_v44 = vpop.xlane.xlu0 %1265  ;;  %1497 = vadd.xlane.f32.xlu0 %v3869_v9 }
 0x20f   : > { %v3873_v15 = vpop.eup %3247  ;;  %3257 = vpow2.f32 %v1437_v26  ;;  %v1439_v37 = vmul.f32 1.442695, %v1348_v31  ;;  %v1333_v3 = vsub.f32 %v3693_v54, %v1266_v44 }
 0x210   : > { %v1268_v45 = vpop.xlane.xlu1 %1267  ;;  %1499 = vadd.xlane.f32.xlu1 %v3873_v15 }
 0x211   : > { %v3877_v14 = vpop.eup %3249  ;;  %3259 = vpow2.f32 %v1439_v37  ;;  %v1409_v62 = vmul.f32 1.442695, %v1333_v3  ;;  %v1334_v19 = vsub.f32 %v3696_v56, %v1268_v45 }
 0x212   : > { %v1290_v53 = vpop.xlane.xlu0 %1289  ;;  %1521 = vadd.xlane.f32.xlu0 %v3877_v14 }
 0x213   : > { %v3884_v41 = vpop.eup %3251  ;;  %3261 = vpow2.f32 %v1409_v62  ;;  %v1411_v27 = vmul.f32 1.442695, %v1334_v19  ;;  %v1345_v54 = vsub.f32 %v3699_v57, %v1290_v53 }
 0x214   : > { %v1292_v25 = vpop.xlane.xlu1 %1291  ;;  %1523 = vadd.xlane.f32.xlu1 %v3884_v41 }
 0x215   : > { %v3889_v49 = vpop.eup %3253  ;;  %3263 = vpow2.f32 %v1411_v27  ;;  %v1433_v56 = vmul.f32 1.442695, %v1345_v54  ;;  %v1346_v34 = vsub.f32 %v3702_v58, %v1292_v25 }
 0x216   : > { %v1278_v51 = vpop.xlane.xlu0 %1277  ;;  %1509 = vadd.xlane.f32.xlu0 %v3889_v49 }
 0x217   : > { %v3893_v52 = vpop.eup %3255  ;;  %3265 = vpow2.f32 %v1433_v56  ;;  %v1435_v30 = vmul.f32 1.442695, %v1346_v34  ;;  %v1339_v57 = vsub.f32 %v3704_v8, %v1278_v51 }
 0x218   : > { %v1280_v36 = vpop.xlane.xlu1 %1279  ;;  %1511 = vadd.xlane.f32.xlu1 %v3893_v52 }
 0x219   : > { %v3897_v1 = vpop.eup %3257  ;;  %3267 = vpow2.f32 %v1435_v30  ;;  %v1421_v26 = vmul.f32 1.442695, %v1339_v57  ;;  %v1340_v31 = vsub.f32 %v3708_v10, %v1280_v36 }
 0x21a   : > { %v1302_v44 = vpop.xlane.xlu0 %1301  ;;  %1533 = vadd.xlane.f32.xlu0 %v3897_v1 }
 0x21b   : > { %v3901_v58 = vpop.eup %3259  ;;  %3269 = vpow2.f32 %v1421_v26  ;;  %v1423_v37 = vmul.f32 1.442695, %v1340_v31  ;;  %v1351_v34 = vsub.f32 %v3710_v11, %v1302_v44 }
 0x21c   : > { %v1304_v3 = vpop.xlane.xlu1 %1303  ;;  %1535 = vadd.xlane.f32.xlu1 %v3901_v58 }
 0x21d   : > { %v3904_v8 = vpop.eup %3261  ;;  %3271 = vpow2.f32 %v1423_v37  ;;  %v1352_v36 = vsub.f32 %v3714_v12, %v1304_v3  ;;  %v1445_v11 = vmul.f32 1.442695, %v1351_v34 }
 0x21e   : > { %1505 = vadd.xlane.f32.xlu0 %v3904_v8  ;;  %v1274_v45 = vpop.xlane.xlu0 %1273 }
 0x21f   : > { %v3907_v62 = vpop.eup %3263  ;;  %v1337_v10 = vsub.f32 %v3717_v13, %v1274_v45 }
 0x220   : > { %1507 = vadd.xlane.f32.xlu1 %v3907_v62  ;;  %v1276_v19 = vpop.xlane.xlu1 %1275 }
 0x221   : > { %v3911_v53 = vpop.eup %3265  ;;  %v1417_v27 = vmul.f32 1.442695, %v1337_v10  ;;  %v1338_v54 = vsub.f32 %v3720_v16, %v1276_v19 }
 0x222   : > { %1529 = vadd.xlane.f32.xlu0 %v3911_v53  ;;  %v1298_v25 = vpop.xlane.xlu0 %1297 }
 0x223   : > { %v3915_v56 = vpop.eup %3267  ;;  %3273 = vpow2.f32 %v1417_v27  ;;  %v1419_v51 = vmul.f32 1.442695, %v1338_v54  ;;  %v1349_v30 = vsub.f32 %v3723_v17, %v1298_v25  ;;  %v1447_v17 = vmul.f32 1.442695, %v1352_v36 }
 0x224   : > { %1531 = vadd.xlane.f32.xlu1 %v3915_v56  ;;  %v1300_v13 = vpop.xlane.xlu1 %1299 }
 0x225   : > { %v3920_v57 = vpop.eup %3269  ;;  %3275 = vpow2.f32 %v1419_v51  ;;  %v1441_v16 = vmul.f32 1.442695, %v1349_v30  ;;  %v1350_v26 = vsub.f32 %v3726_v18, %v1300_v13 }
 0x226   : > { %4128 = vst [vmem:[#allocation2_spill] sm:$0xff] %v3920_v57  ;;  %1517 = vadd.xlane.f32.xlu0 %v3920_v57 }
 0x227   : > { %v3925_v31 = vpop.eup %3271  ;;  %3277 = vpow2.f32 %v1441_v16  ;;  %v1443_v44 = vmul.f32 1.442695, %v1350_v26 }
 0x228   : > { %4129 = vst [vmem:[#allocation3_spill] sm:$0xff] %v3925_v31  ;;  %1519 = vadd.xlane.f32.xlu1 %v3925_v31  ;;  %v3174_v31 = vld [vmem:[%s3498_s24 + $0x88] sm:$0xff]  }
 0x229   : > { %3279 = vpow2.f32 %v1443_v44 }
 0x22a   : > { %3281 = vpow2.f32 %v1445_v11 }
 0x22b   : > { %3283 = vpow2.f32 %v1447_v17 }
 0x22d   : > { %v3928_v37 = vpop.eup %3273 }
 0x22e   : > { %4130 = vst [vmem:[#allocation4_spill] sm:$0xff] %v3928_v37  ;;  %1513 = vadd.xlane.f32.xlu0 %v3928_v37 }
 0x22f   : > { %v3931_v12 = vpop.eup %3275 }
 0x230   : > { %4131 = vst [vmem:[#allocation5_spill] sm:$0xff] %v3931_v12  ;;  %1515 = vadd.xlane.f32.xlu1 %v3931_v12 }
 0x231   : > { %v3934_v18 = vpop.eup %3277 }
 0x232   : > { %4132 = vst [vmem:[#allocation6_spill] sm:$0xff] %v3934_v18  ;;  %1537 = vadd.xlane.f32.xlu0 %v3934_v18 }
 0x233   : > { %v3937_v3 = vpop.eup %3279 }
 0x234   : > { %4133 = vst [vmem:[#allocation7_spill] sm:$0xff] %v3937_v3  ;;  %1539 = vadd.xlane.f32.xlu1 %v3937_v3  ;;  %v3940_v45 = vpop.eup %3281 }
 0x235   : > { %4134 = vst [vmem:[#allocation8_spill] sm:$0xff] %v3940_v45  ;;  %v3943_v10 = vpop.eup %3283 }
 0x236   : > { %1541 = vadd.xlane.f32.xlu0 %v3940_v45  ;;  %4135 = vst [vmem:[#allocation9_spill] sm:$0xff] %v3943_v10 }
 0x238   : > { %1543 = vadd.xlane.f32.xlu1 %v3943_v10 }
 0x253   : > { %v1454_v19 = vpop.xlane.xlu0 %1453 }
 0x257   : > { %v1478_v27 = vpop.xlane.xlu0 %1477 }
 0x259   : > { %v1456_v54 = vpop.xlane.xlu1 %1455 }
 0x25a   : > { %3285 = vrcp.f32 %v1456_v54 }
 0x25b   : > { %v1450_v25 = vpop.xlane.xlu0 %1449 }
 0x25c   : > { %3287 = vrcp.f32 %v1450_v25 }
 0x25d   : > { %v1480_v34 = vpop.xlane.xlu1 %1479  ;;  %3289 = vrcp.f32 %v1454_v19 }
 0x25f   : > { %v1474_v51 = vpop.xlane.xlu0 %1473 }
 0x261   : > { %v1452_v30 = vpop.xlane.xlu1 %1451 }
 0x262   : > { %3291 = vrcp.f32 %v1452_v30 }
 0x263   : > { %3293 = vrcp.f32 %v1480_v34  ;;  %v1462_v13 = vpop.xlane.xlu0 %1461 }
 0x264   : > { %3295 = vrcp.f32 %v1474_v51  ;;  %v3286_v26 = vpop.eup %3285 }
 0x265   : > { %3297 = vrcp.f32 %v1478_v27  ;;  %v1476_v36 = vpop.xlane.xlu1 %1475  ;;  %v1596_v54 = vmul.f32 %v3286_v26, %v3747_v40 }
 0x266   : > { %3299 = vrcp.f32 %v1476_v36  ;;  %v3288_v44 = vpop.eup %3287 }
 0x267   : > { %v1486_v16 = vpop.xlane.xlu0 %1485  ;;  %v3290_v17 = vpop.eup %3289  ;;  %v1593_v30 = vmul.f32 %v3288_v44, %v3751_v43 }
 0x268   : > { %v1595_v27 = vmul.f32 %v3290_v17, %v3738_v35 }
 0x269   : > { %v1464_v11 = vpop.xlane.xlu1 %1463 }
 0x26a   : > { %3301 = vrcp.f32 %v1464_v11  ;;  %v1642_v37 = vpack.c.bf16 %v1596_v54, %v1595_v27 }
 0x26b   : > { %v1458_v10 = vpop.xlane.xlu0 %1457 }
 0x26c   : > { %v3292_v45 = vpop.eup %3291  ;;  %3303 = vrcp.f32 %v1458_v10  ;;  %v3177_v10 = vld [vmem:[%s3498_s24 + $0xc8] sm:$0xff]  }
 0x26d   : > { %v3294_v25 = vpop.eup %3293  ;;  %v1488_v19 = vpop.xlane.xlu1 %1487  ;;  %v1594_v34 = vmul.f32 %v3292_v45, %v3761_v22  ;;  %3305 = vrcp.f32 %v1462_v13 }
 0x26e   : > { %v3296_v51 = vpop.eup %3295  ;;  %v1608_v12 = vmul.f32 %v3294_v25, %v3755_v50 }
 0x26f   : > { %v3298_v36 = vpop.eup %3297  ;;  %v1482_v3 = vpop.xlane.xlu0 %1481  ;;  %v1641_v18 = vpack.c.bf16 %v1594_v34, %v1593_v30  ;;  %v1605_v43 = vmul.f32 %v3296_v51, %v3758_v55 }
 0x270   : > { %v3300_v57 = vpop.eup %3299  ;;  %v1607_v35 = vmul.f32 %v3298_v36, %v3743_v29 }
 0x271   : > { %2964 = vmatprep.mubr.bf16.mxu0 %v1641_v18  ;;  %v1460_v40 = vpop.xlane.xlu1 %1459  ;;  %v1606_v22 = vmul.f32 %v3300_v57, %v3773_v46  ;;  %v3176_v18 = vld [vmem:[%s3498_s24 + $0x90] sm:$0xff]   ;;  %v3178_v46 = vld [vmem:[%s3498_s24 + $0x98] sm:$0xff]  }
 0x272   : > { %3307 = vrcp.f32 %v1460_v40  ;;  %2965 = vmatmul.mubr.bf16.vlgmr.msra.gmra.mrb[24].mxu0 %v1642_v37  ;;  %v1648_v50 = vpack.c.bf16 %v1608_v12, %v1607_v35  ;;  %v3182_v40 = vld [vmem:[%s3498_s24 + $0xa8] sm:$0xff]  }
 0x273   : > { %3309 = vrcp.f32 %v1488_v19  ;;  %v1470_v45 = vpop.xlane.xlu0 %1469  ;;  %v1647_v26 = vpack.c.bf16 %v1606_v22, %v1605_v43  ;;  %3005 = vmatpush3.bf16.msra.mxu0 %v3854_v21  ;;  %v3179_v21 = vld [vmem:[%s3498_s24 + $0xd0] sm:$0xff]  }
 0x274   : > { %3311 = vrcp.f32 %v1482_v3  ;;  %3006 = vmatprep.subr.bf16.mxu0 %v3174_v31  ;;  %v3302_v57 = vpop.eup %3301 }
 0x275   : > { %3313 = vrcp.f32 %v1486_v16  ;;  %2992 = vmatprep.mubr.bf16.mxu1 %v1647_v26  ;;  %v1484_v55 = vpop.xlane.xlu1 %1483  ;;  %v1600_v11 = vmul.f32 %v3302_v57, %v3783_v0  ;;  %v3184_v26 = vld [vmem:[%s3498_s24 + $0xb0] sm:$0xff]  }
 0x276   : > { %3315 = vrcp.f32 %v1484_v55  ;;  %2993 = vmatmul.mubr.bf16.vlgmr.msra.gmra.mrb[24].mxu1 %v1648_v50  ;;  %v3304_v12 = vpop.eup %3303  ;;  %v3185_v50 = vld [vmem:[%s3498_s24 + $0xe8] sm:$0xff]  }
 0x277   : > { %v1494_v29 = vpop.xlane.xlu0 %1493  ;;  %3007 = vmatpush3.bf16.msra.mxu0 %v3174_v31  ;;  %3033 = vmatpush3.bf16.msra.mxu1 %v3881_v47  ;;  %v3306_v3 = vpop.eup %3305  ;;  %v3180_v31 = vld [vmem:[%s3498_s24 + $0xa0] sm:$0xff]   ;;  %v3181_v47 = vld [vmem:[%s3498_s24 + $0xd8] sm:$0xff]   ;;  %v1597_v54 = vmul.f32 %v3304_v12, %v3789_v24 }
 0x278   : > { %3008 = vmatprep.subr.bf16.mxu0 %v3176_v18  ;;  %3034 = vmatprep.subr.bf16.mxu1 %v3177_v10  ;;  %v1599_v30 = vmul.f32 %v3306_v3, %v3769_v42  ;;  %v3183_v24 = vld [vmem:[%s3498_s24 + $0xe0] sm:$0xff]  }
 0x279   : > { %v1472_v37 = vpop.xlane.xlu1 %1471 }
 0x27a   : > { %3317 = vrcp.f32 %v1472_v37  ;;  %v1644_v27 = vpack.c.bf16 %v1600_v11, %v1599_v30 }
 0x27b   : > { %v1466_v13 = vpop.xlane.xlu0 %1465  ;;  %3009 = vmatpush3.bf16.msra.mxu0 %v3176_v18  ;;  %3035 = vmatpush3.bf16.msra.mxu1 %v3177_v10 }
 0x27c   : > { %v3308_v16 = vpop.eup %3307  ;;  %3010 = vmatprep.subr.bf16.mxu0 %v3178_v46  ;;  %3036 = vmatprep.subr.bf16.mxu1 %v3179_v21  ;;  %3319 = vrcp.f32 %v1466_v13 }
 0x27d   : > { %v3310_v44 = vpop.eup %3309  ;;  %v1496_v17 = vpop.xlane.xlu1 %1495  ;;  %v1598_v25 = vmul.f32 %v3308_v16, %v3803_v4  ;;  %3321 = vrcp.f32 %v1470_v45 }
 0x27e   : > { %v3312_v19 = vpop.eup %3311  ;;  %v1612_v36 = vmul.f32 %v3310_v44, %v3793_v2 }
 0x27f   : > { %v3314_v34 = vpop.eup %3313  ;;  %v1643_v51 = vpack.c.bf16 %v1598_v25, %v1597_v54  ;;  %3011 = vmatpush3.bf16.msra.mxu0 %v3178_v46  ;;  %3037 = vmatpush3.bf16.msra.mxu1 %v3179_v21  ;;  %v1490_v43 = vpop.xlane.xlu0 %1489  ;;  %v1609_v4 = vmul.f32 %v3312_v19, %v3799_v61 }
 0x280   : > { %v3316_v0 = vpop.eup %3315  ;;  %3012 = vmatprep.subr.bf16.mxu0 %v3180_v31  ;;  %3038 = vmatprep.subr.bf16.mxu1 %v3181_v47  ;;  %v1611_v35 = vmul.f32 %v3314_v34, %v3779_v48  ;;  %v3186_v48 = vld [vmem:[%s3498_s24 + $0xb8] sm:$0xff]  }
 0x281   : > { %2968 = vmatprep.mubr.bf16.mxu0 %v1643_v51  ;;  %v1468_v42 = vpop.xlane.xlu1 %1467  ;;  %v1610_v22 = vmul.f32 %v3316_v0, %v3813_v6  ;;  %v3187_v6 = vld [vmem:[%s3498_s24 + $0xf0] sm:$0xff]  }
 0x282   : > { %3323 = vrcp.f32 %v1468_v42  ;;  %2969 = vmatmul.mubr.bf16.gmra.mrb[28].mxu0 %v1644_v27  ;;  %v1650_v45 = vpack.c.bf16 %v1612_v36, %v1611_v35 }
 0x283   : > { %3325 = vrcp.f32 %v1496_v17  ;;  %v1649_v2 = vpack.c.bf16 %v1610_v22, %v1609_v4  ;;  %3013 = vmatpush3.bf16.msra.mxu0 %v3180_v31  ;;  %3039 = vmatpush3.bf16.msra.mxu1 %v3181_v47 }
 0x284   : > { %3327 = vrcp.f32 %v1490_v43  ;;  %3014 = vmatprep.subr.bf16.mxu0 %v3182_v40  ;;  %3040 = vmatprep.subr.bf16.mxu1 %v3183_v24  ;;  %v3318_v18 = vpop.eup %3317 }
 0x285   : > { %3329 = vrcp.f32 %v1494_v29  ;;  %2996 = vmatprep.mubr.bf16.mxu1 %v1649_v2  ;;  %v1492_v61 = vpop.xlane.xlu1 %1491  ;;  %v1604_v21 = vmul.f32 %v3318_v18, %v3821_v7  ;;  %v3188_v29 = vld [vmem:[%s3498_s24 + $0xf8] sm:$0xff]  }
 0x286   : > { %3331 = vrcp.f32 %v1492_v61  ;;  %2997 = vmatmul.mubr.bf16.gmra.mrb[28].mxu1 %v1650_v45  ;;  %v3320_v10 = vpop.eup %3319 }
 0x287   : > { %3015 = vmatpush3.bf16.msra.mxu0 %v3182_v40  ;;  %3041 = vmatpush3.bf16.msra.mxu1 %v3183_v24  ;;  %v3322_v55 = vpop.eup %3321  ;;  %v1601_v37 = vmul.f32 %v3320_v10, %v3826_v60 }
 0x288   : > { %3016 = vmatprep.subr.bf16.mxu0 %v3184_v26  ;;  %3042 = vmatprep.subr.bf16.mxu1 %v3185_v50  ;;  %v1603_v13 = vmul.f32 %v3322_v55, %v3809_v5 }
 0x28a   : > { %v1646_v47 = vpack.c.bf16 %v1604_v21, %v1603_v13 }
 0x28b   : > { %3017 = vmatpush3.bf16.msra.mxu0 %v3184_v26  ;;  %3043 = vmatpush3.bf16.msra.mxu1 %v3185_v50 }
 0x28c   : > { %v3324_v46 = vpop.eup %3323  ;;  %3018 = vmatprep.subr.bf16.mxu0 %v3186_v48  ;;  %3044 = vmatprep.subr.bf16.mxu1 %v3187_v6 }
 0x28d   : > { %v3326_v57 = vpop.eup %3325  ;;  %v1602_v12 = vmul.f32 %v3324_v46, %v3836_v32 }
 0x28e   : > { %v3328_v3 = vpop.eup %3327  ;;  %v1616_v44 = vmul.f32 %v3326_v57, %v3829_v23 }
 0x28f   : > { %v3330_v16 = vpop.eup %3329  ;;  %v1645_v11 = vpack.c.bf16 %v1602_v12, %v1601_v37  ;;  %3019 = vmatpush3.bf16.msra.mxu0 %v3186_v48  ;;  %3045 = vmatpush3.bf16.msra.mxu1 %v3187_v6  ;;  %v1613_v7 = vmul.f32 %v3328_v3, %v3833_v28 }
 0x290   : > { %v3332_v31 = vpop.eup %3331  ;;  %3046 = vmatprep.subr.bf16.mxu1 %v3188_v29  ;;  %v1615_v60 = vmul.f32 %v3330_v16, %v3818_v59 }
 0x291   : > { %2972 = vmatprep.mubr.bf16.mxu0 %v1645_v11  ;;  %v1614_v17 = vmul.f32 %v3332_v31, %v3839_v38 }
 0x292   : > { %2973 = vmatmul.mubr.bf16.gmra.mrb[32].mxu0 %v1646_v47  ;;  %v1652_v5 = vpack.c.bf16 %v1616_v44, %v1615_v60 }
 0x293   : > { %v1502_v32 = vpop.xlane.xlu0 %1501  ;;  %v1651_v54 = vpack.c.bf16 %v1614_v17, %v1613_v7  ;;  %3047 = vmatpush3.bf16.msra.mxu1 %v3188_v29 }
 0x295   : > { %3000 = vmatprep.mubr.bf16.mxu1 %v1651_v54  ;;  %v1504_v25 = vpop.xlane.xlu1 %1503 }
 0x296   : > { %3001 = vmatmul.mubr.bf16.gmra.mrb[32].mxu1 %v1652_v5  ;;  %3333 = vrcp.f32 %v1504_v25 }
 0x297   : > { %v1526_v19 = vpop.xlane.xlu0 %1525 }
 0x299   : > { %v1528_v30 = vpop.xlane.xlu1 %1527 }
 0x29b   : > { %v1498_v23 = vpop.xlane.xlu0 %1497 }
 0x29c   : > { %3335 = vrcp.f32 %v1498_v23 }
 0x29d   : > { %3337 = vrcp.f32 %v1502_v32  ;;  %v1500_v34 = vpop.xlane.xlu1 %1499 }
 0x29e   : > { %3339 = vrcp.f32 %v1500_v34  ;;  %v4136_v34 = vld [vmem:[#allocation3_spill] sm:$0xff] }
 0x29f   : > { %3341 = vrcp.f32 %v1528_v30  ;;  %v1522_v28 = vpop.xlane.xlu0 %1521 }
 0x2a0   : > { %3343 = vrcp.f32 %v1522_v28  ;;  %v3334_v51 = vpop.eup %3333 }
 0x2a1   : > { %3345 = vrcp.f32 %v1526_v19  ;;  %v1524_v59 = vpop.xlane.xlu1 %1523  ;;  %v1620_v43 = vmul.f32 %v3334_v51, %v3856_v63 }
 0x2a2   : > { %3347 = vrcp.f32 %v1524_v59  ;;  %v4137_v59 = vld [vmem:[#allocation4_spill] sm:$0xff] }
 0x2a3   : > { %v1510_v38 = vpop.xlane.xlu0 %1509 }
 0x2a5   : > { %v1512_v0 = vpop.xlane.xlu1 %1511 }
 0x2a6   : > { %v3336_v27 = vpop.eup %3335  ;;  %3349 = vrcp.f32 %v1512_v0 }
 0x2a7   : > { %v3338_v36 = vpop.eup %3337  ;;  %v1534_v40 = vpop.xlane.xlu0 %1533  ;;  %v1617_v22 = vmul.f32 %v3336_v27, %v3869_v9  ;;  %v4139_v27 = vld [vmem:[#allocation2_spill] sm:$0xff] }
 0x2a8   : > { %v3340_v24 = vpop.eup %3339  ;;  %v1619_v45 = vmul.f32 %v3338_v36, %v3849_v39 }
 0x2a9   : > { %v3342_v42 = vpop.eup %3341  ;;  %v1536_v4 = vpop.xlane.xlu1 %1535  ;;  %v1618_v35 = vmul.f32 %v3340_v24, %v3873_v15 }
 0x2aa   : > { %v3344_v2 = vpop.eup %3343  ;;  %v1632_v6 = vmul.f32 %v3342_v42, %v3865_v20  ;;  %v1654_v18 = vpack.c.bf16 %v1620_v43, %v1619_v45  ;;  %v4140_v42 = vld [vmem:[#allocation6_spill] sm:$0xff] }
 0x2ab   : > { %v3346_v26 = vpop.eup %3345  ;;  %v1506_v50 = vpop.xlane.xlu0 %1505  ;;  %v1653_v61 = vpack.c.bf16 %v1618_v35, %v1617_v22  ;;  %v1629_v10 = vmul.f32 %v3344_v2, %v3877_v14  ;;  %v4141_v22 = vld [vmem:[#allocation7_spill] sm:$0xff] }
 0x2ac   : > { %v3348_v48 = vpop.eup %3347  ;;  %3351 = vrcp.f32 %v1506_v50  ;;  %v1631_v15 = vmul.f32 %v3346_v26, %v3861_v33  ;;  %v4142_v50 = vld [vmem:[#allocation8_spill] sm:$0xff] }
 0x2ad   : > { %3353 = vrcp.f32 %v1510_v38  ;;  %3020 = vmatprep.mubr.bf16.mxu0 %v1653_v61  ;;  %v1508_v63 = vpop.xlane.xlu1 %1507  ;;  %v1630_v9 = vmul.f32 %v3348_v48, %v3884_v41  ;;  %v4138_v38 = vld [vmem:[#allocation5_spill] sm:$0xff] }
 0x2ae   : > { %3355 = vrcp.f32 %v1508_v63  ;;  %3021 = vmatmul.mubr.bf16.vlgmr.msra.gmra.mrb[36].mxu0 %v1654_v18  ;;  %v1660_v46 = vpack.c.bf16 %v1632_v6, %v1631_v15  ;;  %v4143_v48 = vld [vmem:[#allocation9_spill] sm:$0xff] }
 0x2af   : > { %3357 = vrcp.f32 %v1536_v4  ;;  %v1530_v39 = vpop.xlane.xlu0 %1529  ;;  %v1659_v55 = vpack.c.bf16 %v1630_v9, %v1629_v10 }
 0x2b0   : > { %3359 = vrcp.f32 %v1530_v39  ;;  %v3350_v21 = vpop.eup %3349 }
 0x2b1   : > { %3361 = vrcp.f32 %v1534_v40  ;;  %3048 = vmatprep.mubr.bf16.mxu1 %v1659_v55  ;;  %v1532_v20 = vpop.xlane.xlu1 %1531  ;;  %v1624_v33 = vmul.f32 %v3350_v21, %v3893_v52 }
 0x2b2   : > { %3363 = vrcp.f32 %v1532_v20  ;;  %3049 = vmatmul.mubr.bf16.vlgmr.msra.gmra.mrb[36].mxu1 %v1660_v46 }
 0x2b3   : > { %v1518_v14 = vpop.xlane.xlu0 %1517 }
 0x2b5   : > { %v1520_v41 = vpop.xlane.xlu1 %1519 }
 0x2b6   : > { %v3352_v29 = vpop.eup %3351  ;;  %3365 = vrcp.f32 %v1520_v41 }
 0x2b7   : > { %v3354_v57 = vpop.eup %3353  ;;  %v1621_v3 = vmul.f32 %v3352_v29, %v3904_v8 }
 0x2b8   : > { %v3356_v37 = vpop.eup %3355  ;;  %v1623_v11 = vmul.f32 %v3354_v57, %v3889_v49 }
 0x2b9   : > { %v3358_v12 = vpop.eup %3357  ;;  %v1622_v13 = vmul.f32 %v3356_v37, %v3907_v62 }
 0x2ba   : > { %v3360_v16 = vpop.eup %3359  ;;  %v1656_v17 = vpack.c.bf16 %v1624_v33, %v1623_v11  ;;  %v1636_v60 = vmul.f32 %v3358_v12, %v3901_v58 }
 0x2bb   : > { %v3362_v31 = vpop.eup %3361  ;;  %v1514_v47 = vpop.xlane.xlu0 %1513  ;;  %v1655_v44 = vpack.c.bf16 %v1622_v13, %v1621_v3  ;;  %v1633_v32 = vmul.f32 %v3360_v16, %v3911_v53 }
 0x2bc   : > { %v3364_v7 = vpop.eup %3363  ;;  %3367 = vrcp.f32 %v1514_v47  ;;  %v1635_v49 = vmul.f32 %v3362_v31, %v3897_v1 }
 0x2bd   : > { %3369 = vrcp.f32 %v1518_v14  ;;  %3024 = vmatprep.mubr.bf16.mxu0 %v1655_v44  ;;  %v1516_v52 = vpop.xlane.xlu1 %1515  ;;  %v1634_v8 = vmul.f32 %v3364_v7, %v3915_v56 }
 0x2be   : > { %3371 = vrcp.f32 %v1516_v52  ;;  %3025 = vmatmul.mubr.bf16.gmra.mrb[40].mxu0 %v1656_v17  ;;  %v1662_v5 = vpack.c.bf16 %v1636_v60, %v1635_v49 }
 0x2bf   : > { %v1538_v62 = vpop.xlane.xlu0 %1537  ;;  %v1661_v54 = vpack.c.bf16 %v1634_v8, %v1633_v32 }
 0x2c0   : > { %3373 = vrcp.f32 %v1538_v62  ;;  %v3366_v19 = vpop.eup %3365 }
 0x2c1   : > { %3052 = vmatprep.mubr.bf16.mxu1 %v1661_v54  ;;  %v1540_v25 = vpop.xlane.xlu1 %1539  ;;  %v1628_v28 = vmul.f32 %v3366_v19, %v4136_v34 }
 0x2c2   : > { %3375 = vrcp.f32 %v1540_v25  ;;  %3053 = vmatmul.mubr.bf16.gmra.mrb[40].mxu1 %v1662_v5 }
 0x2c3   : > { %v1542_v58 = vpop.xlane.xlu0 %1541 }
 0x2c4   : > { %3377 = vrcp.f32 %v1542_v58 }
 0x2c5   : > { %v1544_v30 = vpop.xlane.xlu1 %1543 }
 0x2c6   : > { %v3368_v23 = vpop.eup %3367  ;;  %3379 = vrcp.f32 %v1544_v30 }
 0x2c7   : > { %v3370_v53 = vpop.eup %3369  ;;  %v1625_v1 = vmul.f32 %v3368_v23, %v4137_v59 }
 0x2c8   : > { %v3372_v56 = vpop.eup %3371  ;;  %v1627_v36 = vmul.f32 %v3370_v53, %v4139_v27 }
 0x2c9   : > { %v1626_v51 = vmul.f32 %v3372_v56, %v4138_v38 }
 0x2ca   : > { %v3374_v0 = vpop.eup %3373  ;;  %v1658_v43 = vpack.c.bf16 %v1628_v28, %v1627_v36 }
 0x2cb   : > { %v1657_v40 = vpack.c.bf16 %v1626_v51, %v1625_v1  ;;  %v1637_v4 = vmul.f32 %v3374_v0, %v4140_v42 }
 0x2cc   : > { %v3376_v24 = vpop.eup %3375 }
 0x2cd   : > { %3028 = vmatprep.mubr.bf16.mxu0 %v1657_v40  ;;  %v1638_v35 = vmul.f32 %v3376_v24, %v4141_v22 }
 0x2ce   : > { %v3378_v2 = vpop.eup %3377  ;;  %3029 = vmatmul.mubr.bf16.gmra.mrb[44].mxu0 %v1658_v43 }
 0x2cf   : > { %v1663_v45 = vpack.c.bf16 %v1638_v35, %v1637_v4  ;;  %v1639_v61 = vmul.f32 %v3378_v2, %v4142_v50 }
 0x2d0   : > { %v3380_v26 = vpop.eup %3379 }
 0x2d1   : > { %3056 = vmatprep.mubr.bf16.mxu1 %v1663_v45  ;;  %v1640_v6 = vmul.f32 %v3380_v26, %v4143_v48 }
 0x2d3   : > { %v1664_v18 = vpack.c.bf16 %v1640_v6, %v1639_v61 }
 0x2d5   : > { %3057 = vmatmul.mubr.bf16.gmra.mrb[44].mxu1 %v1664_v18 }
 0x345   : > { %v2966_v63 = vpop.f32.mrb[24].mxu0 }
 0x346   : > { %v2678_v10 = vpack.c.bf16 %v2966_v63, %v2966_v63  ;;  %v1747_v9 = vpop.f32.mrb[25].mxu0 }
 0x347   : > { %v2676_v15 = vpack.c.bf16 %v1747_v9, %v1747_v9  ;;  %v2967_v39 = vpop.f32.mrb[26].mxu0 }
 0x348   : > { %2376 = vst.msk [vmem:[%s4015_s27 + $0x8] sm:$0xf] %vm2373_vm1, %v2678_v10  ;;  %v2679_v55 = vpack.c.bf16 %v2967_v39, %v2967_v39  ;;  %v1750_v46 = vpop.f32.mrb[27].mxu0 }
 0x349   : > { %2374 = vst.msk [vmem:[%s4015_s27] sm:$0xf] %vm2373_vm1, %v2676_v15  ;;  %v2677_v20 = vpack.c.bf16 %v1750_v46, %v1750_v46  ;;  %v2994_v21 = vpop.f32.mrb[24].mxu1 }
 0x34a   : > { %2377 = vst.msk [vmem:[%s4015_s27 + $0xc] sm:$0xf] %vm2373_vm1, %v2679_v55  ;;  %v2690_v29 = vpack.c.bf16 %v2994_v21, %v2994_v21  ;;  %v1876_v57 = vpop.f32.mrb[25].mxu1 }
 0x34b   : > { %2375 = vst.msk [vmem:[%s4015_s27 + $0x4] sm:$0xf] %vm2373_vm1, %v2677_v20  ;;  %v2688_v14 = vpack.c.bf16 %v1876_v57, %v1876_v57  ;;  %v2995_v37 = vpop.f32.mrb[26].mxu1 }
 0x34c   : > { %2388 = vst.msk [vmem:[%s4015_s27 + $0x38] sm:$0xf] %vm2373_vm1, %v2690_v29  ;;  %v2691_v41 = vpack.c.bf16 %v2995_v37, %v2995_v37  ;;  %v1879_v33 = vpop.f32.mrb[27].mxu1 }
 0x34d   : > { %2386 = vst.msk [vmem:[%s4015_s27 + $0x30] sm:$0xf] %vm2373_vm1, %v2688_v14  ;;  %v2689_v12 = vpack.c.bf16 %v1879_v33, %v1879_v33 }
 0x34e   : > { %2389 = vst.msk [vmem:[%s4015_s27 + $0x3c] sm:$0xf] %vm2373_vm1, %v2691_v41 }
 0x34f   : > { %2387 = vst.msk [vmem:[%s4015_s27 + $0x34] sm:$0xf] %vm2373_vm1, %v2689_v12 }
 0x355   : > { %v2970_v3 = vpop.f32.mrb[28].mxu0 }
 0x356   : > { %v2682_v13 = vpack.c.bf16 %v2970_v3, %v2970_v3  ;;  %v1763_v16 = vpop.f32.mrb[29].mxu0 }
 0x357   : > { %v2680_v11 = vpack.c.bf16 %v1763_v16, %v1763_v16  ;;  %v2971_v31 = vpop.f32.mrb[30].mxu0 }
 0x358   : > { %2380 = vst.msk [vmem:[%s4015_s27 + $0x18] sm:$0xf] %vm2373_vm1, %v2682_v13  ;;  %v2683_v47 = vpack.c.bf16 %v2971_v31, %v2971_v31  ;;  %v1766_v44 = vpop.f32.mrb[31].mxu0 }
 0x359   : > { %2378 = vst.msk [vmem:[%s4015_s27 + $0x10] sm:$0xf] %vm2373_vm1, %v2680_v11  ;;  %v2681_v7 = vpack.c.bf16 %v1766_v44, %v1766_v44  ;;  %v2998_v17 = vpop.f32.mrb[28].mxu1 }
 0x35a   : > { %2381 = vst.msk [vmem:[%s4015_s27 + $0x1c] sm:$0xf] %vm2373_vm1, %v2683_v47  ;;  %v2694_v60 = vpack.c.bf16 %v2998_v17, %v2998_v17  ;;  %v1892_v52 = vpop.f32.mrb[29].mxu1 }
 0x35b   : > { %2379 = vst.msk [vmem:[%s4015_s27 + $0x14] sm:$0xf] %vm2373_vm1, %v2681_v7  ;;  %v2692_v32 = vpack.c.bf16 %v1892_v52, %v1892_v52  ;;  %v2999_v8 = vpop.f32.mrb[30].mxu1 }
 0x35c   : > { %2392 = vst.msk [vmem:[%s4015_s27 + $0x48] sm:$0xf] %vm2373_vm1, %v2694_v60  ;;  %v2695_v49 = vpack.c.bf16 %v2999_v8, %v2999_v8  ;;  %v1895_v62 = vpop.f32.mrb[31].mxu1 }
 0x35d   : > { %2390 = vst.msk [vmem:[%s4015_s27 + $0x40] sm:$0xf] %vm2373_vm1, %v2692_v32  ;;  %v2693_v54 = vpack.c.bf16 %v1895_v62, %v1895_v62 }
 0x35e   : > { %2393 = vst.msk [vmem:[%s4015_s27 + $0x4c] sm:$0xf] %vm2373_vm1, %v2695_v49 }
 0x35f   : > { %2391 = vst.msk [vmem:[%s4015_s27 + $0x44] sm:$0xf] %vm2373_vm1, %v2693_v54 }
 0x365   : > { %v2974_v5 = vpop.f32.mrb[32].mxu0 }
 0x366   : > { %v2686_v25 = vpack.c.bf16 %v2974_v5, %v2974_v5  ;;  %v1779_v58 = vpop.f32.mrb[33].mxu0 }
 0x367   : > { %v2684_v19 = vpack.c.bf16 %v1779_v58, %v1779_v58  ;;  %v2975_v30 = vpop.f32.mrb[34].mxu0 }
 0x368   : > { %2384 = vst.msk [vmem:[%s4015_s27 + $0x28] sm:$0xf] %vm2373_vm1, %v2686_v25  ;;  %v2687_v23 = vpack.c.bf16 %v2975_v30, %v2975_v30  ;;  %v1782_v53 = vpop.f32.mrb[35].mxu0 }
 0x369   : > { %2382 = vst.msk [vmem:[%s4015_s27 + $0x20] sm:$0xf] %vm2373_vm1, %v2684_v19  ;;  %v2685_v56 = vpack.c.bf16 %v1782_v53, %v1782_v53  ;;  %v3002_v34 = vpop.f32.mrb[32].mxu1 }
 0x36a   : > { %2385 = vst.msk [vmem:[%s4015_s27 + $0x2c] sm:$0xf] %vm2373_vm1, %v2687_v23  ;;  %v2698_v28 = vpack.c.bf16 %v3002_v34, %v3002_v34  ;;  %v1908_v59 = vpop.f32.mrb[33].mxu1 }
 0x36b   : > { %2383 = vst.msk [vmem:[%s4015_s27 + $0x24] sm:$0xf] %vm2373_vm1, %v2685_v56  ;;  %v2696_v1 = vpack.c.bf16 %v1908_v59, %v1908_v59  ;;  %v3003_v38 = vpop.f32.mrb[34].mxu1 }
 0x36c   : > { %2396 = vst.msk [vmem:[%s4015_s27 + $0x58] sm:$0xf] %vm2373_vm1, %v2698_v28  ;;  %v2699_v51 = vpack.c.bf16 %v3003_v38, %v3003_v38  ;;  %v1911_v0 = vpop.f32.mrb[35].mxu1 }
 0x36d   : > { %2394 = vst.msk [vmem:[%s4015_s27 + $0x50] sm:$0xf] %vm2373_vm1, %v2696_v1  ;;  %v2697_v27 = vpack.c.bf16 %v1911_v0, %v1911_v0 }
 0x36e   : > { %2397 = vst.msk [vmem:[%s4015_s27 + $0x5c] sm:$0xf] %vm2373_vm1, %v2699_v51 }
 0x36f   : > { %2395 = vst.msk [vmem:[%s4015_s27 + $0x54] sm:$0xf] %vm2373_vm1, %v2697_v27 }
 0x381   : > { %v3022_v36 = vpop.f32.mrb[36].mxu0 }
 0x382   : > { %v2702_v40 = vpack.c.bf16 %v3022_v36, %v3022_v36  ;;  %v2005_v24 = vpop.f32.mrb[37].mxu0 }
 0x383   : > { %v2700_v43 = vpack.c.bf16 %v2005_v24, %v2005_v24  ;;  %v3023_v42 = vpop.f32.mrb[38].mxu0 }
 0x384   : > { %2400 = vst.msk [vmem:[%s4015_s27 + $0x68] sm:$0xf] %vm2373_vm1, %v2702_v40  ;;  %v2703_v4 = vpack.c.bf16 %v3023_v42, %v3023_v42  ;;  %v2008_v22 = vpop.f32.mrb[39].mxu0 }
 0x385   : > { %2398 = vst.msk [vmem:[%s4015_s27 + $0x60] sm:$0xf] %vm2373_vm1, %v2700_v43  ;;  %v2701_v35 = vpack.c.bf16 %v2008_v22, %v2008_v22  ;;  %v3050_v2 = vpop.f32.mrb[36].mxu1 }
 0x386   : > { %2401 = vst.msk [vmem:[%s4015_s27 + $0x6c] sm:$0xf] %vm2373_vm1, %v2703_v4  ;;  %v2714_v45 = vpack.c.bf16 %v3050_v2, %v3050_v2  ;;  %v2134_v26 = vpop.f32.mrb[37].mxu1 }
 0x387   : > { %2399 = vst.msk [vmem:[%s4015_s27 + $0x64] sm:$0xf] %vm2373_vm1, %v2701_v35  ;;  %v2712_v50 = vpack.c.bf16 %v2134_v26, %v2134_v26  ;;  %v3051_v61 = vpop.f32.mrb[38].mxu1 }
 0x388   : > { %2412 = vst.msk [vmem:[%s4015_s27 + $0x98] sm:$0xf] %vm2373_vm1, %v2714_v45  ;;  %v2715_v48 = vpack.c.bf16 %v3051_v61, %v3051_v61  ;;  %v2137_v6 = vpop.f32.mrb[39].mxu1 }
 0x389   : > { %2410 = vst.msk [vmem:[%s4015_s27 + $0x90] sm:$0xf] %vm2373_vm1, %v2712_v50  ;;  %v2713_v18 = vpack.c.bf16 %v2137_v6, %v2137_v6 }
 0x38a   : > { %2413 = vst.msk [vmem:[%s4015_s27 + $0x9c] sm:$0xf] %vm2373_vm1, %v2715_v48 }
 0x38b   : > { %2411 = vst.msk [vmem:[%s4015_s27 + $0x94] sm:$0xf] %vm2373_vm1, %v2713_v18 }
 0x391   : > { %v3026_v63 = vpop.f32.mrb[40].mxu0 }
 0x392   : > { %v2706_v10 = vpack.c.bf16 %v3026_v63, %v3026_v63  ;;  %v2021_v9 = vpop.f32.mrb[41].mxu0 }
 0x393   : > { %v2704_v15 = vpack.c.bf16 %v2021_v9, %v2021_v9  ;;  %v3027_v39 = vpop.f32.mrb[42].mxu0 }
 0x394   : > { %2404 = vst.msk [vmem:[%s4015_s27 + $0x78] sm:$0xf] %vm2373_vm1, %v2706_v10  ;;  %v2707_v55 = vpack.c.bf16 %v3027_v39, %v3027_v39  ;;  %v2024_v46 = vpop.f32.mrb[43].mxu0 }
 0x395   : > { %2402 = vst.msk [vmem:[%s4015_s27 + $0x70] sm:$0xf] %vm2373_vm1, %v2704_v15  ;;  %v2705_v20 = vpack.c.bf16 %v2024_v46, %v2024_v46  ;;  %v3054_v21 = vpop.f32.mrb[40].mxu1 }
 0x396   : > { %2405 = vst.msk [vmem:[%s4015_s27 + $0x7c] sm:$0xf] %vm2373_vm1, %v2707_v55  ;;  %v2718_v29 = vpack.c.bf16 %v3054_v21, %v3054_v21  ;;  %v2150_v57 = vpop.f32.mrb[41].mxu1 }
 0x397   : > { %2403 = vst.msk [vmem:[%s4015_s27 + $0x74] sm:$0xf] %vm2373_vm1, %v2705_v20  ;;  %v2716_v14 = vpack.c.bf16 %v2150_v57, %v2150_v57  ;;  %v3055_v37 = vpop.f32.mrb[42].mxu1 }
 0x398   : > { %2416 = vst.msk [vmem:[%s4015_s27 + $0xa8] sm:$0xf] %vm2373_vm1, %v2718_v29  ;;  %v2719_v41 = vpack.c.bf16 %v3055_v37, %v3055_v37  ;;  %v2153_v33 = vpop.f32.mrb[43].mxu1 }
 0x399   : > { %2414 = vst.msk [vmem:[%s4015_s27 + $0xa0] sm:$0xf] %vm2373_vm1, %v2716_v14  ;;  %v2717_v12 = vpack.c.bf16 %v2153_v33, %v2153_v33 }
 0x39a   : > { %2417 = vst.msk [vmem:[%s4015_s27 + $0xac] sm:$0xf] %vm2373_vm1, %v2719_v41 }
 0x39b   : > { %2415 = vst.msk [vmem:[%s4015_s27 + $0xa4] sm:$0xf] %vm2373_vm1, %v2717_v12 }
 0x3a1   : > { %v3030_v3 = vpop.f32.mrb[44].mxu0 }
 0x3a2   : > { %v2710_v13 = vpack.c.bf16 %v3030_v3, %v3030_v3  ;;  %v2037_v16 = vpop.f32.mrb[45].mxu0 }
 0x3a3   : > { %v2708_v11 = vpack.c.bf16 %v2037_v16, %v2037_v16  ;;  %v3031_v31 = vpop.f32.mrb[46].mxu0 }
 0x3a4   : > { %2408 = vst.msk [vmem:[%s4015_s27 + $0x88] sm:$0xf] %vm2373_vm1, %v2710_v13  ;;  %v2711_v47 = vpack.c.bf16 %v3031_v31, %v3031_v31  ;;  %v2040_v44 = vpop.f32.mrb[47].mxu0 }
 0x3a5   : > { %2406 = vst.msk [vmem:[%s4015_s27 + $0x80] sm:$0xf] %vm2373_vm1, %v2708_v11  ;;  %v2709_v7 = vpack.c.bf16 %v2040_v44, %v2040_v44 }
 0x3a6   : > { %2409 = vst.msk [vmem:[%s4015_s27 + $0x8c] sm:$0xf] %vm2373_vm1, %v2711_v47 }
 0x3a7   : > { %2407 = vst.msk [vmem:[%s4015_s27 + $0x84] sm:$0xf] %vm2373_vm1, %v2709_v7 }
 0x3a8   : > { %v3058_v17 = vpop.f32.mrb[44].mxu1 }
 0x3a9   : > { %v2722_v60 = vpack.c.bf16 %v3058_v17, %v3058_v17  ;;  %v2166_v52 = vpop.f32.mrb[45].mxu1 }
 0x3aa   : > { %v2720_v32 = vpack.c.bf16 %v2166_v52, %v2166_v52  ;;  %v3059_v8 = vpop.f32.mrb[46].mxu1 }
 0x3ab   : > { %2420 = vst.msk [vmem:[%s4015_s27 + $0xb8] sm:$0xf] %vm2373_vm1, %v2722_v60  ;;  %v2723_v49 = vpack.c.bf16 %v3059_v8, %v3059_v8  ;;  %v2169_v62 = vpop.f32.mrb[47].mxu1 }
 0x3ac   : > { %2418 = vst.msk [vmem:[%s4015_s27 + $0xb0] sm:$0xf] %vm2373_vm1, %v2720_v32  ;;  %v2721_v54 = vpack.c.bf16 %v2169_v62, %v2169_v62 }
 0x3ad   : > { %2421 = vst.msk [vmem:[%s4015_s27 + $0xbc] sm:$0xf] %vm2373_vm1, %v2723_v49 }
 0x3ae   : > { %2419 = vst.msk [vmem:[%s4015_s27 + $0xb4] sm:$0xf] %vm2373_vm1, %v2721_v54 }
 0x3af PF: > { %s13_s12 = sadd.s32 1, %s3387_s12  }
 0x3b0   : > { %p10_p4 = scmp.ge.s32.totalorder %s13_s12, 4  }
 0x3b2   :  { %12 = sbr.rel (!%p10_p4) target bundleno = 1 (0x1), region = 68 }

</bundles_post_ra>
